<compile_context>
chip_gen: v7x
topology: tpu7x:2x2x1
jax: 0.10.0
libtpu: 0.0.40
codegen_flags: <defaults>
</compile_context>

<pallas_src>
import functools

import numpy as np

import jax
import jax.numpy as jnp
from jax.experimental import pallas as pl
from jax.experimental.pallas import tpu as pltpu

KW = 4          # conv kernel size of every Conv2d in the module
PADW = 2        # int(ceil((KW - 1) / 2))
LANES = 128     # channel padding target (lane-dense stores / MXU columns)
SLOPE = 0.2
BN_EPS = 1e-5


# ------------------------------- Pallas kernel --------------------------------

def _conv_kernel(x_ref, w_ref, b_ref, *rest, kh, kw, ws, oh, ow,
                 out_slope, emit_stats):
    """Direct conv on a row-flattened activation block (one batch element per grid step).

    x_ref : (1, total_rows, cs)  row-flattened padded activation, bf16
    w_ref : (kh, kw, cs, coutp)  tap weights, bf16 (coutp is a multiple of 128)
    b_ref : (1, coutp)           bias, f32
    [mask_ref : (oh*ws, 1)]      1.0 where the flattened column is a real output pixel
    y_ref : (1, oh*ws, coutp)    flattened output (columns >= ow are don't-care)
    [sum_ref, ssq_ref : (1, 1, coutp)]  per-batch BN statistics of the raw conv output
    """
    if emit_stats:
        mask_ref, y_ref, sum_ref, ssq_ref = rest
    else:
        (y_ref,) = rest

    rows = oh * ws
    coutp = w_ref.shape[-1]

    acc = jnp.zeros((rows, coutp), jnp.float32)
    for i in range(kh):
        for j in range(kw):
            off = i * ws + j
            slab = x_ref[0, off:off + rows, :]            # (rows, cs) bf16
            acc = acc + jnp.dot(slab, w_ref[i, j],
                                preferred_element_type=jnp.float32)
    acc = acc + b_ref[...]

    if emit_stats:
        valid = mask_ref[...]                             # (rows, 1) f32
        sum_ref[0] = jnp.sum(acc * valid, axis=0, keepdims=True)
        ssq_ref[0] = jnp.sum(acc * acc * valid, axis=0, keepdims=True)

    if out_slope is not None:                             # fused LeakyReLU epilogue
        acc = jnp.where(acc > 0, acc, out_slope * acc)

    y_ref[0] = acc.astype(y_ref.dtype)


# --------------------------- layout / wrapper glue ----------------------------

def _layout_input(x, stride):
    """Spatially pad (+ space-to-depth for stride 2) and row-flatten an NHWC activation."""
    n, h, w, c = x.shape
    oh = (h + 2 * PADW - KW) // stride + 1
    ow = (w + 2 * PADW - KW) // stride + 1
    if stride == 2:
        hp, wp = h + 2 * PADW, w + 2 * PADW
        hpe, wpe = hp + hp % 2, wp + wp % 2               # even extents for 2x2 blocking
        xp = jnp.pad(x, ((0, 0), (PADW, hpe - h - PADW), (PADW, wpe - w - PADW), (0, 0)))
        hs, ws, cs = hpe // 2, wpe // 2, 4 * c
        xk = xp.reshape(n, hs, 2, ws, 2, c).transpose(0, 1, 3, 2, 4, 5)
        xk = xk.reshape(n, hs, ws, cs)
        kh = kw = 2
    else:
        xp = jnp.pad(x, ((0, 0), (PADW, PADW), (PADW, PADW), (0, 0)))
        hs, ws, cs = h + 2 * PADW, w + 2 * PADW, c
        xk = xp
        kh = kw = KW
    xf = xk.reshape(n, hs * ws, cs)
    # the flattened per-tap slabs may read up to (kw - 1) elements past the last row
    need = (kh - 1) * ws + (kw - 1) + oh * ws
    if need > hs * ws:
        xf = jnp.pad(xf, ((0, 0), (0, need - hs * ws), (0, 0)))
    return xf, (ws, oh, ow, kh, kw)


def fused_conv(x, layer, *, stride, out_slope=None, emit_stats=False,
               out_dtype=jnp.bfloat16):
    """One Conv2d(k=4, pad=2) as a single Pallas call, grid over batch."""
    n = x.shape[0]
    xf, (ws, oh, ow, kh, kw) = _layout_input(x.astype(jnp.bfloat16), stride)
    total = xf.shape[1]
    w, b = layer["w"], layer["b"]
    cs, coutp = w.shape[2], w.shape[3]
    assert cs == xf.shape[-1]
    rows = oh * ws

    inputs = [xf, w, b]
    in_specs = [
        pl.BlockSpec((1, total, cs), lambda i: (i, 0, 0)),
        pl.BlockSpec((kh, kw, cs, coutp), lambda i: (0, 0, 0, 0)),
        pl.BlockSpec((1, coutp), lambda i: (0, 0)),
    ]
    out_shape = [jax.ShapeDtypeStruct((n, rows, coutp), out_dtype)]
    out_specs = [pl.BlockSpec((1, rows, coutp), lambda i: (i, 0, 0))]
    if emit_stats:
        mask = jnp.asarray(((np.arange(rows) % ws) < ow)
                           .astype(np.float32).reshape(rows, 1))
        inputs.append(mask)
        in_specs.append(pl.BlockSpec((rows, 1), lambda i: (0, 0)))
        out_shape += [jax.ShapeDtypeStruct((n, 1, coutp), jnp.float32)] * 2
        out_specs += [pl.BlockSpec((1, 1, coutp), lambda i: (i, 0, 0))] * 2

    kernel = functools.partial(_conv_kernel, kh=kh, kw=kw, ws=ws, oh=oh, ow=ow,
                               out_slope=out_slope, emit_stats=emit_stats)
    outs = pl.pallas_call(
        kernel,
        grid=(n,),
        in_specs=in_specs,
        out_shape=out_shape,
        out_specs=out_specs,
        compiler_params=pltpu.CompilerParams(
            dimension_semantics=("parallel",)),           # megacore split on v7x
    )(*inputs)

    y = outs[0].reshape(n, oh, ws, coutp)[:, :, :ow, :]   # drop wrap-around columns
    if emit_stats:
        return y, outs[1], outs[2]
    return y


def bn_leaky(y, s, q, gamma, beta, *, count, slope=SLOPE, eps=BN_EPS):
    """Training-mode BatchNorm2d (batch stats) + LeakyReLU.

    The statistics come from the conv kernel, so y is read exactly once here and the
    affine+activation is fused by XLA with the next layer's padding / space-to-depth.
    Elementwise math is kept in f32 (v5e-friendly); storage stays bf16."""
    mean = jnp.sum(s, axis=(0, 1)) / count
    var = jnp.maximum(jnp.sum(q, axis=(0, 1)) / count - mean * mean, 0.0)
    scale = gamma * jax.lax.rsqrt(var + eps)
    shift = beta - mean * scale
    z = y.astype(jnp.float32) * scale + shift
    return jnp.where(z > 0, z, slope * z).astype(jnp.bfloat16)


# ------------------------------ forward pass ----------------------------------

def forward(params, x_nchw, use_sigmoid=False, logit_nc=1):
    # scale_factor == 1 -> no gauss_filter branch.
    x = jnp.transpose(x_nchw, (0, 2, 3, 1))                        # NCHW -> NHWC
    n = x.shape[0]

    # stage 0: netA.conv0 | netB.conv0 (block-diagonal), stride 2, fused LeakyReLU
    y0 = fused_conv(x, params["c0"], stride=2, out_slope=SLOPE)
    # stage 1: netA.conv1 | netB.conv1 (block-diagonal), stride 2, BN stats fused
    y1, s1, q1 = fused_conv(y0, params["c1"], stride=2, emit_stats=True)
    a1 = bn_leaky(y1, s1, q1, params["c1"]["gamma"], params["c1"]["beta"],
                  count=n * y1.shape[1] * y1.shape[2])
    # a1 == concat([netA(x_A), netB(x_B)], channel), channel-padded to 128 lanes.

    # model
    y2, s2, q2 = fused_conv(a1, params["m0"], stride=2, emit_stats=True)
    a2 = bn_leaky(y2, s2, q2, params["m0"]["gamma"], params["m0"]["beta"],
                  count=n * y2.shape[1] * y2.shape[2])
    y3, s3, q3 = fused_conv(a2, params["m1"], stride=1, emit_stats=True)
    a3 = bn_leaky(y3, s3, q3, params["m1"]["gamma"], params["m1"]["beta"],
                  count=n * y3.shape[1] * y3.shape[2])
    y4 = fused_conv(a3, params["m2"], stride=1, out_dtype=jnp.float32)

    logits = y4[..., :logit_nc]
    if use_sigmoid:
        logits = jax.nn.sigmoid(logits)
    return jnp.transpose(logits, (0, 3, 1, 2))                     # NHWC -> NCHW


# --------------------------- parameter init / prep ----------------------------

def _conv_init(key, cin, cout):
    kw_, kb_ = jax.random.split(key)
    return {"w": 0.02 * jax.random.normal(kw_, (KW, KW, cin, cout), jnp.float32),
            "b": 0.01 * jax.random.normal(kb_, (cout,), jnp.float32)}


def _bn_init(key, c):
    kg, kb = jax.random.split(key)
    return {"gamma": 1.0 + 0.02 * jax.random.normal(kg, (c,), jnp.float32),
            "beta": 0.01 * jax.random.normal(kb, (c,), jnp.float32)}


def init_raw_params(key, ndf=16, num_classes=2):
    """Raw parameters mirroring the PyTorch module (n_layers=3, n_sep=2)."""
    logit_nc = 1 if num_classes == 2 else num_classes
    k = jax.random.split(key, 11)
    return {
        "A_conv0": _conv_init(k[0], 2, ndf),
        "A_conv1": _conv_init(k[1], ndf, 2 * ndf),
        "A_bn1":   _bn_init(k[2], 2 * ndf),
        "B_conv0": _conv_init(k[3], 1, ndf),
        "B_conv1": _conv_init(k[4], ndf, 2 * ndf),
        "B_bn1":   _bn_init(k[5], 2 * ndf),
        "M_conv0": _conv_init(k[6], 4 * ndf, 4 * ndf),
        "M_bn0":   _bn_init(k[7], 4 * ndf),
        "M_conv1": _conv_init(k[8], 4 * ndf, 8 * ndf),
        "M_bn1":   _bn_init(k[9], 8 * ndf),
        "M_conv2": _conv_init(k[10], 8 * ndf, logit_nc),
    }


def _ceil_to(c, m=LANES):
    return ((c + m - 1) // m) * m


def _pad_vec(v, cp):
    return jnp.pad(v, (0, cp - v.shape[0]))


def _block_diag(wa, wb):
    kh, kw_, ca, oa = wa.shape
    _, _, cb, ob = wb.shape
    w = jnp.zeros((kh, kw_, ca + cb, oa + ob), jnp.float32)
    w = w.at[:, :, :ca, :oa].set(wa)
    w = w.at[:, :, ca:, oa:].set(wb)
    return w


def _make_layer(w, b, *, stride, cin_pad, cout_pad):
    """Zero-pad channels to lane-dense widths and (for stride 2) fold the 4x4/stride-2
    kernel into an equivalent 2x2/stride-1 kernel over space-to-depth'd input."""
    kh, kw_, cin, cout = w.shape
    wp = jnp.zeros((kh, kw_, cin_pad, cout_pad), jnp.float32)
    wp = wp.at[:, :, :cin, :cout].set(w)
    bp = jnp.zeros((cout_pad,), jnp.float32).at[:cout].set(b)
    if stride == 2:
        wp = wp.reshape(2, 2, 2, 2, cin_pad, cout_pad)    # (i, pr, j, pc, cin, cout)
        wp = wp.transpose(0, 2, 1, 3, 4, 5)               # (i, j, pr, pc, cin, cout)
        wp = wp.reshape(2, 2, 4 * cin_pad, cout_pad)
    return {"w": wp.astype(jnp.bfloat16), "b": bp.reshape(1, cout_pad)}


def prepare_params(raw, ndf=16):
    """Fuse netA/netB into block-diagonal layers, pad channels to 128, pre-layout weights."""
    p = {}
    c0w = _block_diag(raw["A_conv0"]["w"], raw["B_conv0"]["w"])            # (4,4,3,2ndf)
    c0b = jnp.concatenate([raw["A_conv0"]["b"], raw["B_conv0"]["b"]])
    p["c0"] = _make_layer(c0w, c0b, stride=2, cin_pad=3, cout_pad=_ceil_to(2 * ndf))

    c1w = _block_diag(raw["A_conv1"]["w"], raw["B_conv1"]["w"])            # (4,4,2ndf,4ndf)
    c1b = jnp.concatenate([raw["A_conv1"]["b"], raw["B_conv1"]["b"]])
    p["c1"] = _make_layer(c1w, c1b, stride=2,
                          cin_pad=_ceil_to(2 * ndf), cout_pad=_ceil_to(4 * ndf))
    p["c1"]["gamma"] = _pad_vec(
        jnp.concatenate([raw["A_bn1"]["gamma"], raw["B_bn1"]["gamma"]]), _ceil_to(4 * ndf))
    p["c1"]["beta"] = _pad_vec(
        jnp.concatenate([raw["A_bn1"]["beta"], raw["B_bn1"]["beta"]]), _ceil_to(4 * ndf))

    p["m0"] = _make_layer(raw["M_conv0"]["w"], raw["M_conv0"]["b"], stride=2,
                          cin_pad=_ceil_to(4 * ndf), cout_pad=_ceil_to(4 * ndf))
    p["m0"]["gamma"] = _pad_vec(raw["M_bn0"]["gamma"], _ceil_to(4 * ndf))
    p["m0"]["beta"] = _pad_vec(raw["M_bn0"]["beta"], _ceil_to(4 * ndf))

    p["m1"] = _make_layer(raw["M_conv1"]["w"], raw["M_conv1"]["b"], stride=1,
                          cin_pad=_ceil_to(4 * ndf), cout_pad=_ceil_to(8 * ndf))
    p["m1"]["gamma"] = _pad_vec(raw["M_bn1"]["gamma"], _ceil_to(8 * ndf))
    p["m1"]["beta"] = _pad_vec(raw["M_bn1"]["beta"], _ceil_to(8 * ndf))

    p["m2"] = _make_layer(raw["M_conv2"]["w"], raw["M_conv2"]["b"], stride=1,
                          cin_pad=_ceil_to(8 * ndf),
                          cout_pad=_ceil_to(raw["M_conv2"]["w"].shape[-1]))
    return p


# ----------------------------------- main --------------------------------------

if __name__ == "__main__":
    key = jax.random.PRNGKey(0)
    kx, kp = jax.random.split(key)

    N, C, H, W = 2, 3, 16, 16        # module asserts input_nc == 3
    NDF = 16                         # small ndf for a small synthetic run
    x = jax.random.normal(kx, (N, C, H, W), jnp.float32)

    raw = init_raw_params(kp, ndf=NDF, num_classes=2)
    params = prepare_params(raw, ndf=NDF)

    fwd = jax.jit(functools.partial(forward, use_sigmoid=False, logit_nc=1))
    out = jax.block_until_ready(fwd(params, x))

    assert out.shape == (2, 1, 5, 5), out.shape
    assert bool(jnp.all(jnp.isfinite(out)))
    print("KERNEL_OK")
</pallas_src>

<mosaic_0001>
module attributes {stable_mosaic.version = 11 : i64} {
  func.func @_conv_kernel(%arg0: i32, %arg1: memref<1x101x12xbf16, #tpu.memory_space<vmem>>, %arg2: memref<2x2x12x128xbf16, #tpu.memory_space<vmem>>, %arg3: memref<1x128xf32, #tpu.memory_space<vmem>>, %arg4: memref<1x90x128xbf16, #tpu.memory_space<vmem>>) attributes {dimension_semantics = [#tpu.dimension_semantics<parallel>], iteration_bounds = array<i64: 2>, scalar_prefetch = 0 : i64, scratch_operands = 0 : i64, tpu.core_type = #tpu.core_type<tc>, window_params = [{transform_indices = @transform_0, window_bounds = array<i64: 1, 101, 12>}, {pipeline_mode = #tpu.pipeline_mode<synchronous>, transform_indices = @transform_1, window_bounds = array<i64: 2, 2, 12, 128>}, {pipeline_mode = #tpu.pipeline_mode<synchronous>, transform_indices = @transform_2, window_bounds = array<i64: 1, 128>}, {transform_indices = @transform_3, window_bounds = array<i64: 1, 90, 128>}]} {
    %cst = arith.constant 0.000000e+00 : f32
    %0 = vector.broadcast %cst : f32 to vector<90x128xf32>
    %c0 = arith.constant 0 : index
    %c0_0 = arith.constant 0 : index
    %c0_1 = arith.constant 0 : index
    %1 = vector.load %arg1[%c0, %c0_0, %c0_1] : memref<1x101x12xbf16, #tpu.memory_space<vmem>>, vector<1x90x12xbf16>
    %2 = vector.shape_cast %1 : vector<1x90x12xbf16> to vector<90x12xbf16>
    %c0_2 = arith.constant 0 : index
    %c0_3 = arith.constant 0 : index
    %c0_4 = arith.constant 0 : index
    %c0_5 = arith.constant 0 : index
    %3 = vector.load %arg2[%c0_2, %c0_3, %c0_4, %c0_5] : memref<2x2x12x128xbf16, #tpu.memory_space<vmem>>, vector<1x1x12x128xbf16>
    %4 = vector.shape_cast %3 : vector<1x1x12x128xbf16> to vector<12x128xbf16>
    %cst_6 = arith.constant dense<0.000000e+00> : vector<90x128xf32>
    %5 = tpu.matmul %2, %4, %cst_6 {dimension_numbers = #tpu.dot_dimension_numbers<[1], [0], [0], [1], [0, 0, 1, 1], [], []>} : vector<90x12xbf16>, vector<12x128xbf16>, vector<90x128xf32> -> vector<90x128xf32>
    %6 = arith.addf %0, %5 : vector<90x128xf32>
    %c0_7 = arith.constant 0 : index
    %c1 = arith.constant 1 : index
    %c0_8 = arith.constant 0 : index
    %7 = vector.load %arg1[%c0_7, %c1, %c0_8] : memref<1x101x12xbf16, #tpu.memory_space<vmem>>, vector<1x90x12xbf16>
    %8 = vector.shape_cast %7 : vector<1x90x12xbf16> to vector<90x12xbf16>
    %c0_9 = arith.constant 0 : index
    %c1_10 = arith.constant 1 : index
    %c0_11 = arith.constant 0 : index
    %c0_12 = arith.constant 0 : index
    %9 = vector.load %arg2[%c0_9, %c1_10, %c0_11, %c0_12] : memref<2x2x12x128xbf16, #tpu.memory_space<vmem>>, vector<1x1x12x128xbf16>
    %10 = vector.shape_cast %9 : vector<1x1x12x128xbf16> to vector<12x128xbf16>
    %cst_13 = arith.constant dense<0.000000e+00> : vector<90x128xf32>
    %11 = tpu.matmul %8, %10, %cst_13 {dimension_numbers = #tpu.dot_dimension_numbers<[1], [0], [0], [1], [0, 0, 1, 1], [], []>} : vector<90x12xbf16>, vector<12x128xbf16>, vector<90x128xf32> -> vector<90x128xf32>
    %12 = arith.addf %6, %11 : vector<90x128xf32>
    %c0_14 = arith.constant 0 : index
    %c10 = arith.constant 10 : index
    %c0_15 = arith.constant 0 : index
    %13 = vector.load %arg1[%c0_14, %c10, %c0_15] : memref<1x101x12xbf16, #tpu.memory_space<vmem>>, vector<1x90x12xbf16>
    %14 = vector.shape_cast %13 : vector<1x90x12xbf16> to vector<90x12xbf16>
    %c1_16 = arith.constant 1 : index
    %c0_17 = arith.constant 0 : index
    %c0_18 = arith.constant 0 : index
    %c0_19 = arith.constant 0 : index
    %15 = vector.load %arg2[%c1_16, %c0_17, %c0_18, %c0_19] : memref<2x2x12x128xbf16, #tpu.memory_space<vmem>>, vector<1x1x12x128xbf16>
    %16 = vector.shape_cast %15 : vector<1x1x12x128xbf16> to vector<12x128xbf16>
    %cst_20 = arith.constant dense<0.000000e+00> : vector<90x128xf32>
    %17 = tpu.matmul %14, %16, %cst_20 {dimension_numbers = #tpu.dot_dimension_numbers<[1], [0], [0], [1], [0, 0, 1, 1], [], []>} : vector<90x12xbf16>, vector<12x128xbf16>, vector<90x128xf32> -> vector<90x128xf32>
    %18 = arith.addf %12, %17 : vector<90x128xf32>
    %c0_21 = arith.constant 0 : index
    %c11 = arith.constant 11 : index
    %c0_22 = arith.constant 0 : index
    %19 = vector.load %arg1[%c0_21, %c11, %c0_22] : memref<1x101x12xbf16, #tpu.memory_space<vmem>>, vector<1x90x12xbf16>
    %20 = vector.shape_cast %19 : vector<1x90x12xbf16> to vector<90x12xbf16>
    %c1_23 = arith.constant 1 : index
    %c1_24 = arith.constant 1 : index
    %c0_25 = arith.constant 0 : index
    %c0_26 = arith.constant 0 : index
    %21 = vector.load %arg2[%c1_23, %c1_24, %c0_25, %c0_26] : memref<2x2x12x128xbf16, #tpu.memory_space<vmem>>, vector<1x1x12x128xbf16>
    %22 = vector.shape_cast %21 : vector<1x1x12x128xbf16> to vector<12x128xbf16>
    %cst_27 = arith.constant dense<0.000000e+00> : vector<90x128xf32>
    %23 = tpu.matmul %20, %22, %cst_27 {dimension_numbers = #tpu.dot_dimension_numbers<[1], [0], [0], [1], [0, 0, 1, 1], [], []>} : vector<90x12xbf16>, vector<12x128xbf16>, vector<90x128xf32> -> vector<90x128xf32>
    %24 = arith.addf %18, %23 : vector<90x128xf32>
    %c0_28 = arith.constant 0 : index
    %c0_29 = arith.constant 0 : index
    %25 = vector.load %arg3[%c0_28, %c0_29] : memref<1x128xf32, #tpu.memory_space<vmem>>, vector<1x128xf32>
    %26 = vector.broadcast %25 : vector<1x128xf32> to vector<90x128xf32>
    %27 = arith.addf %24, %26 : vector<90x128xf32>
    %cst_30 = arith.constant 0.000000e+00 : f32
    %28 = vector.broadcast %cst_30 : f32 to vector<90x128xf32>
    %29 = arith.cmpf ogt, %27, %28 : vector<90x128xf32>
    %cst_31 = arith.constant 2.000000e-01 : f32
    %30 = vector.broadcast %cst_31 : f32 to vector<90x128xf32>
    %31 = arith.mulf %30, %27 : vector<90x128xf32>
    %32 = arith.select %29, %27, %31 : vector<90x128xi1>, vector<90x128xf32>
    %33 = arith.truncf %32 : vector<90x128xf32> to vector<90x128xbf16>
    %c0_32 = arith.constant 0 : index
    %c0_33 = arith.constant 0 : index
    %c0_34 = arith.constant 0 : index
    %34 = vector.load %arg4[%c0_32, %c0_33, %c0_34] : memref<1x90x128xbf16, #tpu.memory_space<vmem>>, vector<1x90x128xbf16>
    %35 = vector.shape_cast %34 : vector<1x90x128xbf16> to vector<90x128xbf16>
    %36 = vector.shape_cast %33 : vector<90x128xbf16> to vector<1x90x128xbf16>
    tpu.vector_store %arg4[%c0_32, %c0_33, %c0_34], %36 {strides = array<i32>} : memref<1x90x128xbf16, #tpu.memory_space<vmem>>, vector<1x90x128xbf16>,
    return
  }
  func.func @transform_0(%arg0: i32) -> (i32, i32, i32) {
    %c0_i32 = arith.constant 0 : i32
    %c0_i32_0 = arith.constant 0 : i32
    %c0_i32_1 = arith.constant 0 : i32
    return %arg0, %c0_i32, %c0_i32_0 : i32, i32, i32
  }
  func.func @transform_1(%arg0: i32) -> (i32, i32, i32, i32) {
    %c0_i32 = arith.constant 0 : i32
    %c0_i32_0 = arith.constant 0 : i32
    %c0_i32_1 = arith.constant 0 : i32
    %c0_i32_2 = arith.constant 0 : i32
    %c0_i32_3 = arith.constant 0 : i32
    return %c0_i32, %c0_i32_0, %c0_i32_1, %c0_i32_2 : i32, i32, i32, i32
  }
  func.func @transform_2(%arg0: i32) -> (i32, i32) {
    %c0_i32 = arith.constant 0 : i32
    %c0_i32_0 = arith.constant 0 : i32
    %c0_i32_1 = arith.constant 0 : i32
    return %c0_i32, %c0_i32_0 : i32, i32
  }
  func.func @transform_3(%arg0: i32) -> (i32, i32, i32) {
    %c0_i32 = arith.constant 0 : i32
    %c0_i32_0 = arith.constant 0 : i32
    %c0_i32_1 = arith.constant 0 : i32
    return %arg0, %c0_i32, %c0_i32_0 : i32, i32, i32
  }
}

module attributes {stable_mosaic.version = 11 : i64} {
  func.func @_conv_kernel(%arg0: i32, %arg1: memref<1x49x512xbf16, #tpu.memory_space<vmem>>, %arg2: memref<2x2x512x128xbf16, #tpu.memory_space<vmem>>, %arg3: memref<1x128xf32, #tpu.memory_space<vmem>>, %arg4: memref<35x1xf32, #tpu.memory_space<vmem>>, %arg5: memref<1x35x128xbf16, #tpu.memory_space<vmem>>, %arg6: memref<1x1x128xf32, #tpu.memory_space<vmem>>, %arg7: memref<1x1x128xf32, #tpu.memory_space<vmem>>) attributes {dimension_semantics = [#tpu.dimension_semantics<parallel>], iteration_bounds = array<i64: 2>, scalar_prefetch = 0 : i64, scratch_operands = 0 : i64, tpu.core_type = #tpu.core_type<tc>, window_params = [{transform_indices = @transform_0, window_bounds = array<i64: 1, 49, 512>}, {pipeline_mode = #tpu.pipeline_mode<synchronous>, transform_indices = @transform_1, window_bounds = array<i64: 2, 2, 512, 128>}, {pipeline_mode = #tpu.pipeline_mode<synchronous>, transform_indices = @transform_2, window_bounds = array<i64: 1, 128>}, {pipeline_mode = #tpu.pipeline_mode<synchronous>, transform_indices = @transform_3, window_bounds = array<i64: 35, 1>}, {transform_indices = @transform_4, window_bounds = array<i64: 1, 35, 128>}, {transform_indices = @transform_5, window_bounds = array<i64: 1, 1, 128>}, {transform_indices = @transform_6, window_bounds = array<i64: 1, 1, 128>}]} {
    %cst = arith.constant 0.000000e+00 : f32
    %0 = vector.broadcast %cst : f32 to vector<35x128xf32>
    %c0 = arith.constant 0 : index
    %c0_0 = arith.constant 0 : index
    %c0_1 = arith.constant 0 : index
    %1 = vector.load %arg1[%c0, %c0_0, %c0_1] : memref<1x49x512xbf16, #tpu.memory_space<vmem>>, vector<1x35x512xbf16>
    %2 = vector.shape_cast %1 : vector<1x35x512xbf16> to vector<35x512xbf16>
    %c0_2 = arith.constant 0 : index
    %c0_3 = arith.constant 0 : index
    %c0_4 = arith.constant 0 : index
    %c0_5 = arith.constant 0 : index
    %3 = vector.load %arg2[%c0_2, %c0_3, %c0_4, %c0_5] : memref<2x2x512x128xbf16, #tpu.memory_space<vmem>>, vector<1x1x512x128xbf16>
    %4 = vector.shape_cast %3 : vector<1x1x512x128xbf16> to vector<512x128xbf16>
    %cst_6 = arith.constant dense<0.000000e+00> : vector<35x128xf32>
    %5 = tpu.matmul %2, %4, %cst_6 {dimension_numbers = #tpu.dot_dimension_numbers<[1], [0], [0], [1], [0, 0, 1, 1], [], []>} : vector<35x512xbf16>, vector<512x128xbf16>, vector<35x128xf32> -> vector<35x128xf32>
    %6 = arith.addf %0, %5 : vector<35x128xf32>
    %c0_7 = arith.constant 0 : index
    %c1 = arith.constant 1 : index
    %c0_8 = arith.constant 0 : index
    %7 = vector.load %arg1[%c0_7, %c1, %c0_8] : memref<1x49x512xbf16, #tpu.memory_space<vmem>>, vector<1x35x512xbf16>
    %8 = vector.shape_cast %7 : vector<1x35x512xbf16> to vector<35x512xbf16>
    %c0_9 = arith.constant 0 : index
    %c1_10 = arith.constant 1 : index
    %c0_11 = arith.constant 0 : index
    %c0_12 = arith.constant 0 : index
    %9 = vector.load %arg2[%c0_9, %c1_10, %c0_11, %c0_12] : memref<2x2x512x128xbf16, #tpu.memory_space<vmem>>, vector<1x1x512x128xbf16>
    %10 = vector.shape_cast %9 : vector<1x1x512x128xbf16> to vector<512x128xbf16>
    %cst_13 = arith.constant dense<0.000000e+00> : vector<35x128xf32>
    %11 = tpu.matmul %8, %10, %cst_13 {dimension_numbers = #tpu.dot_dimension_numbers<[1], [0], [0], [1], [0, 0, 1, 1], [], []>} : vector<35x512xbf16>, vector<512x128xbf16>, vector<35x128xf32> -> vector<35x128xf32>
    %12 = arith.addf %6, %11 : vector<35x128xf32>
    %c0_14 = arith.constant 0 : index
    %c7 = arith.constant 7 : index
    %c0_15 = arith.constant 0 : index
    %13 = vector.load %arg1[%c0_14, %c7, %c0_15] : memref<1x49x512xbf16, #tpu.memory_space<vmem>>, vector<1x35x512xbf16>
    %14 = vector.shape_cast %13 : vector<1x35x512xbf16> to vector<35x512xbf16>
    %c1_16 = arith.constant 1 : index
    %c0_17 = arith.constant 0 : index
    %c0_18 = arith.constant 0 : index
    %c0_19 = arith.constant 0 : index
    %15 = vector.load %arg2[%c1_16, %c0_17, %c0_18, %c0_19] : memref<2x2x512x128xbf16, #tpu.memory_space<vmem>>, vector<1x1x512x128xbf16>
    %16 = vector.shape_cast %15 : vector<1x1x512x128xbf16> to vector<512x128xbf16>
    %cst_20 = arith.constant dense<0.000000e+00> : vector<35x128xf32>
    %17 = tpu.matmul %14, %16, %cst_20 {dimension_numbers = #tpu.dot_dimension_numbers<[1], [0], [0], [1], [0, 0, 1, 1], [], []>} : vector<35x512xbf16>, vector<512x128xbf16>, vector<35x128xf32> -> vector<35x128xf32>
    %18 = arith.addf %12, %17 : vector<35x128xf32>
    %c0_21 = arith.constant 0 : index
    %c8 = arith.constant 8 : index
    %c0_22 = arith.constant 0 : index
    %19 = vector.load %arg1[%c0_21, %c8, %c0_22] : memref<1x49x512xbf16, #tpu.memory_space<vmem>>, vector<1x35x512xbf16>
    %20 = vector.shape_cast %19 : vector<1x35x512xbf16> to vector<35x512xbf16>
    %c1_23 = arith.constant 1 : index
    %c1_24 = arith.constant 1 : index
    %c0_25 = arith.constant 0 : index
    %c0_26 = arith.constant 0 : index
    %21 = vector.load %arg2[%c1_23, %c1_24, %c0_25, %c0_26] : memref<2x2x512x128xbf16, #tpu.memory_space<vmem>>, vector<1x1x512x128xbf16>
    %22 = vector.shape_cast %21 : vector<1x1x512x128xbf16> to vector<512x128xbf16>
    %cst_27 = arith.constant dense<0.000000e+00> : vector<35x128xf32>
    %23 = tpu.matmul %20, %22, %cst_27 {dimension_numbers = #tpu.dot_dimension_numbers<[1], [0], [0], [1], [0, 0, 1, 1], [], []>} : vector<35x512xbf16>, vector<512x128xbf16>, vector<35x128xf32> -> vector<35x128xf32>
    %24 = arith.addf %18, %23 : vector<35x128xf32>
    %c0_28 = arith.constant 0 : index
    %c0_29 = arith.constant 0 : index
    %25 = vector.load %arg3[%c0_28, %c0_29] : memref<1x128xf32, #tpu.memory_space<vmem>>, vector<1x128xf32>
    %26 = vector.broadcast %25 : vector<1x128xf32> to vector<35x128xf32>
    %27 = arith.addf %24, %26 : vector<35x128xf32>
    %c0_30 = arith.constant 0 : index
    %c0_31 = arith.constant 0 : index
    %28 = vector.load %arg4[%c0_30, %c0_31] : memref<35x1xf32, #tpu.memory_space<vmem>>, vector<35x1xf32>
    %29 = vector.broadcast %28 : vector<35x1xf32> to vector<35x128xf32>
    %30 = arith.mulf %27, %29 : vector<35x128xf32>
    %cst_32 = arith.constant dense<0.000000e+00> : vector<128xf32>
    %31 = vector.multi_reduction <add>, %30, %cst_32 [0] : vector<35x128xf32> to vector<128xf32>
    %32 = vector.shape_cast %31 : vector<128xf32> to vector<1x128xf32>
    %c0_33 = arith.constant 0 : index
    %c0_34 = arith.constant 0 : index
    %c0_35 = arith.constant 0 : index
    %33 = vector.load %arg6[%c0_33, %c0_34, %c0_35] : memref<1x1x128xf32, #tpu.memory_space<vmem>>, vector<1x1x128xf32>
    %34 = vector.shape_cast %33 : vector<1x1x128xf32> to vector<1x128xf32>
    %35 = vector.shape_cast %32 : vector<1x128xf32> to vector<1x1x128xf32>
    tpu.vector_store %arg6[%c0_33, %c0_34, %c0_35], %35 {strides = array<i32>} : memref<1x1x128xf32, #tpu.memory_space<vmem>>, vector<1x1x128xf32>,
    %36 = arith.mulf %27, %27 : vector<35x128xf32>
    %37 = vector.broadcast %28 : vector<35x1xf32> to vector<35x128xf32>
    %38 = arith.mulf %36, %37 : vector<35x128xf32>
    %cst_36 = arith.constant dense<0.000000e+00> : vector<128xf32>
    %39 = vector.multi_reduction <add>, %38, %cst_36 [0] : vector<35x128xf32> to vector<128xf32>
    %40 = vector.shape_cast %39 : vector<128xf32> to vector<1x128xf32>
    %c0_37 = arith.constant 0 : index
    %c0_38 = arith.constant 0 : index
    %c0_39 = arith.constant 0 : index
    %41 = vector.load %arg7[%c0_37, %c0_38, %c0_39] : memref<1x1x128xf32, #tpu.memory_space<vmem>>, vector<1x1x128xf32>
    %42 = vector.shape_cast %41 : vector<1x1x128xf32> to vector<1x128xf32>
    %43 = vector.shape_cast %40 : vector<1x128xf32> to vector<1x1x128xf32>
    tpu.vector_store %arg7[%c0_37, %c0_38, %c0_39], %43 {strides = array<i32>} : memref<1x1x128xf32, #tpu.memory_space<vmem>>, vector<1x1x128xf32>,
    %44 = arith.truncf %27 : vector<35x128xf32> to vector<35x128xbf16>
    %c0_40 = arith.constant 0 : index
    %c0_41 = arith.constant 0 : index
    %c0_42 = arith.constant 0 : index
    %45 = vector.load %arg5[%c0_40, %c0_41, %c0_42] : memref<1x35x128xbf16, #tpu.memory_space<vmem>>, vector<1x35x128xbf16>
    %46 = vector.shape_cast %45 : vector<1x35x128xbf16> to vector<35x128xbf16>
    %47 = vector.shape_cast %44 : vector<35x128xbf16> to vector<1x35x128xbf16>
    tpu.vector_store %arg5[%c0_40, %c0_41, %c0_42], %47 {strides = array<i32>} : memref<1x35x128xbf16, #tpu.memory_space<vmem>>, vector<1x35x128xbf16>,
    return
  }
  func.func @transform_0(%arg0: i32) -> (i32, i32, i32) {
    %c0_i32 = arith.constant 0 : i32
    %c0_i32_0 = arith.constant 0 : i32
    %c0_i32_1 = arith.constant 0 : i32
    return %arg0, %c0_i32, %c0_i32_0 : i32, i32, i32
  }
  func.func @transform_1(%arg0: i32) -> (i32, i32, i32, i32) {
    %c0_i32 = arith.constant 0 : i32
    %c0_i32_0 = arith.constant 0 : i32
    %c0_i32_1 = arith.constant 0 : i32
    %c0_i32_2 = arith.constant 0 : i32
    %c0_i32_3 = arith.constant 0 : i32
    return %c0_i32, %c0_i32_0, %c0_i32_1, %c0_i32_2 : i32, i32, i32, i32
  }
  func.func @transform_2(%arg0: i32) -> (i32, i32) {
    %c0_i32 = arith.constant 0 : i32
    %c0_i32_0 = arith.constant 0 : i32
    %c0_i32_1 = arith.constant 0 : i32
    return %c0_i32, %c0_i32_0 : i32, i32
  }
  func.func @transform_3(%arg0: i32) -> (i32, i32) {
    %c0_i32 = arith.constant 0 : i32
    %c0_i32_0 = arith.constant 0 : i32
    %c0_i32_1 = arith.constant 0 : i32
    return %c0_i32, %c0_i32_0 : i32, i32
  }
  func.func @transform_4(%arg0: i32) -> (i32, i32, i32) {
    %c0_i32 = arith.constant 0 : i32
    %c0_i32_0 = arith.constant 0 : i32
    %c0_i32_1 = arith.constant 0 : i32
    return %arg0, %c0_i32, %c0_i32_0 : i32, i32, i32
  }
  func.func @transform_5(%arg0: i32) -> (i32, i32, i32) {
    %c0_i32 = arith.constant 0 : i32
    %c0_i32_0 = arith.constant 0 : i32
    %c0_i32_1 = arith.constant 0 : i32
    return %arg0, %c0_i32, %c0_i32_0 : i32, i32, i32
  }
  func.func @transform_6(%arg0: i32) -> (i32, i32, i32) {
    %c0_i32 = arith.constant 0 : i32
    %c0_i32_0 = arith.constant 0 : i32
    %c0_i32_1 = arith.constant 0 : i32
    return %arg0, %c0_i32, %c0_i32_0 : i32, i32, i32
  }
}

module attributes {stable_mosaic.version = 11 : i64} {
  func.func @_conv_kernel(%arg0: i32, %arg1: memref<1x25x512xbf16, #tpu.memory_space<vmem>>, %arg2: memref<2x2x512x128xbf16, #tpu.memory_space<vmem>>, %arg3: memref<1x128xf32, #tpu.memory_space<vmem>>, %arg4: memref<15x1xf32, #tpu.memory_space<vmem>>, %arg5: memref<1x15x128xbf16, #tpu.memory_space<vmem>>, %arg6: memref<1x1x128xf32, #tpu.memory_space<vmem>>, %arg7: memref<1x1x128xf32, #tpu.memory_space<vmem>>) attributes {dimension_semantics = [#tpu.dimension_semantics<parallel>], iteration_bounds = array<i64: 2>, scalar_prefetch = 0 : i64, scratch_operands = 0 : i64, tpu.core_type = #tpu.core_type<tc>, window_params = [{transform_indices = @transform_0, window_bounds = array<i64: 1, 25, 512>}, {pipeline_mode = #tpu.pipeline_mode<synchronous>, transform_indices = @transform_1, window_bounds = array<i64: 2, 2, 512, 128>}, {pipeline_mode = #tpu.pipeline_mode<synchronous>, transform_indices = @transform_2, window_bounds = array<i64: 1, 128>}, {pipeline_mode = #tpu.pipeline_mode<synchronous>, transform_indices = @transform_3, window_bounds = array<i64: 15, 1>}, {transform_indices = @transform_4, window_bounds = array<i64: 1, 15, 128>}, {transform_indices = @transform_5, window_bounds = array<i64: 1, 1, 128>}, {transform_indices = @transform_6, window_bounds = array<i64: 1, 1, 128>}]} {
    %cst = arith.constant 0.000000e+00 : f32
    %0 = vector.broadcast %cst : f32 to vector<15x128xf32>
    %c0 = arith.constant 0 : index
    %c0_0 = arith.constant 0 : index
    %c0_1 = arith.constant 0 : index
    %1 = vector.load %arg1[%c0, %c0_0, %c0_1] : memref<1x25x512xbf16, #tpu.memory_space<vmem>>, vector<1x15x512xbf16>
    %2 = vector.shape_cast %1 : vector<1x15x512xbf16> to vector<15x512xbf16>
    %c0_2 = arith.constant 0 : index
    %c0_3 = arith.constant 0 : index
    %c0_4 = arith.constant 0 : index
    %c0_5 = arith.constant 0 : index
    %3 = vector.load %arg2[%c0_2, %c0_3, %c0_4, %c0_5] : memref<2x2x512x128xbf16, #tpu.memory_space<vmem>>, vector<1x1x512x128xbf16>
    %4 = vector.shape_cast %3 : vector<1x1x512x128xbf16> to vector<512x128xbf16>
    %cst_6 = arith.constant dense<0.000000e+00> : vector<15x128xf32>
    %5 = tpu.matmul %2, %4, %cst_6 {dimension_numbers = #tpu.dot_dimension_numbers<[1], [0], [0], [1], [0, 0, 1, 1], [], []>} : vector<15x512xbf16>, vector<512x128xbf16>, vector<15x128xf32> -> vector<15x128xf32>
    %6 = arith.addf %0, %5 : vector<15x128xf32>
    %c0_7 = arith.constant 0 : index
    %c1 = arith.constant 1 : index
    %c0_8 = arith.constant 0 : index
    %7 = vector.load %arg1[%c0_7, %c1, %c0_8] : memref<1x25x512xbf16, #tpu.memory_space<vmem>>, vector<1x15x512xbf16>
    %8 = vector.shape_cast %7 : vector<1x15x512xbf16> to vector<15x512xbf16>
    %c0_9 = arith.constant 0 : index
    %c1_10 = arith.constant 1 : index
    %c0_11 = arith.constant 0 : index
    %c0_12 = arith.constant 0 : index
    %9 = vector.load %arg2[%c0_9, %c1_10, %c0_11, %c0_12] : memref<2x2x512x128xbf16, #tpu.memory_space<vmem>>, vector<1x1x512x128xbf16>
    %10 = vector.shape_cast %9 : vector<1x1x512x128xbf16> to vector<512x128xbf16>
    %cst_13 = arith.constant dense<0.000000e+00> : vector<15x128xf32>
    %11 = tpu.matmul %8, %10, %cst_13 {dimension_numbers = #tpu.dot_dimension_numbers<[1], [0], [0], [1], [0, 0, 1, 1], [], []>} : vector<15x512xbf16>, vector<512x128xbf16>, vector<15x128xf32> -> vector<15x128xf32>
    %12 = arith.addf %6, %11 : vector<15x128xf32>
    %c0_14 = arith.constant 0 : index
    %c5 = arith.constant 5 : index
    %c0_15 = arith.constant 0 : index
    %13 = vector.load %arg1[%c0_14, %c5, %c0_15] : memref<1x25x512xbf16, #tpu.memory_space<vmem>>, vector<1x15x512xbf16>
    %14 = vector.shape_cast %13 : vector<1x15x512xbf16> to vector<15x512xbf16>
    %c1_16 = arith.constant 1 : index
    %c0_17 = arith.constant 0 : index
    %c0_18 = arith.constant 0 : index
    %c0_19 = arith.constant 0 : index
    %15 = vector.load %arg2[%c1_16, %c0_17, %c0_18, %c0_19] : memref<2x2x512x128xbf16, #tpu.memory_space<vmem>>, vector<1x1x512x128xbf16>
    %16 = vector.shape_cast %15 : vector<1x1x512x128xbf16> to vector<512x128xbf16>
    %cst_20 = arith.constant dense<0.000000e+00> : vector<15x128xf32>
    %17 = tpu.matmul %14, %16, %cst_20 {dimension_numbers = #tpu.dot_dimension_numbers<[1], [0], [0], [1], [0, 0, 1, 1], [], []>} : vector<15x512xbf16>, vector<512x128xbf16>, vector<15x128xf32> -> vector<15x128xf32>
    %18 = arith.addf %12, %17 : vector<15x128xf32>
    %c0_21 = arith.constant 0 : index
    %c6 = arith.constant 6 : index
    %c0_22 = arith.constant 0 : index
    %19 = vector.load %arg1[%c0_21, %c6, %c0_22] : memref<1x25x512xbf16, #tpu.memory_space<vmem>>, vector<1x15x512xbf16>
    %20 = vector.shape_cast %19 : vector<1x15x512xbf16> to vector<15x512xbf16>
    %c1_23 = arith.constant 1 : index
    %c1_24 = arith.constant 1 : index
    %c0_25 = arith.constant 0 : index
    %c0_26 = arith.constant 0 : index
    %21 = vector.load %arg2[%c1_23, %c1_24, %c0_25, %c0_26] : memref<2x2x512x128xbf16, #tpu.memory_space<vmem>>, vector<1x1x512x128xbf16>
    %22 = vector.shape_cast %21 : vector<1x1x512x128xbf16> to vector<512x128xbf16>
    %cst_27 = arith.constant dense<0.000000e+00> : vector<15x128xf32>
    %23 = tpu.matmul %20, %22, %cst_27 {dimension_numbers = #tpu.dot_dimension_numbers<[1], [0], [0], [1], [0, 0, 1, 1], [], []>} : vector<15x512xbf16>, vector<512x128xbf16>, vector<15x128xf32> -> vector<15x128xf32>
    %24 = arith.addf %18, %23 : vector<15x128xf32>
    %c0_28 = arith.constant 0 : index
    %c0_29 = arith.constant 0 : index
    %25 = vector.load %arg3[%c0_28, %c0_29] : memref<1x128xf32, #tpu.memory_space<vmem>>, vector<1x128xf32>
    %26 = vector.broadcast %25 : vector<1x128xf32> to vector<15x128xf32>
    %27 = arith.addf %24, %26 : vector<15x128xf32>
    %c0_30 = arith.constant 0 : index
    %c0_31 = arith.constant 0 : index
    %28 = vector.load %arg4[%c0_30, %c0_31] : memref<15x1xf32, #tpu.memory_space<vmem>>, vector<15x1xf32>
    %29 = vector.broadcast %28 : vector<15x1xf32> to vector<15x128xf32>
    %30 = arith.mulf %27, %29 : vector<15x128xf32>
    %cst_32 = arith.constant dense<0.000000e+00> : vector<128xf32>
    %31 = vector.multi_reduction <add>, %30, %cst_32 [0] : vector<15x128xf32> to vector<128xf32>
    %32 = vector.shape_cast %31 : vector<128xf32> to vector<1x128xf32>
    %c0_33 = arith.constant 0 : index
    %c0_34 = arith.constant 0 : index
    %c0_35 = arith.constant 0 : index
    %33 = vector.load %arg6[%c0_33, %c0_34, %c0_35] : memref<1x1x128xf32, #tpu.memory_space<vmem>>, vector<1x1x128xf32>
    %34 = vector.shape_cast %33 : vector<1x1x128xf32> to vector<1x128xf32>
    %35 = vector.shape_cast %32 : vector<1x128xf32> to vector<1x1x128xf32>
    tpu.vector_store %arg6[%c0_33, %c0_34, %c0_35], %35 {strides = array<i32>} : memref<1x1x128xf32, #tpu.memory_space<vmem>>, vector<1x1x128xf32>,
    %36 = arith.mulf %27, %27 : vector<15x128xf32>
    %37 = vector.broadcast %28 : vector<15x1xf32> to vector<15x128xf32>
    %38 = arith.mulf %36, %37 : vector<15x128xf32>
    %cst_36 = arith.constant dense<0.000000e+00> : vector<128xf32>
    %39 = vector.multi_reduction <add>, %38, %cst_36 [0] : vector<15x128xf32> to vector<128xf32>
    %40 = vector.shape_cast %39 : vector<128xf32> to vector<1x128xf32>
    %c0_37 = arith.constant 0 : index
    %c0_38 = arith.constant 0 : index
    %c0_39 = arith.constant 0 : index
    %41 = vector.load %arg7[%c0_37, %c0_38, %c0_39] : memref<1x1x128xf32, #tpu.memory_space<vmem>>, vector<1x1x128xf32>
    %42 = vector.shape_cast %41 : vector<1x1x128xf32> to vector<1x128xf32>
    %43 = vector.shape_cast %40 : vector<1x128xf32> to vector<1x1x128xf32>
    tpu.vector_store %arg7[%c0_37, %c0_38, %c0_39], %43 {strides = array<i32>} : memref<1x1x128xf32, #tpu.memory_space<vmem>>, vector<1x1x128xf32>,
    %44 = arith.truncf %27 : vector<15x128xf32> to vector<15x128xbf16>
    %c0_40 = arith.constant 0 : index
    %c0_41 = arith.constant 0 : index
    %c0_42 = arith.constant 0 : index
    %45 = vector.load %arg5[%c0_40, %c0_41, %c0_42] : memref<1x15x128xbf16, #tpu.memory_space<vmem>>, vector<1x15x128xbf16>
    %46 = vector.shape_cast %45 : vector<1x15x128xbf16> to vector<15x128xbf16>
    %47 = vector.shape_cast %44 : vector<15x128xbf16> to vector<1x15x128xbf16>
    tpu.vector_store %arg5[%c0_40, %c0_41, %c0_42], %47 {strides = array<i32>} : memref<1x15x128xbf16, #tpu.memory_space<vmem>>, vector<1x15x128xbf16>,
    return
  }
  func.func @transform_0(%arg0: i32) -> (i32, i32, i32) {
    %c0_i32 = arith.constant 0 : i32
    %c0_i32_0 = arith.constant 0 : i32
    %c0_i32_1 = arith.constant 0 : i32
    return %arg0, %c0_i32, %c0_i32_0 : i32, i32, i32
  }
  func.func @transform_1(%arg0: i32) -> (i32, i32, i32, i32) {
    %c0_i32 = arith.constant 0 : i32
    %c0_i32_0 = arith.constant 0 : i32
    %c0_i32_1 = arith.constant 0 : i32
    %c0_i32_2 = arith.constant 0 : i32
    %c0_i32_3 = arith.constant 0 : i32
    return %c0_i32, %c0_i32_0, %c0_i32_1, %c0_i32_2 : i32, i32, i32, i32
  }
  func.func @transform_2(%arg0: i32) -> (i32, i32) {
    %c0_i32 = arith.constant 0 : i32
    %c0_i32_0 = arith.constant 0 : i32
    %c0_i32_1 = arith.constant 0 : i32
    return %c0_i32, %c0_i32_0 : i32, i32
  }
  func.func @transform_3(%arg0: i32) -> (i32, i32) {
    %c0_i32 = arith.constant 0 : i32
    %c0_i32_0 = arith.constant 0 : i32
    %c0_i32_1 = arith.constant 0 : i32
    return %c0_i32, %c0_i32_0 : i32, i32
  }
  func.func @transform_4(%arg0: i32) -> (i32, i32, i32) {
    %c0_i32 = arith.constant 0 : i32
    %c0_i32_0 = arith.constant 0 : i32
    %c0_i32_1 = arith.constant 0 : i32
    return %arg0, %c0_i32, %c0_i32_0 : i32, i32, i32
  }
  func.func @transform_5(%arg0: i32) -> (i32, i32, i32) {
    %c0_i32 = arith.constant 0 : i32
    %c0_i32_0 = arith.constant 0 : i32
    %c0_i32_1 = arith.constant 0 : i32
    return %arg0, %c0_i32, %c0_i32_0 : i32, i32, i32
  }
  func.func @transform_6(%arg0: i32) -> (i32, i32, i32) {
    %c0_i32 = arith.constant 0 : i32
    %c0_i32_0 = arith.constant 0 : i32
    %c0_i32_1 = arith.constant 0 : i32
    return %arg0, %c0_i32, %c0_i32_0 : i32, i32, i32
  }
}

module attributes {stable_mosaic.version = 11 : i64} {
  func.func @_conv_kernel(%arg0: i32, %arg1: memref<1x52x128xbf16, #tpu.memory_space<vmem>>, %arg2: memref<4x4x128x128xbf16, #tpu.memory_space<vmem>>, %arg3: memref<1x128xf32, #tpu.memory_space<vmem>>, %arg4: memref<28x1xf32, #tpu.memory_space<vmem>>, %arg5: memref<1x28x128xbf16, #tpu.memory_space<vmem>>, %arg6: memref<1x1x128xf32, #tpu.memory_space<vmem>>, %arg7: memref<1x1x128xf32, #tpu.memory_space<vmem>>) attributes {dimension_semantics = [#tpu.dimension_semantics<parallel>], iteration_bounds = array<i64: 2>, scalar_prefetch = 0 : i64, scratch_operands = 0 : i64, tpu.core_type = #tpu.core_type<tc>, window_params = [{transform_indices = @transform_0, window_bounds = array<i64: 1, 52, 128>}, {pipeline_mode = #tpu.pipeline_mode<synchronous>, transform_indices = @transform_1, window_bounds = array<i64: 4, 4, 128, 128>}, {pipeline_mode = #tpu.pipeline_mode<synchronous>, transform_indices = @transform_2, window_bounds = array<i64: 1, 128>}, {pipeline_mode = #tpu.pipeline_mode<synchronous>, transform_indices = @transform_3, window_bounds = array<i64: 28, 1>}, {transform_indices = @transform_4, window_bounds = array<i64: 1, 28, 128>}, {transform_indices = @transform_5, window_bounds = array<i64: 1, 1, 128>}, {transform_indices = @transform_6, window_bounds = array<i64: 1, 1, 128>}]} {
    %cst = arith.constant 0.000000e+00 : f32
    %0 = vector.broadcast %cst : f32 to vector<28x128xf32>
    %c0 = arith.constant 0 : index
    %c0_0 = arith.constant 0 : index
    %c0_1 = arith.constant 0 : index
    %1 = vector.load %arg1[%c0, %c0_0, %c0_1] : memref<1x52x128xbf16, #tpu.memory_space<vmem>>, vector<1x28x128xbf16>
    %2 = vector.shape_cast %1 : vector<1x28x128xbf16> to vector<28x128xbf16>
    %c0_2 = arith.constant 0 : index
    %c0_3 = arith.constant 0 : index
    %c0_4 = arith.constant 0 : index
    %c0_5 = arith.constant 0 : index
    %3 = vector.load %arg2[%c0_2, %c0_3, %c0_4, %c0_5] : memref<4x4x128x128xbf16, #tpu.memory_space<vmem>>, vector<1x1x128x128xbf16>
    %4 = vector.shape_cast %3 : vector<1x1x128x128xbf16> to vector<128x128xbf16>
    %cst_6 = arith.constant dense<0.000000e+00> : vector<28x128xf32>
    %5 = tpu.matmul %2, %4, %cst_6 {dimension_numbers = #tpu.dot_dimension_numbers<[1], [0], [0], [1], [0, 0, 1, 1], [], []>} : vector<28x128xbf16>, vector<128x128xbf16>, vector<28x128xf32> -> vector<28x128xf32>
    %6 = arith.addf %0, %5 : vector<28x128xf32>
    %c0_7 = arith.constant 0 : index
    %c1 = arith.constant 1 : index
    %c0_8 = arith.constant 0 : index
    %7 = vector.load %arg1[%c0_7, %c1, %c0_8] : memref<1x52x128xbf16, #tpu.memory_space<vmem>>, vector<1x28x128xbf16>
    %8 = vector.shape_cast %7 : vector<1x28x128xbf16> to vector<28x128xbf16>
    %c0_9 = arith.constant 0 : index
    %c1_10 = arith.constant 1 : index
    %c0_11 = arith.constant 0 : index
    %c0_12 = arith.constant 0 : index
    %9 = vector.load %arg2[%c0_9, %c1_10, %c0_11, %c0_12] : memref<4x4x128x128xbf16, #tpu.memory_space<vmem>>, vector<1x1x128x128xbf16>
    %10 = vector.shape_cast %9 : vector<1x1x128x128xbf16> to vector<128x128xbf16>
    %cst_13 = arith.constant dense<0.000000e+00> : vector<28x128xf32>
    %11 = tpu.matmul %8, %10, %cst_13 {dimension_numbers = #tpu.dot_dimension_numbers<[1], [0], [0], [1], [0, 0, 1, 1], [], []>} : vector<28x128xbf16>, vector<128x128xbf16>, vector<28x128xf32> -> vector<28x128xf32>
    %12 = arith.addf %6, %11 : vector<28x128xf32>
    %c0_14 = arith.constant 0 : index
    %c2 = arith.constant 2 : index
    %c0_15 = arith.constant 0 : index
    %13 = vector.load %arg1[%c0_14, %c2, %c0_15] : memref<1x52x128xbf16, #tpu.memory_space<vmem>>, vector<1x28x128xbf16>
    %14 = vector.shape_cast %13 : vector<1x28x128xbf16> to vector<28x128xbf16>
    %c0_16 = arith.constant 0 : index
    %c2_17 = arith.constant 2 : index
    %c0_18 = arith.constant 0 : index
    %c0_19 = arith.constant 0 : index
    %15 = vector.load %arg2[%c0_16, %c2_17, %c0_18, %c0_19] : memref<4x4x128x128xbf16, #tpu.memory_space<vmem>>, vector<1x1x128x128xbf16>
    %16 = vector.shape_cast %15 : vector<1x1x128x128xbf16> to vector<128x128xbf16>
    %cst_20 = arith.constant dense<0.000000e+00> : vector<28x128xf32>
    %17 = tpu.matmul %14, %16, %cst_20 {dimension_numbers = #tpu.dot_dimension_numbers<[1], [0], [0], [1], [0, 0, 1, 1], [], []>} : vector<28x128xbf16>, vector<128x128xbf16>, vector<28x128xf32> -> vector<28x128xf32>
    %18 = arith.addf %12, %17 : vector<28x128xf32>
    %c0_21 = arith.constant 0 : index
    %c3 = arith.constant 3 : index
    %c0_22 = arith.constant 0 : index
    %19 = vector.load %arg1[%c0_21, %c3, %c0_22] : memref<1x52x128xbf16, #tpu.memory_space<vmem>>, vector<1x28x128xbf16>
    %20 = vector.shape_cast %19 : vector<1x28x128xbf16> to vector<28x128xbf16>
    %c0_23 = arith.constant 0 : index
    %c3_24 = arith.constant 3 : index
    %c0_25 = arith.constant 0 : index
    %c0_26 = arith.constant 0 : index
    %21 = vector.load %arg2[%c0_23, %c3_24, %c0_25, %c0_26] : memref<4x4x128x128xbf16, #tpu.memory_space<vmem>>, vector<1x1x128x128xbf16>
    %22 = vector.shape_cast %21 : vector<1x1x128x128xbf16> to vector<128x128xbf16>
    %cst_27 = arith.constant dense<0.000000e+00> : vector<28x128xf32>
    %23 = tpu.matmul %20, %22, %cst_27 {dimension_numbers = #tpu.dot_dimension_numbers<[1], [0], [0], [1], [0, 0, 1, 1], [], []>} : vector<28x128xbf16>, vector<128x128xbf16>, vector<28x128xf32> -> vector<28x128xf32>
    %24 = arith.addf %18, %23 : vector<28x128xf32>
    %c0_28 = arith.constant 0 : index
    %c7 = arith.constant 7 : index
    %c0_29 = arith.constant 0 : index
    %25 = vector.load %arg1[%c0_28, %c7, %c0_29] : memref<1x52x128xbf16, #tpu.memory_space<vmem>>, vector<1x28x128xbf16>
    %26 = vector.shape_cast %25 : vector<1x28x128xbf16> to vector<28x128xbf16>
    %c1_30 = arith.constant 1 : index
    %c0_31 = arith.constant 0 : index
    %c0_32 = arith.constant 0 : index
    %c0_33 = arith.constant 0 : index
    %27 = vector.load %arg2[%c1_30, %c0_31, %c0_32, %c0_33] : memref<4x4x128x128xbf16, #tpu.memory_space<vmem>>, vector<1x1x128x128xbf16>
    %28 = vector.shape_cast %27 : vector<1x1x128x128xbf16> to vector<128x128xbf16>
    %cst_34 = arith.constant dense<0.000000e+00> : vector<28x128xf32>
    %29 = tpu.matmul %26, %28, %cst_34 {dimension_numbers = #tpu.dot_dimension_numbers<[1], [0], [0], [1], [0, 0, 1, 1], [], []>} : vector<28x128xbf16>, vector<128x128xbf16>, vector<28x128xf32> -> vector<28x128xf32>
    %30 = arith.addf %24, %29 : vector<28x128xf32>
    %c0_35 = arith.constant 0 : index
    %c8 = arith.constant 8 : index
    %c0_36 = arith.constant 0 : index
    %31 = vector.load %arg1[%c0_35, %c8, %c0_36] : memref<1x52x128xbf16, #tpu.memory_space<vmem>>, vector<1x28x128xbf16>
    %32 = vector.shape_cast %31 : vector<1x28x128xbf16> to vector<28x128xbf16>
    %c1_37 = arith.constant 1 : index
    %c1_38 = arith.constant 1 : index
    %c0_39 = arith.constant 0 : index
    %c0_40 = arith.constant 0 : index
    %33 = vector.load %arg2[%c1_37, %c1_38, %c0_39, %c0_40] : memref<4x4x128x128xbf16, #tpu.memory_space<vmem>>, vector<1x1x128x128xbf16>
    %34 = vector.shape_cast %33 : vector<1x1x128x128xbf16> to vector<128x128xbf16>
    %cst_41 = arith.constant dense<0.000000e+00> : vector<28x128xf32>
    %35 = tpu.matmul %32, %34, %cst_41 {dimension_numbers = #tpu.dot_dimension_numbers<[1], [0], [0], [1], [0, 0, 1, 1], [], []>} : vector<28x128xbf16>, vector<128x128xbf16>, vector<28x128xf32> -> vector<28x128xf32>
    %36 = arith.addf %30, %35 : vector<28x128xf32>
    %c0_42 = arith.constant 0 : index
    %c9 = arith.constant 9 : index
    %c0_43 = arith.constant 0 : index
    %37 = vector.load %arg1[%c0_42, %c9, %c0_43] : memref<1x52x128xbf16, #tpu.memory_space<vmem>>, vector<1x28x128xbf16>
    %38 = vector.shape_cast %37 : vector<1x28x128xbf16> to vector<28x128xbf16>
    %c1_44 = arith.constant 1 : index
    %c2_45 = arith.constant 2 : index
    %c0_46 = arith.constant 0 : index
    %c0_47 = arith.constant 0 : index
    %39 = vector.load %arg2[%c1_44, %c2_45, %c0_46, %c0_47] : memref<4x4x128x128xbf16, #tpu.memory_space<vmem>>, vector<1x1x128x128xbf16>
    %40 = vector.shape_cast %39 : vector<1x1x128x128xbf16> to vector<128x128xbf16>
    %cst_48 = arith.constant dense<0.000000e+00> : vector<28x128xf32>
    %41 = tpu.matmul %38, %40, %cst_48 {dimension_numbers = #tpu.dot_dimension_numbers<[1], [0], [0], [1], [0, 0, 1, 1], [], []>} : vector<28x128xbf16>, vector<128x128xbf16>, vector<28x128xf32> -> vector<28x128xf32>
    %42 = arith.addf %36, %41 : vector<28x128xf32>
    %c0_49 = arith.constant 0 : index
    %c10 = arith.constant 10 : index
    %c0_50 = arith.constant 0 : index
    %43 = vector.load %arg1[%c0_49, %c10, %c0_50] : memref<1x52x128xbf16, #tpu.memory_space<vmem>>, vector<1x28x128xbf16>
    %44 = vector.shape_cast %43 : vector<1x28x128xbf16> to vector<28x128xbf16>
    %c1_51 = arith.constant 1 : index
    %c3_52 = arith.constant 3 : index
    %c0_53 = arith.constant 0 : index
    %c0_54 = arith.constant 0 : index
    %45 = vector.load %arg2[%c1_51, %c3_52, %c0_53, %c0_54] : memref<4x4x128x128xbf16, #tpu.memory_space<vmem>>, vector<1x1x128x128xbf16>
    %46 = vector.shape_cast %45 : vector<1x1x128x128xbf16> to vector<128x128xbf16>
    %cst_55 = arith.constant dense<0.000000e+00> : vector<28x128xf32>
    %47 = tpu.matmul %44, %46, %cst_55 {dimension_numbers = #tpu.dot_dimension_numbers<[1], [0], [0], [1], [0, 0, 1, 1], [], []>} : vector<28x128xbf16>, vector<128x128xbf16>, vector<28x128xf32> -> vector<28x128xf32>
    %48 = arith.addf %42, %47 : vector<28x128xf32>
    %c0_56 = arith.constant 0 : index
    %c14 = arith.constant 14 : index
    %c0_57 = arith.constant 0 : index
    %49 = vector.load %arg1[%c0_56, %c14, %c0_57] : memref<1x52x128xbf16, #tpu.memory_space<vmem>>, vector<1x28x128xbf16>
    %50 = vector.shape_cast %49 : vector<1x28x128xbf16> to vector<28x128xbf16>
    %c2_58 = arith.constant 2 : index
    %c0_59 = arith.constant 0 : index
    %c0_60 = arith.constant 0 : index
    %c0_61 = arith.constant 0 : index
    %51 = vector.load %arg2[%c2_58, %c0_59, %c0_60, %c0_61] : memref<4x4x128x128xbf16, #tpu.memory_space<vmem>>, vector<1x1x128x128xbf16>
    %52 = vector.shape_cast %51 : vector<1x1x128x128xbf16> to vector<128x128xbf16>
    %cst_62 = arith.constant dense<0.000000e+00> : vector<28x128xf32>
    %53 = tpu.matmul %50, %52, %cst_62 {dimension_numbers = #tpu.dot_dimension_numbers<[1], [0], [0], [1], [0, 0, 1, 1], [], []>} : vector<28x128xbf16>, vector<128x128xbf16>, vector<28x128xf32> -> vector<28x128xf32>
    %54 = arith.addf %48, %53 : vector<28x128xf32>
    %c0_63 = arith.constant 0 : index
    %c15 = arith.constant 15 : index
    %c0_64 = arith.constant 0 : index
    %55 = vector.load %arg1[%c0_63, %c15, %c0_64] : memref<1x52x128xbf16, #tpu.memory_space<vmem>>, vector<1x28x128xbf16>
    %56 = vector.shape_cast %55 : vector<1x28x128xbf16> to vector<28x128xbf16>
    %c2_65 = arith.constant 2 : index
    %c1_66 = arith.constant 1 : index
    %c0_67 = arith.constant 0 : index
    %c0_68 = arith.constant 0 : index
    %57 = vector.load %arg2[%c2_65, %c1_66, %c0_67, %c0_68] : memref<4x4x128x128xbf16, #tpu.memory_space<vmem>>, vector<1x1x128x128xbf16>
    %58 = vector.shape_cast %57 : vector<1x1x128x128xbf16> to vector<128x128xbf16>
    %cst_69 = arith.constant dense<0.000000e+00> : vector<28x128xf32>
    %59 = tpu.matmul %56, %58, %cst_69 {dimension_numbers = #tpu.dot_dimension_numbers<[1], [0], [0], [1], [0, 0, 1, 1], [], []>} : vector<28x128xbf16>, vector<128x128xbf16>, vector<28x128xf32> -> vector<28x128xf32>
    %60 = arith.addf %54, %59 : vector<28x128xf32>
    %c0_70 = arith.constant 0 : index
    %c16 = arith.constant 16 : index
    %c0_71 = arith.constant 0 : index
    %61 = vector.load %arg1[%c0_70, %c16, %c0_71] : memref<1x52x128xbf16, #tpu.memory_space<vmem>>, vector<1x28x128xbf16>
    %62 = vector.shape_cast %61 : vector<1x28x128xbf16> to vector<28x128xbf16>
    %c2_72 = arith.constant 2 : index
    %c2_73 = arith.constant 2 : index
    %c0_74 = arith.constant 0 : index
    %c0_75 = arith.constant 0 : index
    %63 = vector.load %arg2[%c2_72, %c2_73, %c0_74, %c0_75] : memref<4x4x128x128xbf16, #tpu.memory_space<vmem>>, vector<1x1x128x128xbf16>
    %64 = vector.shape_cast %63 : vector<1x1x128x128xbf16> to vector<128x128xbf16>
    %cst_76 = arith.constant dense<0.000000e+00> : vector<28x128xf32>
    %65 = tpu.matmul %62, %64, %cst_76 {dimension_numbers = #tpu.dot_dimension_numbers<[1], [0], [0], [1], [0, 0, 1, 1], [], []>} : vector<28x128xbf16>, vector<128x128xbf16>, vector<28x128xf32> -> vector<28x128xf32>
    %66 = arith.addf %60, %65 : vector<28x128xf32>
    %c0_77 = arith.constant 0 : index
    %c17 = arith.constant 17 : index
    %c0_78 = arith.constant 0 : index
    %67 = vector.load %arg1[%c0_77, %c17, %c0_78] : memref<1x52x128xbf16, #tpu.memory_space<vmem>>, vector<1x28x128xbf16>
    %68 = vector.shape_cast %67 : vector<1x28x128xbf16> to vector<28x128xbf16>
    %c2_79 = arith.constant 2 : index
    %c3_80 = arith.constant 3 : index
    %c0_81 = arith.constant 0 : index
    %c0_82 = arith.constant 0 : index
    %69 = vector.load %arg2[%c2_79, %c3_80, %c0_81, %c0_82] : memref<4x4x128x128xbf16, #tpu.memory_space<vmem>>, vector<1x1x128x128xbf16>
    %70 = vector.shape_cast %69 : vector<1x1x128x128xbf16> to vector<128x128xbf16>
    %cst_83 = arith.constant dense<0.000000e+00> : vector<28x128xf32>
    %71 = tpu.matmul %68, %70, %cst_83 {dimension_numbers = #tpu.dot_dimension_numbers<[1], [0], [0], [1], [0, 0, 1, 1], [], []>} : vector<28x128xbf16>, vector<128x128xbf16>, vector<28x128xf32> -> vector<28x128xf32>
    %72 = arith.addf %66, %71 : vector<28x128xf32>
    %c0_84 = arith.constant 0 : index
    %c21 = arith.constant 21 : index
    %c0_85 = arith.constant 0 : index
    %73 = vector.load %arg1[%c0_84, %c21, %c0_85] : memref<1x52x128xbf16, #tpu.memory_space<vmem>>, vector<1x28x128xbf16>
    %74 = vector.shape_cast %73 : vector<1x28x128xbf16> to vector<28x128xbf16>
    %c3_86 = arith.constant 3 : index
    %c0_87 = arith.constant 0 : index
    %c0_88 = arith.constant 0 : index
    %c0_89 = arith.constant 0 : index
    %75 = vector.load %arg2[%c3_86, %c0_87, %c0_88, %c0_89] : memref<4x4x128x128xbf16, #tpu.memory_space<vmem>>, vector<1x1x128x128xbf16>
    %76 = vector.shape_cast %75 : vector<1x1x128x128xbf16> to vector<128x128xbf16>
    %cst_90 = arith.constant dense<0.000000e+00> : vector<28x128xf32>
    %77 = tpu.matmul %74, %76, %cst_90 {dimension_numbers = #tpu.dot_dimension_numbers<[1], [0], [0], [1], [0, 0, 1, 1], [], []>} : vector<28x128xbf16>, vector<128x128xbf16>, vector<28x128xf32> -> vector<28x128xf32>
    %78 = arith.addf %72, %77 : vector<28x128xf32>
    %c0_91 = arith.constant 0 : index
    %c22 = arith.constant 22 : index
    %c0_92 = arith.constant 0 : index
    %79 = vector.load %arg1[%c0_91, %c22, %c0_92] : memref<1x52x128xbf16, #tpu.memory_space<vmem>>, vector<1x28x128xbf16>
    %80 = vector.shape_cast %79 : vector<1x28x128xbf16> to vector<28x128xbf16>
    %c3_93 = arith.constant 3 : index
    %c1_94 = arith.constant 1 : index
    %c0_95 = arith.constant 0 : index
    %c0_96 = arith.constant 0 : index
    %81 = vector.load %arg2[%c3_93, %c1_94, %c0_95, %c0_96] : memref<4x4x128x128xbf16, #tpu.memory_space<vmem>>, vector<1x1x128x128xbf16>
    %82 = vector.shape_cast %81 : vector<1x1x128x128xbf16> to vector<128x128xbf16>
    %cst_97 = arith.constant dense<0.000000e+00> : vector<28x128xf32>
    %83 = tpu.matmul %80, %82, %cst_97 {dimension_numbers = #tpu.dot_dimension_numbers<[1], [0], [0], [1], [0, 0, 1, 1], [], []>} : vector<28x128xbf16>, vector<128x128xbf16>, vector<28x128xf32> -> vector<28x128xf32>
    %84 = arith.addf %78, %83 : vector<28x128xf32>
    %c0_98 = arith.constant 0 : index
    %c23 = arith.constant 23 : index
    %c0_99 = arith.constant 0 : index
    %85 = vector.load %arg1[%c0_98, %c23, %c0_99] : memref<1x52x128xbf16, #tpu.memory_space<vmem>>, vector<1x28x128xbf16>
    %86 = vector.shape_cast %85 : vector<1x28x128xbf16> to vector<28x128xbf16>
    %c3_100 = arith.constant 3 : index
    %c2_101 = arith.constant 2 : index
    %c0_102 = arith.constant 0 : index
    %c0_103 = arith.constant 0 : index
    %87 = vector.load %arg2[%c3_100, %c2_101, %c0_102, %c0_103] : memref<4x4x128x128xbf16, #tpu.memory_space<vmem>>, vector<1x1x128x128xbf16>
    %88 = vector.shape_cast %87 : vector<1x1x128x128xbf16> to vector<128x128xbf16>
    %cst_104 = arith.constant dense<0.000000e+00> : vector<28x128xf32>
    %89 = tpu.matmul %86, %88, %cst_104 {dimension_numbers = #tpu.dot_dimension_numbers<[1], [0], [0], [1], [0, 0, 1, 1], [], []>} : vector<28x128xbf16>, vector<128x128xbf16>, vector<28x128xf32> -> vector<28x128xf32>
    %90 = arith.addf %84, %89 : vector<28x128xf32>
    %c0_105 = arith.constant 0 : index
    %c24 = arith.constant 24 : index
    %c0_106 = arith.constant 0 : index
    %91 = vector.load %arg1[%c0_105, %c24, %c0_106] : memref<1x52x128xbf16, #tpu.memory_space<vmem>>, vector<1x28x128xbf16>
    %92 = vector.shape_cast %91 : vector<1x28x128xbf16> to vector<28x128xbf16>
    %c3_107 = arith.constant 3 : index
    %c3_108 = arith.constant 3 : index
    %c0_109 = arith.constant 0 : index
    %c0_110 = arith.constant 0 : index
    %93 = vector.load %arg2[%c3_107, %c3_108, %c0_109, %c0_110] : memref<4x4x128x128xbf16, #tpu.memory_space<vmem>>, vector<1x1x128x128xbf16>
    %94 = vector.shape_cast %93 : vector<1x1x128x128xbf16> to vector<128x128xbf16>
    %cst_111 = arith.constant dense<0.000000e+00> : vector<28x128xf32>
    %95 = tpu.matmul %92, %94, %cst_111 {dimension_numbers = #tpu.dot_dimension_numbers<[1], [0], [0], [1], [0, 0, 1, 1], [], []>} : vector<28x128xbf16>, vector<128x128xbf16>, vector<28x128xf32> -> vector<28x128xf32>
    %96 = arith.addf %90, %95 : vector<28x128xf32>
    %c0_112 = arith.constant 0 : index
    %c0_113 = arith.constant 0 : index
    %97 = vector.load %arg3[%c0_112, %c0_113] : memref<1x128xf32, #tpu.memory_space<vmem>>, vector<1x128xf32>
    %98 = vector.broadcast %97 : vector<1x128xf32> to vector<28x128xf32>
    %99 = arith.addf %96, %98 : vector<28x128xf32>
    %c0_114 = arith.constant 0 : index
    %c0_115 = arith.constant 0 : index
    %100 = vector.load %arg4[%c0_114, %c0_115] : memref<28x1xf32, #tpu.memory_space<vmem>>, vector<28x1xf32>
    %101 = vector.broadcast %100 : vector<28x1xf32> to vector<28x128xf32>
    %102 = arith.mulf %99, %101 : vector<28x128xf32>
    %cst_116 = arith.constant dense<0.000000e+00> : vector<128xf32>
    %103 = vector.multi_reduction <add>, %102, %cst_116 [0] : vector<28x128xf32> to vector<128xf32>
    %104 = vector.shape_cast %103 : vector<128xf32> to vector<1x128xf32>
    %c0_117 = arith.constant 0 : index
    %c0_118 = arith.constant 0 : index
    %c0_119 = arith.constant 0 : index
    %105 = vector.load %arg6[%c0_117, %c0_118, %c0_119] : memref<1x1x128xf32, #tpu.memory_space<vmem>>, vector<1x1x128xf32>
    %106 = vector.shape_cast %105 : vector<1x1x128xf32> to vector<1x128xf32>
    %107 = vector.shape_cast %104 : vector<1x128xf32> to vector<1x1x128xf32>
    tpu.vector_store %arg6[%c0_117, %c0_118, %c0_119], %107 {strides = array<i32>} : memref<1x1x128xf32, #tpu.memory_space<vmem>>, vector<1x1x128xf32>,
    %108 = arith.mulf %99, %99 : vector<28x128xf32>
    %109 = vector.broadcast %100 : vector<28x1xf32> to vector<28x128xf32>
    %110 = arith.mulf %108, %109 : vector<28x128xf32>
    %cst_120 = arith.constant dense<0.000000e+00> : vector<128xf32>
    %111 = vector.multi_reduction <add>, %110, %cst_120 [0] : vector<28x128xf32> to vector<128xf32>
    %112 = vector.shape_cast %111 : vector<128xf32> to vector<1x128xf32>
    %c0_121 = arith.constant 0 : index
    %c0_122 = arith.constant 0 : index
    %c0_123 = arith.constant 0 : index
    %113 = vector.load %arg7[%c0_121, %c0_122, %c0_123] : memref<1x1x128xf32, #tpu.memory_space<vmem>>, vector<1x1x128xf32>
    %114 = vector.shape_cast %113 : vector<1x1x128xf32> to vector<1x128xf32>
    %115 = vector.shape_cast %112 : vector<1x128xf32> to vector<1x1x128xf32>
    tpu.vector_store %arg7[%c0_121, %c0_122, %c0_123], %115 {strides = array<i32>} : memref<1x1x128xf32, #tpu.memory_space<vmem>>, vector<1x1x128xf32>,
    %116 = arith.truncf %99 : vector<28x128xf32> to vector<28x128xbf16>
    %c0_124 = arith.constant 0 : index
    %c0_125 = arith.constant 0 : index
    %c0_126 = arith.constant 0 : index
    %117 = vector.load %arg5[%c0_124, %c0_125, %c0_126] : memref<1x28x128xbf16, #tpu.memory_space<vmem>>, vector<1x28x128xbf16>
    %118 = vector.shape_cast %117 : vector<1x28x128xbf16> to vector<28x128xbf16>
    %119 = vector.shape_cast %116 : vector<28x128xbf16> to vector<1x28x128xbf16>
    tpu.vector_store %arg5[%c0_124, %c0_125, %c0_126], %119 {strides = array<i32>} : memref<1x28x128xbf16, #tpu.memory_space<vmem>>, vector<1x28x128xbf16>,
    return
  }
  func.func @transform_0(%arg0: i32) -> (i32, i32, i32) {
    %c0_i32 = arith.constant 0 : i32
    %c0_i32_0 = arith.constant 0 : i32
    %c0_i32_1 = arith.constant 0 : i32
    return %arg0, %c0_i32, %c0_i32_0 : i32, i32, i32
  }
  func.func @transform_1(%arg0: i32) -> (i32, i32, i32, i32) {
    %c0_i32 = arith.constant 0 : i32
    %c0_i32_0 = arith.constant 0 : i32
    %c0_i32_1 = arith.constant 0 : i32
    %c0_i32_2 = arith.constant 0 : i32
    %c0_i32_3 = arith.constant 0 : i32
    return %c0_i32, %c0_i32_0, %c0_i32_1, %c0_i32_2 : i32, i32, i32, i32
  }
  func.func @transform_2(%arg0: i32) -> (i32, i32) {
    %c0_i32 = arith.constant 0 : i32
    %c0_i32_0 = arith.constant 0 : i32
    %c0_i32_1 = arith.constant 0 : i32
    return %c0_i32, %c0_i32_0 : i32, i32
  }
  func.func @transform_3(%arg0: i32) -> (i32, i32) {
    %c0_i32 = arith.constant 0 : i32
    %c0_i32_0 = arith.constant 0 : i32
    %c0_i32_1 = arith.constant 0 : i32
    return %c0_i32, %c0_i32_0 : i32, i32
  }
  func.func @transform_4(%arg0: i32) -> (i32, i32, i32) {
    %c0_i32 = arith.constant 0 : i32
    %c0_i32_0 = arith.constant 0 : i32
    %c0_i32_1 = arith.constant 0 : i32
    return %arg0, %c0_i32, %c0_i32_0 : i32, i32, i32
  }
  func.func @transform_5(%arg0: i32) -> (i32, i32, i32) {
    %c0_i32 = arith.constant 0 : i32
    %c0_i32_0 = arith.constant 0 : i32
    %c0_i32_1 = arith.constant 0 : i32
    return %arg0, %c0_i32, %c0_i32_0 : i32, i32, i32
  }
  func.func @transform_6(%arg0: i32) -> (i32, i32, i32) {
    %c0_i32 = arith.constant 0 : i32
    %c0_i32_0 = arith.constant 0 : i32
    %c0_i32_1 = arith.constant 0 : i32
    return %arg0, %c0_i32, %c0_i32_0 : i32, i32, i32
  }
}

module attributes {stable_mosaic.version = 11 : i64} {
  func.func @_conv_kernel(%arg0: i32, %arg1: memref<1x67x128xbf16, #tpu.memory_space<vmem>>, %arg2: memref<4x4x128x128xbf16, #tpu.memory_space<vmem>>, %arg3: memref<1x128xf32, #tpu.memory_space<vmem>>, %arg4: memref<1x40x128xf32, #tpu.memory_space<vmem>>) attributes {dimension_semantics = [#tpu.dimension_semantics<parallel>], iteration_bounds = array<i64: 2>, scalar_prefetch = 0 : i64, scratch_operands = 0 : i64, tpu.core_type = #tpu.core_type<tc>, window_params = [{transform_indices = @transform_0, window_bounds = array<i64: 1, 67, 128>}, {pipeline_mode = #tpu.pipeline_mode<synchronous>, transform_indices = @transform_1, window_bounds = array<i64: 4, 4, 128, 128>}, {pipeline_mode = #tpu.pipeline_mode<synchronous>, transform_indices = @transform_2, window_bounds = array<i64: 1, 128>}, {transform_indices = @transform_3, window_bounds = array<i64: 1, 40, 128>}]} {
    %cst = arith.constant 0.000000e+00 : f32
    %0 = vector.broadcast %cst : f32 to vector<40x128xf32>
    %c0 = arith.constant 0 : index
    %c0_0 = arith.constant 0 : index
    %c0_1 = arith.constant 0 : index
    %1 = vector.load %arg1[%c0, %c0_0, %c0_1] : memref<1x67x128xbf16, #tpu.memory_space<vmem>>, vector<1x40x128xbf16>
    %2 = vector.shape_cast %1 : vector<1x40x128xbf16> to vector<40x128xbf16>
    %c0_2 = arith.constant 0 : index
    %c0_3 = arith.constant 0 : index
    %c0_4 = arith.constant 0 : index
    %c0_5 = arith.constant 0 : index
    %3 = vector.load %arg2[%c0_2, %c0_3, %c0_4, %c0_5] : memref<4x4x128x128xbf16, #tpu.memory_space<vmem>>, vector<1x1x128x128xbf16>
    %4 = vector.shape_cast %3 : vector<1x1x128x128xbf16> to vector<128x128xbf16>
    %cst_6 = arith.constant dense<0.000000e+00> : vector<40x128xf32>
    %5 = tpu.matmul %2, %4, %cst_6 {dimension_numbers = #tpu.dot_dimension_numbers<[1], [0], [0], [1], [0, 0, 1, 1], [], []>} : vector<40x128xbf16>, vector<128x128xbf16>, vector<40x128xf32> -> vector<40x128xf32>
    %6 = arith.addf %0, %5 : vector<40x128xf32>
    %c0_7 = arith.constant 0 : index
    %c1 = arith.constant 1 : index
    %c0_8 = arith.constant 0 : index
    %7 = vector.load %arg1[%c0_7, %c1, %c0_8] : memref<1x67x128xbf16, #tpu.memory_space<vmem>>, vector<1x40x128xbf16>
    %8 = vector.shape_cast %7 : vector<1x40x128xbf16> to vector<40x128xbf16>
    %c0_9 = arith.constant 0 : index
    %c1_10 = arith.constant 1 : index
    %c0_11 = arith.constant 0 : index
    %c0_12 = arith.constant 0 : index
    %9 = vector.load %arg2[%c0_9, %c1_10, %c0_11, %c0_12] : memref<4x4x128x128xbf16, #tpu.memory_space<vmem>>, vector<1x1x128x128xbf16>
    %10 = vector.shape_cast %9 : vector<1x1x128x128xbf16> to vector<128x128xbf16>
    %cst_13 = arith.constant dense<0.000000e+00> : vector<40x128xf32>
    %11 = tpu.matmul %8, %10, %cst_13 {dimension_numbers = #tpu.dot_dimension_numbers<[1], [0], [0], [1], [0, 0, 1, 1], [], []>} : vector<40x128xbf16>, vector<128x128xbf16>, vector<40x128xf32> -> vector<40x128xf32>
    %12 = arith.addf %6, %11 : vector<40x128xf32>
    %c0_14 = arith.constant 0 : index
    %c2 = arith.constant 2 : index
    %c0_15 = arith.constant 0 : index
    %13 = vector.load %arg1[%c0_14, %c2, %c0_15] : memref<1x67x128xbf16, #tpu.memory_space<vmem>>, vector<1x40x128xbf16>
    %14 = vector.shape_cast %13 : vector<1x40x128xbf16> to vector<40x128xbf16>
    %c0_16 = arith.constant 0 : index
    %c2_17 = arith.constant 2 : index
    %c0_18 = arith.constant 0 : index
    %c0_19 = arith.constant 0 : index
    %15 = vector.load %arg2[%c0_16, %c2_17, %c0_18, %c0_19] : memref<4x4x128x128xbf16, #tpu.memory_space<vmem>>, vector<1x1x128x128xbf16>
    %16 = vector.shape_cast %15 : vector<1x1x128x128xbf16> to vector<128x128xbf16>
    %cst_20 = arith.constant dense<0.000000e+00> : vector<40x128xf32>
    %17 = tpu.matmul %14, %16, %cst_20 {dimension_numbers = #tpu.dot_dimension_numbers<[1], [0], [0], [1], [0, 0, 1, 1], [], []>} : vector<40x128xbf16>, vector<128x128xbf16>, vector<40x128xf32> -> vector<40x128xf32>
    %18 = arith.addf %12, %17 : vector<40x128xf32>
    %c0_21 = arith.constant 0 : index
    %c3 = arith.constant 3 : index
    %c0_22 = arith.constant 0 : index
    %19 = vector.load %arg1[%c0_21, %c3, %c0_22] : memref<1x67x128xbf16, #tpu.memory_space<vmem>>, vector<1x40x128xbf16>
    %20 = vector.shape_cast %19 : vector<1x40x128xbf16> to vector<40x128xbf16>
    %c0_23 = arith.constant 0 : index
    %c3_24 = arith.constant 3 : index
    %c0_25 = arith.constant 0 : index
    %c0_26 = arith.constant 0 : index
    %21 = vector.load %arg2[%c0_23, %c3_24, %c0_25, %c0_26] : memref<4x4x128x128xbf16, #tpu.memory_space<vmem>>, vector<1x1x128x128xbf16>
    %22 = vector.shape_cast %21 : vector<1x1x128x128xbf16> to vector<128x128xbf16>
    %cst_27 = arith.constant dense<0.000000e+00> : vector<40x128xf32>
    %23 = tpu.matmul %20, %22, %cst_27 {dimension_numbers = #tpu.dot_dimension_numbers<[1], [0], [0], [1], [0, 0, 1, 1], [], []>} : vector<40x128xbf16>, vector<128x128xbf16>, vector<40x128xf32> -> vector<40x128xf32>
    %24 = arith.addf %18, %23 : vector<40x128xf32>
    %c0_28 = arith.constant 0 : index
    %c8 = arith.constant 8 : index
    %c0_29 = arith.constant 0 : index
    %25 = vector.load %arg1[%c0_28, %c8, %c0_29] : memref<1x67x128xbf16, #tpu.memory_space<vmem>>, vector<1x40x128xbf16>
    %26 = vector.shape_cast %25 : vector<1x40x128xbf16> to vector<40x128xbf16>
    %c1_30 = arith.constant 1 : index
    %c0_31 = arith.constant 0 : index
    %c0_32 = arith.constant 0 : index
    %c0_33 = arith.constant 0 : index
    %27 = vector.load %arg2[%c1_30, %c0_31, %c0_32, %c0_33] : memref<4x4x128x128xbf16, #tpu.memory_space<vmem>>, vector<1x1x128x128xbf16>
    %28 = vector.shape_cast %27 : vector<1x1x128x128xbf16> to vector<128x128xbf16>
    %cst_34 = arith.constant dense<0.000000e+00> : vector<40x128xf32>
    %29 = tpu.matmul %26, %28, %cst_34 {dimension_numbers = #tpu.dot_dimension_numbers<[1], [0], [0], [1], [0, 0, 1, 1], [], []>} : vector<40x128xbf16>, vector<128x128xbf16>, vector<40x128xf32> -> vector<40x128xf32>
    %30 = arith.addf %24, %29 : vector<40x128xf32>
    %c0_35 = arith.constant 0 : index
    %c9 = arith.constant 9 : index
    %c0_36 = arith.constant 0 : index
    %31 = vector.load %arg1[%c0_35, %c9, %c0_36] : memref<1x67x128xbf16, #tpu.memory_space<vmem>>, vector<1x40x128xbf16>
    %32 = vector.shape_cast %31 : vector<1x40x128xbf16> to vector<40x128xbf16>
    %c1_37 = arith.constant 1 : index
    %c1_38 = arith.constant 1 : index
    %c0_39 = arith.constant 0 : index
    %c0_40 = arith.constant 0 : index
    %33 = vector.load %arg2[%c1_37, %c1_38, %c0_39, %c0_40] : memref<4x4x128x128xbf16, #tpu.memory_space<vmem>>, vector<1x1x128x128xbf16>
    %34 = vector.shape_cast %33 : vector<1x1x128x128xbf16> to vector<128x128xbf16>
    %cst_41 = arith.constant dense<0.000000e+00> : vector<40x128xf32>
    %35 = tpu.matmul %32, %34, %cst_41 {dimension_numbers = #tpu.dot_dimension_numbers<[1], [0], [0], [1], [0, 0, 1, 1], [], []>} : vector<40x128xbf16>, vector<128x128xbf16>, vector<40x128xf32> -> vector<40x128xf32>
    %36 = arith.addf %30, %35 : vector<40x128xf32>
    %c0_42 = arith.constant 0 : index
    %c10 = arith.constant 10 : index
    %c0_43 = arith.constant 0 : index
    %37 = vector.load %arg1[%c0_42, %c10, %c0_43] : memref<1x67x128xbf16, #tpu.memory_space<vmem>>, vector<1x40x128xbf16>
    %38 = vector.shape_cast %37 : vector<1x40x128xbf16> to vector<40x128xbf16>
    %c1_44 = arith.constant 1 : index
    %c2_45 = arith.constant 2 : index
    %c0_46 = arith.constant 0 : index
    %c0_47 = arith.constant 0 : index
    %39 = vector.load %arg2[%c1_44, %c2_45, %c0_46, %c0_47] : memref<4x4x128x128xbf16, #tpu.memory_space<vmem>>, vector<1x1x128x128xbf16>
    %40 = vector.shape_cast %39 : vector<1x1x128x128xbf16> to vector<128x128xbf16>
    %cst_48 = arith.constant dense<0.000000e+00> : vector<40x128xf32>
    %41 = tpu.matmul %38, %40, %cst_48 {dimension_numbers = #tpu.dot_dimension_numbers<[1], [0], [0], [1], [0, 0, 1, 1], [], []>} : vector<40x128xbf16>, vector<128x128xbf16>, vector<40x128xf32> -> vector<40x128xf32>
    %42 = arith.addf %36, %41 : vector<40x128xf32>
    %c0_49 = arith.constant 0 : index
    %c11 = arith.constant 11 : index
    %c0_50 = arith.constant 0 : index
    %43 = vector.load %arg1[%c0_49, %c11, %c0_50] : memref<1x67x128xbf16, #tpu.memory_space<vmem>>, vector<1x40x128xbf16>
    %44 = vector.shape_cast %43 : vector<1x40x128xbf16> to vector<40x128xbf16>
    %c1_51 = arith.constant 1 : index
    %c3_52 = arith.constant 3 : index
    %c0_53 = arith.constant 0 : index
    %c0_54 = arith.constant 0 : index
    %45 = vector.load %arg2[%c1_51, %c3_52, %c0_53, %c0_54] : memref<4x4x128x128xbf16, #tpu.memory_space<vmem>>, vector<1x1x128x128xbf16>
    %46 = vector.shape_cast %45 : vector<1x1x128x128xbf16> to vector<128x128xbf16>
    %cst_55 = arith.constant dense<0.000000e+00> : vector<40x128xf32>
    %47 = tpu.matmul %44, %46, %cst_55 {dimension_numbers = #tpu.dot_dimension_numbers<[1], [0], [0], [1], [0, 0, 1, 1], [], []>} : vector<40x128xbf16>, vector<128x128xbf16>, vector<40x128xf32> -> vector<40x128xf32>
    %48 = arith.addf %42, %47 : vector<40x128xf32>
    %c0_56 = arith.constant 0 : index
    %c16 = arith.constant 16 : index
    %c0_57 = arith.constant 0 : index
    %49 = vector.load %arg1[%c0_56, %c16, %c0_57] : memref<1x67x128xbf16, #tpu.memory_space<vmem>>, vector<1x40x128xbf16>
    %50 = vector.shape_cast %49 : vector<1x40x128xbf16> to vector<40x128xbf16>
    %c2_58 = arith.constant 2 : index
    %c0_59 = arith.constant 0 : index
    %c0_60 = arith.constant 0 : index
    %c0_61 = arith.constant 0 : index
    %51 = vector.load %arg2[%c2_58, %c0_59, %c0_60, %c0_61] : memref<4x4x128x128xbf16, #tpu.memory_space<vmem>>, vector<1x1x128x128xbf16>
    %52 = vector.shape_cast %51 : vector<1x1x128x128xbf16> to vector<128x128xbf16>
    %cst_62 = arith.constant dense<0.000000e+00> : vector<40x128xf32>
    %53 = tpu.matmul %50, %52, %cst_62 {dimension_numbers = #tpu.dot_dimension_numbers<[1], [0], [0], [1], [0, 0, 1, 1], [], []>} : vector<40x128xbf16>, vector<128x128xbf16>, vector<40x128xf32> -> vector<40x128xf32>
    %54 = arith.addf %48, %53 : vector<40x128xf32>
    %c0_63 = arith.constant 0 : index
    %c17 = arith.constant 17 : index
    %c0_64 = arith.constant 0 : index
    %55 = vector.load %arg1[%c0_63, %c17, %c0_64] : memref<1x67x128xbf16, #tpu.memory_space<vmem>>, vector<1x40x128xbf16>
    %56 = vector.shape_cast %55 : vector<1x40x128xbf16> to vector<40x128xbf16>
    %c2_65 = arith.constant 2 : index
    %c1_66 = arith.constant 1 : index
    %c0_67 = arith.constant 0 : index
    %c0_68 = arith.constant 0 : index
    %57 = vector.load %arg2[%c2_65, %c1_66, %c0_67, %c0_68] : memref<4x4x128x128xbf16, #tpu.memory_space<vmem>>, vector<1x1x128x128xbf16>
    %58 = vector.shape_cast %57 : vector<1x1x128x128xbf16> to vector<128x128xbf16>
    %cst_69 = arith.constant dense<0.000000e+00> : vector<40x128xf32>
    %59 = tpu.matmul %56, %58, %cst_69 {dimension_numbers = #tpu.dot_dimension_numbers<[1], [0], [0], [1], [0, 0, 1, 1], [], []>} : vector<40x128xbf16>, vector<128x128xbf16>, vector<40x128xf32> -> vector<40x128xf32>
    %60 = arith.addf %54, %59 : vector<40x128xf32>
    %c0_70 = arith.constant 0 : index
    %c18 = arith.constant 18 : index
    %c0_71 = arith.constant 0 : index
    %61 = vector.load %arg1[%c0_70, %c18, %c0_71] : memref<1x67x128xbf16, #tpu.memory_space<vmem>>, vector<1x40x128xbf16>
    %62 = vector.shape_cast %61 : vector<1x40x128xbf16> to vector<40x128xbf16>
    %c2_72 = arith.constant 2 : index
    %c2_73 = arith.constant 2 : index
    %c0_74 = arith.constant 0 : index
    %c0_75 = arith.constant 0 : index
    %63 = vector.load %arg2[%c2_72, %c2_73, %c0_74, %c0_75] : memref<4x4x128x128xbf16, #tpu.memory_space<vmem>>, vector<1x1x128x128xbf16>
    %64 = vector.shape_cast %63 : vector<1x1x128x128xbf16> to vector<128x128xbf16>
    %cst_76 = arith.constant dense<0.000000e+00> : vector<40x128xf32>
    %65 = tpu.matmul %62, %64, %cst_76 {dimension_numbers = #tpu.dot_dimension_numbers<[1], [0], [0], [1], [0, 0, 1, 1], [], []>} : vector<40x128xbf16>, vector<128x128xbf16>, vector<40x128xf32> -> vector<40x128xf32>
    %66 = arith.addf %60, %65 : vector<40x128xf32>
    %c0_77 = arith.constant 0 : index
    %c19 = arith.constant 19 : index
    %c0_78 = arith.constant 0 : index
    %67 = vector.load %arg1[%c0_77, %c19, %c0_78] : memref<1x67x128xbf16, #tpu.memory_space<vmem>>, vector<1x40x128xbf16>
    %68 = vector.shape_cast %67 : vector<1x40x128xbf16> to vector<40x128xbf16>
    %c2_79 = arith.constant 2 : index
    %c3_80 = arith.constant 3 : index
    %c0_81 = arith.constant 0 : index
    %c0_82 = arith.constant 0 : index
    %69 = vector.load %arg2[%c2_79, %c3_80, %c0_81, %c0_82] : memref<4x4x128x128xbf16, #tpu.memory_space<vmem>>, vector<1x1x128x128xbf16>
    %70 = vector.shape_cast %69 : vector<1x1x128x128xbf16> to vector<128x128xbf16>
    %cst_83 = arith.constant dense<0.000000e+00> : vector<40x128xf32>
    %71 = tpu.matmul %68, %70, %cst_83 {dimension_numbers = #tpu.dot_dimension_numbers<[1], [0], [0], [1], [0, 0, 1, 1], [], []>} : vector<40x128xbf16>, vector<128x128xbf16>, vector<40x128xf32> -> vector<40x128xf32>
    %72 = arith.addf %66, %71 : vector<40x128xf32>
    %c0_84 = arith.constant 0 : index
    %c24 = arith.constant 24 : index
    %c0_85 = arith.constant 0 : index
    %73 = vector.load %arg1[%c0_84, %c24, %c0_85] : memref<1x67x128xbf16, #tpu.memory_space<vmem>>, vector<1x40x128xbf16>
    %74 = vector.shape_cast %73 : vector<1x40x128xbf16> to vector<40x128xbf16>
    %c3_86 = arith.constant 3 : index
    %c0_87 = arith.constant 0 : index
    %c0_88 = arith.constant 0 : index
    %c0_89 = arith.constant 0 : index
    %75 = vector.load %arg2[%c3_86, %c0_87, %c0_88, %c0_89] : memref<4x4x128x128xbf16, #tpu.memory_space<vmem>>, vector<1x1x128x128xbf16>
    %76 = vector.shape_cast %75 : vector<1x1x128x128xbf16> to vector<128x128xbf16>
    %cst_90 = arith.constant dense<0.000000e+00> : vector<40x128xf32>
    %77 = tpu.matmul %74, %76, %cst_90 {dimension_numbers = #tpu.dot_dimension_numbers<[1], [0], [0], [1], [0, 0, 1, 1], [], []>} : vector<40x128xbf16>, vector<128x128xbf16>, vector<40x128xf32> -> vector<40x128xf32>
    %78 = arith.addf %72, %77 : vector<40x128xf32>
    %c0_91 = arith.constant 0 : index
    %c25 = arith.constant 25 : index
    %c0_92 = arith.constant 0 : index
    %79 = vector.load %arg1[%c0_91, %c25, %c0_92] : memref<1x67x128xbf16, #tpu.memory_space<vmem>>, vector<1x40x128xbf16>
    %80 = vector.shape_cast %79 : vector<1x40x128xbf16> to vector<40x128xbf16>
    %c3_93 = arith.constant 3 : index
    %c1_94 = arith.constant 1 : index
    %c0_95 = arith.constant 0 : index
    %c0_96 = arith.constant 0 : index
    %81 = vector.load %arg2[%c3_93, %c1_94, %c0_95, %c0_96] : memref<4x4x128x128xbf16, #tpu.memory_space<vmem>>, vector<1x1x128x128xbf16>
    %82 = vector.shape_cast %81 : vector<1x1x128x128xbf16> to vector<128x128xbf16>
    %cst_97 = arith.constant dense<0.000000e+00> : vector<40x128xf32>
    %83 = tpu.matmul %80, %82, %cst_97 {dimension_numbers = #tpu.dot_dimension_numbers<[1], [0], [0], [1], [0, 0, 1, 1], [], []>} : vector<40x128xbf16>, vector<128x128xbf16>, vector<40x128xf32> -> vector<40x128xf32>
    %84 = arith.addf %78, %83 : vector<40x128xf32>
    %c0_98 = arith.constant 0 : index
    %c26 = arith.constant 26 : index
    %c0_99 = arith.constant 0 : index
    %85 = vector.load %arg1[%c0_98, %c26, %c0_99] : memref<1x67x128xbf16, #tpu.memory_space<vmem>>, vector<1x40x128xbf16>
    %86 = vector.shape_cast %85 : vector<1x40x128xbf16> to vector<40x128xbf16>
    %c3_100 = arith.constant 3 : index
    %c2_101 = arith.constant 2 : index
    %c0_102 = arith.constant 0 : index
    %c0_103 = arith.constant 0 : index
    %87 = vector.load %arg2[%c3_100, %c2_101, %c0_102, %c0_103] : memref<4x4x128x128xbf16, #tpu.memory_space<vmem>>, vector<1x1x128x128xbf16>
    %88 = vector.shape_cast %87 : vector<1x1x128x128xbf16> to vector<128x128xbf16>
    %cst_104 = arith.constant dense<0.000000e+00> : vector<40x128xf32>
    %89 = tpu.matmul %86, %88, %cst_104 {dimension_numbers = #tpu.dot_dimension_numbers<[1], [0], [0], [1], [0, 0, 1, 1], [], []>} : vector<40x128xbf16>, vector<128x128xbf16>, vector<40x128xf32> -> vector<40x128xf32>
    %90 = arith.addf %84, %89 : vector<40x128xf32>
    %c0_105 = arith.constant 0 : index
    %c27 = arith.constant 27 : index
    %c0_106 = arith.constant 0 : index
    %91 = vector.load %arg1[%c0_105, %c27, %c0_106] : memref<1x67x128xbf16, #tpu.memory_space<vmem>>, vector<1x40x128xbf16>
    %92 = vector.shape_cast %91 : vector<1x40x128xbf16> to vector<40x128xbf16>
    %c3_107 = arith.constant 3 : index
    %c3_108 = arith.constant 3 : index
    %c0_109 = arith.constant 0 : index
    %c0_110 = arith.constant 0 : index
    %93 = vector.load %arg2[%c3_107, %c3_108, %c0_109, %c0_110] : memref<4x4x128x128xbf16, #tpu.memory_space<vmem>>, vector<1x1x128x128xbf16>
    %94 = vector.shape_cast %93 : vector<1x1x128x128xbf16> to vector<128x128xbf16>
    %cst_111 = arith.constant dense<0.000000e+00> : vector<40x128xf32>
    %95 = tpu.matmul %92, %94, %cst_111 {dimension_numbers = #tpu.dot_dimension_numbers<[1], [0], [0], [1], [0, 0, 1, 1], [], []>} : vector<40x128xbf16>, vector<128x128xbf16>, vector<40x128xf32> -> vector<40x128xf32>
    %96 = arith.addf %90, %95 : vector<40x128xf32>
    %c0_112 = arith.constant 0 : index
    %c0_113 = arith.constant 0 : index
    %97 = vector.load %arg3[%c0_112, %c0_113] : memref<1x128xf32, #tpu.memory_space<vmem>>, vector<1x128xf32>
    %98 = vector.broadcast %97 : vector<1x128xf32> to vector<40x128xf32>
    %99 = arith.addf %96, %98 : vector<40x128xf32>
    %c0_114 = arith.constant 0 : index
    %c0_115 = arith.constant 0 : index
    %c0_116 = arith.constant 0 : index
    %100 = vector.load %arg4[%c0_114, %c0_115, %c0_116] : memref<1x40x128xf32, #tpu.memory_space<vmem>>, vector<1x40x128xf32>
    %101 = vector.shape_cast %100 : vector<1x40x128xf32> to vector<40x128xf32>
    %102 = vector.shape_cast %99 : vector<40x128xf32> to vector<1x40x128xf32>
    tpu.vector_store %arg4[%c0_114, %c0_115, %c0_116], %102 {strides = array<i32>} : memref<1x40x128xf32, #tpu.memory_space<vmem>>, vector<1x40x128xf32>,
    return
  }
  func.func @transform_0(%arg0: i32) -> (i32, i32, i32) {
    %c0_i32 = arith.constant 0 : i32
    %c0_i32_0 = arith.constant 0 : i32
    %c0_i32_1 = arith.constant 0 : i32
    return %arg0, %c0_i32, %c0_i32_0 : i32, i32, i32
  }
  func.func @transform_1(%arg0: i32) -> (i32, i32, i32, i32) {
    %c0_i32 = arith.constant 0 : i32
    %c0_i32_0 = arith.constant 0 : i32
    %c0_i32_1 = arith.constant 0 : i32
    %c0_i32_2 = arith.constant 0 : i32
    %c0_i32_3 = arith.constant 0 : i32
    return %c0_i32, %c0_i32_0, %c0_i32_1, %c0_i32_2 : i32, i32, i32, i32
  }
  func.func @transform_2(%arg0: i32) -> (i32, i32) {
    %c0_i32 = arith.constant 0 : i32
    %c0_i32_0 = arith.constant 0 : i32
    %c0_i32_1 = arith.constant 0 : i32
    return %c0_i32, %c0_i32_0 : i32, i32
  }
  func.func @transform_3(%arg0: i32) -> (i32, i32, i32) {
    %c0_i32 = arith.constant 0 : i32
    %c0_i32_0 = arith.constant 0 : i32
    %c0_i32_1 = arith.constant 0 : i32
    return %arg0, %c0_i32, %c0_i32_0 : i32, i32, i32
  }
}

</mosaic_0001>

<bundles_post_ra>
// kernel: forward.5
= control target key start
LH: loop header
LB: loop body
LE: loop exit
PB: predicated region body
PF: predicated region fallthrough
CT: control target
= control target key end

     0   :  { %s1299_s12 = smov 0   ;;  %s1477_s0 = inlined_call_operand.vmem [shape: bf16[2,101,12], index: 0, kind: input, shape index: {}]   ;;  %s1478_s1 = inlined_call_operand.vmem [shape: bf16[2,2,12,128], index: 1, kind: input, shape index: {}]   ;;  %s1479_s2 = inlined_call_operand.vmem [shape: f32[1,128], index: 2, kind: input, shape index: {}]   ;;  %s1480_s3 = inlined_call_operand.vmem [shape: bf16[2,90,128], index: 3, kind: output, shape index: {}]  }
   0x1 LB: > { %s1008_s13 = sadd.s32 4294967295, %s1277_s12   ;;  %p1012_p0 = scmp.ge.s32.totalorder %s1277_s12, 1  ;;  %s1277_s12 = sphi %s1299_s12, %s13_s12  }
   0x2   : > { %p137_p1 = scmp.lt.s32.totalorder %s1277_s12, 3 }
   0x4   : > { %p138_p2 = pnand %p1012_p0, %p137_p1 }
   0x5   : > { %vm292_vm0 = vcmask (!%p138_p2), 1045504   ;;  %p161_p3 = scmp.lt.s32.totalorder (!%p138_p2), %s1008_s13, 1  ;;  %v1253_v0 = vld [vmem:[%s1478_s1 + $0x10] sm:$0x3f] (!%p138_p2)   ;;  %v1254_v1 = vld [vmem:[%s1478_s1 + $0x8] sm:$0x3f] (!%p138_p2)  }
   0x6   : > { %141 = sbr.rel (%p138_p2) target bundleno = 292 (0x124), region = 32  ;;  %1241 = vmatprep.subr.msk.bf16.mxu0 (!%p138_p2), %vm292_vm0, %v1253_v0  ;;  %v563_v2 = vsel (!%p138_p2), %vm292_vm0, %v1253_v0, 0  ;;  %1239 = vmatprep.subr.msk.bf16.mxu1 (!%p138_p2), %vm292_vm0, %v1254_v1  ;;  %v294_v3 = vsel (!%p138_p2), %vm292_vm0, %v1254_v1, 0  ;;  %v1260_v4 = vld [vmem:[%s1478_s1] sm:$0x3f] (!%p138_p2)   ;;  %vm273_vm1 = vcmask (!%p138_p2), 97280  }
   0x7   : > { %1176 = vmatpush3.bf16.msra.mxu0 (!%p138_p2), %v563_v2  ;;  %1148 = vmatpush3.bf16.msra.mxu1 (!%p138_p2), %v294_v3  ;;  %v1261_v5 = vld [vmem:[%s1478_s1 + $0x18] sm:$0x3f] (!%p138_p2)   ;;  %vm220_vm2 = vsmask.f32 (!%p138_p2), 7424  ;;  %vm527_vm3 = vcmask (!%p138_p2), 1046528   ;;  %v399_v40 = vsel (!%p138_p2), %vm292_vm0, %v1260_v4, 0 }
   0x8   : > { %1240 = vmatprep.subr.msk.bf16.mxu1 (!%p138_p2), %vm292_vm0, %v1260_v4  ;;  %1242 = vmatprep.subr.msk.bf16.mxu0 (!%p138_p2), %vm292_vm0, %v1261_v5  ;;  %v743_v15 = vsel (!%p138_p2), %vm292_vm0, %v1261_v5, 0  ;;  %vm665_vm4 = vsmask.f32 (!%p138_p2), 6400 }
   0xd   : > { %s1482_s13 = smov (!%p161_p3, %s1008_s13), 1 }
   0xe   : > { %s1243_s18 = smul.u32 52, %s1482_s13 }
   0xf   : > { %s1244_s28 = smul.u32 48, %s1482_s13 }
  0x10   : > { %s1329_s25 = scalar_lea.vmem %s1477_s0, %s1243_s18 }
  0x11   : > { %v1334_v6 = vld [vmem:[%s1329_s25 + $0x4] sm:$0xfe]   ;;  %v1337_v7 = vld [vmem:[%s1329_s25 + $0xc] sm:$0xff]   ;;  %v1340_v8 = vld [vmem:[%s1329_s25 + $0x14] sm:$0xff]   ;;  %s1457_s4 = scalar_lea.vmem %s1480_s3, %s1244_s28 }
  0x12   : > { %v528_v9 = vrot.slane %v1334_v6, 1  ;;  %v529_v10 = vrot.slane %v1337_v7, 1  ;;  %v531_v11 = vrot.slane %v1340_v8, 1  ;;  %v1346_v12 = vld [vmem:[%s1329_s25] sm:$0xff]   ;;  %v1350_v14 = vld [vmem:[%s1329_s25 + $0x8] sm:$0xff]   ;;  %v1358_v19 = vld [vmem:[%s1329_s25 + $0x10] sm:$0xff]  }
  0x13   : > { %v222_v17 = vshrl.u32 %v1346_v12, 16  ;;  %v224_v18 = vshll.u32 %v1346_v12, 16  ;;  %v1361_v20 = vld [vmem:[%s1329_s25 + $0x1c] sm:$0xff]   ;;  %v229_v21 = vshll.u32 %v1350_v14, 16  ;;  %v233_v22 = vshrl.u32 %v1350_v14, 16  ;;  %v1369_v26 = vld [vmem:[%s1329_s25 + $0x24] sm:$0xff]  }
  0x14   : > { %v530_v13 = vsel %vm527_vm3, %v528_v9, %v529_v10  ;;  %v532_v16 = vsel %vm527_vm3, %v529_v10, %v531_v11  ;;  %v237_v24 = vshll.u32 %v1358_v19, 16  ;;  %v533_v25 = vrot.slane %v1361_v20, 1  ;;  %v1372_v28 = vld [vmem:[%s1329_s25 + $0x18] sm:$0xff]   ;;  %v1380_v36 = vld [vmem:[%s1329_s25 + $0x20] sm:$0xff]   ;;  %v492_v38 = vld [vmem:[%s1329_s25 + $0x2c] sm:$0xf] }
  0x15   : > { %1177 = vmatprep.mubr.msk.bf16.mxu0 %vm273_vm1, %v530_v13  ;;  %v226_v23 = vrot.slane %v224_v18, 1  ;;  %v231_v27 = vrot.slane %v229_v21, 1  ;;  %v535_v32 = vrot.slane %v1369_v26, 1  ;;  %v241_v34 = vshrl.u32 %v1358_v19, 16  ;;  %v493_v42 = vld [vmem:[%s1329_s25 + $0x30] sm:$0x3] }
  0x16   : > { %1178 = vmatmul.mubr.msk.bf16.vlgmr.msra.gmra.mrb[0].mxu0 %vm273_vm1, %v532_v16  ;;  %v239_v30 = vrot.slane %v237_v24, 1  ;;  %v534_v31 = vsel %vm527_vm3, %v531_v11, %v533_v25  ;;  %v245_v35 = vshll.u32 %v1372_v28, 16  ;;  %v249_v37 = vshrl.u32 %v1372_v28, 16  ;;  %v1389_v43 = vld [vmem:[%s1329_s25 + $0x28] sm:$0xf] }
  0x17   : > { %1190 = vmatpush3.bf16.msra.mxu0 %v743_v15  ;;  %v227_v29 = vor.u32 %v226_v23, %v222_v17  ;;  %v235_v33 = vor.u32 %v233_v22, %v231_v27  ;;  %1181 = vmatprep.mubr.msk.bf16.mxu0 %vm273_vm1, %v534_v31  ;;  %v536_v41 = vsel %vm527_vm3, %v533_v25, %v535_v32  ;;  %v667_v44 = vshrl.u32 %v1334_v6, 16  ;;  %v186_v49 = vld [vmem:[%s1329_s25 + $0x2c] sm:$0x3]  ;;  %v658_v61 = vld [vmem:[%s1329_s25 + $0x30] sm:$0x7] }
  0x18   : > { %v243_v46 = vor.u32 %v241_v34, %v239_v30  ;;  %v247_v47 = vrot.slane %v245_v35, 1  ;;  %v253_v48 = vshll.u32 %v1380_v36, 16  ;;  %v1045_v50 = vcombine.low %v492_v38, %v493_v42 }
  0x19   : > { %v232_v39 = vsel %vm220_vm2, %v227_v29, %v231_v27  ;;  %v240_v45 = vsel %vm220_vm2, %v235_v33, %v239_v30  ;;  %v1022_v51 = vcombine.low %v1389_v43, %v186_v49  ;;  %v257_v52 = vshrl.u32 %v1380_v36, 16 }
  0x1a   : > { %1149 = vmatprep.mubr.msk.bf16.mxu1 %vm273_vm1, %v232_v39  ;;  %v248_v53 = vsel %vm220_vm2, %v243_v46, %v247_v47  ;;  %v251_v54 = vor.u32 %v249_v37, %v247_v47  ;;  %v255_v55 = vrot.slane %v253_v48, 1  ;;  %v537_v56 = vrot.slane %v1045_v50, 1 }
  0x1b   : > { %1150 = vmatmul.mubr.msk.bf16.vlgmr.msra.gmra.mrb[0].mxu1 %vm273_vm1, %v240_v45  ;;  %v261_v57 = vshll.u32 %v1022_v51, 16  ;;  %v669_v58 = vrot.slane %v667_v44, 1  ;;  %v670_v59 = vshll.u32 %v1334_v6, 16  ;;  %v675_v63 = vshrl.u32 %v1337_v7, 16 }
  0x1c   : > { %1162 = vmatpush3.bf16.msra.mxu1 %v399_v40  ;;  %1153 = vmatprep.mubr.msk.bf16.mxu1 %vm273_vm1, %v248_v53  ;;  %v256_v60 = vsel %vm220_vm2, %v251_v54, %v255_v55  ;;  %v259_v62 = vor.u32 %v257_v52, %v255_v55  ;;  %v678_v0 = vshll.u32 %v1337_v7, 16  ;;  %v538_v1 = vsel %vm527_vm3, %v535_v32, %v537_v56 }
  0x1d   : > { %v263_v2 = vrot.slane %v261_v57, 1  ;;  %v672_v3 = vrot.slane %v670_v59, 2  ;;  %v684_v4 = vshrl.u32 %v1340_v8, 16  ;;  %v677_v5 = vrot.slane %v675_v63, 1 }
  0x1e   : > { %1182 = vmatmul.mubr.msk.bf16.gmra.mrb[4].mxu0 %vm273_vm1, %v536_v41  ;;  %v680_v9 = vrot.slane %v678_v0, 2  ;;  %v687_v6 = vshll.u32 %v1340_v8, 16  ;;  %v693_v10 = vshrl.u32 %v1361_v20, 16  ;;  %v1055_v11 = vcombine.low %v492_v38, %v658_v61 }
  0x1f   : > { %1185 = vmatprep.mubr.msk.bf16.mxu0 %vm273_vm1, %v538_v1  ;;  %v264_v13 = vsel %vm220_vm2, %v259_v62, %v263_v2  ;;  %v673_v15 = vor.u32 %v672_v3, %v669_v58  ;;  %v686_v16 = vrot.slane %v684_v4, 1  ;;  %v696_v21 = vshll.u32 %v1361_v20, 16 }
  0x20   : > { %v681_v7 = vor.u32 %v680_v9, %v677_v5  ;;  %v689_v17 = vrot.slane %v687_v6, 2  ;;  %v695_v18 = vrot.slane %v693_v10, 1  ;;  %v265_v22 = vshrl.u32 %v1022_v51, 16 }
  0x21   : > { %v698_v23 = vrot.slane %v696_v21, 2  ;;  %v702_v25 = vshrl.u32 %v1369_v26, 16  ;;  %v705_v27 = vshll.u32 %v1369_v26, 16  ;;  %v711_v30 = vshrl.u32 %v1055_v11, 16 }
  0x22   : > { %v682_v8 = vsel %vm665_vm4, %v673_v15, %v681_v7  ;;  %v690_v24 = vor.u32 %v689_v17, %v686_v16  ;;  %v714_v20 = vshll.u32 %v1055_v11, 16  ;;  %v267_v31 = vor.u32 %v265_v22, %v263_v2 }
  0x23   : > { %1154 = vmatmul.mubr.msk.bf16.gmra.mrb[4].mxu1 %vm273_vm1, %v256_v60  ;;  %v699_v29 = vor.u32 %v698_v23, %v695_v18  ;;  %v704_v33 = vrot.slane %v702_v25, 1  ;;  %v707_v34 = vrot.slane %v705_v27, 2  ;;  %v713_v37 = vrot.slane %v711_v30, 1 }
  0x24   : > { %1157 = vmatprep.mubr.msk.bf16.mxu1 %vm273_vm1, %v264_v13  ;;  %v691_v32 = vsel %vm665_vm4, %v681_v7, %v690_v24  ;;  %v716_v38 = vrot.slane %v714_v20, 2 }
  0x25   : > { %v700_v35 = vsel %vm665_vm4, %v690_v24, %v699_v29  ;;  %v708_v26 = vor.u32 %v707_v34, %v704_v33 }
  0x26   : > { %1186 = vmatmul.mubr.msk.bf16.gmra.mrb[8].mxu0 %vm273_vm1, %v537_v56  ;;  %v717_v39 = vor.u32 %v716_v38, %v713_v37 }
  0x27   : > { %1191 = vmatprep.mubr.msk.bf16.mxu0 %vm273_vm1, %v682_v8  ;;  %v709_v40 = vsel %vm665_vm4, %v699_v29, %v708_v26 }
  0x28   : > { %v718_v41 = vsel %vm665_vm4, %v708_v26, %v717_v39 }
  0x2b   : > { %1158 = vmatmul.mubr.msk.bf16.gmra.mrb[8].mxu1 %vm273_vm1, %v267_v31 }
  0x2c   : > { %1163 = vmatprep.mubr.msk.bf16.mxu1 %vm273_vm1, %v1346_v12  ;;  %v183_v12 = vld [vmem:[%s1329_s25 + $0x2c] sm:$0x1] }
  0x2d   : > { %v1030_v42 = vcombine.low %v1389_v43, %v183_v12 }
  0x2e   : > { %1192 = vmatmul.mubr.msk.bf16.vlgmr.msra.gmra.mrb[0].mxu0 %vm273_vm1, %v691_v32 }
  0x2f   : > { %1195 = vmatprep.mubr.msk.bf16.mxu0 %vm273_vm1, %v700_v35 }
  0x33   : > { %1164 = vmatmul.mubr.msk.bf16.vlgmr.msra.gmra.mrb[0].mxu1 %vm273_vm1, %v1350_v14 }
  0x34   : > { %1167 = vmatprep.mubr.msk.bf16.mxu1 %vm273_vm1, %v1358_v19 }
  0x36   : > { %1196 = vmatmul.mubr.msk.bf16.gmra.mrb[4].mxu0 %vm273_vm1, %v709_v40 }
  0x37   : > { %1199 = vmatprep.mubr.msk.bf16.mxu0 %vm273_vm1, %v718_v41 }
  0x3b   : > { %1168 = vmatmul.mubr.msk.bf16.gmra.mrb[4].mxu1 %vm273_vm1, %v1372_v28  ;;  %v1447_v28 = vld [vmem:[%s1479_s2] ss:$0 sm:$0xff] }
  0x3c   : > { %1171 = vmatprep.mubr.msk.bf16.mxu1 %vm273_vm1, %v1380_v36 }
  0x3e   : > { %1200 = vmatmul.mubr.msk.bf16.gmra.mrb[8].mxu0 %vm273_vm1, %v717_v39 }
  0x43   : > { %1172 = vmatmul.mubr.msk.bf16.gmra.mrb[8].mxu1 %vm273_vm1, %v1030_v42 }
 0x101   : > { %v1193_v14 = vpop.f32.mrb[0].mxu0 }
 0x102   : > { %v779_v44 = vpop.f32.mrb[1].mxu0 }
 0x103   : > { %v1194_v45 = vpop.f32.mrb[2].mxu0 }
 0x104   : > { %v782_v46 = vpop.f32.mrb[3].mxu0 }
 0x106   : > { %v1165_v19 = vpop.f32.mrb[0].mxu1 }
 0x107   : > { %v1203_v47 = vadd.f32 %v1193_v14, %v1165_v19  ;;  %v435_v48 = vpop.f32.mrb[1].mxu1 }
 0x108   : > { %v1204_v36 = vadd.f32 %v779_v44, %v435_v48  ;;  %v1166_v50 = vpop.f32.mrb[2].mxu1 }
 0x109   : > { %v1197_v49 = vpop.f32.mrb[4].mxu0  ;;  %v847_v43 = vadd.f32 %v1203_v47, %v1447_v28  ;;  %v1205_v52 = vadd.f32 %v1194_v45, %v1166_v50  ;;  %v438_v53 = vpop.f32.mrb[3].mxu1 }
 0x10a   : > { %v795_v51 = vpop.f32.mrb[5].mxu0  ;;  %v845_v55 = vadd.f32 %v1204_v36, %v1447_v28  ;;  %v1206_v56 = vadd.f32 %v782_v46, %v438_v53 }
 0x10b   : > { %v1198_v54 = vpop.f32.mrb[6].mxu0  ;;  %v871_v58 = vmul.f32 0.2, %v847_v43  ;;  %v848_v59 = vadd.f32 %v1205_v52, %v1447_v28  ;;  %vm859_vm5 = vcmp.gt.f32.partialorder %v847_v43, 0.0 }
 0x10c   : > { %v798_v57 = vpop.f32.mrb[7].mxu0  ;;  %v869_v60 = vmul.f32 0.2, %v845_v55  ;;  %v846_v61 = vadd.f32 %v1206_v56, %v1447_v28  ;;  %vm857_vm6 = vcmp.gt.f32.partialorder %v845_v55, 0.0 }
 0x10d   : > { %vm860_vm7 = vcmp.gt.f32.partialorder %v848_v59, 0.0  ;;  %v872_v62 = vmul.f32 0.2, %v848_v59  ;;  %v883_v1 = vsel %vm859_vm5, %v847_v43, %v871_v58 }
 0x10e   : > { %vm858_vm8 = vcmp.gt.f32.partialorder %v846_v61, 0.0  ;;  %v870_v63 = vmul.f32 0.2, %v846_v61  ;;  %v1169_v0 = vpop.f32.mrb[4].mxu1  ;;  %v881_v9 = vsel %vm857_vm6, %v845_v55, %v869_v60 }
 0x10f   : > { %v884_v2 = vsel %vm860_vm7, %v848_v59, %v872_v62  ;;  %v1207_v3 = vadd.f32 %v1197_v49, %v1169_v0  ;;  %v451_v4 = vpop.f32.mrb[5].mxu1 }
 0x110   : > { %v1098_v6 = vpack.c.bf16 %v884_v2, %v883_v1  ;;  %v882_v10 = vsel %vm858_vm8, %v846_v61, %v870_v63  ;;  %v1208_v11 = vadd.f32 %v795_v51, %v451_v4  ;;  %v1170_v13 = vpop.f32.mrb[6].mxu1 }
 0x111   : > { %v1201_v5 = vpop.f32.mrb[8].mxu0  ;;  %v1093_v16 = vpack.c.bf16 %v882_v10, %v881_v9  ;;  %v851_v7 = vadd.f32 %v1207_v3, %v1447_v28  ;;  %v1209_v17 = vadd.f32 %v1198_v54, %v1170_v13  ;;  %v454_v18 = vpop.f32.mrb[7].mxu1 }
 0x112   : > { %v811_v15 = vpop.f32.mrb[9].mxu0  ;;  %1115 = vst [vmem:[%s1457_s4 + $0x8] sm:$0xff] %v1098_v6   ;;  %v849_v22 = vadd.f32 %v1208_v11, %v1447_v28  ;;  %v1210_v8 = vadd.f32 %v798_v57, %v454_v18 }
 0x113   : > { %v1202_v21 = vpop.f32.mrb[10].mxu0  ;;  %1094 = vst [vmem:[%s1457_s4] sm:$0xff] %v1093_v16   ;;  %v875_v24 = vmul.f32 0.2, %v851_v7  ;;  %v852_v25 = vadd.f32 %v1209_v17, %v1447_v28  ;;  %vm863_vm9 = vcmp.gt.f32.partialorder %v851_v7, 0.0 }
 0x114   : > { %v814_v23 = vpop.f32.mrb[11].mxu0  ;;  %v873_v27 = vmul.f32 0.2, %v849_v22  ;;  %v850_v29 = vadd.f32 %v1210_v8, %v1447_v28  ;;  %vm861_vm10 = vcmp.gt.f32.partialorder %v849_v22, 0.0 }
 0x115   : > { %vm864_vm11 = vcmp.gt.f32.partialorder %v852_v25, 0.0  ;;  %v876_v30 = vmul.f32 0.2, %v852_v25  ;;  %v887_v32 = vsel %vm863_vm9, %v851_v7, %v875_v24 }
 0x116   : > { %vm862_vm12 = vcmp.gt.f32.partialorder %v850_v29, 0.0  ;;  %v874_v20 = vmul.f32 0.2, %v850_v29  ;;  %v1173_v31 = vpop.f32.mrb[8].mxu1  ;;  %v885_v37 = vsel %vm861_vm10, %v849_v22, %v873_v27 }
 0x117   : > { %v888_v33 = vsel %vm864_vm11, %v852_v25, %v876_v30  ;;  %v1211_v34 = vadd.f32 %v1201_v5, %v1173_v31  ;;  %v467_v35 = vpop.f32.mrb[9].mxu1 }
 0x118   : > { %v1108_v38 = vpack.c.bf16 %v888_v33, %v887_v32  ;;  %v886_v26 = vsel %vm862_vm12, %v850_v29, %v874_v20  ;;  %v1212_v39 = vadd.f32 %v811_v15, %v467_v35  ;;  %v1174_v40 = vpop.f32.mrb[10].mxu1 }
 0x119   : > { %v1103_v41 = vpack.c.bf16 %v886_v26, %v885_v37  ;;  %v855_v12 = vadd.f32 %v1211_v34, %v1447_v28  ;;  %v1213_v42 = vadd.f32 %v1202_v21, %v1174_v40  ;;  %v470_v14 = vpop.f32.mrb[11].mxu1 }
 0x11a   : > { %1117 = vst [vmem:[%s1457_s4 + $0x18] sm:$0xff] %v1108_v38   ;;  %v853_v44 = vadd.f32 %v1212_v39, %v1447_v28  ;;  %v1214_v45 = vadd.f32 %v814_v23, %v470_v14 }
 0x11b   : > { %1116 = vst [vmem:[%s1457_s4 + $0x10] sm:$0xff] %v1103_v41   ;;  %vm867_vm13 = vcmp.gt.f32.partialorder %v855_v12, 0.0  ;;  %v879_v46 = vmul.f32 0.2, %v855_v12  ;;  %v856_v19 = vadd.f32 %v1213_v42, %v1447_v28 }
 0x11c   : > { %v877_v47 = vmul.f32 0.2, %v853_v44  ;;  %v854_v48 = vadd.f32 %v1214_v45, %v1447_v28  ;;  %vm865_vm14 = vcmp.gt.f32.partialorder %v853_v44, 0.0 }
 0x11d   : > { %v891_v49 = vsel %vm867_vm13, %v855_v12, %v879_v46  ;;  %vm868_vm15 = vcmp.gt.f32.partialorder %v856_v19, 0.0  ;;  %v880_v36 = vmul.f32 0.2, %v856_v19 }
 0x11e   : > { %v1088_v50 = vpack.c.bf16 %v891_v49, %v891_v49  ;;  %vm866_vm0 = vcmp.gt.f32.partialorder %v854_v48, 0.0  ;;  %v878_v51 = vmul.f32 0.2, %v854_v48  ;;  %v889_v52 = vsel %vm865_vm14, %v853_v44, %v877_v47 }
 0x11f   : > { %v892_v43 = vsel %vm868_vm15, %v856_v19, %v880_v36 }
 0x120   : > { %951 = vst [vmem:[%s1457_s4 + $0x28] sm:$0xf] %v1088_v50  ;;  %v1089_v53 = vpack.c.bf16 %v892_v43, %v892_v43  ;;  %v890_v54 = vsel %vm866_vm0, %v854_v48, %v878_v51 }
 0x121   : > { %v1113_v55 = vpack.c.bf16 %v890_v54, %v889_v52 }
 0x122   : > { %952 = vst [vmem:[%s1457_s4 + $0x2c] sm:$0x1] %v1089_v53 }
 0x123   : > { %1118 = vst [vmem:[%s1457_s4 + $0x20] sm:$0xff] %v1113_v55  }
 0x124 PF: > { %s13_s12 = sadd.s32 1, %s1277_s12  }
 0x125   : > { %p10_p4 = scmp.ge.s32.totalorder %s13_s12, 4  }
 0x127   :  { %12 = sbr.rel (!%p10_p4) target bundleno = 1 (0x1), region = 65 }

// kernel: forward.6
= control target key start
LH: loop header
LB: loop body
LE: loop exit
PB: predicated region body
PF: predicated region fallthrough
CT: control target
= control target key end

     0   :  { %s3233_s21 = smov 0   ;;  %s3858_s0 = inlined_call_operand.vmem [shape: bf16[2,49,512], index: 0, kind: input, shape index: {}]   ;;  %s3859_s1 = inlined_call_operand.vmem [shape: bf16[2,2,512,128], index: 1, kind: input, shape index: {}]   ;;  %s3860_s2 = inlined_call_operand.vmem [shape: f32[1,128], index: 2, kind: input, shape index: {}]   ;;  %s3861_s3 = inlined_call_operand.vmem [shape: f32[35,1], index: 3, kind: input, shape index: {}]   ;;  %s3862_s4 = inlined_call_operand.vmem [shape: bf16[2,35,128], index: 4, kind: output, shape index: {0}]   ;;  %s3863_s5 = inlined_call_operand.vmem [shape: f32[2,1,128], index: 5, kind: output, shape index: {1}]   ;;  %s3864_s6 = inlined_call_operand.vmem [shape: f32[2,1,128], index: 6, kind: output, shape index: {2}]  }
   0x1 LB: > { %s2351_s22 = sadd.s32 4294967295, %s3195_s21   ;;  %p2355_p0 = scmp.ge.s32.totalorder %s3195_s21, 1  ;;  %s3195_s21 = sphi %s3233_s21, %s17_s21  }
   0x2   : > { %p217_p1 = scmp.lt.s32.totalorder %s3195_s21, 3 }
   0x4   : > { %p218_p2 = pnand %p2355_p0, %p217_p1 }
   0x5   : > { %v3023_v0 = vld [vmem:[%s3859_s1 + $0x140] sm:$0xff] (!%p218_p2)   ;;  %v3027_v4 = vld [vmem:[%s3859_s1 + $0x148] sm:$0xff] (!%p218_p2)   ;;  %v3031_v8 = vld [vmem:[%s3859_s1 + $0x150] sm:$0xff] (!%p218_p2)   ;;  %p253_p3 = scmp.lt.s32.totalorder (!%p218_p2), %s2351_s22, 1  ;;  %vm451_vm0 = vsmask.f32 (!%p218_p2), 7424 }
   0x6   : > { %221 = sbr.rel (%p218_p2) target bundleno = 394 (0x18a), region = 36  ;;  %v3024_v1 = vld [vmem:[%s3859_s1 + $0x1c0] sm:$0xff] (!%p218_p2)   ;;  %2738 = vmatprep.subr.bf16.mxu0 (!%p218_p2), %v3023_v0  ;;  %v3028_v5 = vld [vmem:[%s3859_s1 + $0x1c8] sm:$0xff] (!%p218_p2)   ;;  %v3032_v9 = vld [vmem:[%s3859_s1 + $0x1d0] sm:$0xff] (!%p218_p2)   ;;  %vm1301_vm1 = vsmask.f32 (!%p218_p2), 4352 }
   0x7   : > { %v3025_v2 = vld [vmem:[%s3859_s1 + $0x100] sm:$0xff] (!%p218_p2)   ;;  %2772 = vmatprep.subr.bf16.mxu1 (!%p218_p2), %v3024_v1  ;;  %v3029_v6 = vld [vmem:[%s3859_s1 + $0x108] sm:$0xff] (!%p218_p2)   ;;  %v3033_v10 = vld [vmem:[%s3859_s1 + $0x110] sm:$0xff] (!%p218_p2)   ;;  %vm2240_vm2 = vcmask (!%p218_p2), 1041408   ;;  %vm2241_vm3 = vsmask.f32 (!%p218_p2), 1280 }
   0x8   : > { %v3026_v3 = vld [vmem:[%s3859_s1 + $0x180] sm:$0xff] (!%p218_p2)   ;;  %2739 = vmatpush3.bf16.msra.mxu0 (!%p218_p2), %v3025_v2  ;;  %v3030_v7 = vld [vmem:[%s3859_s1 + $0x188] sm:$0xff] (!%p218_p2)   ;;  %v3034_v11 = vld [vmem:[%s3859_s1 + $0x190] sm:$0xff] (!%p218_p2)   ;;  %vm2183_vm4 = vcmask (!%p218_p2), 1042432  }
   0x9   : > { %2773 = vmatpush3.bf16.msra.mxu1 (!%p218_p2), %v3026_v3  ;;  %2740 = vmatprep.subr.bf16.mxu0 (!%p218_p2), %v3027_v4  ;;  %v3035_v12 = vld [vmem:[%s3859_s1 + $0x158] sm:$0xff] (!%p218_p2)   ;;  %v3039_v16 = vld [vmem:[%s3859_s1 + $0x160] sm:$0xff] (!%p218_p2)   ;;  %v3043_v20 = vld [vmem:[%s3859_s1 + $0x168] sm:$0xff] (!%p218_p2)  }
   0xa   : > { %2774 = vmatprep.subr.bf16.mxu1 (!%p218_p2), %v3028_v5  ;;  %v3036_v13 = vld [vmem:[%s3859_s1 + $0x1d8] sm:$0xff] (!%p218_p2)   ;;  %v3040_v17 = vld [vmem:[%s3859_s1 + $0x1e0] sm:$0xff] (!%p218_p2)   ;;  %v3044_v21 = vld [vmem:[%s3859_s1 + $0x1e8] sm:$0xff] (!%p218_p2)  }
   0xb   : > { %v3037_v14 = vld [vmem:[%s3859_s1 + $0x118] sm:$0xff] (!%p218_p2)   ;;  %v3041_v18 = vld [vmem:[%s3859_s1 + $0x120] sm:$0xff] (!%p218_p2)   ;;  %v3045_v22 = vld [vmem:[%s3859_s1 + $0x128] sm:$0xff] (!%p218_p2)  }
   0xc   : > { %2741 = vmatpush3.bf16.msra.mxu0 (!%p218_p2), %v3029_v6  ;;  %v3038_v15 = vld [vmem:[%s3859_s1 + $0x198] sm:$0xff] (!%p218_p2)   ;;  %v3042_v19 = vld [vmem:[%s3859_s1 + $0x1a0] sm:$0xff] (!%p218_p2)   ;;  %v3046_v23 = vld [vmem:[%s3859_s1 + $0x1a8] sm:$0xff] (!%p218_p2)  }
   0xd   : > { %2775 = vmatpush3.bf16.msra.mxu1 %v3030_v7  ;;  %2742 = vmatprep.subr.bf16.mxu0 %v3031_v8  ;;  %s3866_s22 = smov (!%p253_p3, %s2351_s22), 1  ;;  %v3047_v24 = vld [vmem:[%s3859_s1 + $0x170] sm:$0xff]   ;;  %v3051_v28 = vld [vmem:[%s3859_s1 + $0x178] sm:$0xff]   ;;  %v3063_v50 = vld [vmem:[%s3859_s1 + $0x40] sm:$0xff]  }
   0xe   : > { %2776 = vmatprep.subr.bf16.mxu1 %v3032_v9  ;;  %v3048_v25 = vld [vmem:[%s3859_s1 + $0x1f0] sm:$0xff]   ;;  %s3010_s7 = smul.u32 112, %s3866_s22  ;;  %v3052_v29 = vld [vmem:[%s3859_s1 + $0x1f8] sm:$0xff]   ;;  %v3064_v59 = vld [vmem:[%s3859_s1 + $0xc0] sm:$0xff]   ;;  %s265_s24 = scalar_lea.vmem %s3863_s5, %s3866_s22 }
   0xf   : > { %v3049_v26 = vld [vmem:[%s3859_s1 + $0x130] sm:$0xff]   ;;  %v3053_v30 = vld [vmem:[%s3859_s1 + $0x138] sm:$0xff]   ;;  %v3065_v7 = vld [vmem:[%s3859_s1] sm:$0xff]   ;;  %s3011_s15 = smul.u32 20, %s3866_s22  ;;  %s268_s27 = scalar_lea.vmem %s3864_s6, %s3866_s22 }
  0x10   : > { %2743 = vmatpush3.bf16.msra.mxu0 %v3033_v10  ;;  %v3050_v27 = vld [vmem:[%s3859_s1 + $0x1b0] sm:$0xff]   ;;  %s3341_s18 = scalar_lea.vmem %s3858_s0, %s3010_s7  ;;  %v3054_v31 = vld [vmem:[%s3859_s1 + $0x1b8] sm:$0xff]   ;;  %v3067_v10 = vld [vmem:[%s3859_s1 + $0x48] sm:$0xff]  }
  0x11   : > { %2777 = vmatpush3.bf16.msra.mxu1 %v3034_v11  ;;  %2744 = vmatprep.subr.bf16.mxu0 %v3035_v12  ;;  %v270_v32 = vld [vmem:[%s3341_s18] sm:$0xff]  ;;  %v3351_v33 = vld [vmem:[%s3341_s18 + $0x10] sm:$0xff]  ;;  %v271_v37 = vld [vmem:[%s3341_s18 + $0x8] sm:$0xff]  ;;  %s3837_s19 = scalar_lea.vmem %s3862_s4, %s3011_s15 }
  0x12   : > { %2778 = vmatprep.subr.bf16.mxu1 %v3036_v13  ;;  %v274_v34 = vld [vmem:[%s3341_s18 + $0x20] sm:$0xff]  ;;  %v276_v35 = vld [vmem:[%s3341_s18 + $0x30] sm:$0xff]  ;;  %v3356_v36 = vcombine.high %v270_v32, %v3351_v33  ;;  %v3360_v38 = vld [vmem:[%s3341_s18 + $0x18] sm:$0xff]  ;;  %v3363_v39 = vcombine.low %v270_v32, %v3351_v33 }
  0x13   : > { %v3365_v40 = vcombine.high %v274_v34, %v276_v35  ;;  %v275_v41 = vld [vmem:[%s3341_s18 + $0x28] sm:$0xff]  ;;  %v277_v42 = vld [vmem:[%s3341_s18 + $0x38] sm:$0xff]  ;;  %v3370_v43 = vcombine.high %v271_v37, %v3360_v38  ;;  %v3372_v44 = vcombine.low %v274_v34, %v276_v35  ;;  %v3375_v45 = vcombine.low %v271_v37, %v3360_v38  ;;  %vm2242_vm5 = vmand %vm2240_vm2, %vm2241_vm3 }
  0x14   : > { %2745 = vmatpush3.bf16.msra.mxu0 %v3037_v14  ;;  %v465_v46 = vshrl.u32 %v3356_v36, 16  ;;  %v467_v47 = vshll.u32 %v3356_v36, 16  ;;  %v3379_v48 = vcombine.high %v275_v41, %v277_v42  ;;  %v453_v49 = vshrl.u32 %v3363_v39, 16  ;;  %v3066_v14 = vld [vmem:[%s3859_s1 + $0x80] sm:$0xff]   ;;  %v3079_v35 = vld [vmem:[%s3859_s1 + $0x18] sm:$0xff]  }
  0x15   : > { %2779 = vmatpush3.bf16.msra.mxu1 %v3038_v15  ;;  %2746 = vmatprep.subr.bf16.mxu0 %v3039_v16  ;;  %v472_v51 = vshll.u32 %v3365_v40, 16  ;;  %v489_v52 = vshrl.u32 %v3370_v43, 16  ;;  %v491_v53 = vshll.u32 %v3370_v43, 16  ;;  %v455_v54 = vshll.u32 %v3363_v39, 16  ;;  %v3068_v16 = vld [vmem:[%s3859_s1 + $0xc8] sm:$0xff]  }
  0x16   : > { %2780 = vmatprep.subr.bf16.mxu1 %v3040_v17  ;;  %v469_v55 = vrot.slane %v467_v47, 1  ;;  %v496_v56 = vshll.u32 %v3379_v48, 16  ;;  %v460_v57 = vshll.u32 %v3372_v44, 16  ;;  %v3391_v58 = vcombine.low %v275_v41, %v277_v42  ;;  %v3069_v17 = vld [vmem:[%s3859_s1 + $0x8] sm:$0xff]  }
  0x17   : > { %v474_v60 = vrot.slane %v472_v51, 1  ;;  %v493_v61 = vrot.slane %v491_v53, 1  ;;  %v457_v62 = vrot.slane %v455_v54, 1  ;;  %v477_v63 = vshrl.u32 %v3375_v45, 16  ;;  %v3083_v53 = vld [vmem:[%s3859_s1 + $0x60] sm:$0xff]   ;;  %v3080_v54 = vld [vmem:[%s3859_s1 + $0x98] sm:$0xff]  }
  0x18   : > { %2747 = vmatpush3.bf16.msra.mxu0 %v3041_v18  ;;  %v470_v0 = vor.u32 %v469_v55, %v465_v46  ;;  %v498_v1 = vrot.slane %v496_v56, 1  ;;  %v462_v2 = vrot.slane %v460_v57, 1  ;;  %v479_v3 = vshll.u32 %v3375_v45, 16 }
  0x19   : > { %2781 = vmatpush3.bf16.msra.mxu1 %v3042_v19  ;;  %2748 = vmatprep.subr.bf16.mxu0 %v3043_v20  ;;  %v494_v4 = vor.u32 %v493_v61, %v489_v52  ;;  %v458_v5 = vor.u32 %v457_v62, %v453_v49  ;;  %v484_v6 = vshll.u32 %v3391_v58, 16  ;;  %v3071_v19 = vld [vmem:[%s3859_s1 + $0x50] sm:$0xff]   ;;  %v3070_v20 = vld [vmem:[%s3859_s1 + $0x88] sm:$0xff]  }
  0x1a   : > { %2782 = vmatprep.subr.bf16.mxu1 %v3044_v21  ;;  %v475_v8 = vsel %vm451_vm0, %v470_v0, %v474_v60  ;;  %v481_v9 = vrot.slane %v479_v3, 1  ;;  %v3072_v21 = vld [vmem:[%s3859_s1 + $0xd0] sm:$0xff]  }
  0x1b   : > { %780 = vmatprep.mubr.bf16.mxu0 %v475_v8  ;;  %v499_v11 = vsel %vm451_vm0, %v494_v4, %v498_v1  ;;  %v463_v12 = vsel %vm451_vm0, %v458_v5, %v462_v2  ;;  %v486_v13 = vrot.slane %v484_v6, 1  ;;  %v3086_v5 = vld [vmem:[%s3859_s1 + $0xa0] sm:$0xff]   ;;  %v3087_v8 = vld [vmem:[%s3859_s1 + $0x68] sm:$0xff]  }
  0x1c   : > { %2749 = vmatpush3.bf16.msra.mxu0 %v3045_v22  ;;  %836 = vmatprep.mubr.bf16.mxu1 %v499_v11  ;;  %v482_v15 = vor.u32 %v481_v9, %v477_v63  ;;  %v508_v22 = vshrl.u32 %v3365_v40, 16  ;;  %v3084_v63 = vld [vmem:[%s3859_s1 + $0xe0] sm:$0xff]  }
  0x1d   : > { %2783 = vmatpush3.bf16.msra.mxu1 %v3046_v23  ;;  %2750 = vmatprep.subr.bf16.mxu0 %v3047_v24  ;;  %v3073_v23 = vld [vmem:[%s3859_s1 + $0x10] sm:$0xff]   ;;  %v524_v24 = vshrl.u32 %v3379_v48, 16 }
  0x1e   : > { %2784 = vmatprep.subr.bf16.mxu1 %v3048_v25  ;;  %v487_v18 = vsel %vm451_vm0, %v482_v15, %v486_v13  ;;  %v3074_v25 = vld [vmem:[%s3859_s1 + $0x90] sm:$0xff]   ;;  %v510_v41 = vor.u32 %v508_v22, %v474_v60 }
  0x1f   : > { %v526_v42 = vor.u32 %v524_v24, %v498_v1  ;;  %v3085_v1 = vld [vmem:[%s3859_s1 + $0x20] sm:$0xff]  }
  0x20   : > { %2751 = vmatpush3.bf16.msra.mxu0 %v3049_v26  ;;  %v3075_v26 = vld [vmem:[%s3859_s1 + $0x58] sm:$0xff]  }
  0x21   : > { %2785 = vmatpush3.bf16.msra.mxu1 %v3050_v27  ;;  %2752 = vmatprep.subr.bf16.mxu0 %v3051_v28  ;;  %v500_v27 = vshrl.u32 %v3372_v44, 16  ;;  %v3076_v28 = vld [vmem:[%s3859_s1 + $0xd8] sm:$0xff]  }
  0x22   : > { %2786 = vmatprep.subr.bf16.mxu1 %v3052_v29  ;;  %v516_v29 = vshrl.u32 %v3391_v58, 16 }
  0x24   : > { %2753 = vmatpush3.bf16.msra.mxu0 %v3053_v30  ;;  %v278_v30 = vld [vmem:[%s3341_s18 + $0x40] sm:$0x33]  ;;  %v518_v55 = vor.u32 %v516_v29, %v486_v13  ;;  %v3089_v13 = vld [vmem:[%s3859_s1 + $0x28] sm:$0xff]  }
  0x25   : > { %2787 = vmatpush3.bf16.msra.mxu1 %v3054_v31  ;;  %2806 = vmatprep.subr.bf16.mxu0 %v3063_v50  ;;  %v279_v31 = vld [vmem:[%s3341_s18 + $0x48] sm:$0x33]  ;;  %v3453_v32 = vcombine.high %v278_v30, %v278_v30  ;;  %v3460_v37 = vcombine.low %v278_v30, %v278_v30  ;;  %v502_v50 = vor.u32 %v500_v27, %v462_v2  ;;  %v3096_v30 = vld [vmem:[%s3859_s1 + $0xf8] sm:$0xff]  }
  0x26   : > { %2840 = vmatprep.subr.bf16.mxu1 %v3064_v59  ;;  %v3455_v34 = vcombine.high %v279_v31, %v279_v31  ;;  %v3466_v46 = vcombine.low %v279_v31, %v279_v31  ;;  %v3097_v31 = vld [vmem:[%s3859_s1 + $0x38] sm:$0xff]  }
  0x27   : > { %781 = vmatmul.mubr.bf16.vlgmr.msra.gmra.mrb[0].mxu0 %v463_v12  ;;  %v512_v47 = vshll.u32 %v3453_v32, 16  ;;  %v504_v52 = vshll.u32 %v3460_v37, 16  ;;  %v535_v9 = vshrl.u32 %v3453_v32, 16 }
  0x28   : > { %2807 = vmatpush3.bf16.msra.mxu0 %v3065_v7  ;;  %837 = vmatmul.mubr.bf16.vlgmr.msra.gmra.mrb[0].mxu1 %v487_v18  ;;  %v528_v49 = vshll.u32 %v3455_v34, 16  ;;  %v520_v59 = vshll.u32 %v3466_v46, 16  ;;  %v541_v11 = vshrl.u32 %v3455_v34, 16  ;;  %v3091_v18 = vld [vmem:[%s3859_s1 + $0x70] sm:$0xff]  }
  0x29   : > { %2808 = vmatprep.subr.bf16.mxu0 %v3067_v10  ;;  %2841 = vmatpush3.bf16.msra.mxu1 %v3066_v14  ;;  %v514_v60 = vrot.slane %v512_v47, 1  ;;  %v506_v62 = vrot.slane %v504_v52, 1  ;;  %v3088_v10 = vld [vmem:[%s3859_s1 + $0xe8] sm:$0xff]   ;;  %v532_v14 = vshrl.u32 %v3460_v37, 16  ;;  %v3101_v47 = vld [vmem:[%s3859_s1 + $0x200] sm:$0xff]  }
  0x2a   : > { %2842 = vmatprep.subr.bf16.mxu1 %v3068_v16  ;;  %v530_v61 = vrot.slane %v528_v49, 1  ;;  %v522_v0 = vrot.slane %v520_v59, 1  ;;  %v3090_v16 = vld [vmem:[%s3859_s1 + $0xa8] sm:$0xff]   ;;  %v3112_v59 = vld [vmem:[%s3859_s1 + $0x2d8] sm:$0xff]  }
  0x2b   : > { %v515_v2 = vsel %vm451_vm0, %v510_v41, %v514_v60  ;;  %v507_v4 = vsel %vm451_vm0, %v502_v50, %v506_v62  ;;  %v537_v12 = vor.u32 %v535_v9, %v514_v60  ;;  %v3099_v41 = vld [vmem:[%s3859_s1 + $0x240] sm:$0xff]   ;;  %v3104_v49 = vld [vmem:[%s3859_s1 + $0x2c8] sm:$0xff]   ;;  %v3113_v60 = vld [vmem:[%s3859_s1 + $0x218] sm:$0xff]   ;;  %v1350_v9 = vrot.slane %v484_v6, 4 }
  0x2c   : > { %2809 = vmatpush3.bf16.msra.mxu0 %v3069_v17  ;;  %v531_v3 = vsel %vm451_vm0, %v526_v42, %v530_v61  ;;  %788 = vmatprep.mubr.bf16.mxu0 %v515_v2  ;;  %v523_v7 = vsel %vm451_vm0, %v518_v55, %v522_v0  ;;  %v543_v15 = vor.u32 %v541_v11, %v530_v61  ;;  %v538_v17 = vshrl.u32 %v3466_v46, 16  ;;  %v3100_v42 = vld [vmem:[%s3859_s1 + $0x2c0] sm:$0xff]   ;;  %v3105_v50 = vld [vmem:[%s3859_s1 + $0x208] sm:$0xff]   ;;  %v3111_v55 = vld [vmem:[%s3859_s1 + $0x258] sm:$0xff]  }
  0x2d   : > { %2810 = vmatprep.subr.bf16.mxu0 %v3071_v19  ;;  %2843 = vmatpush3.bf16.msra.mxu1 %v3070_v20  ;;  %v534_v19 = vor.u32 %v532_v14, %v506_v62  ;;  %v3092_v20 = vld [vmem:[%s3859_s1 + $0xf0] sm:$0xff]   ;;  %v3106_v52 = vld [vmem:[%s3859_s1 + $0x288] sm:$0xff]   ;;  %v3114_v61 = vld [vmem:[%s3859_s1 + $0x298] sm:$0xff]  }
  0x2e   : > { %2844 = vmatprep.subr.bf16.mxu1 %v3072_v21  ;;  %844 = vmatprep.mubr.bf16.mxu1 %v531_v3  ;;  %v540_v21 = vor.u32 %v538_v17, %v522_v0  ;;  %v3115_v62 = vld [vmem:[%s3859_s1 + $0x260] sm:$0xff]   ;;  %v3121_v2 = vld [vmem:[%s3859_s1 + $0x228] sm:$0xff]   ;;  %v1330_v3 = vrot.slane %v508_v22, 3  ;;  %v3124_v22 = vld [vmem:[%s3859_s1 + $0x2f0] sm:$0xff]  }
  0x2f   : > { %789 = vmatmul.mubr.bf16.gmra.mrb[4].mxu0 %v507_v4  ;;  %v3117_v0 = vld [vmem:[%s3859_s1 + $0x220] sm:$0xff]   ;;  %v3122_v4 = vld [vmem:[%s3859_s1 + $0x2a8] sm:$0xff]  }
  0x30   : > { %2811 = vmatpush3.bf16.msra.mxu0 %v3073_v23  ;;  %845 = vmatmul.mubr.bf16.gmra.mrb[4].mxu1 %v523_v7  ;;  %v3093_v23 = vld [vmem:[%s3859_s1 + $0x30] sm:$0xff]   ;;  %v1364_v7 = vrot.slane %v524_v24, 3 }
  0x31   : > { %2812 = vmatprep.subr.bf16.mxu0 %v3075_v26  ;;  %2845 = vmatpush3.bf16.msra.mxu1 %v3074_v25  ;;  %v3094_v25 = vld [vmem:[%s3859_s1 + $0xb0] sm:$0xff]   ;;  %v3197_v26 = vmov 0  }
  0x32   : > { %2846 = vmatprep.subr.bf16.mxu1 %v3076_v28  ;;  %796 = vmatprep.mubr.bf16.mxu0 %v537_v12  ;;  %v3095_v28 = vld [vmem:[%s3859_s1 + $0x78] sm:$0xff]   ;;  %v3126_v24 = vld [vmem:[%s3859_s1 + $0x2b0] sm:$0xff]  }
  0x33   : > { %852 = vmatprep.mubr.bf16.mxu1 %v543_v15  ;;  %3021 = vset.pattern.permute.xlu0 %v3197_v26 }
  0x34   : > { %2813 = vmatpush3.bf16.msra.mxu0 %v3079_v35  ;;  %3022 = vset.pattern.permute.xlu1 %v3197_v26  ;;  %v3098_v35 = vld [vmem:[%s3859_s1 + $0xb8] sm:$0xff]  }
  0x35   : > { %2814 = vmatprep.subr.bf16.mxu0 %v3083_v53  ;;  %2847 = vmatpush3.bf16.msra.mxu1 %v3080_v54  ;;  %v3107_v53 = vld [vmem:[%s3859_s1 + $0x250] sm:$0xff]  }
  0x36   : > { %2848 = vmatprep.subr.bf16.mxu1 %v3084_v63  ;;  %v3109_v54 = vld [vmem:[%s3859_s1 + $0x210] sm:$0xff]   ;;  %v3116_v63 = vld [vmem:[%s3859_s1 + $0x2e0] sm:$0xff]  }
  0x37   : > { %797 = vmatmul.mubr.bf16.gmra.mrb[8].mxu0 %v534_v19 }
  0x38   : > { %2815 = vmatpush3.bf16.msra.mxu0 %v3085_v1  ;;  %853 = vmatmul.mubr.bf16.gmra.mrb[8].mxu1 %v540_v21  ;;  %v3119_v1 = vld [vmem:[%s3859_s1 + $0x268] sm:$0xff]  }
  0x39   : > { %2816 = vmatprep.subr.bf16.mxu0 %v3087_v8  ;;  %2849 = vmatpush3.bf16.msra.mxu1 %v3086_v5  ;;  %v1333_v5 = vrot.slane %v472_v51, 4  ;;  %v1367_v8 = vrot.slane %v496_v56, 4  ;;  %v1313_v51 = vrot.slane %v500_v27, 3  ;;  %v1347_v56 = vrot.slane %v516_v29, 3  ;;  %v3128_v27 = vld [vmem:[%s3859_s1 + $0x2f8] sm:$0xff]  }
  0x3a   : > { %2850 = vmatprep.subr.bf16.mxu1 %v3088_v10  ;;  %1096 = vmatprep.mubr.bf16.mxu0 %v3356_v36  ;;  %v3102_v36 = vld [vmem:[%s3859_s1 + $0x280] sm:$0xff]   ;;  %v1177_v10 = vld [vmem:[%s3341_s18 + $0x8] sm:$0x88] }
  0x3b   : > { %1152 = vmatprep.mubr.bf16.mxu1 %v3370_v43  ;;  %v3103_v43 = vld [vmem:[%s3859_s1 + $0x248] sm:$0xff]   ;;  %v1176_v29 = vld [vmem:[%s3341_s18] sm:$0x88]  ;;  %v2565_v6 = vcombine.high %v1177_v10, %v3360_v38  ;;  %v3668_v14 = vor.u32 %v1333_v5, %v1330_v3  ;;  %v3670_v15 = vor.u32 %v1367_v8, %v1364_v7  ;;  %v3674_v17 = vor.u32 %v1350_v9, %v1347_v56  ;;  %v3148_v56 = vld [vmem:[%s3859_s1 + $0x3d0] sm:$0xff]  }
  0x3c   : > { %2817 = vmatpush3.bf16.msra.mxu0 %v3089_v13  ;;  %v2562_v11 = vcombine.low %v1176_v29, %v3351_v33  ;;  %v2563_v12 = vcombine.high %v1176_v29, %v3351_v33  ;;  %v3135_v13 = vld [vmem:[%s3859_s1 + $0x340] sm:$0xff]  }
  0x3d   : > { %2818 = vmatprep.subr.bf16.mxu0 %v3091_v18  ;;  %2851 = vmatpush3.bf16.msra.mxu1 %v3090_v16  ;;  %v3136_v33 = vld [vmem:[%s3859_s1 + $0x3c0] sm:$0xff]   ;;  %v1354_v19 = vshrl.u32 %v2565_v6, 16 }
  0x3e   : > { %2852 = vmatprep.subr.bf16.mxu1 %v3092_v20  ;;  %v1320_v18 = vshrl.u32 %v2563_v12, 16  ;;  %v1357_v20 = vshll.u32 %v2565_v6, 16  ;;  %v1303_v21 = vshrl.u32 %v2562_v11, 16 }
  0x40   : > { %2819 = vmatpush3.bf16.msra.mxu0 %v3093_v23  ;;  %v1306_v23 = vshll.u32 %v2562_v11, 16 }
  0x41   : > { %2820 = vmatprep.subr.bf16.mxu0 %v3095_v28  ;;  %2853 = vmatpush3.bf16.msra.mxu1 %v3094_v25  ;;  %v1322_v28 = vrot.slane %v1320_v18, 3 }
  0x42   : > { %2854 = vmatprep.subr.bf16.mxu1 %v3096_v30 }
  0x44   : > { %2821 = vmatpush3.bf16.msra.mxu0 %v3097_v31  ;;  %v1356_v31 = vrot.slane %v1354_v19, 3  ;;  %v3151_v19 = vld [vmem:[%s3859_s1 + $0x358] sm:$0xff]  }
  0x45   : > { %2874 = vmatprep.subr.bf16.mxu0 %v3099_v41  ;;  %2855 = vmatpush3.bf16.msra.mxu1 %v3098_v35  ;;  %v1359_v35 = vrot.slane %v1357_v20, 4  ;;  %v1305_v41 = vrot.slane %v1303_v21, 3 }
  0x46   : > { %2908 = vmatprep.subr.bf16.mxu1 %v3100_v42  ;;  %v1308_v42 = vrot.slane %v1306_v23, 4  ;;  %v3152_v23 = vld [vmem:[%s3859_s1 + $0x3d8] sm:$0xff]  }
  0x47   : > { %1097 = vmatmul.mubr.bf16.vlgmr.msra.gmra.mrb[12].mxu0 %v3363_v39  ;;  %v3108_v39 = vld [vmem:[%s3859_s1 + $0x2d0] sm:$0xff]  }
  0x48   : > { %2875 = vmatpush3.bf16.msra.mxu0 %v3101_v47  ;;  %1104 = vmatprep.mubr.bf16.mxu0 %v3365_v40  ;;  %v3125_v40 = vld [vmem:[%s3859_s1 + $0x230] sm:$0xff]  }
  0x49   : > { %1153 = vmatmul.mubr.bf16.vlgmr.msra.gmra.mrb[12].mxu1 %v3375_v45  ;;  %2876 = vmatprep.subr.bf16.mxu0 %v3103_v43  ;;  %v3110_v45 = vld [vmem:[%s3859_s1 + $0x290] sm:$0xff]   ;;  %v3137_v43 = vld [vmem:[%s3859_s1 + $0x300] sm:$0xff]  }
  0x4a   : > { %2909 = vmatpush3.bf16.msra.mxu1 %v3102_v36  ;;  %1160 = vmatprep.mubr.bf16.mxu1 %v3379_v48  ;;  %v3127_v48 = vld [vmem:[%s3859_s1 + $0x278] sm:$0xff]  }
  0x4b   : > { %2910 = vmatprep.subr.bf16.mxu1 %v3104_v49  ;;  %v3138_v49 = vld [vmem:[%s3859_s1 + $0x380] sm:$0xff]  }
  0x4c   : > { %2877 = vmatpush3.bf16.msra.mxu0 %v3105_v50 }
  0x4d   : > { %2878 = vmatprep.subr.bf16.mxu0 %v3107_v53  ;;  %v1309_v53 = vor.u32 %v1308_v42, %v1305_v41  ;;  %v3184_v41 = vld [vmem:[%s3341_s18 + $0x20] sm:$0xff] }
  0x4e   : > { %2911 = vmatpush3.bf16.msra.mxu1 %v3106_v52  ;;  %v1360_v52 = vor.u32 %v1359_v35, %v1356_v31  ;;  %v3159_v31 = vld [vmem:[%s3859_s1 + $0x368] sm:$0xff]   ;;  %v3183_v35 = vld [vmem:[%s3341_s18 + $0x10] sm:$0xff] }
  0x4f   : > { %1105 = vmatmul.mubr.bf16.gmra.mrb[16].mxu0 %v3372_v44  ;;  %2912 = vmatprep.subr.bf16.mxu1 %v3108_v39  ;;  %v3129_v44 = vld [vmem:[%s3859_s1 + $0x238] sm:$0xff]   ;;  %v2671_v42 = vcombine.high %v3183_v35, %v3184_v41 }
  0x50   : > { %2879 = vmatpush3.bf16.msra.mxu0 %v3109_v54  ;;  %1112 = vmatprep.mubr.bf16.mxu0 %v3453_v32  ;;  %v3118_v32 = vld [vmem:[%s3859_s1 + $0x2a0] sm:$0xff]   ;;  %v3139_v54 = vld [vmem:[%s3859_s1 + $0x348] sm:$0xff]  }
  0x51   : > { %1161 = vmatmul.mubr.bf16.gmra.mrb[16].mxu1 %v3391_v58  ;;  %2880 = vmatprep.subr.bf16.mxu0 %v3111_v55  ;;  %v2564_v58 = vcombine.low %v1177_v10, %v3360_v38  ;;  %v1323_v38 = vshll.u32 %v2563_v12, 16  ;;  %v1369_v55 = vsel %vm1301_vm1, %v1360_v52, %v3670_v15  ;;  %v3162_v52 = vld [vmem:[%s3859_s1 + $0x3a8] sm:$0xff]  }
  0x52   : > { %2913 = vmatpush3.bf16.msra.mxu1 %v3110_v45  ;;  %1168 = vmatprep.mubr.bf16.mxu1 %v3455_v34  ;;  %v3120_v34 = vld [vmem:[%s3859_s1 + $0x2e8] sm:$0xff]  }
  0x53   : > { %2914 = vmatprep.subr.bf16.mxu1 %v3112_v59  ;;  %v1337_v25 = vshrl.u32 %v2564_v58, 16  ;;  %v1340_v26 = vshll.u32 %v2564_v58, 16  ;;  %v1325_v30 = vrot.slane %v1323_v38, 4  ;;  %v3140_v59 = vld [vmem:[%s3859_s1 + $0x3c8] sm:$0xff]  }
  0x54   : > { %2881 = vmatpush3.bf16.msra.mxu0 %v3113_v60 }
  0x55   : > { %2882 = vmatprep.subr.bf16.mxu0 %v3115_v62  ;;  %v1339_v47 = vrot.slane %v1337_v25, 3  ;;  %v1342_v36 = vrot.slane %v1340_v26, 4  ;;  %v1326_v50 = vor.u32 %v1325_v30, %v1322_v28  ;;  %v3141_v62 = vld [vmem:[%s3859_s1 + $0x308] sm:$0xff]   ;;  %v3157_v28 = vld [vmem:[%s3859_s1 + $0x320] sm:$0xff]  }
  0x56   : > { %2915 = vmatpush3.bf16.msra.mxu1 %v3114_v61  ;;  %v3158_v30 = vld [vmem:[%s3859_s1 + $0x3a0] sm:$0xff]  }
  0x57   : > { %1113 = vmatmul.mubr.bf16.gmra.mrb[20].mxu0 %v3460_v37  ;;  %2916 = vmatprep.subr.bf16.mxu1 %v3116_v63  ;;  %v3123_v37 = vld [vmem:[%s3859_s1 + $0x270] sm:$0xff]   ;;  %v1343_v39 = vor.u32 %v1342_v36, %v1339_v47  ;;  %v1335_v45 = vsel %vm1301_vm1, %v1326_v50, %v3668_v14  ;;  %v3142_v63 = vld [vmem:[%s3859_s1 + $0x388] sm:$0xff]  }
  0x58   : > { %2883 = vmatpush3.bf16.msra.mxu0 %v3117_v0  ;;  %1642 = vmatprep.mubr.bf16.mxu0 %v1335_v45  ;;  %v3706_v0 = vld [vmem:[%s3341_s18 + $0x40] sm:$0xff]  ;;  %v3160_v47 = vld [vmem:[%s3859_s1 + $0x3e8] sm:$0xff]   ;;  %v3166_v45 = vld [vmem:[%s3859_s1 + $0x3b0] sm:$0xff]  }
  0x59   : > { %1169 = vmatmul.mubr.bf16.gmra.mrb[20].mxu1 %v3466_v46  ;;  %2884 = vmatprep.subr.bf16.mxu0 %v3119_v1  ;;  %v1316_v46 = vrot.slane %v460_v57, 4  ;;  %v3130_v57 = vld [vmem:[%s3859_s1 + $0x2b8] sm:$0xff]   ;;  %v1352_v61 = vsel %vm1301_vm1, %v1343_v39, %v3674_v17  ;;  %v3161_v36 = vld [vmem:[%s3859_s1 + $0x328] sm:$0xff]   ;;  %v3164_v39 = vld [vmem:[%s3859_s1 + $0x3f0] sm:$0xff]  }
  0x5a   : > { %2917 = vmatpush3.bf16.msra.mxu1 %v3118_v32  ;;  %1698 = vmatprep.mubr.bf16.mxu1 %v1369_v55  ;;  %v1186_v32 = vld [vmem:[%s3341_s18 + $0x50] sm:$0x11]  ;;  %v3167_v55 = vld [vmem:[%s3859_s1 + $0x378] sm:$0xff]  }
  0x5b   : > { %2918 = vmatprep.subr.bf16.mxu1 %v3120_v34  ;;  %v3672_v16 = vor.u32 %v1316_v46, %v1313_v51  ;;  %v2571_v1 = vcombine.high %v3706_v0, %v1186_v32  ;;  %v3711_v34 = vld [vmem:[%s3341_s18 + $0x48] sm:$0xff]  ;;  %v2570_v3 = vcombine.low %v3706_v0, %v1186_v32  ;;  %v2145_v32 = vld [vmem:[%s3861_s3] sm:$0xff] }
  0x5c   : > { %2885 = vmatpush3.bf16.msra.mxu0 %v3121_v2  ;;  %v1187_v2 = vld [vmem:[%s3341_s18 + $0x58] sm:$0x11]  ;;  %2152 = vperm.xlu0 %3021, %v2145_v32  }
  0x5d   : > { %2886 = vmatprep.subr.bf16.mxu0 %v3123_v37  ;;  %v1318_v60 = vsel %vm1301_vm1, %v1309_v53, %v3672_v16  ;;  %v2572_v5 = vcombine.low %v3711_v34, %v1187_v2  ;;  %v3147_v37 = vld [vmem:[%s3859_s1 + $0x350] sm:$0xff]   ;;  %v1380_v7 = vshrl.u32 %v2571_v1, 16  ;;  %v1371_v8 = vshrl.u32 %v2570_v3, 16 }
  0x5e   : > { %2919 = vmatpush3.bf16.msra.mxu1 %v3122_v4  ;;  %v2573_v4 = vcombine.high %v3711_v34, %v1187_v2  ;;  %v3163_v53 = vld [vmem:[%s3859_s1 + $0x370] sm:$0xff]  }
  0x5f   : > { %2920 = vmatprep.subr.bf16.mxu1 %v3124_v22  ;;  %v1383_v22 = vshll.u32 %v2571_v1, 16  ;;  %v1389_v46 = vshrl.u32 %v2572_v5, 16  ;;  %v1382_v9 = vrot.slane %v1380_v7, 3  ;;  %v3187_v1 = vld [vmem:[%s3341_s18 + $0x30] sm:$0xff]  ;;  %v2148_v7 = vld [vmem:[%s3861_s3 + $0x18] sm:$0xff] }
  0x60   : > { %2887 = vmatpush3.bf16.msra.mxu0 %v3125_v40  ;;  %v1374_v40 = vshll.u32 %v2570_v3, 16  ;;  %v1398_v51 = vshrl.u32 %v2573_v4, 16  ;;  %v2675_v2 = vcombine.high %v3187_v1, %v3706_v0  ;;  %v3188_v3 = vld [vmem:[%s3341_s18 + $0x38] sm:$0xff] }
  0x61   : > { %2888 = vmatprep.subr.bf16.mxu0 %v3127_v48  ;;  %v1392_v48 = vshll.u32 %v2572_v5, 16  ;;  %v1391_v12 = vrot.slane %v1389_v46, 3  ;;  %v2147_v5 = vld [vmem:[%s3861_s3 + $0x10] sm:$0xff] }
  0x62   : > { %2921 = vmatpush3.bf16.msra.mxu1 %v3126_v24  ;;  %v1401_v24 = vshll.u32 %v2573_v4, 16  ;;  %v1376_v29 = vrot.slane %v1374_v40, 4  ;;  %v1400_v10 = vrot.slane %v1398_v51, 3  ;;  %v2677_v4 = vcombine.high %v3188_v3, %v3711_v34  ;;  %2162 = vperm.xlu1 %3022, %v2147_v5   ;;  %v2149_v40 = vld [vmem:[%s3861_s3 + $0x20] sm:$0x7] }
  0x63   : > { %2922 = vmatprep.subr.bf16.mxu1 %v3128_v27  ;;  %v3149_v27 = vld [vmem:[%s3859_s1 + $0x310] sm:$0xff]   ;;  %v1394_v58 = vrot.slane %v1392_v48, 4  ;;  %v2674_v51 = vcombine.low %v3187_v1, %v3706_v0 }
  0x64   : > { %2889 = vmatpush3.bf16.msra.mxu0 %v3129_v44  ;;  %v1385_v44 = vrot.slane %v1383_v22, 4  ;;  %v1403_v11 = vrot.slane %v1401_v24, 4  ;;  %v1727_v22 = vld [vmem:[%s3341_s18 + $0x50] sm:$0x33]  ;;  %v2676_v24 = vcombine.low %v3188_v3, %v3711_v34 }
  0x65   : > { %2942 = vmatprep.subr.bf16.mxu0 %v3135_v13  ;;  %v1395_v38 = vor.u32 %v1394_v58, %v1391_v12  ;;  %v2679_v46 = vcombine.high %v1727_v22, %v1727_v22 }
  0x66   : > { %2923 = vmatpush3.bf16.msra.mxu1 %v3130_v57  ;;  %v1373_v57 = vrot.slane %v1371_v8, 3  ;;  %v1386_v6 = vor.u32 %v1385_v44, %v1382_v9  ;;  %v1404_v18 = vor.u32 %v1403_v11, %v1400_v10  ;;  %v1728_v8 = vld [vmem:[%s3341_s18 + $0x58] sm:$0x33]  ;;  %2167 = vperm.xlu1 %3022, %v2148_v7  }
  0x67   : > { %2976 = vmatprep.subr.bf16.mxu1 %v3136_v33  ;;  %1643 = vmatmul.mubr.bf16.vlgmr.msra.gmra.mrb[24].mxu0 %v1318_v60  ;;  %v3150_v33 = vld [vmem:[%s3859_s1 + $0x390] sm:$0xff]   ;;  %v1396_v26 = vsel %vm1301_vm1, %v3674_v17, %v1395_v38  ;;  %v3156_v17 = vld [vmem:[%s3859_s1 + $0x3e0] sm:$0xff]   ;;  %v3169_v60 = vld [vmem:[%s3859_s1 + $0x338] sm:$0xff]   ;;  %v2681_v48 = vcombine.high %v1728_v8, %v1728_v8 }
  0x68   : > { %2943 = vmatpush3.bf16.msra.mxu0 %v3137_v43  ;;  %v1377_v13 = vor.u32 %v1376_v29, %v1373_v57  ;;  %v1387_v20 = vsel %vm1301_vm1, %v3668_v14, %v1386_v6  ;;  %v1405_v25 = vsel %vm1301_vm1, %v3670_v15, %v1404_v18  ;;  %v3153_v14 = vld [vmem:[%s3859_s1 + $0x318] sm:$0xff]   ;;  %v3155_v15 = vld [vmem:[%s3859_s1 + $0x360] sm:$0xff]  }
  0x69   : > { %1699 = vmatmul.mubr.bf16.vlgmr.msra.gmra.mrb[24].mxu1 %v1352_v61  ;;  %2944 = vmatprep.subr.bf16.mxu0 %v3139_v54  ;;  %v3185_v43 = vld [vmem:[%s3341_s18 + $0x18] sm:$0xff]  ;;  %v3165_v54 = vld [vmem:[%s3859_s1 + $0x330] sm:$0xff]  }
  0x6a   : > { %2977 = vmatpush3.bf16.msra.mxu1 %v3138_v49  ;;  %v1378_v21 = vsel %vm1301_vm1, %v3672_v16, %v1377_v13  ;;  %1650 = vmatprep.mubr.bf16.mxu0 %v1387_v20  ;;  %v3154_v16 = vld [vmem:[%s3859_s1 + $0x398] sm:$0xff]   ;;  %v3186_v49 = vld [vmem:[%s3341_s18 + $0x28] sm:$0xff] }
  0x6b   : > { %2978 = vmatprep.subr.bf16.mxu1 %v3140_v59  ;;  %1706 = vmatprep.mubr.bf16.mxu1 %v1405_v25  ;;  %v2673_v50 = vcombine.high %v3185_v43, %v3186_v49  ;;  %v3168_v59 = vld [vmem:[%s3859_s1 + $0x3f8] sm:$0xff]  }
  0x6c   : > { %2945 = vmatpush3.bf16.msra.mxu0 %v3141_v62  ;;  %v3170_v61 = vld [vmem:[%s3859_s1 + $0x3b8] sm:$0xff]   ;;  %v2670_v62 = vcombine.low %v3183_v35, %v3184_v41 }
  0x6d   : > { %2946 = vmatprep.subr.bf16.mxu0 %v3147_v37  ;;  %v2146_v37 = vld [vmem:[%s3861_s3 + $0x8] sm:$0xff] }
  0x6e   : > { %2979 = vmatpush3.bf16.msra.mxu1 %v3142_v63  ;;  %v2672_v63 = vcombine.low %v3185_v43, %v3186_v49  ;;  %2157 = vperm.xlu0 %3021, %v2146_v37  }
  0x6f   : > { %2980 = vmatprep.subr.bf16.mxu1 %v3148_v56  ;;  %1651 = vmatmul.mubr.bf16.gmra.mrb[28].mxu0 %v1378_v21  ;;  %v2678_v56 = vcombine.low %v1727_v22, %v1727_v22 }
  0x70   : > { %2947 = vmatpush3.bf16.msra.mxu0 %v3149_v27  ;;  %1658 = vmatprep.mubr.bf16.mxu0 %v1386_v6  ;;  %v2680_v27 = vcombine.low %v1728_v8, %v1728_v8 }
  0x71   : > { %2948 = vmatprep.subr.bf16.mxu0 %v3151_v19  ;;  %1707 = vmatmul.mubr.bf16.gmra.mrb[28].mxu1 %v1396_v26 }
  0x72   : > { %2981 = vmatpush3.bf16.msra.mxu1 %v3150_v33  ;;  %1714 = vmatprep.mubr.bf16.mxu1 %v1404_v18 }
  0x73   : > { %2982 = vmatprep.subr.bf16.mxu1 %v3152_v23  ;;  %2172 = vperm.xlu0 %3021, %v2149_v40  }
  0x74   : > { %2949 = vmatpush3.bf16.msra.mxu0 %v3153_v14 }
  0x75   : > { %2950 = vmatprep.subr.bf16.mxu0 %v3155_v15 }
  0x76   : > { %2983 = vmatpush3.bf16.msra.mxu1 %v3154_v16 }
  0x77   : > { %2984 = vmatprep.subr.bf16.mxu1 %v3156_v17  ;;  %1659 = vmatmul.mubr.bf16.gmra.mrb[32].mxu0 %v1377_v13 }
  0x78   : > { %2951 = vmatpush3.bf16.msra.mxu0 %v3157_v28  ;;  %2048 = vmatprep.mubr.bf16.mxu0 %v2671_v42 }
  0x79   : > { %2952 = vmatprep.subr.bf16.mxu0 %v3159_v31  ;;  %1715 = vmatmul.mubr.bf16.gmra.mrb[32].mxu1 %v1395_v38 }
  0x7a   : > { %2985 = vmatpush3.bf16.msra.mxu1 %v3158_v30  ;;  %2104 = vmatprep.mubr.bf16.mxu1 %v2673_v50 }
  0x7b   : > { %2986 = vmatprep.subr.bf16.mxu1 %v3160_v47 }
  0x7c   : > { %2953 = vmatpush3.bf16.msra.mxu0 %v3161_v36 }
  0x7d   : > { %2954 = vmatprep.subr.bf16.mxu0 %v3163_v53 }
  0x7e   : > { %2987 = vmatpush3.bf16.msra.mxu1 %v3162_v52 }
  0x7f   : > { %2988 = vmatprep.subr.bf16.mxu1 %v3164_v39 }
  0x80   : > { %2955 = vmatpush3.bf16.msra.mxu0 %v3165_v54 }
  0x81   : > { %2956 = vmatprep.subr.bf16.mxu0 %v3167_v55 }
  0x82   : > { %2989 = vmatpush3.bf16.msra.mxu1 %v3166_v45 }
  0x83   : > { %2990 = vmatprep.subr.bf16.mxu1 %v3168_v59 }
  0x84   : > { %2957 = vmatpush3.bf16.msra.mxu0 %v3169_v60 }
  0x86   : > { %2991 = vmatpush3.bf16.msra.mxu1 %v3170_v61 }
  0x87   : > { %2049 = vmatmul.mubr.bf16.vlgmr.msra.gmra.mrb[36].mxu0 %v2670_v62 }
  0x88   : > { %2056 = vmatprep.mubr.bf16.mxu0 %v2675_v2 }
  0x89   : > { %2105 = vmatmul.mubr.bf16.vlgmr.msra.gmra.mrb[36].mxu1 %v2672_v63 }
  0x8a   : > { %2112 = vmatprep.mubr.bf16.mxu1 %v2677_v4 }
  0x8f   : > { %2057 = vmatmul.mubr.bf16.gmra.mrb[40].mxu0 %v2674_v51 }
  0x90   : > { %2064 = vmatprep.mubr.bf16.mxu0 %v2679_v46 }
  0x91   : > { %2113 = vmatmul.mubr.bf16.gmra.mrb[40].mxu1 %v2676_v24 }
  0x92   : > { %2120 = vmatprep.mubr.bf16.mxu1 %v2681_v48 }
  0x97   : > { %2065 = vmatmul.mubr.bf16.gmra.mrb[44].mxu0 %v2678_v56 }
  0x99   : > { %2121 = vmatmul.mubr.bf16.gmra.mrb[44].mxu1 %v2680_v27 }
  0xfa   : > { %v2754_v9 = vpop.f32.mrb[0].mxu0 }
  0xfb   : > { %v2755_v44 = vpop.f32.mrb[1].mxu0  ;;  %v2788_v10 = vpop.f32.mrb[0].mxu1 }
  0xfc   : > { %v2756_v57 = vadd.f32 %v2755_v44, %v2754_v9  ;;  %v2757_v29 = vpop.f32.mrb[2].mxu0  ;;  %v2789_v0 = vpop.f32.mrb[1].mxu1 }
  0xfd   : > { %v2758_v11 = vpop.f32.mrb[3].mxu0  ;;  %v2790_v34 = vadd.f32 %v2789_v0, %v2788_v10  ;;  %v2791_v58 = vpop.f32.mrb[2].mxu1 }
  0xfe   : > { %v2759_v12 = vadd.f32 %v2758_v11, %v2757_v29  ;;  %v2792_v6 = vpop.f32.mrb[3].mxu1 }
  0xff   : > { %v839_v13 = vadd.f32 %v2790_v34, %v2756_v57  ;;  %v2793_v33 = vadd.f32 %v2792_v6, %v2791_v58 }
 0x101   : > { %v842_v18 = vadd.f32 %v2793_v33, %v2759_v12 }
 0x102   : > { %v2760_v38 = vpop.f32.mrb[4].mxu0 }
 0x103   : > { %v2794_v19 = vpop.f32.mrb[4].mxu1  ;;  %v2761_v20 = vpop.f32.mrb[5].mxu0 }
 0x104   : > { %v2762_v21 = vadd.f32 %v2761_v20, %v2760_v38  ;;  %v2795_v23 = vpop.f32.mrb[5].mxu1  ;;  %v2763_v25 = vpop.f32.mrb[6].mxu0 }
 0x105   : > { %v2796_v26 = vadd.f32 %v2795_v23, %v2794_v19  ;;  %v2797_v14 = vpop.f32.mrb[6].mxu1  ;;  %v2764_v16 = vpop.f32.mrb[7].mxu0 }
 0x106   : > { %v2765_v15 = vadd.f32 %v2764_v16, %v2763_v25  ;;  %v2798_v17 = vpop.f32.mrb[7].mxu1 }
 0x107   : > { %v847_v28 = vadd.f32 %v2796_v26, %v2762_v21  ;;  %v2799_v30 = vadd.f32 %v2798_v17, %v2797_v14 }
 0x109   : > { %v850_v31 = vadd.f32 %v2799_v30, %v2765_v15 }
 0x10a   : > { %v2766_v35 = vpop.f32.mrb[8].mxu0 }
 0x10b   : > { %v2800_v41 = vpop.f32.mrb[8].mxu1  ;;  %v2767_v42 = vpop.f32.mrb[9].mxu0 }
 0x10c   : > { %v2768_v47 = vadd.f32 %v2767_v42, %v2766_v35  ;;  %v2801_v36 = vpop.f32.mrb[9].mxu1  ;;  %v2769_v43 = vpop.f32.mrb[10].mxu0 }
 0x10d   : > { %v2802_v49 = vadd.f32 %v2801_v36, %v2800_v41  ;;  %v2803_v50 = vpop.f32.mrb[10].mxu1  ;;  %v2770_v52 = vpop.f32.mrb[11].mxu0 }
 0x10e   : > { %v2804_v53 = vpop.f32.mrb[11].mxu1 }
 0x10f   : > { %v855_v39 = vadd.f32 %v2802_v49, %v2768_v47 }
 0x11a   : > { %v2822_v54 = vpop.f32.mrb[12].mxu0 }
 0x11b   : > { %v2823_v45 = vpop.f32.mrb[13].mxu0 }
 0x11c   : > { %v2856_v55 = vpop.f32.mrb[12].mxu1  ;;  %v2824_v59 = vadd.f32 %v2823_v45, %v2822_v54  ;;  %v2825_v60 = vpop.f32.mrb[14].mxu0 }
 0x11d   : > { %v2857_v61 = vpop.f32.mrb[13].mxu1  ;;  %v2826_v62 = vpop.f32.mrb[15].mxu0 }
 0x11e   : > { %v1099_v63 = vadd.f32 %v2824_v59, %v839_v13  ;;  %v2858_v32 = vadd.f32 %v2857_v61, %v2856_v55  ;;  %v2859_v1 = vpop.f32.mrb[14].mxu1  ;;  %v2827_v2 = vadd.f32 %v2826_v62, %v2825_v60 }
 0x11f   : > { %v2860_v3 = vpop.f32.mrb[15].mxu1 }
 0x120   : > { %v1155_v4 = vadd.f32 %v2858_v32, %v1099_v63  ;;  %v1102_v5 = vadd.f32 %v2827_v2, %v842_v18  ;;  %v2861_v37 = vadd.f32 %v2860_v3, %v2859_v1 }
 0x122   : > { %v1158_v7 = vadd.f32 %v2861_v37, %v1102_v5  ;;  %v2828_v22 = vpop.f32.mrb[16].mxu0 }
 0x123   : > { %v2829_v8 = vpop.f32.mrb[17].mxu0 }
 0x124   : > { %v2830_v40 = vadd.f32 %v2829_v8, %v2828_v22  ;;  %v2831_v51 = vpop.f32.mrb[18].mxu0  ;;  %v2862_v24 = vpop.f32.mrb[16].mxu1 }
 0x125   : > { %v2832_v46 = vpop.f32.mrb[19].mxu0  ;;  %v2863_v48 = vpop.f32.mrb[17].mxu1 }
 0x126   : > { %v1107_v56 = vadd.f32 %v2830_v40, %v847_v28  ;;  %v2833_v27 = vadd.f32 %v2832_v46, %v2831_v51  ;;  %v2864_v9 = vadd.f32 %v2863_v48, %v2862_v24  ;;  %v2865_v44 = vpop.f32.mrb[18].mxu1 }
 0x127   : > { %v2866_v57 = vpop.f32.mrb[19].mxu1 }
 0x128   : > { %v1110_v29 = vadd.f32 %v2833_v27, %v850_v31  ;;  %v1163_v10 = vadd.f32 %v2864_v9, %v1107_v56  ;;  %v2867_v11 = vadd.f32 %v2866_v57, %v2865_v44  ;;  %v2153_v27 = vpop.permute.xlu0 %2152 }
 0x12a   : > { %v1166_v0 = vadd.f32 %v2867_v11, %v1110_v29  ;;  %v2834_v12 = vpop.f32.mrb[20].mxu0 }
 0x12b   : > { %v2835_v34 = vpop.f32.mrb[21].mxu0 }
 0x12c   : > { %v2836_v58 = vadd.f32 %v2835_v34, %v2834_v12  ;;  %v2868_v6 = vpop.f32.mrb[20].mxu1  ;;  %v2837_v13 = vpop.f32.mrb[22].mxu0 }
 0x12d   : > { %v2869_v33 = vpop.f32.mrb[21].mxu1  ;;  %v2838_v18 = vpop.f32.mrb[23].mxu0 }
 0x12e   : > { %v1115_v38 = vadd.f32 %v2836_v58, %v855_v39  ;;  %v2870_v19 = vadd.f32 %v2869_v33, %v2868_v6  ;;  %v2871_v20 = vpop.f32.mrb[22].mxu1  ;;  %v3829_v18 = vld [vmem:[%s3860_s2] ss:$0 sm:$0xff] }
 0x12f   : > { %v2872_v21 = vpop.f32.mrb[23].mxu1  ;;  %v2158_v20 = vpop.permute.xlu0 %2157 }
 0x130   : > { %v1171_v23 = vadd.f32 %v2870_v19, %v1115_v38  ;;  %v2163_v21 = vpop.permute.xlu1 %2162 }
 0x13a   : > { %v2890_v25 = vpop.f32.mrb[24].mxu0 }
 0x13b   : > { %v2891_v14 = vpop.f32.mrb[25].mxu0 }
 0x13c   : > { %v2924_v26 = vpop.f32.mrb[24].mxu1  ;;  %v2892_v15 = vadd.f32 %v2891_v14, %v2890_v25  ;;  %v2893_v28 = vpop.f32.mrb[26].mxu0 }
 0x13d   : > { %v2925_v16 = vpop.f32.mrb[25].mxu1  ;;  %v2894_v31 = vpop.f32.mrb[27].mxu0 }
 0x13e   : > { %v2926_v17 = vadd.f32 %v2925_v16, %v2924_v26  ;;  %v2927_v30 = vpop.f32.mrb[26].mxu1  ;;  %v2895_v42 = vadd.f32 %v2894_v31, %v2893_v28 }
 0x13f   : > { %v2928_v35 = vpop.f32.mrb[27].mxu1 }
 0x140   : > { %v1701_v41 = vadd.f32 %v2926_v17, %v2892_v15  ;;  %v2929_v47 = vadd.f32 %v2928_v35, %v2927_v30 }
 0x142   : > { %v1722_v36 = vadd.f32 %v1701_v41, %v1155_v4  ;;  %v1704_v43 = vadd.f32 %v2929_v47, %v2895_v42  ;;  %v2896_v50 = vpop.f32.mrb[28].mxu0 }
 0x143   : > { %v2897_v53 = vpop.f32.mrb[29].mxu0 }
 0x144   : > { %v1723_v49 = vadd.f32 %v1704_v43, %v1158_v7  ;;  %v2930_v52 = vpop.f32.mrb[28].mxu1  ;;  %v2898_v39 = vadd.f32 %v2897_v53, %v2896_v50  ;;  %v2899_v45 = vpop.f32.mrb[30].mxu0 }
 0x145   : > { %v2931_v54 = vpop.f32.mrb[29].mxu1  ;;  %v2900_v60 = vpop.f32.mrb[31].mxu0 }
 0x146   : > { %v2932_v55 = vadd.f32 %v2931_v54, %v2930_v52  ;;  %v2933_v59 = vpop.f32.mrb[30].mxu1  ;;  %v2901_v61 = vadd.f32 %v2900_v60, %v2899_v45 }
 0x147   : > { %v2934_v62 = vpop.f32.mrb[31].mxu1 }
 0x148   : > { %v1709_v63 = vadd.f32 %v2932_v55, %v2898_v39  ;;  %v2935_v32 = vadd.f32 %v2934_v62, %v2933_v59 }
 0x14a   : > { %v1724_v1 = vadd.f32 %v1709_v63, %v1163_v10  ;;  %v1712_v2 = vadd.f32 %v2935_v32, %v2901_v61  ;;  %v2902_v3 = vpop.f32.mrb[32].mxu0  ;;  %v2168_v61 = vpop.permute.xlu1 %2167 }
 0x14b   : > { %v2903_v37 = vpop.f32.mrb[33].mxu0 }
 0x14c   : > { %v1725_v5 = vadd.f32 %v1712_v2, %v1166_v0  ;;  %v2936_v4 = vpop.f32.mrb[32].mxu1  ;;  %v2904_v7 = vadd.f32 %v2903_v37, %v2902_v3  ;;  %v2905_v8 = vpop.f32.mrb[34].mxu0 }
 0x14d   : > { %v2937_v22 = vpop.f32.mrb[33].mxu1  ;;  %v2906_v24 = vpop.f32.mrb[35].mxu0 }
 0x14e   : > { %v2938_v40 = vadd.f32 %v2937_v22, %v2936_v4  ;;  %v2939_v51 = vpop.f32.mrb[34].mxu1 }
 0x14f   : > { %v2940_v46 = vpop.f32.mrb[35].mxu1 }
 0x150   : > { %v1717_v48 = vadd.f32 %v2938_v40, %v2904_v7 }
 0x152   : > { %v3824_v56 = vadd.f32 %v1717_v48, %v1171_v23 }
 0x15a   : > { %v2958_v9 = vpop.f32.mrb[36].mxu0 }
 0x15b   : > { %v2959_v57 = vpop.f32.mrb[37].mxu0 }
 0x15c   : > { %v2992_v44 = vpop.f32.mrb[36].mxu1  ;;  %v2960_v10 = vadd.f32 %v2959_v57, %v2958_v9  ;;  %v2961_v0 = vpop.f32.mrb[38].mxu0 }
 0x15d   : > { %v2993_v29 = vpop.f32.mrb[37].mxu1  ;;  %v2962_v34 = vpop.f32.mrb[39].mxu0 }
 0x15e   : > { %v2994_v11 = vadd.f32 %v2993_v29, %v2992_v44  ;;  %v2995_v12 = vpop.f32.mrb[38].mxu1  ;;  %v2963_v13 = vadd.f32 %v2962_v34, %v2961_v0 }
 0x15f   : > { %v2996_v58 = vpop.f32.mrb[39].mxu1 }
 0x160   : > { %v2107_v6 = vadd.f32 %v2994_v11, %v2960_v10  ;;  %v2997_v33 = vadd.f32 %v2996_v58, %v2995_v12  ;;  %v2173_v58 = vpop.permute.xlu0 %2172 }
 0x162   : > { %v2128_v38 = vadd.f32 %v2107_v6, %v1722_v36  ;;  %v2110_v19 = vadd.f32 %v2997_v33, %v2963_v13  ;;  %v2964_v26 = vpop.f32.mrb[40].mxu0  ;;  %v2243_v6 = vld [vmem:[%s3837_s19 + $0x10] sm:$0x3] }
 0x163   : > { %v2965_v16 = vpop.f32.mrb[41].mxu0 }
 0x164   : > { %v2129_v23 = vadd.f32 %v2110_v19, %v1723_v49  ;;  %v2140_v25 = vadd.f32 %v3829_v18, %v2128_v38  ;;  %v2998_v14 = vpop.f32.mrb[40].mxu1  ;;  %v2966_v17 = vadd.f32 %v2965_v16, %v2964_v26  ;;  %v2967_v30 = vpop.f32.mrb[42].mxu0 }
 0x165   : > { %v2999_v15 = vpop.f32.mrb[41].mxu1  ;;  %v2968_v42 = vpop.f32.mrb[43].mxu0 }
 0x166   : > { %v3000_v28 = vadd.f32 %v2999_v15, %v2998_v14  ;;  %v3001_v31 = vpop.f32.mrb[42].mxu1  ;;  %v2193_v35 = vmul.f32 %v2140_v25, %v2140_v25  ;;  %v2141_v41 = vadd.f32 %v3829_v18, %v2129_v23  ;;  %v2969_v43 = vadd.f32 %v2968_v42, %v2967_v30 }
 0x167   : > { %v3002_v47 = vpop.f32.mrb[43].mxu1  ;;  %v2175_v50 = vmul.f32 %v2153_v27, %v2140_v25 }
 0x168   : > { %v2115_v36 = vadd.f32 %v3000_v28, %v2966_v17  ;;  %v3003_v49 = vadd.f32 %v3002_v47, %v3001_v31  ;;  %v2176_v52 = vmul.f32 %v2158_v20, %v2141_v41  ;;  %v2194_v53 = vmul.f32 %v2141_v41, %v2141_v41 }
 0x169   : > { %v2730_v39 = vpack.c.bf16 %v2141_v41, %v2140_v25  ;;  %v2198_v55 = vmul.f32 %v2193_v35, %v2153_v27 }
 0x16a   : > { %v2130_v54 = vadd.f32 %v2115_v36, %v1724_v1  ;;  %v2118_v45 = vadd.f32 %v3003_v49, %v2969_v43  ;;  %v2180_v59 = vadd.f32 %v2176_v52, %v2175_v50  ;;  %v2199_v60 = vmul.f32 %v2194_v53, %v2158_v20  ;;  %v2970_v32 = vpop.f32.mrb[44].mxu0 }
 0x16b   : > { %2731 = vst [vmem:[%s3837_s19] sm:$0xff] %v2730_v39   ;;  %v2971_v4 = vpop.f32.mrb[45].mxu0 }
 0x16c   : > { %v2131_v62 = vadd.f32 %v2118_v45, %v1725_v5  ;;  %v2142_v63 = vadd.f32 %v3829_v18, %v2130_v54  ;;  %v3004_v2 = vpop.f32.mrb[44].mxu1  ;;  %v2203_v3 = vadd.f32 %v2199_v60, %v2198_v55  ;;  %v2972_v8 = vadd.f32 %v2971_v4, %v2970_v32  ;;  %v2973_v51 = vpop.f32.mrb[46].mxu0 }
 0x16d   : > { %v3005_v37 = vpop.f32.mrb[45].mxu1  ;;  %v2974_v46 = vpop.f32.mrb[47].mxu0 }
 0x16e   : > { %v2177_v7 = vmul.f32 %v2163_v21, %v2142_v63  ;;  %v2195_v22 = vmul.f32 %v2142_v63, %v2142_v63  ;;  %v3006_v40 = vadd.f32 %v3005_v37, %v3004_v2  ;;  %v3007_v1 = vpop.f32.mrb[46].mxu1  ;;  %v2143_v24 = vadd.f32 %v3829_v18, %v2131_v62 }
 0x16f   : > { %v3008_v48 = vpop.f32.mrb[47].mxu1 }
 0x170   : > { %v2181_v27 = vadd.f32 %v2180_v59, %v2177_v7  ;;  %v2200_v5 = vmul.f32 %v2195_v22, %v2163_v21  ;;  %v2123_v9 = vadd.f32 %v3006_v40, %v2972_v8  ;;  %v2178_v44 = vmul.f32 %v2168_v61, %v2143_v24 }
 0x171   : > { %v2196_v57 = vmul.f32 %v2143_v24, %v2143_v24  ;;  %v2735_v29 = vpack.c.bf16 %v2143_v24, %v2142_v63 }
 0x172   : > { %v2204_v10 = vadd.f32 %v2203_v3, %v2200_v5  ;;  %v2132_v11 = vadd.f32 %v2123_v9, %v3824_v56  ;;  %v2182_v0 = vadd.f32 %v2181_v27, %v2178_v44 }
 0x173   : > { %v2201_v12 = vmul.f32 %v2196_v57, %v2168_v61  ;;  %2737 = vst [vmem:[%s3837_s19 + $0x8] sm:$0xff] %v2735_v29  }
 0x174   : > { %v2144_v34 = vadd.f32 %v3829_v18, %v2132_v11 }
 0x175   : > { %v2205_v13 = vadd.f32 %v2204_v10, %v2201_v12 }
 0x176   : > { %v2179_v33 = vmul.f32 %v2173_v58, %v2144_v34  ;;  %v2197_v38 = vmul.f32 %v2144_v34, %v2144_v34  ;;  %v2726_v19 = vpack.c.bf16 %v2144_v34, %v2144_v34 }
 0x178   : > { %v2184_v20 = vsel %vm2183_vm4, %v2179_v33, 0.0  ;;  %v2202_v21 = vmul.f32 %v2197_v38, %v2173_v58  ;;  %v2244_v56 = vsel %vm2242_vm5, %v2726_v19, %v2243_v6 }
 0x179   : > { %2245 = vst [vmem:[%s3837_s19 + $0x10] sm:$0x3] %v2244_v56  ;;  %v2185_v23 = vadd.f32 %v2184_v20, %v2182_v0 }
 0x17a   : > { %v2206_v25 = vsel %vm2183_vm4, %v2202_v21, 0.0 }
 0x17b   : > { %v2186_v26 = vrot.slane %v2185_v23, 4  ;;  %v2207_v14 = vadd.f32 %v2206_v25, %v2205_v13 }
 0x17d   : > { %v2187_v16 = vadd.f32 %v2186_v26, %v2185_v23  ;;  %v2208_v18 = vrot.slane %v2207_v14, 4 }
 0x17f   : > { %v2188_v15 = vrot.slane %v2187_v16, 2  ;;  %v2209_v17 = vadd.f32 %v2208_v18, %v2207_v14 }
 0x181   : > { %v2189_v28 = vadd.f32 %v2188_v15, %v2187_v16  ;;  %v2210_v30 = vrot.slane %v2209_v17, 2 }
 0x183   : > { %v2190_v31 = vrot.slane %v2189_v28, 1  ;;  %v2211_v35 = vadd.f32 %v2210_v30, %v2209_v17 }
 0x185   : > { %v2191_v41 = vadd.f32 %v2190_v31, %v2189_v28  ;;  %v2212_v42 = vrot.slane %v2211_v35, 1 }
 0x187   : > { %2192 = vst [vmem:[%s265_s24] sm:$0x1] %v2191_v41  ;;  %v2213_v47 = vadd.f32 %v2212_v42, %v2211_v35 }
 0x189   : > { %2214 = vst [vmem:[%s268_s27] sm:$0x1] %v2213_v47 }
 0x18a PF: > { %s17_s21 = sadd.s32 1, %s3195_s21  }
 0x18b   : > { %p14_p4 = scmp.ge.s32.totalorder %s17_s21, 4  }
 0x18d   :  { %16 = sbr.rel (!%p14_p4) target bundleno = 1 (0x1), region = 93 }

// kernel: forward.7
= control target key start
LH: loop header
LB: loop body
LE: loop exit
PB: predicated region body
PF: predicated region fallthrough
CT: control target
= control target key end

     0   :  { %s2733_s21 = smov 0   ;;  %s3207_s0 = inlined_call_operand.vmem [shape: bf16[2,25,512], index: 0, kind: input, shape index: {}]   ;;  %s3208_s1 = inlined_call_operand.vmem [shape: bf16[2,2,512,128], index: 1, kind: input, shape index: {}]   ;;  %s3209_s2 = inlined_call_operand.vmem [shape: f32[1,128], index: 2, kind: input, shape index: {}]   ;;  %s3210_s3 = inlined_call_operand.vmem [shape: f32[15,1], index: 3, kind: input, shape index: {}]   ;;  %s3211_s4 = inlined_call_operand.vmem [shape: bf16[2,15,128], index: 4, kind: output, shape index: {0}]   ;;  %s3212_s5 = inlined_call_operand.vmem [shape: f32[2,1,128], index: 5, kind: output, shape index: {1}]   ;;  %s3213_s6 = inlined_call_operand.vmem [shape: f32[2,1,128], index: 6, kind: output, shape index: {2}]  }
   0x1 LB: > { %s1997_s22 = sadd.s32 4294967295, %s2695_s21   ;;  %p2001_p0 = scmp.ge.s32.totalorder %s2695_s21, 1  ;;  %s2695_s21 = sphi %s2733_s21, %s17_s21  }
   0x2   : > { %p217_p1 = scmp.lt.s32.totalorder %s2695_s21, 3 }
   0x4   : > { %p218_p2 = pnand %p2001_p0, %p217_p1 }
   0x5   : > { %v2541_v0 = vld [vmem:[%s3208_s1 + $0x140] sm:$0xff] (!%p218_p2)   ;;  %v2545_v4 = vld [vmem:[%s3208_s1 + $0x148] sm:$0xff] (!%p218_p2)   ;;  %v2549_v8 = vld [vmem:[%s3208_s1 + $0x150] sm:$0xff] (!%p218_p2)   ;;  %p253_p3 = scmp.lt.s32.totalorder (!%p218_p2), %s1997_s22, 1  ;;  %v2697_v23 = vmov (!%p218_p2), 0   ;;  %vm1538_vm1 = vcmask (!%p218_p2), 1044480  }
   0x6   : > { %221 = sbr.rel (%p218_p2) target bundleno = 379 (0x17b), region = 36  ;;  %v2542_v1 = vld [vmem:[%s3208_s1 + $0x1c0] sm:$0xff] (!%p218_p2)   ;;  %2355 = vmatprep.subr.bf16.mxu0 (!%p218_p2), %v2541_v0  ;;  %v2546_v5 = vld [vmem:[%s3208_s1 + $0x1c8] sm:$0xff] (!%p218_p2)   ;;  %v2550_v9 = vld [vmem:[%s3208_s1 + $0x1d0] sm:$0xff] (!%p218_p2)   ;;  %2540 = vset.pattern.permute.xlu0 (!%p218_p2), %v2697_v23  ;;  %vm1100_vm0 = vsmask.f32 (!%p218_p2), 5376 }
   0x7   : > { %v2543_v2 = vld [vmem:[%s3208_s1 + $0x100] sm:$0xff] (!%p218_p2)   ;;  %2377 = vmatprep.subr.bf16.mxu1 (!%p218_p2), %v2542_v1  ;;  %v2547_v6 = vld [vmem:[%s3208_s1 + $0x108] sm:$0xff] (!%p218_p2)   ;;  %v2551_v10 = vld [vmem:[%s3208_s1 + $0x110] sm:$0xff] (!%p218_p2)   ;;  %vm1886_vm2 = vcmask (!%p218_p2), 1043456   ;;  %vm1887_vm3 = vsmask.f32 (!%p218_p2), 3328 }
   0x8   : > { %v2544_v3 = vld [vmem:[%s3208_s1 + $0x180] sm:$0xff] (!%p218_p2)   ;;  %2356 = vmatpush3.bf16.msra.mxu0 (!%p218_p2), %v2543_v2  ;;  %v2548_v7 = vld [vmem:[%s3208_s1 + $0x188] sm:$0xff] (!%p218_p2)   ;;  %v2552_v11 = vld [vmem:[%s3208_s1 + $0x190] sm:$0xff] (!%p218_p2)   ;;  %vm1854_vm4 = vcmask (!%p218_p2), 1046528  }
   0x9   : > { %2378 = vmatpush3.bf16.msra.mxu1 (!%p218_p2), %v2544_v3  ;;  %2357 = vmatprep.subr.bf16.mxu0 (!%p218_p2), %v2545_v4  ;;  %v2553_v12 = vld [vmem:[%s3208_s1 + $0x158] sm:$0xff] (!%p218_p2)   ;;  %v2557_v16 = vld [vmem:[%s3208_s1 + $0x160] sm:$0xff] (!%p218_p2)   ;;  %v2561_v20 = vld [vmem:[%s3208_s1 + $0x168] sm:$0xff] (!%p218_p2)  }
   0xa   : > { %2379 = vmatprep.subr.bf16.mxu1 (!%p218_p2), %v2546_v5  ;;  %v2554_v13 = vld [vmem:[%s3208_s1 + $0x1d8] sm:$0xff] (!%p218_p2)   ;;  %v2558_v17 = vld [vmem:[%s3208_s1 + $0x1e0] sm:$0xff] (!%p218_p2)   ;;  %v2562_v21 = vld [vmem:[%s3208_s1 + $0x1e8] sm:$0xff] (!%p218_p2)  }
   0xb   : > { %v2555_v14 = vld [vmem:[%s3208_s1 + $0x118] sm:$0xff] (!%p218_p2)   ;;  %v2559_v18 = vld [vmem:[%s3208_s1 + $0x120] sm:$0xff] (!%p218_p2)   ;;  %v2563_v22 = vld [vmem:[%s3208_s1 + $0x128] sm:$0xff] (!%p218_p2)  }
   0xc   : > { %2358 = vmatpush3.bf16.msra.mxu0 (!%p218_p2), %v2547_v6  ;;  %v2556_v15 = vld [vmem:[%s3208_s1 + $0x198] sm:$0xff] (!%p218_p2)   ;;  %v2560_v19 = vld [vmem:[%s3208_s1 + $0x1a0] sm:$0xff] (!%p218_p2)   ;;  %v2564_v24 = vld [vmem:[%s3208_s1 + $0x1a8] sm:$0xff] (!%p218_p2)  }
   0xd   : > { %2380 = vmatpush3.bf16.msra.mxu1 %v2548_v7  ;;  %2359 = vmatprep.subr.bf16.mxu0 %v2549_v8  ;;  %s3215_s22 = smov (!%p253_p3, %s1997_s22), 1  ;;  %v2565_v25 = vld [vmem:[%s3208_s1 + $0x170] sm:$0xff]   ;;  %v2569_v29 = vld [vmem:[%s3208_s1 + $0x178] sm:$0xff]   ;;  %v2577_v41 = vld [vmem:[%s3208_s1 + $0x40] sm:$0xff]  }
   0xe   : > { %2381 = vmatprep.subr.bf16.mxu1 %v2550_v9  ;;  %v2566_v26 = vld [vmem:[%s3208_s1 + $0x1f0] sm:$0xff]   ;;  %s2351_s9 = sshll.u32 %s3215_s22, 6  ;;  %v2570_v30 = vld [vmem:[%s3208_s1 + $0x1f8] sm:$0xff]   ;;  %v2578_v46 = vld [vmem:[%s3208_s1 + $0xc0] sm:$0xff]   ;;  %s265_s15 = scalar_lea.vmem %s3212_s5, %s3215_s22 }
   0xf   : > { %v2567_v27 = vld [vmem:[%s3208_s1 + $0x130] sm:$0xff]   ;;  %s2841_s18 = scalar_lea.vmem %s3207_s0, %s2351_s9  ;;  %v2571_v31 = vld [vmem:[%s3208_s1 + $0x138] sm:$0xff]   ;;  %v2579_v53 = vld [vmem:[%s3208_s1] sm:$0xff]   ;;  %s2352_s9 = sshll.u32 %s3215_s22, 3 }
  0x10   : > { %2360 = vmatpush3.bf16.msra.mxu0 %v2551_v10  ;;  %v2568_v28 = vld [vmem:[%s3208_s1 + $0x1b0] sm:$0xff]   ;;  %v2572_v32 = vld [vmem:[%s3208_s1 + $0x1b8] sm:$0xff]   ;;  %v270_v33 = vld [vmem:[%s2841_s18] sm:$0xff]  ;;  %s262_s12 = scalar_lea.vmem %s3211_s4, %s2352_s9  ;;  %s268_s19 = scalar_lea.vmem %s3213_s6, %s3215_s22 }
  0x11   : > { %2382 = vmatpush3.bf16.msra.mxu1 %v2552_v11  ;;  %2361 = vmatprep.subr.bf16.mxu0 %v2553_v12  ;;  %v2851_v34 = vld [vmem:[%s2841_s18 + $0x10] sm:$0xff]  ;;  %v271_v35 = vld [vmem:[%s2841_s18 + $0x8] sm:$0xff]  ;;  %v2859_v38 = vld [vmem:[%s2841_s18 + $0x18] sm:$0xff] }
  0x12   : > { %2383 = vmatprep.subr.bf16.mxu1 %v2554_v13  ;;  %v2855_v36 = vcombine.low %v270_v33, %v2851_v34  ;;  %v2071_v37 = vcombine.high %v270_v33, %v2851_v34  ;;  %v2862_v39 = vcombine.low %v271_v35, %v2859_v38  ;;  %v2073_v40 = vcombine.high %v271_v35, %v2859_v38  ;;  %v2580_v56 = vld [vmem:[%s3208_s1 + $0x80] sm:$0xff]   ;;  %v2581_v57 = vld [vmem:[%s3208_s1 + $0x48] sm:$0xff]   ;;  %v2585_v1 = vld [vmem:[%s3208_s1 + $0x50] sm:$0xff]  }
  0x13   : > { %v2582_v62 = vld [vmem:[%s3208_s1 + $0xc8] sm:$0xff]   ;;  %v2586_v2 = vld [vmem:[%s3208_s1 + $0xd0] sm:$0xff]   ;;  %v2589_v5 = vld [vmem:[%s3208_s1 + $0x58] sm:$0xff]  }
  0x14   : > { %2362 = vmatpush3.bf16.msra.mxu0 %v2555_v14  ;;  %v427_v42 = vshrl.u32 %v2071_v37, 16  ;;  %v429_v43 = vshll.u32 %v2071_v37, 16  ;;  %v420_v44 = vshrl.u32 %v2855_v36, 16  ;;  %v422_v45 = vshll.u32 %v2855_v36, 16  ;;  %v2583_v63 = vld [vmem:[%s3208_s1 + $0x8] sm:$0xff]   ;;  %v2587_v3 = vld [vmem:[%s3208_s1 + $0x10] sm:$0xff]   ;;  %vm1888_vm5 = vmand %vm1886_vm2, %vm1887_vm3 }
  0x15   : > { %2384 = vmatpush3.bf16.msra.mxu1 %v2556_v15  ;;  %2363 = vmatprep.subr.bf16.mxu0 %v2557_v16  ;;  %v441_v47 = vshrl.u32 %v2073_v40, 16  ;;  %v443_v48 = vshll.u32 %v2073_v40, 16  ;;  %v434_v49 = vshrl.u32 %v2862_v39, 16  ;;  %v436_v50 = vshll.u32 %v2862_v39, 16  ;;  %v2584_v0 = vld [vmem:[%s3208_s1 + $0x88] sm:$0xff]   ;;  %v2588_v4 = vld [vmem:[%s3208_s1 + $0x90] sm:$0xff]  }
  0x16   : > { %2385 = vmatprep.subr.bf16.mxu1 %v2558_v17  ;;  %v431_v51 = vrot.slane %v429_v43, 1  ;;  %v424_v52 = vrot.slane %v422_v45, 1  ;;  %v2590_v6 = vld [vmem:[%s3208_s1 + $0xd8] sm:$0xff]   ;;  %v2593_v9 = vld [vmem:[%s3208_s1 + $0x60] sm:$0xff]   ;;  %v2597_v13 = vld [vmem:[%s3208_s1 + $0x68] sm:$0xff]  }
  0x17   : > { %v445_v54 = vrot.slane %v443_v48, 1  ;;  %v438_v55 = vrot.slane %v436_v50, 1  ;;  %v2591_v7 = vld [vmem:[%s3208_s1 + $0x18] sm:$0xff]   ;;  %v2594_v10 = vld [vmem:[%s3208_s1 + $0xe0] sm:$0xff]   ;;  %v2598_v14 = vld [vmem:[%s3208_s1 + $0xe8] sm:$0xff]  }
  0x18   : > { %2364 = vmatpush3.bf16.msra.mxu0 %v2559_v18  ;;  %v432_v58 = vor.u32 %v431_v51, %v427_v42  ;;  %v425_v59 = vor.u32 %v424_v52, %v420_v44  ;;  %v2592_v8 = vld [vmem:[%s3208_s1 + $0x98] sm:$0xff]   ;;  %v2595_v11 = vld [vmem:[%s3208_s1 + $0x20] sm:$0xff]   ;;  %v2599_v15 = vld [vmem:[%s3208_s1 + $0x28] sm:$0xff]  }
  0x19   : > { %2386 = vmatpush3.bf16.msra.mxu1 %v2560_v19  ;;  %2365 = vmatprep.subr.bf16.mxu0 %v2561_v20  ;;  %v446_v60 = vor.u32 %v445_v54, %v441_v47  ;;  %v439_v61 = vor.u32 %v438_v55, %v434_v49  ;;  %v2596_v12 = vld [vmem:[%s3208_s1 + $0xa0] sm:$0xff]   ;;  %v2600_v16 = vld [vmem:[%s3208_s1 + $0xa8] sm:$0xff]   ;;  %v2601_v17 = vld [vmem:[%s3208_s1 + $0x70] sm:$0xff]  }
  0x1a   : > { %2387 = vmatprep.subr.bf16.mxu1 %v2562_v21  ;;  %675 = vmatprep.mubr.bf16.mxu0 %v432_v58  ;;  %v2602_v18 = vld [vmem:[%s3208_s1 + $0xf0] sm:$0xff]   ;;  %v2605_v21 = vld [vmem:[%s3208_s1 + $0x78] sm:$0xff]   ;;  %v2625_v43 = vld [vmem:[%s3208_s1 + $0x260] sm:$0xff]  }
  0x1b   : > { %716 = vmatprep.mubr.bf16.mxu1 %v446_v60  ;;  %v2603_v19 = vld [vmem:[%s3208_s1 + $0x30] sm:$0xff]   ;;  %v2607_v23 = vld [vmem:[%s3208_s1 + $0x38] sm:$0xff]   ;;  %v2626_v44 = vld [vmem:[%s3208_s1 + $0x2e0] sm:$0xff]  }
  0x1c   : > { %2366 = vmatpush3.bf16.msra.mxu0 %v2563_v22  ;;  %v2604_v20 = vld [vmem:[%s3208_s1 + $0xb0] sm:$0xff]   ;;  %v2606_v22 = vld [vmem:[%s3208_s1 + $0xf8] sm:$0xff]   ;;  %v2627_v45 = vld [vmem:[%s3208_s1 + $0x220] sm:$0xff]  }
  0x1d   : > { %2388 = vmatpush3.bf16.msra.mxu1 %v2564_v24  ;;  %2367 = vmatprep.subr.bf16.mxu0 %v2565_v25  ;;  %v2608_v24 = vld [vmem:[%s3208_s1 + $0xb8] sm:$0xff]   ;;  %v2609_v25 = vld [vmem:[%s3208_s1 + $0x240] sm:$0xff]   ;;  %v2617_v33 = vld [vmem:[%s3208_s1 + $0x250] sm:$0xff]  }
  0x1e   : > { %2389 = vmatprep.subr.bf16.mxu1 %v2566_v26  ;;  %v2610_v26 = vld [vmem:[%s3208_s1 + $0x2c0] sm:$0xff]   ;;  %v2618_v35 = vld [vmem:[%s3208_s1 + $0x2d0] sm:$0xff]   ;;  %v2624_v42 = vld [vmem:[%s3208_s1 + $0x298] sm:$0xff]  }
  0x1f   : > { %v2629_v47 = vld [vmem:[%s3208_s1 + $0x268] sm:$0xff]   ;;  %v2633_v51 = vld [vmem:[%s3208_s1 + $0x270] sm:$0xff]   ;;  %v2637_v55 = vld [vmem:[%s3208_s1 + $0x278] sm:$0xff]  }
  0x20   : > { %2368 = vmatpush3.bf16.msra.mxu0 %v2567_v27  ;;  %v2611_v27 = vld [vmem:[%s3208_s1 + $0x200] sm:$0xff]   ;;  %v2630_v48 = vld [vmem:[%s3208_s1 + $0x2e8] sm:$0xff]   ;;  %v2634_v52 = vld [vmem:[%s3208_s1 + $0x2f0] sm:$0xff]  }
  0x21   : > { %2390 = vmatpush3.bf16.msra.mxu1 %v2568_v28  ;;  %2369 = vmatprep.subr.bf16.mxu0 %v2569_v29  ;;  %v2612_v28 = vld [vmem:[%s3208_s1 + $0x280] sm:$0xff]   ;;  %v2613_v29 = vld [vmem:[%s3208_s1 + $0x248] sm:$0xff]   ;;  %v2636_v54 = vld [vmem:[%s3208_s1 + $0x2b0] sm:$0xff]  }
  0x22   : > { %2391 = vmatprep.subr.bf16.mxu1 %v2570_v30  ;;  %v2614_v30 = vld [vmem:[%s3208_s1 + $0x2c8] sm:$0xff]   ;;  %v2640_v58 = vld [vmem:[%s3208_s1 + $0x2b8] sm:$0xff]   ;;  %v1007_v60 = vld [vmem:[%s2841_s18 + $0x20] sm:$0x33] }
  0x23   : > { %v2631_v49 = vld [vmem:[%s3208_s1 + $0x228] sm:$0xff]  }
  0x24   : > { %2370 = vmatpush3.bf16.msra.mxu0 %v2571_v31  ;;  %v2615_v31 = vld [vmem:[%s3208_s1 + $0x208] sm:$0xff]  }
  0x25   : > { %2392 = vmatpush3.bf16.msra.mxu1 %v2572_v32  ;;  %2399 = vmatprep.subr.bf16.mxu0 %v2577_v41  ;;  %v2616_v32 = vld [vmem:[%s3208_s1 + $0x288] sm:$0xff]   ;;  %v2623_v41 = vld [vmem:[%s3208_s1 + $0x218] sm:$0xff]  }
  0x26   : > { %2421 = vmatprep.subr.bf16.mxu1 %v2578_v46  ;;  %v2628_v46 = vld [vmem:[%s3208_s1 + $0x2a0] sm:$0xff]   ;;  %v2632_v50 = vld [vmem:[%s3208_s1 + $0x2a8] sm:$0xff]  }
  0x27   : > { %676 = vmatmul.mubr.bf16.vlgmr.msra.gmra.mrb[0].mxu0 %v425_v59  ;;  %v1003_v59 = vld [vmem:[%s2841_s18] sm:$0xcc] }
  0x28   : > { %717 = vmatmul.mubr.bf16.vlgmr.msra.gmra.mrb[0].mxu1 %v439_v61  ;;  %2400 = vmatpush3.bf16.msra.mxu0 %v2579_v53  ;;  %v2635_v53 = vld [vmem:[%s3208_s1 + $0x230] sm:$0xff]   ;;  %v2203_v61 = vcombine.high %v1003_v59, %v2851_v34 }
  0x29   : > { %2422 = vmatpush3.bf16.msra.mxu1 %v2580_v56  ;;  %2401 = vmatprep.subr.bf16.mxu0 %v2581_v57  ;;  %v2638_v56 = vld [vmem:[%s3208_s1 + $0x2f8] sm:$0xff]  }
  0x2a   : > { %2423 = vmatprep.subr.bf16.mxu1 %v2582_v62  ;;  %953 = vmatprep.mubr.bf16.mxu0 %v2071_v37  ;;  %v2620_v37 = vld [vmem:[%s3208_s1 + $0x290] sm:$0xff]   ;;  %v2639_v57 = vld [vmem:[%s3208_s1 + $0x238] sm:$0xff]   ;;  %v1004_v62 = vld [vmem:[%s2841_s18 + $0x8] sm:$0xcc] }
  0x2b   : > { %994 = vmatprep.mubr.bf16.mxu1 %v2073_v40  ;;  %v2622_v40 = vld [vmem:[%s3208_s1 + $0x2d8] sm:$0xff]  }
  0x2c   : > { %2402 = vmatpush3.bf16.msra.mxu0 %v2583_v63  ;;  %v1008_v63 = vld [vmem:[%s2841_s18 + $0x28] sm:$0x33] }
  0x2d   : > { %2424 = vmatpush3.bf16.msra.mxu1 %v2584_v0  ;;  %2403 = vmatprep.subr.bf16.mxu0 %v2585_v1  ;;  %v2202_v0 = vcombine.low %v1003_v59, %v2851_v34  ;;  %v2207_v1 = vcombine.high %v1007_v60, %v1007_v60 }
  0x2e   : > { %2425 = vmatprep.subr.bf16.mxu1 %v2586_v2  ;;  %v2205_v2 = vcombine.high %v1004_v62, %v2859_v38 }
  0x30   : > { %2404 = vmatpush3.bf16.msra.mxu0 %v2587_v3  ;;  %v2209_v3 = vcombine.high %v1008_v63, %v1008_v63 }
  0x31   : > { %2426 = vmatpush3.bf16.msra.mxu1 %v2588_v4  ;;  %2405 = vmatprep.subr.bf16.mxu0 %v2589_v5  ;;  %v2649_v4 = vld [vmem:[%s3208_s1 + $0x340] sm:$0xff]   ;;  %v1119_v5 = vshrl.u32 %v2203_v61, 16 }
  0x32   : > { %2427 = vmatprep.subr.bf16.mxu1 %v2590_v6  ;;  %v1122_v6 = vshll.u32 %v2203_v61, 16  ;;  %v2656_v61 = vld [vmem:[%s3208_s1 + $0x388] sm:$0xff]  }
  0x34   : > { %2406 = vmatpush3.bf16.msra.mxu0 %v2591_v7  ;;  %v2206_v7 = vcombine.low %v1007_v60, %v1007_v60  ;;  %v2657_v60 = vld [vmem:[%s3208_s1 + $0x350] sm:$0xff]  }
  0x35   : > { %2428 = vmatpush3.bf16.msra.mxu1 %v2592_v8  ;;  %2407 = vmatprep.subr.bf16.mxu0 %v2593_v9  ;;  %v1102_v8 = vshrl.u32 %v2202_v0, 16  ;;  %v2650_v9 = vld [vmem:[%s3208_s1 + $0x3c0] sm:$0xff]  }
  0x36   : > { %2429 = vmatprep.subr.bf16.mxu1 %v2594_v10  ;;  %v1127_v10 = vshrl.u32 %v2207_v1, 16 }
  0x38   : > { %2408 = vmatpush3.bf16.msra.mxu0 %v2595_v11  ;;  %v1130_v11 = vshll.u32 %v2207_v1, 16  ;;  %v2660_v1 = vld [vmem:[%s3208_s1 + $0x390] sm:$0xff]  }
  0x39   : > { %2430 = vmatpush3.bf16.msra.mxu1 %v2596_v12  ;;  %2409 = vmatprep.subr.bf16.mxu0 %v2597_v13  ;;  %v1153_v12 = vshrl.u32 %v2205_v2, 16  ;;  %v1156_v13 = vshll.u32 %v2205_v2, 16  ;;  %v2662_v2 = vld [vmem:[%s3208_s1 + $0x3d8] sm:$0xff]  }
  0x3a   : > { %2431 = vmatprep.subr.bf16.mxu1 %v2598_v14  ;;  %v1121_v14 = vrot.slane %v1119_v5, 2  ;;  %v2664_v5 = vld [vmem:[%s3208_s1 + $0x398] sm:$0xff]  }
  0x3c   : > { %2410 = vmatpush3.bf16.msra.mxu0 %v2599_v15  ;;  %v1124_v15 = vrot.slane %v1122_v6, 3  ;;  %v2666_v6 = vld [vmem:[%s3208_s1 + $0x3e0] sm:$0xff]  }
  0x3d   : > { %2432 = vmatpush3.bf16.msra.mxu1 %v2600_v16  ;;  %2411 = vmatprep.subr.bf16.mxu0 %v2601_v17  ;;  %v1161_v16 = vshrl.u32 %v2209_v3, 16  ;;  %v1164_v17 = vshll.u32 %v2209_v3, 16  ;;  %v2663_v3 = vld [vmem:[%s3208_s1 + $0x318] sm:$0xff]  }
  0x3e   : > { %2433 = vmatprep.subr.bf16.mxu1 %v2602_v18  ;;  %v1129_v18 = vrot.slane %v1127_v10, 2  ;;  %v2670_v10 = vld [vmem:[%s3208_s1 + $0x3e8] sm:$0xff]  }
  0x40   : > { %2412 = vmatpush3.bf16.msra.mxu0 %v2603_v19  ;;  %v1132_v19 = vrot.slane %v1130_v11, 3  ;;  %v2671_v11 = vld [vmem:[%s3208_s1 + $0x328] sm:$0xff]  }
  0x41   : > { %2434 = vmatpush3.bf16.msra.mxu1 %v2604_v20  ;;  %2413 = vmatprep.subr.bf16.mxu0 %v2605_v21  ;;  %v1155_v20 = vrot.slane %v1153_v12, 2  ;;  %v1158_v21 = vrot.slane %v1156_v13, 3  ;;  %v2672_v12 = vld [vmem:[%s3208_s1 + $0x3a8] sm:$0xff]   ;;  %v2673_v13 = vld [vmem:[%s3208_s1 + $0x370] sm:$0xff]  }
  0x42   : > { %2435 = vmatprep.subr.bf16.mxu1 %v2606_v22  ;;  %v1125_v22 = vor.u32 %v1124_v15, %v1121_v14  ;;  %v2674_v14 = vld [vmem:[%s3208_s1 + $0x3f0] sm:$0xff]  }
  0x43   : > { %v2675_v15 = vld [vmem:[%s3208_s1 + $0x330] sm:$0xff]  }
  0x44   : > { %2414 = vmatpush3.bf16.msra.mxu0 %v2607_v23  ;;  %v1163_v23 = vrot.slane %v1161_v16, 2  ;;  %v2677_v16 = vld [vmem:[%s3208_s1 + $0x378] sm:$0xff]  }
  0x45   : > { %2436 = vmatpush3.bf16.msra.mxu1 %v2608_v24  ;;  %2443 = vmatprep.subr.bf16.mxu0 %v2609_v25  ;;  %v1166_v24 = vrot.slane %v1164_v17, 3  ;;  %v1104_v25 = vrot.slane %v1102_v8, 2  ;;  %v2669_v8 = vld [vmem:[%s3208_s1 + $0x368] sm:$0xff]   ;;  %v1449_v17 = vld [vmem:[%s2841_s18] sm:$0x88] }
  0x46   : > { %2465 = vmatprep.subr.bf16.mxu1 %v2610_v26  ;;  %v1133_v26 = vor.u32 %v1132_v19, %v1129_v18  ;;  %v1451_v18 = vld [vmem:[%s2841_s18 + $0x20] sm:$0x77]  ;;  %v1450_v19 = vld [vmem:[%s2841_s18 + $0x8] sm:$0x88] }
  0x47   : > { %954 = vmatmul.mubr.bf16.vlgmr.msra.gmra.mrb[4].mxu0 %v2855_v36  ;;  %v2619_v36 = vld [vmem:[%s3208_s1 + $0x210] sm:$0xff]  }
  0x48   : > { %995 = vmatmul.mubr.bf16.vlgmr.msra.gmra.mrb[4].mxu1 %v2862_v39  ;;  %2444 = vmatpush3.bf16.msra.mxu0 %v2611_v27  ;;  %v2621_v39 = vld [vmem:[%s3208_s1 + $0x258] sm:$0xff]   ;;  %v1159_v27 = vor.u32 %v1158_v21, %v1155_v20  ;;  %v2307_v20 = vcombine.high %v1449_v17, %v2851_v34  ;;  %v2311_v21 = vcombine.high %v1451_v18, %v1451_v18 }
  0x49   : > { %2466 = vmatpush3.bf16.msra.mxu1 %v2612_v28  ;;  %2445 = vmatprep.subr.bf16.mxu0 %v2613_v29  ;;  %v1105_v28 = vshll.u32 %v2202_v0, 16  ;;  %v1110_v29 = vshrl.u32 %v2206_v7, 16  ;;  %v2661_v0 = vld [vmem:[%s3208_s1 + $0x358] sm:$0xff]  }
  0x4a   : > { %2467 = vmatprep.subr.bf16.mxu1 %v2614_v30  ;;  %v1167_v30 = vor.u32 %v1166_v24, %v1163_v23  ;;  %v2309_v23 = vcombine.high %v1450_v19, %v2859_v38  ;;  %v2306_v24 = vcombine.low %v1449_v17, %v2851_v34  ;;  %v2678_v34 = vld [vmem:[%s3208_s1 + $0x3f8] sm:$0xff]  }
  0x4c   : > { %2446 = vmatpush3.bf16.msra.mxu0 %v2615_v31  ;;  %v1113_v31 = vshll.u32 %v2206_v7, 16  ;;  %v2667_v7 = vld [vmem:[%s3208_s1 + $0x320] sm:$0xff]  }
  0x4d   : > { %2468 = vmatpush3.bf16.msra.mxu1 %v2616_v32  ;;  %2447 = vmatprep.subr.bf16.mxu0 %v2617_v33  ;;  %v2204_v32 = vcombine.low %v1004_v62, %v2859_v38  ;;  %v2208_v33 = vcombine.low %v1008_v63, %v1008_v63  ;;  %v2658_v62 = vld [vmem:[%s3208_s1 + $0x3d0] sm:$0xff]  }
  0x4e   : > { %2469 = vmatprep.subr.bf16.mxu1 %v2618_v35  ;;  %v1134_v35 = vsel %vm1100_vm0, %v1125_v22, %v1133_v26  ;;  %v2659_v63 = vld [vmem:[%s3208_s1 + $0x310] sm:$0xff]   ;;  %v1452_v22 = vld [vmem:[%s2841_s18 + $0x28] sm:$0x77] }
  0x4f   : > { %1397 = vmatprep.mubr.bf16.mxu0 %v1134_v35  ;;  %v2676_v26 = vld [vmem:[%s3208_s1 + $0x3b0] sm:$0xff]   ;;  %v1548_v35 = vrot.slane %v2309_v23, 3 }
  0x50   : > { %2448 = vmatpush3.bf16.msra.mxu0 %v2619_v36  ;;  %v1107_v36 = vrot.slane %v1105_v28, 3  ;;  %v2310_v28 = vcombine.low %v1451_v18, %v1451_v18 }
  0x51   : > { %2470 = vmatpush3.bf16.msra.mxu1 %v2620_v37  ;;  %2449 = vmatprep.subr.bf16.mxu0 %v2621_v39  ;;  %v1112_v37 = vrot.slane %v1110_v29, 2  ;;  %v1168_v39 = vsel %vm1100_vm0, %v1159_v27, %v1167_v30  ;;  %v2313_v27 = vcombine.high %v1452_v22, %v1452_v22  ;;  %v2308_v29 = vcombine.low %v1450_v19, %v2859_v38 }
  0x52   : > { %2471 = vmatprep.subr.bf16.mxu1 %v2622_v40  ;;  %v1115_v40 = vrot.slane %v1113_v31, 3  ;;  %1438 = vmatprep.mubr.bf16.mxu1 %v1168_v39  ;;  %v2312_v30 = vcombine.low %v1452_v22, %v1452_v22  ;;  %v2679_v31 = vld [vmem:[%s3208_s1 + $0x338] sm:$0xff]   ;;  %v1540_v39 = vrot.slane %v2310_v28, 3 }
  0x54   : > { %2450 = vmatpush3.bf16.msra.mxu0 %v2623_v41  ;;  %v1136_v41 = vshrl.u32 %v2204_v32, 16 }
  0x55   : > { %2472 = vmatpush3.bf16.msra.mxu1 %v2624_v42  ;;  %2451 = vmatprep.subr.bf16.mxu0 %v2625_v43  ;;  %v1139_v42 = vshll.u32 %v2204_v32, 16  ;;  %v1108_v43 = vor.u32 %v1107_v36, %v1104_v25  ;;  %v1841_v25 = vld [vmem:[%s3210_s3 + $0x8] sm:$0x7f]  ;;  %v1542_v32 = vrot.slane %v2307_v20, 3  ;;  %v1539_v36 = vrot.slane %v2306_v24, 3 }
  0x56   : > { %2473 = vmatprep.subr.bf16.mxu1 %v2626_v44  ;;  %v1144_v44 = vshrl.u32 %v2208_v33, 16  ;;  %1849 = vperm.xlu0 %2540, %v1841_v25  }
  0x58   : > { %2452 = vmatpush3.bf16.msra.mxu0 %v2627_v45  ;;  %v1147_v45 = vshll.u32 %v2208_v33, 16  ;;  %v1543_v33 = vrot.slane %v2311_v21, 3 }
  0x59   : > { %2474 = vmatpush3.bf16.msra.mxu1 %v2628_v46  ;;  %2453 = vmatprep.subr.bf16.mxu0 %v2629_v47  ;;  %v1116_v46 = vor.u32 %v1115_v40, %v1112_v37  ;;  %v1138_v47 = vrot.slane %v1136_v41, 2  ;;  %v1549_v37 = vrot.slane %v2313_v27, 3  ;;  %v1840_v40 = vld [vmem:[%s3210_s3] sm:$0xff]  ;;  %v2680_v41 = vld [vmem:[%s3208_s1 + $0x3b8] sm:$0xff]  }
  0x5a   : > { %2475 = vmatprep.subr.bf16.mxu1 %v2630_v48  ;;  %v1141_v48 = vrot.slane %v1139_v42, 3  ;;  %v1544_v38 = vsel %vm1538_vm1, %v1542_v32, %v1543_v33  ;;  %1844 = vperm.xlu0 %2540, %v1840_v40  }
  0x5b   : > { %v1550_v42 = vsel %vm1538_vm1, %v1548_v35, %v1549_v37 }
  0x5c   : > { %2454 = vmatpush3.bf16.msra.mxu0 %v2631_v49  ;;  %v2651_v49 = vld [vmem:[%s3208_s1 + $0x300] sm:$0xff]  }
  0x5d   : > { %2476 = vmatpush3.bf16.msra.mxu1 %v2632_v50  ;;  %2455 = vmatprep.subr.bf16.mxu0 %v2633_v51  ;;  %v2653_v50 = vld [vmem:[%s3208_s1 + $0x348] sm:$0xff]   ;;  %v1146_v51 = vrot.slane %v1144_v44, 2  ;;  %v1546_v44 = vrot.slane %v2312_v30, 3 }
  0x5e   : > { %2477 = vmatprep.subr.bf16.mxu1 %v2634_v52  ;;  %v1149_v52 = vrot.slane %v1147_v45, 3  ;;  %v1541_v45 = vsel %vm1538_vm1, %v1539_v36, %v1540_v39 }
  0x60   : > { %2456 = vmatpush3.bf16.msra.mxu0 %v2635_v53  ;;  %v1117_v53 = vsel %vm1100_vm0, %v1108_v43, %v1116_v46  ;;  %v1545_v43 = vrot.slane %v2308_v29, 3 }
  0x61   : > { %2478 = vmatpush3.bf16.msra.mxu1 %v2636_v54  ;;  %2457 = vmatprep.subr.bf16.mxu0 %v2637_v55  ;;  %v1142_v54 = vor.u32 %v1141_v48, %v1138_v47  ;;  %v2652_v55 = vld [vmem:[%s3208_s1 + $0x380] sm:$0xff]  }
  0x62   : > { %2479 = vmatprep.subr.bf16.mxu1 %v2638_v56  ;;  %v1150_v56 = vor.u32 %v1149_v52, %v1146_v51  ;;  %v1547_v46 = vsel %vm1538_vm1, %v1545_v43, %v1546_v44  ;;  %v2346_v43 = vld [vmem:[%s3209_s2] ss:$0 sm:$0xff] }
  0x64   : > { %2458 = vmatpush3.bf16.msra.mxu0 %v2639_v57  ;;  %v2654_v57 = vld [vmem:[%s3208_s1 + $0x3c8] sm:$0xff]   ;;  %v1151_v59 = vsel %vm1100_vm0, %v1142_v54, %v1150_v56 }
  0x65   : > { %2480 = vmatpush3.bf16.msra.mxu1 %v2640_v58  ;;  %2487 = vmatprep.subr.bf16.mxu0 %v2649_v4  ;;  %v2655_v58 = vld [vmem:[%s3208_s1 + $0x308] sm:$0xff]   ;;  %v2665_v4 = vld [vmem:[%s3208_s1 + $0x360] sm:$0xff]  }
  0x66   : > { %2509 = vmatprep.subr.bf16.mxu1 %v2650_v9  ;;  %v2668_v9 = vld [vmem:[%s3208_s1 + $0x3a0] sm:$0xff]  }
  0x67   : > { %1398 = vmatmul.mubr.bf16.vlgmr.msra.gmra.mrb[8].mxu0 %v1117_v53 }
  0x68   : > { %2488 = vmatpush3.bf16.msra.mxu0 %v2651_v49  ;;  %1439 = vmatmul.mubr.bf16.vlgmr.msra.gmra.mrb[8].mxu1 %v1151_v59 }
  0x69   : > { %2489 = vmatprep.subr.bf16.mxu0 %v2653_v50  ;;  %2510 = vmatpush3.bf16.msra.mxu1 %v2652_v55 }
  0x6a   : > { %2511 = vmatprep.subr.bf16.mxu1 %v2654_v57  ;;  %1779 = vmatprep.mubr.bf16.mxu0 %v1544_v38 }
  0x6b   : > { %1820 = vmatprep.mubr.bf16.mxu1 %v1550_v42 }
  0x6c   : > { %2490 = vmatpush3.bf16.msra.mxu0 %v2655_v58 }
  0x6d   : > { %2491 = vmatprep.subr.bf16.mxu0 %v2657_v60  ;;  %2512 = vmatpush3.bf16.msra.mxu1 %v2656_v61 }
  0x6e   : > { %2513 = vmatprep.subr.bf16.mxu1 %v2658_v62 }
  0x70   : > { %2492 = vmatpush3.bf16.msra.mxu0 %v2659_v63 }
  0x71   : > { %2493 = vmatprep.subr.bf16.mxu0 %v2661_v0  ;;  %2514 = vmatpush3.bf16.msra.mxu1 %v2660_v1 }
  0x72   : > { %2515 = vmatprep.subr.bf16.mxu1 %v2662_v2 }
  0x74   : > { %2494 = vmatpush3.bf16.msra.mxu0 %v2663_v3 }
  0x75   : > { %2495 = vmatprep.subr.bf16.mxu0 %v2665_v4  ;;  %2516 = vmatpush3.bf16.msra.mxu1 %v2664_v5 }
  0x76   : > { %2517 = vmatprep.subr.bf16.mxu1 %v2666_v6 }
  0x78   : > { %2496 = vmatpush3.bf16.msra.mxu0 %v2667_v7 }
  0x79   : > { %2497 = vmatprep.subr.bf16.mxu0 %v2669_v8  ;;  %2518 = vmatpush3.bf16.msra.mxu1 %v2668_v9 }
  0x7a   : > { %2519 = vmatprep.subr.bf16.mxu1 %v2670_v10 }
  0x7c   : > { %2498 = vmatpush3.bf16.msra.mxu0 %v2671_v11 }
  0x7d   : > { %2499 = vmatprep.subr.bf16.mxu0 %v2673_v13  ;;  %2520 = vmatpush3.bf16.msra.mxu1 %v2672_v12 }
  0x7e   : > { %2521 = vmatprep.subr.bf16.mxu1 %v2674_v14 }
  0x80   : > { %2500 = vmatpush3.bf16.msra.mxu0 %v2675_v15 }
  0x81   : > { %2501 = vmatprep.subr.bf16.mxu0 %v2677_v16  ;;  %2522 = vmatpush3.bf16.msra.mxu1 %v2676_v26 }
  0x82   : > { %2523 = vmatprep.subr.bf16.mxu1 %v2678_v34 }
  0x84   : > { %2502 = vmatpush3.bf16.msra.mxu0 %v2679_v31 }
  0x85   : > { %2524 = vmatpush3.bf16.msra.mxu1 %v2680_v41 }
  0x87   : > { %1780 = vmatmul.mubr.bf16.vlgmr.msra.gmra.mrb[12].mxu0 %v1541_v45 }
  0x88   : > { %1821 = vmatmul.mubr.bf16.vlgmr.msra.gmra.mrb[12].mxu1 %v1547_v46 }
  0xd5   : > { %v1850_v42 = vpop.permute.xlu0 %1849 }
  0xfa   : > { %v2371_v47 = vpop.f32.mrb[0].mxu0 }
  0xfb   : > { %v2393_v48 = vpop.f32.mrb[0].mxu1  ;;  %v2372_v49 = vpop.f32.mrb[1].mxu0 }
  0xfc   : > { %v2373_v50 = vadd.f32 %v2372_v49, %v2371_v47  ;;  %v2394_v51 = vpop.f32.mrb[1].mxu1  ;;  %v2374_v52 = vpop.f32.mrb[2].mxu0 }
  0xfd   : > { %v2395_v53 = vadd.f32 %v2394_v51, %v2393_v48  ;;  %v2396_v54 = vpop.f32.mrb[2].mxu1  ;;  %v2375_v55 = vpop.f32.mrb[3].mxu0 }
  0xfe   : > { %v2376_v56 = vadd.f32 %v2375_v55, %v2374_v52  ;;  %v2397_v57 = vpop.f32.mrb[3].mxu1  ;;  %v1845_v49 = vpop.permute.xlu0 %1844  ;;  %v1889_v52 = vld [vmem:[%s262_s12 + $0x4] sm:$0xf] }
  0xff   : > { %v719_v58 = vadd.f32 %v2395_v53, %v2373_v50  ;;  %v2398_v59 = vadd.f32 %v2397_v57, %v2396_v54 }
 0x101   : > { %v722_v60 = vadd.f32 %v2398_v59, %v2376_v56 }
 0x11a   : > { %v2415_v61 = vpop.f32.mrb[4].mxu0 }
 0x11b   : > { %v2437_v62 = vpop.f32.mrb[4].mxu1  ;;  %v2416_v63 = vpop.f32.mrb[5].mxu0 }
 0x11c   : > { %v2417_v0 = vadd.f32 %v2416_v63, %v2415_v61  ;;  %v2438_v1 = vpop.f32.mrb[5].mxu1  ;;  %v2418_v2 = vpop.f32.mrb[6].mxu0 }
 0x11d   : > { %v2439_v3 = vadd.f32 %v2438_v1, %v2437_v62  ;;  %v2440_v4 = vpop.f32.mrb[6].mxu1  ;;  %v2419_v5 = vpop.f32.mrb[7].mxu0 }
 0x11e   : > { %v956_v6 = vadd.f32 %v2417_v0, %v719_v58  ;;  %v2420_v7 = vadd.f32 %v2419_v5, %v2418_v2  ;;  %v2441_v8 = vpop.f32.mrb[7].mxu1 }
 0x11f   : > { %v2442_v9 = vadd.f32 %v2441_v8, %v2440_v4 }
 0x120   : > { %v997_v10 = vadd.f32 %v2439_v3, %v956_v6  ;;  %v959_v11 = vadd.f32 %v2420_v7, %v722_v60 }
 0x122   : > { %v1000_v12 = vadd.f32 %v2442_v9, %v959_v11 }
 0x13a   : > { %v2459_v13 = vpop.f32.mrb[8].mxu0 }
 0x13b   : > { %v2460_v14 = vpop.f32.mrb[9].mxu0  ;;  %v2481_v17 = vpop.f32.mrb[8].mxu1 }
 0x13c   : > { %v2461_v15 = vadd.f32 %v2460_v14, %v2459_v13  ;;  %v2462_v16 = vpop.f32.mrb[10].mxu0  ;;  %v2482_v19 = vpop.f32.mrb[9].mxu1 }
 0x13d   : > { %v2463_v18 = vpop.f32.mrb[11].mxu0  ;;  %v2483_v21 = vadd.f32 %v2482_v19, %v2481_v17  ;;  %v2484_v22 = vpop.f32.mrb[10].mxu1 }
 0x13e   : > { %v2464_v20 = vadd.f32 %v2463_v18, %v2462_v16  ;;  %v2485_v23 = vpop.f32.mrb[11].mxu1 }
 0x13f   : > { %v1441_v24 = vadd.f32 %v2483_v21, %v2461_v15  ;;  %v2486_v25 = vadd.f32 %v2485_v23, %v2484_v22 }
 0x141   : > { %v1447_v26 = vadd.f32 %v1441_v24, %v997_v10  ;;  %v1444_v27 = vadd.f32 %v2486_v25, %v2464_v20 }
 0x143   : > { %v1448_v28 = vadd.f32 %v1444_v27, %v1000_v12 }
 0x15a   : > { %v2503_v29 = vpop.f32.mrb[12].mxu0 }
 0x15b   : > { %v2504_v30 = vpop.f32.mrb[13].mxu0  ;;  %v2525_v32 = vpop.f32.mrb[12].mxu1 }
 0x15c   : > { %v2505_v34 = vadd.f32 %v2504_v30, %v2503_v29  ;;  %v2506_v31 = vpop.f32.mrb[14].mxu0  ;;  %v2526_v35 = vpop.f32.mrb[13].mxu1 }
 0x15d   : > { %v2507_v33 = vpop.f32.mrb[15].mxu0  ;;  %v2527_v37 = vadd.f32 %v2526_v35, %v2525_v32  ;;  %v2528_v39 = vpop.f32.mrb[14].mxu1 }
 0x15e   : > { %v2508_v36 = vadd.f32 %v2507_v33, %v2506_v31  ;;  %v2529_v38 = vpop.f32.mrb[15].mxu1 }
 0x15f   : > { %v1823_v40 = vadd.f32 %v2527_v37, %v2505_v34  ;;  %v2530_v41 = vadd.f32 %v2529_v38, %v2528_v39 }
 0x161   : > { %v1829_v44 = vadd.f32 %v1823_v40, %v1447_v26  ;;  %v1826_v45 = vadd.f32 %v2530_v41, %v2508_v36 }
 0x163   : > { %v1830_v46 = vadd.f32 %v1826_v45, %v1448_v28  ;;  %v1838_v47 = vadd.f32 %v2346_v43, %v1829_v44 }
 0x165   : > { %v1839_v48 = vadd.f32 %v2346_v43, %v1830_v46  ;;  %v2353_v50 = vpack.c.bf16 %v1838_v47, %v1838_v47  ;;  %v1864_v51 = vmul.f32 %v1838_v47, %v1838_v47  ;;  %v1852_v56 = vmul.f32 %v1845_v49, %v1838_v47 }
 0x167   : > { %v1853_v53 = vmul.f32 %v1850_v42, %v1839_v48  ;;  %v1865_v54 = vmul.f32 %v1839_v48, %v1839_v48  ;;  %v2354_v55 = vpack.c.bf16 %v1839_v48, %v1839_v48  ;;  %1885 = vst [vmem:[%s262_s12] sm:$0xf] %v2353_v50  ;;  %v1866_v61 = vmul.f32 %v1864_v51, %v1845_v49 }
 0x169   : > { %v1867_v57 = vmul.f32 %v1865_v54, %v1850_v42  ;;  %v1855_v58 = vsel %vm1854_vm4, %v1853_v53, 0.0  ;;  %v1890_v59 = vsel %vm1888_vm5, %v2354_v55, %v1889_v52 }
 0x16a   : > { %v1856_v60 = vadd.f32 %v1855_v58, %v1852_v56  ;;  %1891 = vst [vmem:[%s262_s12 + $0x4] sm:$0xf] %v1890_v59 }
 0x16b   : > { %v1868_v62 = vsel %vm1854_vm4, %v1867_v57, 0.0 }
 0x16c   : > { %v1857_v63 = vrot.slane %v1856_v60, 4  ;;  %v1869_v0 = vadd.f32 %v1868_v62, %v1866_v61 }
 0x16e   : > { %v1858_v1 = vadd.f32 %v1857_v63, %v1856_v60  ;;  %v1870_v2 = vrot.slane %v1869_v0, 4 }
 0x170   : > { %v1859_v3 = vrot.slane %v1858_v1, 2  ;;  %v1871_v4 = vadd.f32 %v1870_v2, %v1869_v0 }
 0x172   : > { %v1860_v5 = vadd.f32 %v1859_v3, %v1858_v1  ;;  %v1872_v6 = vrot.slane %v1871_v4, 2 }
 0x174   : > { %v1861_v7 = vrot.slane %v1860_v5, 1  ;;  %v1873_v8 = vadd.f32 %v1872_v6, %v1871_v4 }
 0x176   : > { %v1862_v9 = vadd.f32 %v1861_v7, %v1860_v5  ;;  %v1874_v10 = vrot.slane %v1873_v8, 1 }
 0x178   : > { %1863 = vst [vmem:[%s265_s15] sm:$0x1] %v1862_v9  ;;  %v1875_v11 = vadd.f32 %v1874_v10, %v1873_v8 }
 0x17a   : > { %1876 = vst [vmem:[%s268_s19] sm:$0x1] %v1875_v11 }
 0x17b PF: > { %s17_s21 = sadd.s32 1, %s2695_s21  }
 0x17c   : > { %p14_p4 = scmp.ge.s32.totalorder %s17_s21, 4  }
 0x17e   :  { %16 = sbr.rel (!%p14_p4) target bundleno = 1 (0x1), region = 93 }

// kernel: forward.8
= control target key start
LH: loop header
LB: loop body
LE: loop exit
PB: predicated region body
PF: predicated region fallthrough
CT: control target
= control target key end

     0   :  { %s3834_s21 = smov 0   ;;  %s4462_s0 = inlined_call_operand.vmem [shape: bf16[2,52,128], index: 0, kind: input, shape index: {}]   ;;  %s4463_s1 = inlined_call_operand.vmem [shape: bf16[4,4,128,128], index: 1, kind: input, shape index: {}]   ;;  %s4464_s2 = inlined_call_operand.vmem [shape: f32[1,128], index: 2, kind: input, shape index: {}]   ;;  %s4465_s3 = inlined_call_operand.vmem [shape: f32[28,1], index: 3, kind: input, shape index: {}]   ;;  %s4466_s4 = inlined_call_operand.vmem [shape: bf16[2,28,128], index: 4, kind: output, shape index: {0}]   ;;  %s4467_s5 = inlined_call_operand.vmem [shape: f32[2,1,128], index: 5, kind: output, shape index: {1}]   ;;  %s4468_s6 = inlined_call_operand.vmem [shape: f32[2,1,128], index: 6, kind: output, shape index: {2}]  }
   0x1 LB: > { %s2665_s22 = sadd.s32 4294967295, %s3796_s21   ;;  %p2669_p0 = scmp.ge.s32.totalorder %s3796_s21, 1  ;;  %s3796_s21 = sphi %s3834_s21, %s17_s21  }
   0x2   : > { %p217_p1 = scmp.lt.s32.totalorder %s3796_s21, 3 }
   0x4   : > { %p218_p2 = pnand %p2669_p0, %p217_p1 }
   0x5   : > { %v3636_v0 = vld [vmem:[%s4463_s1 + $0x40] sm:$0xff] (!%p218_p2)   ;;  %p253_p3 = scmp.lt.s32.totalorder (!%p218_p2), %s2665_s22, 1  ;;  %v3638_v2 = vld [vmem:[%s4463_s1 + $0x48] sm:$0xff] (!%p218_p2)   ;;  %v3640_v4 = vld [vmem:[%s4463_s1 + $0x50] sm:$0xff] (!%p218_p2)   ;;  %vm318_vm0 = vsmask.f32 (!%p218_p2), 7424 }
   0x6   : > { %221 = sbr.rel (%p218_p2) target bundleno = 505 (0x1f9), region = 36  ;;  %v3637_v1 = vld [vmem:[%s4463_s1 + $0x200] sm:$0xff] (!%p218_p2)   ;;  %3244 = vmatprep.subr.bf16.mxu1 (!%p218_p2), %v3636_v0  ;;  %v3639_v3 = vld [vmem:[%s4463_s1 + $0x208] sm:$0xff] (!%p218_p2)   ;;  %v3641_v5 = vld [vmem:[%s4463_s1 + $0x210] sm:$0xff] (!%p218_p2)   ;;  %vm1393_vm1 = vcmask (!%p218_p2), 1044480   ;;  %vm556_vm3 = vcmask (!%p218_p2), 1046528  }
   0x7   : > { %3404 = vmatprep.subr.bf16.mxu0 (!%p218_p2), %v3637_v1  ;;  %3245 = vmatpush3.bf16.msra.mxu1 (!%p218_p2), %v3636_v0  ;;  %v3642_v6 = vld [vmem:[%s4463_s1 + $0x58] sm:$0xff] (!%p218_p2)   ;;  %v3644_v8 = vld [vmem:[%s4463_s1 + $0x60] sm:$0xff] (!%p218_p2)   ;;  %v3646_v10 = vld [vmem:[%s4463_s1 + $0x68] sm:$0xff] (!%p218_p2)   ;;  %vm840_vm2 = vsmask.f32 (!%p218_p2), 4352  ;;  %vm2511_vm6 = vcmask (!%p218_p2), 1043456  }
   0x8   : > { %3405 = vmatpush3.bf16.msra.mxu0 (!%p218_p2), %v3637_v1  ;;  %3246 = vmatprep.subr.bf16.mxu1 (!%p218_p2), %v3638_v2  ;;  %v3643_v7 = vld [vmem:[%s4463_s1 + $0x218] sm:$0xff] (!%p218_p2)   ;;  %v3645_v9 = vld [vmem:[%s4463_s1 + $0x220] sm:$0xff] (!%p218_p2)   ;;  %v3647_v14 = vld [vmem:[%s4463_s1 + $0x228] sm:$0xff] (!%p218_p2)   ;;  %vm684_vm4 = vsmask.f32 (!%p218_p2), 6400 }
   0x9   : > { %3406 = vmatprep.subr.bf16.mxu0 (!%p218_p2), %v3639_v3  ;;  %v3648_v23 = vld [vmem:[%s4463_s1 + $0x70] sm:$0xff] (!%p218_p2)   ;;  %v3650_v33 = vld [vmem:[%s4463_s1 + $0x78] sm:$0xff] (!%p218_p2)   ;;  %v3654_v42 = vld [vmem:[%s4463_s1] sm:$0xff] (!%p218_p2)   ;;  %vm1948_vm5 = vsmask.f32 (!%p218_p2), 5376 }
   0xa   : > { %v3649_v27 = vld [vmem:[%s4463_s1 + $0x230] sm:$0xff] (!%p218_p2)   ;;  %v3651_v36 = vld [vmem:[%s4463_s1 + $0x238] sm:$0xff] (!%p218_p2)   ;;  %v3657_v44 = vld [vmem:[%s4463_s1 + $0x240] sm:$0xff] (!%p218_p2)  }
   0xb   : > { %3247 = vmatpush3.bf16.msra.mxu1 (!%p218_p2), %v3638_v2  ;;  %v3659_v51 = vld [vmem:[%s4463_s1 + $0x8] sm:$0xff] (!%p218_p2)   ;;  %v3661_v57 = vld [vmem:[%s4463_s1 + $0x10] sm:$0xff] (!%p218_p2)   ;;  %v3663_v60 = vld [vmem:[%s4463_s1 + $0x18] sm:$0xff] (!%p218_p2)  }
   0xc   : > { %3407 = vmatpush3.bf16.msra.mxu0 (!%p218_p2), %v3639_v3  ;;  %3248 = vmatprep.subr.bf16.mxu1 (!%p218_p2), %v3640_v4  ;;  %v3660_v53 = vld [vmem:[%s4463_s1 + $0x248] sm:$0xff] (!%p218_p2)   ;;  %v3662_v58 = vld [vmem:[%s4463_s1 + $0x250] sm:$0xff] (!%p218_p2)   ;;  %v3664_v61 = vld [vmem:[%s4463_s1 + $0x258] sm:$0xff] (!%p218_p2)  }
   0xd   : > { %s4470_s22 = smov (!%p253_p3, %s2665_s22), 1  ;;  %3408 = vmatprep.subr.bf16.mxu0 %v3641_v5  ;;  %v3665_v62 = vld [vmem:[%s4463_s1 + $0x20] sm:$0xff]   ;;  %v3667_v1 = vld [vmem:[%s4463_s1 + $0x28] sm:$0xff]  }
   0xe   : > { %s3624_s15 = smul.u32 28, %s4470_s22  ;;  %v3666_v63 = vld [vmem:[%s4463_s1 + $0x260] sm:$0xff]   ;;  %v3668_v3 = vld [vmem:[%s4463_s1 + $0x268] sm:$0xff]   ;;  %s3074_s14 = sshll.u32 %s4470_s22, 4 }
   0xf   : > { %3249 = vmatpush3.bf16.msra.mxu1 %v3640_v4  ;;  %v3669_v4 = vld [vmem:[%s4463_s1 + $0x30] sm:$0xff]   ;;  %s262_s16 = scalar_lea.vmem %s4466_s4, %s3074_s14  ;;  %s265_s19 = scalar_lea.vmem %s4467_s5, %s4470_s22 }
  0x10   : > { %3409 = vmatpush3.bf16.msra.mxu0 %v3641_v5  ;;  %3250 = vmatprep.subr.bf16.mxu1 %v3642_v6  ;;  %s3878_s24 = scalar_lea.vmem %s4462_s0, %s3624_s15  ;;  %s268_s25 = scalar_lea.vmem %s4468_s6, %s4470_s22 }
  0x11   : > { %3410 = vmatprep.subr.bf16.mxu0 %v3643_v7  ;;  %v270_v11 = vld [vmem:[%s3878_s24] sm:$0xf]  ;;  %v3885_v12 = vld [vmem:[%s3878_s24 + $0x4] sm:$0xf]  ;;  %v3888_v13 = vld [vmem:[%s3878_s24 + $0x8] sm:$0xf] }
  0x12   : > { %v290_v15 = vld [vmem:[%s3878_s24 + $0xc] sm:$0x7]  ;;  %v3895_v16 = vcombine.low %v270_v11, %v3885_v12  ;;  %v1358_v18 = vld [vmem:[%s3878_s24 + $0x4] sm:$0x8]  ;;  %v3904_v21 = vld [vmem:[%s3878_s24 + $0x8] sm:$0xf] }
  0x13   : > { %3251 = vmatpush3.bf16.msra.mxu1 %v3642_v6  ;;  %v3898_v17 = vcombine.low %v3888_v13, %v290_v15  ;;  %v3907_v22 = vld [vmem:[%s3878_s24 + $0xc] sm:$0xf]  ;;  %v3914_v25 = vld [vmem:[%s3878_s24 + $0x10] sm:$0xf]  ;;  %v2877_v26 = vcombine.low %v1358_v18, %v3904_v21  ;;  %v3969_v0 = vld [vmem:[%s3878_s24 + $0x14] sm:$0x3] }
  0x14   : > { %3411 = vmatpush3.bf16.msra.mxu0 %v3643_v7  ;;  %3252 = vmatprep.subr.bf16.mxu1 %v3644_v8  ;;  %v320_v19 = vshrl.u32 %v3895_v16, 16  ;;  %v322_v20 = vshll.u32 %v3895_v16, 16  ;;  %v2878_v29 = vcombine.low %v3907_v22, %v3914_v25  ;;  %v3658_v32 = vld [vmem:[%s3878_s24 + $0x14] ss:$0 sps:$4 sm:$0x11]   ;;  %v2904_v2 = vcombine.low %v3969_v0, %v3969_v0  ;;  %v3673_v18 = vld [vmem:[%s4463_s1 + $0x80] sm:$0xff]  }
  0x15   : > { %3412 = vmatprep.subr.bf16.mxu0 %v3645_v9  ;;  %v327_v24 = vshll.u32 %v3898_v17, 16  ;;  %v1394_v31 = vrot.slane %v2877_v26, 3  ;;  %v331_v39 = vshrl.u32 %v3898_v17, 16  ;;  %v1524_v40 = vshrl.u32 %v2877_v26, 16  ;;  %v3670_v7 = vld [vmem:[%s4463_s1 + $0x270] sm:$0xff]  }
  0x16   : > { %v324_v28 = vrot.slane %v322_v20, 1  ;;  %v1395_v35 = vrot.slane %v2878_v29, 3  ;;  %v1527_v41 = vshll.u32 %v2877_v26, 16  ;;  %v1397_v43 = vrot.slane %v3658_v32, 3  ;;  %v3674_v20 = vld [vmem:[%s4463_s1 + $0x280] sm:$0xff]   ;;  %v3680_v32 = vld [vmem:[%s4463_s1 + $0x290] sm:$0xff]  }
  0x17   : > { %3253 = vmatpush3.bf16.msra.mxu1 %v3644_v8  ;;  %v329_v30 = vrot.slane %v327_v24, 1  ;;  %v1526_v45 = vrot.slane %v1524_v40, 3  ;;  %v1532_v48 = vshrl.u32 %v2878_v29, 16  ;;  %v1535_v49 = vshll.u32 %v2878_v29, 16  ;;  %v3671_v8 = vld [vmem:[%s4463_s1 + $0x38] sm:$0xff]   ;;  %v3688_v40 = vld [vmem:[%s4463_s1 + $0x2b0] sm:$0xff]  }
  0x18   : > { %3413 = vmatpush3.bf16.msra.mxu0 %v3645_v9  ;;  %3254 = vmatprep.subr.bf16.mxu1 %v3646_v10  ;;  %v325_v34 = vor.u32 %v324_v28, %v320_v19  ;;  %v1396_v38 = vsel %vm1393_vm1, %v1394_v31, %v1395_v35  ;;  %v1529_v47 = vrot.slane %v1527_v41, 4  ;;  %v1398_v50 = vsel %vm1393_vm1, %v1395_v35, %v1397_v43  ;;  %v535_v9 = vld [vmem:[%s3878_s24] sm:$0xe]  ;;  %v3678_v28 = vld [vmem:[%s4463_s1 + $0x288] sm:$0xff]   ;;  %v3679_v31 = vld [vmem:[%s4463_s1 + $0x90] sm:$0xff]  }
  0x19   : > { %3414 = vmatprep.subr.bf16.mxu0 %v3647_v14  ;;  %3420 = vmatprep.mubr.bf16.mxu0 %v1396_v38  ;;  %v333_v46 = vor.u32 %v331_v39, %v329_v30  ;;  %v1534_v52 = vrot.slane %v1532_v48, 3  ;;  %v1537_v54 = vrot.slane %v1535_v49, 4  ;;  %v1541_v5 = vshrl.u32 %v2904_v2, 16  ;;  %v663_v35 = vld [vmem:[%s3878_s24 + $0xc] sm:$0xf]  ;;  %v3687_v38 = vld [vmem:[%s4463_s1 + $0xb0] sm:$0xff]  }
  0x1a   : > { %v330_v37 = vsel %vm318_vm0, %v325_v34, %v329_v30  ;;  %v1530_v55 = vor.u32 %v1529_v47, %v1526_v45  ;;  %v1544_v6 = vshll.u32 %v2904_v2, 16  ;;  %v3993_v15 = vcombine.low %v535_v9, %v3885_v12  ;;  %v3684_v34 = vld [vmem:[%s4463_s1 + $0x2a0] sm:$0xff]   ;;  %v1774_v41 = vld [vmem:[%s3878_s24 + $0x14] sm:$0x7]  ;;  %v3689_v47 = vld [vmem:[%s4463_s1 + $0xb8] sm:$0xff]  }
  0x1b   : > { %3255 = vmatpush3.bf16.msra.mxu1 %v3646_v10  ;;  %3260 = vmatprep.mubr.bf16.mxu1 %v330_v37  ;;  %v3945_v56 = vor.u32 %v1537_v54, %v1534_v52  ;;  %v1543_v10 = vrot.slane %v1541_v5, 3  ;;  %v558_v12 = vrot.slane %v3898_v17, 1  ;;  %v4018_v30 = vcombine.low %v3904_v21, %v3907_v22  ;;  %v3681_v21 = vld [vmem:[%s4463_s1 + $0x98] sm:$0xff]   ;;  %v3686_v37 = vld [vmem:[%s4463_s1 + $0x2a8] sm:$0xff]   ;;  %v4087_v2 = vld [vmem:[%s3878_s24 + $0x10] sm:$0xf] }
  0x1c   : > { %3415 = vmatpush3.bf16.msra.mxu0 %v3647_v14  ;;  %3256 = vmatprep.subr.bf16.mxu1 %v3648_v23  ;;  %v1546_v11 = vrot.slane %v1544_v6, 4  ;;  %v3672_v14 = vld [vmem:[%s4463_s1 + $0x278] sm:$0xff]   ;;  %v557_v24 = vrot.slane %v3993_v15, 1  ;;  %v2749_v39 = vcombine.low %v3888_v13, %v663_v35  ;;  %v689_v43 = vshll.u32 %v3993_v15, 16  ;;  %v3699_v17 = vld [vmem:[%s4463_s1 + $0x2d0] sm:$0xff]  }
  0x1d   : > { %3416 = vmatprep.subr.bf16.mxu0 %v3649_v27  ;;  %v1539_v59 = vsel %vm840_vm2, %v1530_v55, %v3945_v56  ;;  %v3682_v22 = vld [vmem:[%s4463_s1 + $0x298] sm:$0xff]  }
  0x1e   : > { %v1547_v19 = vor.u32 %v1546_v11, %v1543_v10  ;;  %v559_v29 = vsel %vm556_vm3, %v557_v24, %v558_v12  ;;  %v697_v45 = vshll.u32 %v2749_v39, 16  ;;  %v3690_v48 = vld [vmem:[%s4463_s1 + $0x2b8] sm:$0xff]   ;;  %v3702_v10 = vld [vmem:[%s4463_s1 + $0xe0] sm:$0xff]   ;;  %v1913_v24 = vld [vmem:[%s3878_s24 + $0x8] sm:$0xc] }
  0x1f   : > { %3257 = vmatpush3.bf16.msra.mxu1 %v3648_v23  ;;  %v3700_v6 = vld [vmem:[%s4463_s1 + $0xd8] sm:$0xff]  }
  0x20   : > { %3417 = vmatpush3.bf16.msra.mxu0 %v3649_v27  ;;  %3258 = vmatprep.subr.bf16.mxu1 %v3650_v33  ;;  %v1548_v26 = vsel %vm840_vm2, %v3945_v56, %v1547_v19  ;;  %v3677_v27 = vld [vmem:[%s4463_s1 + $0x88] sm:$0xff]   ;;  %v699_v52 = vrot.slane %v697_v45, 2  ;;  %v3692_v56 = vld [vmem:[%s4463_s1 + $0xc0] sm:$0xff]   ;;  %v3708_v35 = vld [vmem:[%s4463_s1 + $0xf8] sm:$0xff]  }
  0x21   : > { %3418 = vmatprep.subr.bf16.mxu0 %v3651_v36  ;;  %v4126_v19 = vld [vmem:[%s3878_s24 + $0x8] sm:$0xf] }
  0x23   : > { %3259 = vmatpush3.bf16.msra.mxu1 %v3650_v33  ;;  %v3683_v33 = vld [vmem:[%s4463_s1 + $0xa0] sm:$0xff]  }
  0x24   : > { %3419 = vmatpush3.bf16.msra.mxu0 %v3651_v36  ;;  %3264 = vmatprep.subr.bf16.mxu1 %v3654_v42  ;;  %v3685_v36 = vld [vmem:[%s4463_s1 + $0xa8] sm:$0xff]  }
  0x25   : > { %3424 = vmatprep.subr.bf16.mxu0 %v3657_v44 }
  0x26   : > { %3261 = vmatmul.mubr.bf16.vlgmr.msra.gmra.mrb[0].mxu1 %v333_v46  ;;  %v1798_v46 = vshll.u32 %v4018_v30, 16 }
  0x27   : > { %3265 = vmatpush3.bf16.msra.mxu1 %v3654_v42  ;;  %3421 = vmatmul.mubr.bf16.vlgmr.msra.gmra.mrb[0].mxu0 %v1398_v50  ;;  %v686_v42 = vshrl.u32 %v3993_v15, 16  ;;  %v691_v50 = vrot.slane %v689_v43, 2  ;;  %v805_v15 = vld [vmem:[%s3878_s24] sm:$0x8] }
  0x28   : > { %3425 = vmatpush3.bf16.msra.mxu0 %v3657_v44  ;;  %3266 = vmatprep.subr.bf16.mxu1 %v3659_v51  ;;  %v694_v44 = vshrl.u32 %v2749_v39, 16  ;;  %v1800_v54 = vrot.slane %v1798_v46, 1 }
  0x29   : > { %3426 = vmatprep.subr.bf16.mxu0 %v3660_v53  ;;  %3280 = vmatprep.mubr.bf16.mxu1 %v3895_v16  ;;  %v273_v16 = vld [vmem:[%s3878_s24 + $0xc] sm:$0x3]  ;;  %v688_v49 = vrot.slane %v686_v42, 1 }
  0x2a   : > { %3440 = vmatprep.mubr.bf16.mxu0 %v1539_v59  ;;  %v2699_v23 = vcombine.low %v3888_v13, %v273_v16  ;;  %v4058_v13 = vcombine.low %v3914_v25, %v1774_v41 }
  0x2b   : > { %3267 = vmatpush3.bf16.msra.mxu1 %v3659_v51  ;;  %v696_v51 = vrot.slane %v694_v44, 1 }
  0x2c   : > { %3427 = vmatpush3.bf16.msra.mxu0 %v3660_v53  ;;  %3268 = vmatprep.subr.bf16.mxu1 %v3661_v57  ;;  %v1796_v53 = vshrl.u32 %v4018_v30, 16  ;;  %v1803_v55 = vshll.u32 %v4058_v13, 16  ;;  %v1807_v39 = vshrl.u32 %v4058_v13, 16  ;;  %v3713_v13 = vld [vmem:[%s4463_s1 + $0x300] sm:$0xff]  }
  0x2d   : > { %3428 = vmatprep.subr.bf16.mxu0 %v3662_v58  ;;  %v4074_v59 = vor.u32 %v699_v52, %v696_v51  ;;  %v3714_v52 = vld [vmem:[%s4463_s1 + $0x108] sm:$0xff]  }
  0x2f   : > { %3269 = vmatpush3.bf16.msra.mxu1 %v3661_v57  ;;  %v3694_v57 = vld [vmem:[%s4463_s1 + $0x2c0] sm:$0xff]  }
  0x30   : > { %3429 = vmatpush3.bf16.msra.mxu0 %v3662_v58  ;;  %3270 = vmatprep.subr.bf16.mxu1 %v3663_v60  ;;  %v692_v58 = vor.u32 %v691_v50, %v688_v49 }
  0x31   : > { %3430 = vmatprep.subr.bf16.mxu0 %v3664_v61 }
  0x33   : > { %3271 = vmatpush3.bf16.msra.mxu1 %v3663_v60  ;;  %v2930_v60 = vcombine.low %v3914_v25, %v3969_v0  ;;  %v701_v25 = vsel %vm684_vm4, %v692_v58, %v4074_v59 }
  0x34   : > { %3431 = vmatpush3.bf16.msra.mxu0 %v3664_v61  ;;  %3272 = vmatprep.subr.bf16.mxu1 %v3665_v62  ;;  %v3696_v61 = vld [vmem:[%s4463_s1 + $0xc8] sm:$0xff]  }
  0x35   : > { %3432 = vmatprep.subr.bf16.mxu0 %v3666_v63 }
  0x37   : > { %3273 = vmatpush3.bf16.msra.mxu1 %v3665_v62  ;;  %v3697_v62 = vld [vmem:[%s4463_s1 + $0x2c8] sm:$0xff]  }
  0x38   : > { %3433 = vmatpush3.bf16.msra.mxu0 %v3666_v63  ;;  %3274 = vmatprep.subr.bf16.mxu1 %v3667_v1  ;;  %v1801_v63 = vor.u32 %v1800_v54, %v1796_v53 }
  0x39   : > { %3434 = vmatprep.subr.bf16.mxu0 %v3668_v3 }
  0x3b   : > { %3275 = vmatpush3.bf16.msra.mxu1 %v3667_v1  ;;  %v4084_v1 = vrot.slane %v1803_v55, 1 }
  0x3c   : > { %3435 = vmatpush3.bf16.msra.mxu0 %v3668_v3  ;;  %3276 = vmatprep.subr.bf16.mxu1 %v3669_v4  ;;  %v4090_v3 = vld [vmem:[%s3878_s24 + $0x14] sm:$0xf] }
  0x3d   : > { %3436 = vmatprep.subr.bf16.mxu0 %v3670_v7  ;;  %v1806_v0 = vsel %vm318_vm0, %v1801_v63, %v4084_v1  ;;  %v4102_v5 = vcombine.low %v4087_v2, %v4090_v3  ;;  %v1809_v51 = vor.u32 %v1807_v39, %v4084_v1  ;;  %v3798_v63 = vmov 0   ;;  %v3720_v1 = vld [vmem:[%s4463_s1 + $0x120] sm:$0xff]  }
  0x3e   : > { %3634 = vset.pattern.permute.xlu0 %v3798_v63  ;;  %3635 = vset.pattern.permute.xlu1 %v3798_v63  ;;  %v3730_v39 = vld [vmem:[%s4463_s1 + $0x140] sm:$0xff]  }
  0x3f   : > { %3277 = vmatpush3.bf16.msra.mxu1 %v3669_v4  ;;  %v3698_v4 = vld [vmem:[%s4463_s1 + $0xd0] sm:$0xff]   ;;  %v1961_v9 = vshll.u32 %v4102_v5, 16 }
  0x40   : > { %3437 = vmatpush3.bf16.msra.mxu0 %v3670_v7  ;;  %3278 = vmatprep.subr.bf16.mxu1 %v3671_v8  ;;  %v1958_v7 = vshrl.u32 %v4102_v5, 16 }
  0x41   : > { %3438 = vmatprep.subr.bf16.mxu0 %v3672_v14  ;;  %v2233_v16 = vrot.slane %v1961_v9, 4 }
  0x42   : > { %v2232_v11 = vrot.slane %v1958_v7, 3  ;;  %v1960_v46 = vrot.slane %v1958_v7, 2  ;;  %v1231_v7 = vld [vmem:[%s3878_s24 + $0x4] sm:$0xe] }
  0x43   : > { %3279 = vmatpush3.bf16.msra.mxu1 %v3671_v8  ;;  %v3701_v8 = vld [vmem:[%s4463_s1 + $0x2d8] sm:$0xff]  }
  0x44   : > { %3439 = vmatpush3.bf16.msra.mxu0 %v3672_v14  ;;  %3284 = vmatprep.subr.bf16.mxu1 %v3673_v18  ;;  %v3703_v14 = vld [vmem:[%s4463_s1 + $0x2e0] sm:$0xff]  }
  0x45   : > { %3444 = vmatprep.subr.bf16.mxu0 %v3674_v20 }
  0x46   : > { %3281 = vmatmul.mubr.bf16.vlgmr.msra.gmra.mrb[0].mxu1 %v2699_v23  ;;  %v4131_v23 = vld [vmem:[%s3878_s24 + $0xc] sm:$0xf] }
  0x47   : > { %3285 = vmatpush3.bf16.msra.mxu1 %v3673_v18  ;;  %3441 = vmatmul.mubr.bf16.vlgmr.msra.gmra.mrb[0].mxu0 %v1548_v26  ;;  %v4123_v18 = vld [vmem:[%s3878_s24 + $0x4] sm:$0xf]  ;;  %v3704_v26 = vld [vmem:[%s4463_s1 + $0xe8] sm:$0xff]  }
  0x48   : > { %3445 = vmatpush3.bf16.msra.mxu0 %v3674_v20  ;;  %3286 = vmatprep.subr.bf16.mxu1 %v3677_v27  ;;  %v4128_v20 = vor.u32 %v2233_v16, %v2232_v11  ;;  %v2481_v11 = vld [vmem:[%s4465_s3] sm:$0xff] }
  0x49   : > { %3446 = vmatprep.subr.bf16.mxu0 %v3678_v28  ;;  %3300 = vmatprep.mubr.bf16.mxu1 %v559_v29  ;;  %v2775_v29 = vcombine.low %v4126_v19, %v4131_v23 }
  0x4a   : > { %3460 = vmatprep.mubr.bf16.mxu0 %v4018_v30  ;;  %v3706_v30 = vld [vmem:[%s4463_s1 + $0xf0] sm:$0xff]   ;;  %2487 = vperm.xlu0 %3634, %v2481_v11  }
  0x4b   : > { %3287 = vmatpush3.bf16.msra.mxu1 %v3677_v27  ;;  %v2774_v27 = vcombine.low %v805_v15, %v4123_v18  ;;  %v3723_v15 = vld [vmem:[%s4463_s1 + $0x328] sm:$0xff]  }
  0x4c   : > { %3447 = vmatpush3.bf16.msra.mxu0 %v3678_v28  ;;  %3288 = vmatprep.subr.bf16.mxu1 %v3679_v31  ;;  %v3705_v28 = vld [vmem:[%s4463_s1 + $0x2e8] sm:$0xff]  }
  0x4d   : > { %3448 = vmatprep.subr.bf16.mxu0 %v3680_v32 }
  0x4f   : > { %3289 = vmatpush3.bf16.msra.mxu1 %v3679_v31 }
  0x50   : > { %3449 = vmatpush3.bf16.msra.mxu0 %v3680_v32  ;;  %3290 = vmatprep.subr.bf16.mxu1 %v3681_v21  ;;  %v3707_v32 = vld [vmem:[%s4463_s1 + $0x2f0] sm:$0xff]  }
  0x51   : > { %3450 = vmatprep.subr.bf16.mxu0 %v3682_v22 }
  0x53   : > { %3291 = vmatpush3.bf16.msra.mxu1 %v3681_v21  ;;  %v842_v21 = vshrl.u32 %v2774_v27, 16 }
  0x54   : > { %3451 = vmatpush3.bf16.msra.mxu0 %v3682_v22  ;;  %3292 = vmatprep.subr.bf16.mxu1 %v3683_v33  ;;  %v845_v22 = vshll.u32 %v2774_v27, 16 }
  0x55   : > { %3452 = vmatprep.subr.bf16.mxu0 %v3684_v34 }
  0x56   : > { %v847_v41 = vrot.slane %v845_v22, 4 }
  0x57   : > { %3293 = vmatpush3.bf16.msra.mxu1 %v3683_v33  ;;  %v850_v33 = vshrl.u32 %v2775_v29, 16 }
  0x58   : > { %3453 = vmatpush3.bf16.msra.mxu0 %v3684_v34  ;;  %3294 = vmatprep.subr.bf16.mxu1 %v3685_v36  ;;  %v853_v34 = vshll.u32 %v2775_v29, 16  ;;  %v3724_v29 = vld [vmem:[%s4463_s1 + $0x130] sm:$0xff]  }
  0x59   : > { %3454 = vmatprep.subr.bf16.mxu0 %v3686_v37  ;;  %v852_v42 = vrot.slane %v850_v33, 3  ;;  %v3726_v33 = vld [vmem:[%s4463_s1 + $0x138] sm:$0xff]  }
  0x5a   : > { %v855_v43 = vrot.slane %v853_v34, 4 }
  0x5b   : > { %3295 = vmatpush3.bf16.msra.mxu1 %v3685_v36 }
  0x5c   : > { %3455 = vmatpush3.bf16.msra.mxu0 %v3686_v37  ;;  %3296 = vmatprep.subr.bf16.mxu1 %v3687_v38  ;;  %v4166_v50 = vor.u32 %v855_v43, %v852_v42 }
  0x5d   : > { %3456 = vmatprep.subr.bf16.mxu0 %v3688_v40 }
  0x5f   : > { %3297 = vmatpush3.bf16.msra.mxu1 %v3687_v38  ;;  %v3709_v38 = vld [vmem:[%s4463_s1 + $0x2f8] sm:$0xff]  }
  0x60   : > { %3457 = vmatpush3.bf16.msra.mxu0 %v3688_v40  ;;  %3298 = vmatprep.subr.bf16.mxu1 %v3689_v47  ;;  %v844_v40 = vrot.slane %v842_v21, 3 }
  0x61   : > { %3458 = vmatprep.subr.bf16.mxu0 %v3690_v48 }
  0x62   : > { %v848_v49 = vor.u32 %v847_v41, %v844_v40  ;;  %v3733_v41 = vld [vmem:[%s4463_s1 + $0x340] sm:$0xff]  }
  0x63   : > { %3299 = vmatpush3.bf16.msra.mxu1 %v3689_v47  ;;  %v1963_v47 = vrot.slane %v1961_v9, 3  ;;  %v2852_v9 = vcombine.low %v1231_v7, %v4126_v19  ;;  %v3751_v7 = vld [vmem:[%s4463_s1 + $0x180] sm:$0xff]  }
  0x64   : > { %3459 = vmatpush3.bf16.msra.mxu0 %v3690_v48  ;;  %3304 = vmatprep.subr.bf16.mxu1 %v3692_v56  ;;  %v3711_v48 = vld [vmem:[%s4463_s1 + $0x100] sm:$0xff]  }
  0x65   : > { %3464 = vmatprep.subr.bf16.mxu0 %v3694_v57  ;;  %v4172_v54 = vor.u32 %v1963_v47, %v1960_v46  ;;  %v1252_v16 = vrot.slane %v2852_v9, 1  ;;  %v3736_v46 = vld [vmem:[%s4463_s1 + $0x148] sm:$0xff]   ;;  %v3753_v9 = vld [vmem:[%s4463_s1 + $0x380] sm:$0xff]  }
  0x66   : > { %3301 = vmatmul.mubr.bf16.vlgmr.msra.gmra.mrb[0].mxu1 %v558_v12  ;;  %v4135_v12 = vld [vmem:[%s3878_s24 + $0xc] sm:$0xf] }
  0x67   : > { %3305 = vmatpush3.bf16.msra.mxu1 %v3692_v56  ;;  %3461 = vmatmul.mubr.bf16.vlgmr.msra.gmra.mrb[0].mxu0 %v2930_v60  ;;  %v2980_v31 = vcombine.low %v1913_v24, %v4135_v12  ;;  %v3057_v55 = vcombine.low %v4135_v12, %v4087_v2  ;;  %v3715_v56 = vld [vmem:[%s4463_s1 + $0x308] sm:$0xff]   ;;  %v3716_v60 = vld [vmem:[%s4463_s1 + $0x110] sm:$0xff]   ;;  %v3779_v2 = vld [vmem:[%s4463_s1 + $0x1e0] sm:$0xff]  }
  0x68   : > { %3465 = vmatpush3.bf16.msra.mxu0 %v3694_v57  ;;  %3306 = vmatprep.subr.bf16.mxu1 %v3696_v61  ;;  %v857_v57 = vsel %vm840_vm2, %v848_v49, %v4166_v50  ;;  %v2482_v24 = vld [vmem:[%s4465_s3 + $0x8] sm:$0xff]  ;;  %v3738_v49 = vld [vmem:[%s4463_s1 + $0x150] sm:$0xff]  }
  0x69   : > { %3466 = vmatprep.subr.bf16.mxu0 %v3697_v62  ;;  %3320 = vmatprep.mubr.bf16.mxu1 %v701_v25  ;;  %v1950_v36 = vshrl.u32 %v2980_v31, 16  ;;  %v1953_v37 = vshll.u32 %v2980_v31, 16  ;;  %v1092_v25 = vld [vmem:[%s3878_s24 + $0x10] sm:$0x7]  ;;  %v3737_v47 = vld [vmem:[%s4463_s1 + $0x348] sm:$0xff]  }
  0x6a   : > { %3480 = vmatprep.mubr.bf16.mxu0 %v1806_v0  ;;  %v4201_v0 = vld [vmem:[%s3878_s24 + $0x10] sm:$0x3]  ;;  %2492 = vperm.xlu0 %3634, %v2482_v24  }
  0x6b   : > { %3307 = vmatpush3.bf16.msra.mxu1 %v3696_v61  ;;  %v1952_v44 = vrot.slane %v1950_v36, 2  ;;  %v1955_v45 = vrot.slane %v1953_v37, 3  ;;  %v3717_v61 = vld [vmem:[%s4463_s1 + $0x310] sm:$0xff]   ;;  %v3727_v36 = vld [vmem:[%s4463_s1 + $0x338] sm:$0xff]   ;;  %v2802_v11 = vcombine.low %v4131_v23, %v4201_v0 }
  0x6c   : > { %3467 = vmatpush3.bf16.msra.mxu0 %v3697_v62  ;;  %3308 = vmatprep.subr.bf16.mxu1 %v3698_v4  ;;  %v3719_v62 = vld [vmem:[%s4463_s1 + $0x318] sm:$0xff]  }
  0x6d   : > { %3468 = vmatprep.subr.bf16.mxu0 %v3699_v17  ;;  %v1956_v53 = vor.u32 %v1955_v45, %v1952_v44  ;;  %v2096_v44 = vrot.slane %v4102_v5, 3 }
  0x6f   : > { %3309 = vmatpush3.bf16.msra.mxu1 %v3698_v4  ;;  %v1965_v58 = vsel %vm1948_vm5, %v1956_v53, %v4172_v54  ;;  %v3721_v4 = vld [vmem:[%s4463_s1 + $0x320] sm:$0xff]   ;;  %v3744_v53 = vld [vmem:[%s4463_s1 + $0x168] sm:$0xff]  }
  0x70   : > { %3469 = vmatpush3.bf16.msra.mxu0 %v3699_v17  ;;  %3310 = vmatprep.subr.bf16.mxu1 %v3700_v6  ;;  %v4207_v17 = vcombine.low %v4131_v23, %v1092_v25  ;;  %v3756_v23 = vld [vmem:[%s4463_s1 + $0x388] sm:$0xff]  }
  0x71   : > { %3470 = vmatprep.subr.bf16.mxu0 %v3701_v8 }
  0x72   : > { %v1121_v25 = vshll.u32 %v4207_v17, 16 }
  0x73   : > { %3311 = vmatpush3.bf16.msra.mxu1 %v3700_v6  ;;  %v2776_v6 = vcombine.low %v4201_v0, %v4201_v0 }
  0x74   : > { %3471 = vmatpush3.bf16.msra.mxu0 %v3701_v8  ;;  %3312 = vmatprep.subr.bf16.mxu1 %v3702_v10  ;;  %v3722_v8 = vld [vmem:[%s4463_s1 + $0x128] sm:$0xff]  }
  0x75   : > { %3472 = vmatprep.subr.bf16.mxu0 %v3703_v14  ;;  %v862_v27 = vshll.u32 %v2776_v6, 16 }
  0x77   : > { %3313 = vmatpush3.bf16.msra.mxu1 %v3702_v10  ;;  %v1253_v10 = vrot.slane %v4207_v17, 1  ;;  %v864_v22 = vrot.slane %v862_v27, 4  ;;  %v3757_v27 = vld [vmem:[%s4463_s1 + $0x190] sm:$0xff]  }
  0x78   : > { %3473 = vmatpush3.bf16.msra.mxu0 %v3703_v14  ;;  %3314 = vmatprep.subr.bf16.mxu1 %v3704_v26  ;;  %v2483_v14 = vld [vmem:[%s4465_s3 + $0x10] sm:$0xff] }
  0x79   : > { %3474 = vmatprep.subr.bf16.mxu0 %v3705_v28  ;;  %2497 = vperm.xlu1 %3635, %v2483_v14   ;;  %v4241_v31 = vsel %vm556_vm3, %v1252_v16, %v1253_v10 }
  0x7b   : > { %3315 = vmatpush3.bf16.msra.mxu1 %v3704_v26  ;;  %v859_v26 = vshrl.u32 %v2776_v6, 16 }
  0x7c   : > { %3475 = vmatpush3.bf16.msra.mxu0 %v3705_v28  ;;  %3316 = vmatprep.subr.bf16.mxu1 %v3706_v30  ;;  %v2484_v28 = vld [vmem:[%s4465_s3 + $0x18] sm:$0xf] }
  0x7d   : > { %3476 = vmatprep.subr.bf16.mxu0 %v3707_v32  ;;  %2502 = vperm.xlu1 %3635, %v2484_v28   ;;  %v861_v21 = vrot.slane %v859_v26, 3  ;;  %v3755_v26 = vld [vmem:[%s4463_s1 + $0x188] sm:$0xff]   ;;  %v3758_v28 = vld [vmem:[%s4463_s1 + $0x390] sm:$0xff]  }
  0x7f   : > { %3317 = vmatpush3.bf16.msra.mxu1 %v3706_v30  ;;  %v4236_v30 = vld [vmem:[%s3878_s24 + $0x18] ss:$0 sps:$4 sm:$0x11]   ;;  %v865_v37 = vor.u32 %v864_v22, %v861_v21  ;;  %v3762_v21 = vld [vmem:[%s4463_s1 + $0x3a0] sm:$0xff]  }
  0x80   : > { %3477 = vmatpush3.bf16.msra.mxu0 %v3707_v32  ;;  %3318 = vmatprep.subr.bf16.mxu1 %v3708_v35  ;;  %v3725_v32 = vld [vmem:[%s4463_s1 + $0x330] sm:$0xff]   ;;  %v1967_v34 = vshll.u32 %v4236_v30, 16  ;;  %v4362_v22 = vld [vmem:[%s3878_s24 + $0x18] sm:$0x3] }
  0x81   : > { %3478 = vmatprep.subr.bf16.mxu0 %v3709_v38  ;;  %v866_v42 = vsel %vm840_vm2, %v4166_v50, %v865_v37  ;;  %v3739_v50 = vld [vmem:[%s4463_s1 + $0x350] sm:$0xff]  }
  0x82   : > { %v1969_v40 = vrot.slane %v1967_v34, 3  ;;  %v3032_v34 = vcombine.low %v4362_v22, %v4362_v22 }
  0x83   : > { %3319 = vmatpush3.bf16.msra.mxu1 %v3708_v35  ;;  %v2074_v35 = vld [vmem:[%s3878_s24 + $0x8] sm:$0x8] }
  0x84   : > { %3479 = vmatpush3.bf16.msra.mxu0 %v3709_v38  ;;  %3324 = vmatprep.subr.bf16.mxu1 %v3711_v48  ;;  %v4255_v38 = vcombine.low %v2074_v35, %v4135_v12  ;;  %v1970_v45 = vsel %vm1948_vm5, %v4172_v54, %v1969_v40  ;;  %v3745_v54 = vld [vmem:[%s4463_s1 + $0x368] sm:$0xff]   ;;  %v2237_v37 = vshrl.u32 %v3032_v34, 16  ;;  %v3767_v40 = vld [vmem:[%s4463_s1 + $0x1b8] sm:$0xff]   ;;  %v3780_v12 = vld [vmem:[%s4463_s1 + $0x3e0] sm:$0xff]  }
  0x85   : > { %3484 = vmatprep.subr.bf16.mxu0 %v3713_v13  ;;  %v3764_v35 = vld [vmem:[%s4463_s1 + $0x3a8] sm:$0xff]  }
  0x86   : > { %3321 = vmatmul.mubr.bf16.vlgmr.msra.gmra.mrb[0].mxu1 %v4074_v59  ;;  %v3718_v59 = vld [vmem:[%s4463_s1 + $0x118] sm:$0xff]   ;;  %v2095_v43 = vrot.slane %v4255_v38, 3 }
  0x87   : > { %3325 = vmatpush3.bf16.msra.mxu1 %v3711_v48  ;;  %3481 = vmatmul.mubr.bf16.vlgmr.msra.gmra.mrb[0].mxu0 %v1809_v51  ;;  %v2801_v48 = vcombine.low %v4123_v18, %v4126_v19  ;;  %v3740_v18 = vld [vmem:[%s4463_s1 + $0x158] sm:$0xff]   ;;  %v3742_v51 = vld [vmem:[%s4463_s1 + $0x160] sm:$0xff]  }
  0x88   : > { %3485 = vmatpush3.bf16.msra.mxu0 %v3713_v13  ;;  %3326 = vmatprep.subr.bf16.mxu1 %v3714_v52  ;;  %v2097_v13 = vsel %vm1393_vm1, %v2095_v43, %v2096_v44  ;;  %v3741_v19 = vld [vmem:[%s4463_s1 + $0x358] sm:$0xff]  }
  0x89   : > { %3486 = vmatprep.subr.bf16.mxu0 %v3715_v56  ;;  %3340 = vmatprep.mubr.bf16.mxu1 %v857_v57  ;;  %v3747_v57 = vld [vmem:[%s4463_s1 + $0x370] sm:$0xff]   ;;  %v1114_v63 = vshrl.u32 %v2801_v48, 16  ;;  %v3768_v43 = vld [vmem:[%s4463_s1 + $0x3b8] sm:$0xff]  }
  0x8a   : > { %3500 = vmatprep.mubr.bf16.mxu0 %v1965_v58  ;;  %v1116_v58 = vshll.u32 %v2801_v48, 16 }
  0x8b   : > { %3327 = vmatpush3.bf16.msra.mxu1 %v3714_v52  ;;  %v3743_v52 = vld [vmem:[%s4463_s1 + $0x360] sm:$0xff]  }
  0x8c   : > { %3487 = vmatpush3.bf16.msra.mxu0 %v3715_v56  ;;  %3328 = vmatprep.subr.bf16.mxu1 %v3716_v60  ;;  %v3746_v56 = vld [vmem:[%s4463_s1 + $0x170] sm:$0xff]  }
  0x8d   : > { %3488 = vmatprep.subr.bf16.mxu0 %v3717_v61 }
  0x8f   : > { %3329 = vmatpush3.bf16.msra.mxu1 %v3716_v60  ;;  %v2225_v60 = vshrl.u32 %v4255_v38, 16 }
  0x90   : > { %3489 = vmatpush3.bf16.msra.mxu0 %v3717_v61  ;;  %3330 = vmatprep.subr.bf16.mxu1 %v3718_v59  ;;  %v2228_v61 = vshll.u32 %v4255_v38, 16  ;;  %v2240_v38 = vshll.u32 %v3032_v34, 16 }
  0x91   : > { %3490 = vmatprep.subr.bf16.mxu0 %v3719_v62 }
  0x92   : > { %v2230_v6 = vrot.slane %v2228_v61, 4 }
  0x93   : > { %3331 = vmatpush3.bf16.msra.mxu1 %v3718_v59  ;;  %v3748_v59 = vld [vmem:[%s4463_s1 + $0x178] sm:$0xff]  }
  0x94   : > { %3491 = vmatpush3.bf16.msra.mxu0 %v3719_v62  ;;  %3332 = vmatprep.subr.bf16.mxu1 %v3720_v1  ;;  %v3749_v62 = vld [vmem:[%s4463_s1 + $0x378] sm:$0xff]  }
  0x95   : > { %3492 = vmatprep.subr.bf16.mxu0 %v3721_v4 }
  0x97   : > { %3333 = vmatpush3.bf16.msra.mxu1 %v3720_v1  ;;  %v1118_v1 = vrot.slane %v1116_v58, 1 }
  0x98   : > { %3493 = vmatpush3.bf16.msra.mxu0 %v3721_v4  ;;  %3334 = vmatprep.subr.bf16.mxu1 %v3722_v8  ;;  %v2227_v4 = vrot.slane %v2225_v60, 3 }
  0x99   : > { %3494 = vmatprep.subr.bf16.mxu0 %v3723_v15  ;;  %v1119_v14 = vor.u32 %v1118_v1, %v1114_v63 }
  0x9a   : > { %v2231_v16 = vor.u32 %v2230_v6, %v2227_v4 }
  0x9b   : > { %3335 = vmatpush3.bf16.msra.mxu1 %v3722_v8  ;;  %v2098_v8 = vrot.slane %v4236_v30, 3  ;;  %v3760_v30 = vld [vmem:[%s4463_s1 + $0x398] sm:$0xff]  }
  0x9c   : > { %3495 = vmatpush3.bf16.msra.mxu0 %v3723_v15  ;;  %3336 = vmatprep.subr.bf16.mxu1 %v3724_v29  ;;  %v4328_v15 = vrot.slane %v1121_v25, 1  ;;  %v2235_v5 = vsel %vm840_vm2, %v2231_v16, %v4128_v20 }
  0x9d   : > { %3496 = vmatprep.subr.bf16.mxu0 %v3725_v32  ;;  %v2099_v24 = vsel %vm1393_vm1, %v2096_v44, %v2098_v8  ;;  %v1125_v44 = vshrl.u32 %v4207_v17, 16 }
  0x9e   : > { %v1124_v0 = vsel %vm318_vm0, %v1119_v14, %v4328_v15 }
  0x9f   : > { %3337 = vmatpush3.bf16.msra.mxu1 %v3724_v29  ;;  %v3759_v29 = vld [vmem:[%s4463_s1 + $0x198] sm:$0xff]  }
  0xa0   : > { %3497 = vmatpush3.bf16.msra.mxu0 %v3725_v32  ;;  %3338 = vmatprep.subr.bf16.mxu1 %v3726_v33  ;;  %v3761_v32 = vld [vmem:[%s4463_s1 + $0x1a0] sm:$0xff]  }
  0xa1   : > { %3498 = vmatprep.subr.bf16.mxu0 %v3727_v36 }
  0xa3   : > { %3339 = vmatpush3.bf16.msra.mxu1 %v3726_v33  ;;  %v3763_v33 = vld [vmem:[%s4463_s1 + $0x1a8] sm:$0xff]  }
  0xa4   : > { %3499 = vmatpush3.bf16.msra.mxu0 %v3727_v36  ;;  %3344 = vmatprep.subr.bf16.mxu1 %v3730_v39  ;;  %v3765_v36 = vld [vmem:[%s4463_s1 + $0x1b0] sm:$0xff]  }
  0xa5   : > { %3504 = vmatprep.subr.bf16.mxu0 %v3733_v41 }
  0xa6   : > { %3341 = vmatmul.mubr.bf16.vlgmr.msra.gmra.mrb[0].mxu1 %v866_v42  ;;  %v2242_v42 = vrot.slane %v2240_v38, 4 }
  0xa7   : > { %3345 = vmatpush3.bf16.msra.mxu1 %v3730_v39  ;;  %3501 = vmatmul.mubr.bf16.vlgmr.msra.gmra.mrb[0].mxu0 %v1970_v45  ;;  %v3766_v39 = vld [vmem:[%s4463_s1 + $0x3b0] sm:$0xff]   ;;  %v3770_v45 = vld [vmem:[%s4463_s1 + $0x1c0] sm:$0xff]  }
  0xa8   : > { %3505 = vmatpush3.bf16.msra.mxu0 %v3733_v41  ;;  %3346 = vmatprep.subr.bf16.mxu1 %v3736_v46  ;;  %v2239_v41 = vrot.slane %v2237_v37, 3 }
  0xa9   : > { %3506 = vmatprep.subr.bf16.mxu0 %v3737_v47  ;;  %3360 = vmatprep.mubr.bf16.mxu1 %v2801_v48  ;;  %v1127_v48 = vor.u32 %v1125_v44, %v4328_v15 }
  0xaa   : > { %3520 = vmatprep.mubr.bf16.mxu0 %v2097_v13 }
  0xab   : > { %3347 = vmatpush3.bf16.msra.mxu1 %v3736_v46  ;;  %v2243_v46 = vor.u32 %v2242_v42, %v2239_v41 }
  0xac   : > { %3507 = vmatpush3.bf16.msra.mxu0 %v3737_v47  ;;  %3348 = vmatprep.subr.bf16.mxu1 %v3738_v49  ;;  %v3771_v47 = vld [vmem:[%s4463_s1 + $0x3c0] sm:$0xff]  }
  0xad   : > { %3508 = vmatprep.subr.bf16.mxu0 %v3739_v50  ;;  %v2244_v13 = vsel %vm840_vm2, %v4128_v20, %v2243_v46  ;;  %v3776_v20 = vld [vmem:[%s4463_s1 + $0x3d0] sm:$0xff]  }
  0xaf   : > { %3349 = vmatpush3.bf16.msra.mxu1 %v3738_v49  ;;  %v3773_v49 = vld [vmem:[%s4463_s1 + $0x1c8] sm:$0xff]  }
  0xb0   : > { %3509 = vmatpush3.bf16.msra.mxu0 %v3739_v50  ;;  %3350 = vmatprep.subr.bf16.mxu1 %v3740_v18  ;;  %v3774_v50 = vld [vmem:[%s4463_s1 + $0x3c8] sm:$0xff]  }
  0xb1   : > { %3510 = vmatprep.subr.bf16.mxu0 %v3741_v19 }
  0xb3   : > { %3351 = vmatpush3.bf16.msra.mxu1 %v3740_v18  ;;  %v3775_v18 = vld [vmem:[%s4463_s1 + $0x1d0] sm:$0xff]  }
  0xb4   : > { %3511 = vmatpush3.bf16.msra.mxu0 %v3741_v19  ;;  %3352 = vmatprep.subr.bf16.mxu1 %v3742_v51  ;;  %v3777_v19 = vld [vmem:[%s4463_s1 + $0x1d8] sm:$0xff]  }
  0xb5   : > { %3512 = vmatprep.subr.bf16.mxu0 %v3743_v52 }
  0xb7   : > { %3353 = vmatpush3.bf16.msra.mxu1 %v3742_v51  ;;  %v3778_v51 = vld [vmem:[%s4463_s1 + $0x3d8] sm:$0xff]  }
  0xb8   : > { %3513 = vmatpush3.bf16.msra.mxu0 %v3743_v52  ;;  %3354 = vmatprep.subr.bf16.mxu1 %v3744_v53  ;;  %v3783_v52 = vld [vmem:[%s4463_s1 + $0x1f0] sm:$0xff]  }
  0xb9   : > { %3514 = vmatprep.subr.bf16.mxu0 %v3745_v54 }
  0xbb   : > { %3355 = vmatpush3.bf16.msra.mxu1 %v3744_v53  ;;  %v3784_v53 = vld [vmem:[%s4463_s1 + $0x3f0] sm:$0xff]  }
  0xbc   : > { %3515 = vmatpush3.bf16.msra.mxu0 %v3745_v54  ;;  %3356 = vmatprep.subr.bf16.mxu1 %v3746_v56  ;;  %v3785_v54 = vld [vmem:[%s4463_s1 + $0x1f8] sm:$0xff]  }
  0xbd   : > { %3516 = vmatprep.subr.bf16.mxu0 %v3747_v57 }
  0xbf   : > { %3357 = vmatpush3.bf16.msra.mxu1 %v3746_v56  ;;  %v3786_v56 = vld [vmem:[%s4463_s1 + $0x3f8] sm:$0xff]  }
  0xc0   : > { %3517 = vmatpush3.bf16.msra.mxu0 %v3747_v57  ;;  %3358 = vmatprep.subr.bf16.mxu1 %v3748_v59  ;;  %v3058_v57 = vcombine.low %v4090_v3, %v4362_v22 }
  0xc1   : > { %3518 = vmatprep.subr.bf16.mxu0 %v3749_v62 }
  0xc3   : > { %3359 = vmatpush3.bf16.msra.mxu1 %v3748_v59 }
  0xc4   : > { %3519 = vmatpush3.bf16.msra.mxu0 %v3749_v62  ;;  %3364 = vmatprep.subr.bf16.mxu1 %v3751_v7  ;;  %v3067_v62 = vld [vmem:[%s4464_s2] ss:$0 sm:$0xff] }
  0xc5   : > { %3524 = vmatprep.subr.bf16.mxu0 %v3753_v9 }
  0xc6   : > { %3361 = vmatmul.mubr.bf16.vlgmr.msra.gmra.mrb[0].mxu1 %v2802_v11 }
  0xc7   : > { %3365 = vmatpush3.bf16.msra.mxu1 %v3751_v7  ;;  %3521 = vmatmul.mubr.bf16.vlgmr.msra.gmra.mrb[0].mxu0 %v2099_v24 }
  0xc8   : > { %3525 = vmatpush3.bf16.msra.mxu0 %v3753_v9  ;;  %3366 = vmatprep.subr.bf16.mxu1 %v3755_v26 }
  0xc9   : > { %3526 = vmatprep.subr.bf16.mxu0 %v3756_v23  ;;  %3380 = vmatprep.mubr.bf16.mxu1 %v1124_v0  ;;  %v2488_v58 = vpop.permute.xlu0 %2487 }
  0xca   : > { %3540 = vmatprep.mubr.bf16.mxu0 %v2235_v5 }
  0xcb   : > { %3367 = vmatpush3.bf16.msra.mxu1 %v3755_v26 }
  0xcc   : > { %3527 = vmatpush3.bf16.msra.mxu0 %v3756_v23  ;;  %3368 = vmatprep.subr.bf16.mxu1 %v3757_v27 }
  0xcd   : > { %3528 = vmatprep.subr.bf16.mxu0 %v3758_v28 }
  0xcf   : > { %3369 = vmatpush3.bf16.msra.mxu1 %v3757_v27 }
  0xd0   : > { %3529 = vmatpush3.bf16.msra.mxu0 %v3758_v28  ;;  %3370 = vmatprep.subr.bf16.mxu1 %v3759_v29 }
  0xd1   : > { %3530 = vmatprep.subr.bf16.mxu0 %v3760_v30 }
  0xd3   : > { %3371 = vmatpush3.bf16.msra.mxu1 %v3759_v29 }
  0xd4   : > { %3531 = vmatpush3.bf16.msra.mxu0 %v3760_v30  ;;  %3372 = vmatprep.subr.bf16.mxu1 %v3761_v32 }
  0xd5   : > { %3532 = vmatprep.subr.bf16.mxu0 %v3762_v21 }
  0xd7   : > { %3373 = vmatpush3.bf16.msra.mxu1 %v3761_v32 }
  0xd8   : > { %3533 = vmatpush3.bf16.msra.mxu0 %v3762_v21  ;;  %3374 = vmatprep.subr.bf16.mxu1 %v3763_v33 }
  0xd9   : > { %3534 = vmatprep.subr.bf16.mxu0 %v3764_v35 }
  0xdb   : > { %3375 = vmatpush3.bf16.msra.mxu1 %v3763_v33 }
  0xdc   : > { %3535 = vmatpush3.bf16.msra.mxu0 %v3764_v35  ;;  %3376 = vmatprep.subr.bf16.mxu1 %v3765_v36 }
  0xdd   : > { %3536 = vmatprep.subr.bf16.mxu0 %v3766_v39 }
  0xdf   : > { %3377 = vmatpush3.bf16.msra.mxu1 %v3765_v36 }
  0xe0   : > { %3537 = vmatpush3.bf16.msra.mxu0 %v3766_v39  ;;  %3378 = vmatprep.subr.bf16.mxu1 %v3767_v40 }
  0xe1   : > { %3538 = vmatprep.subr.bf16.mxu0 %v3768_v43 }
  0xe3   : > { %3379 = vmatpush3.bf16.msra.mxu1 %v3767_v40 }
  0xe4   : > { %3539 = vmatpush3.bf16.msra.mxu0 %v3768_v43  ;;  %3384 = vmatprep.subr.bf16.mxu1 %v3770_v45 }
  0xe5   : > { %3544 = vmatprep.subr.bf16.mxu0 %v3771_v47 }
  0xe6   : > { %3381 = vmatmul.mubr.bf16.vlgmr.msra.gmra.mrb[0].mxu1 %v1127_v48 }
  0xe7   : > { %3385 = vmatpush3.bf16.msra.mxu1 %v3770_v45  ;;  %3541 = vmatmul.mubr.bf16.vlgmr.msra.gmra.mrb[0].mxu0 %v2244_v13 }
  0xe8   : > { %3545 = vmatpush3.bf16.msra.mxu0 %v3771_v47  ;;  %3386 = vmatprep.subr.bf16.mxu1 %v3773_v49 }
  0xe9   : > { %3546 = vmatprep.subr.bf16.mxu0 %v3774_v50  ;;  %3400 = vmatprep.mubr.bf16.mxu1 %v4241_v31  ;;  %v3782_v31 = vld [vmem:[%s4463_s1 + $0x3e8] sm:$0xff]   ;;  %v2493_v5 = vpop.permute.xlu0 %2492 }
  0xea   : > { %3560 = vmatprep.mubr.bf16.mxu0 %v3057_v55  ;;  %v3781_v55 = vld [vmem:[%s4463_s1 + $0x1e8] sm:$0xff]  }
  0xeb   : > { %3387 = vmatpush3.bf16.msra.mxu1 %v3773_v49 }
  0xec   : > { %3547 = vmatpush3.bf16.msra.mxu0 %v3774_v50  ;;  %3388 = vmatprep.subr.bf16.mxu1 %v3775_v18 }
  0xed   : > { %3548 = vmatprep.subr.bf16.mxu0 %v3776_v20 }
  0xef   : > { %3389 = vmatpush3.bf16.msra.mxu1 %v3775_v18 }
  0xf0   : > { %3549 = vmatpush3.bf16.msra.mxu0 %v3776_v20  ;;  %3390 = vmatprep.subr.bf16.mxu1 %v3777_v19 }
  0xf1   : > { %3550 = vmatprep.subr.bf16.mxu0 %v3778_v51 }
  0xf3   : > { %3391 = vmatpush3.bf16.msra.mxu1 %v3777_v19 }
  0xf4   : > { %3551 = vmatpush3.bf16.msra.mxu0 %v3778_v51  ;;  %3392 = vmatprep.subr.bf16.mxu1 %v3779_v2 }
  0xf5   : > { %3552 = vmatprep.subr.bf16.mxu0 %v3780_v12 }
  0xf7   : > { %3393 = vmatpush3.bf16.msra.mxu1 %v3779_v2 }
  0xf8   : > { %3553 = vmatpush3.bf16.msra.mxu0 %v3780_v12  ;;  %3394 = vmatprep.subr.bf16.mxu1 %v3781_v55  ;;  %v2498_v61 = vpop.permute.xlu1 %2497 }
  0xf9   : > { %3554 = vmatprep.subr.bf16.mxu0 %v3782_v31 }
  0xfb   : > { %3395 = vmatpush3.bf16.msra.mxu1 %v3781_v55 }
  0xfc   : > { %3555 = vmatpush3.bf16.msra.mxu0 %v3782_v31  ;;  %3396 = vmatprep.subr.bf16.mxu1 %v3783_v52  ;;  %v2503_v26 = vpop.permute.xlu1 %2502 }
  0xfd   : > { %3556 = vmatprep.subr.bf16.mxu0 %v3784_v53 }
  0xff   : > { %3397 = vmatpush3.bf16.msra.mxu1 %v3783_v52 }
 0x100   : > { %3557 = vmatpush3.bf16.msra.mxu0 %v3784_v53  ;;  %3398 = vmatprep.subr.bf16.mxu1 %v3785_v54 }
 0x101   : > { %3558 = vmatprep.subr.bf16.mxu0 %v3786_v56 }
 0x103   : > { %3399 = vmatpush3.bf16.msra.mxu1 %v3785_v54 }
 0x104   : > { %3559 = vmatpush3.bf16.msra.mxu0 %v3786_v56 }
 0x106   : > { %3401 = vmatmul.mubr.bf16.vlgmr.msra.gmra.mrb[0].mxu1 %v1253_v10 }
 0x107   : > { %3561 = vmatmul.mubr.bf16.vlgmr.msra.gmra.mrb[0].mxu0 %v3058_v57 }
 0x1d9   : > { %v3402_v60 = vpop.f32.mrb[0].mxu1 }
 0x1da   : > { %v3562_v59 = vpop.f32.mrb[0].mxu0  ;;  %v1339_v63 = vpop.f32.mrb[1].mxu1 }
 0x1db   : > { %v3564_v1 = vadd.f32 %v3562_v59, %v3402_v60  ;;  %v2451_v25 = vpop.f32.mrb[1].mxu0  ;;  %v3403_v4 = vpop.f32.mrb[2].mxu1 }
 0x1dc   : > { %v3565_v6 = vadd.f32 %v2451_v25, %v1339_v63  ;;  %v3563_v3 = vpop.f32.mrb[2].mxu0  ;;  %v1342_v7 = vpop.f32.mrb[3].mxu1 }
 0x1dd   : > { %v2479_v8 = vadd.f32 %v3564_v1, %v3067_v62  ;;  %v3566_v17 = vadd.f32 %v3563_v3, %v3403_v4  ;;  %v2454_v10 = vpop.f32.mrb[3].mxu0 }
 0x1de   : > { %v2477_v9 = vadd.f32 %v3565_v6, %v3067_v62  ;;  %v3567_v11 = vadd.f32 %v2454_v10, %v1342_v7 }
 0x1df   : > { %v3077_v14 = vpack.c.bf16 %v2479_v8, %v2479_v8  ;;  %v2480_v15 = vadd.f32 %v3566_v17, %v3067_v62  ;;  %v2523_v23 = vmul.f32 %v2479_v8, %v2479_v8  ;;  %v2507_v22 = vmul.f32 %v2498_v61, %v2479_v8 }
 0x1e0   : > { %v2478_v16 = vadd.f32 %v3567_v11, %v3067_v62  ;;  %v2521_v24 = vmul.f32 %v2477_v9, %v2477_v9  ;;  %v2505_v29 = vmul.f32 %v2488_v58, %v2477_v9 }
 0x1e1   : > { %2558 = vst [vmem:[%s262_s16 + $0x8] sm:$0xf] %v3077_v14  ;;  %v3078_v0 = vpack.c.bf16 %v2480_v15, %v2480_v15  ;;  %v2524_v27 = vmul.f32 %v2480_v15, %v2480_v15  ;;  %v2508_v21 = vmul.f32 %v2503_v26, %v2480_v15  ;;  %v2527_v37 = vmul.f32 %v2523_v23, %v2498_v61 }
 0x1e2   : > { %v3082_v28 = vpack.c.bf16 %v2478_v16, %v2477_v9  ;;  %v2506_v30 = vmul.f32 %v2493_v5, %v2478_v16  ;;  %v2522_v32 = vmul.f32 %v2478_v16, %v2478_v16  ;;  %v2525_v34 = vmul.f32 %v2521_v24, %v2488_v58 }
 0x1e3   : > { %2559 = vst [vmem:[%s262_s16 + $0xc] sm:$0x3] %v3078_v0  ;;  %v2528_v36 = vmul.f32 %v2524_v27, %v2503_v26  ;;  %v2512_v40 = vsel %vm2511_vm6, %v2508_v21, 0.0 }
 0x1e4   : > { %3083 = vst [vmem:[%s262_s16] sm:$0xff] %v3082_v28   ;;  %v2509_v33 = vadd.f32 %v2506_v30, %v2505_v29  ;;  %v2526_v35 = vmul.f32 %v2522_v32, %v2493_v5 }
 0x1e5   : > { %v2531_v43 = vsel %vm2511_vm6, %v2528_v36, 0.0 }
 0x1e6   : > { %v2510_v38 = vadd.f32 %v2509_v33, %v2507_v22  ;;  %v2529_v39 = vadd.f32 %v2526_v35, %v2525_v34 }
 0x1e8   : > { %v2530_v41 = vadd.f32 %v2529_v39, %v2527_v37  ;;  %v2513_v42 = vadd.f32 %v2512_v40, %v2510_v38 }
 0x1ea   : > { %v2514_v44 = vrot.slane %v2513_v42, 4  ;;  %v2532_v45 = vadd.f32 %v2531_v43, %v2530_v41 }
 0x1ec   : > { %v2515_v46 = vadd.f32 %v2514_v44, %v2513_v42  ;;  %v2533_v47 = vrot.slane %v2532_v45, 4 }
 0x1ee   : > { %v2516_v48 = vrot.slane %v2515_v46, 2  ;;  %v2534_v13 = vadd.f32 %v2533_v47, %v2532_v45 }
 0x1f0   : > { %v2517_v49 = vadd.f32 %v2516_v48, %v2515_v46  ;;  %v2535_v50 = vrot.slane %v2534_v13, 2 }
 0x1f2   : > { %v2518_v18 = vrot.slane %v2517_v49, 1  ;;  %v2536_v20 = vadd.f32 %v2535_v50, %v2534_v13 }
 0x1f4   : > { %v2519_v19 = vadd.f32 %v2518_v18, %v2517_v49  ;;  %v2537_v51 = vrot.slane %v2536_v20, 1 }
 0x1f6   : > { %2520 = vst [vmem:[%s265_s19] sm:$0x1] %v2519_v19  ;;  %v2538_v2 = vadd.f32 %v2537_v51, %v2536_v20 }
 0x1f8   : > { %2539 = vst [vmem:[%s268_s25] sm:$0x1] %v2538_v2 }
 0x1f9 PF: > { %s17_s21 = sadd.s32 1, %s3796_s21  }
 0x1fa   : > { %p14_p4 = scmp.ge.s32.totalorder %s17_s21, 4  }
 0x1fc   :  { %16 = sbr.rel (!%p14_p4) target bundleno = 1 (0x1), region = 105 }

// kernel: forward.9
= control target key start
LH: loop header
LB: loop body
LE: loop exit
PB: predicated region body
PF: predicated region fallthrough
CT: control target
= control target key end

     0   :  { %s3863_s12 = smov 0   ;;  %s4708_s0 = inlined_call_operand.vmem [shape: bf16[2,67,128], index: 0, kind: input, shape index: {}]   ;;  %s4709_s1 = inlined_call_operand.vmem [shape: bf16[4,4,128,128], index: 1, kind: input, shape index: {}]   ;;  %s4710_s2 = inlined_call_operand.vmem [shape: f32[1,128], index: 2, kind: input, shape index: {}]   ;;  %s4711_s3 = inlined_call_operand.vmem [shape: f32[2,40,128], index: 3, kind: output, shape index: {}]  }
   0x1 LB: > { %s2631_s13 = sadd.s32 4294967295, %s3839_s12   ;;  %p2635_p0 = scmp.ge.s32.totalorder %s3839_s12, 1  ;;  %s3839_s12 = sphi %s3863_s12, %s13_s12  }
   0x2   : > { %p137_p1 = scmp.lt.s32.totalorder %s3839_s12, 3 }
   0x4   : > { %p138_p2 = pnand %p2635_p0, %p137_p1 }
   0x5   : > { %v3675_v0 = vld [vmem:[%s4709_s1 + $0x40] sm:$0xff] (!%p138_p2)   ;;  %v3841_v1 = vmov (!%p138_p2), 0.0   ;;  %v3677_v3 = vld [vmem:[%s4709_s1 + $0x48] sm:$0xff] (!%p138_p2)   ;;  %vm3842_vm0 = vmmov (!%p138_p2), 0   ;;  %p161_p3 = scmp.lt.s32.totalorder (!%p138_p2), %s2631_s13, 1  ;;  %v3679_v5 = vld [vmem:[%s4709_s1 + $0x50] sm:$0xff] (!%p138_p2)  }
   0x6   : > { %141 = sbr.rel (%p138_p2) target bundleno = 497 (0x1f1), region = 32  ;;  %3215 = vmatprep.subr.bf16.mxu0 (!%p138_p2), %v3841_v1  ;;  %3243 = vmatprep.subr.bf16.mxu1 (!%p138_p2), %v3841_v1  ;;  %v3676_v2 = vld [vmem:[%s4709_s1] sm:$0xff] (!%p138_p2)   ;;  %v3678_v4 = vld [vmem:[%s4709_s1 + $0x8] sm:$0xff] (!%p138_p2)   ;;  %v3680_v6 = vld [vmem:[%s4709_s1 + $0x10] sm:$0xff] (!%p138_p2)   ;;  %vm226_vm1 = vsmask.f32 (!%p138_p2), 7424 }
   0x7   : > { %3216 = vmatpush3.bf16.msra.mxu0 (!%p138_p2), %v3675_v0  ;;  %3231 = vmatprep.mubr.msk.bf16.mxu0 (!%p138_p2), %vm3842_vm0, %v3841_v1  ;;  %v3681_v7 = vld [vmem:[%s4709_s1 + $0x58] sm:$0xff] (!%p138_p2)   ;;  %v3683_v9 = vld [vmem:[%s4709_s1 + $0x60] sm:$0xff] (!%p138_p2)   ;;  %v3685_v17 = vld [vmem:[%s4709_s1 + $0x68] sm:$0xff] (!%p138_p2)   ;;  %vm486_vm2 = vcmask (!%p138_p2), 1046528   ;;  %vm625_vm3 = vsmask.f32 (!%p138_p2), 6400 }
   0x8   : > { %3244 = vmatpush3.bf16.msra.mxu1 (!%p138_p2), %v3676_v2  ;;  %3217 = vmatprep.subr.bf16.mxu0 (!%p138_p2), %v3841_v1  ;;  %v3682_v8 = vld [vmem:[%s4709_s1 + $0x18] sm:$0xff] (!%p138_p2)   ;;  %v3684_v10 = vld [vmem:[%s4709_s1 + $0x20] sm:$0xff] (!%p138_p2)   ;;  %v3686_v19 = vld [vmem:[%s4709_s1 + $0x28] sm:$0xff] (!%p138_p2)  }
   0x9   : > { %3245 = vmatprep.subr.bf16.mxu1 (!%p138_p2), %v3841_v1  ;;  %3259 = vmatprep.mubr.msk.bf16.mxu1 (!%p138_p2), %vm3842_vm0, %v3841_v1  ;;  %v3687_v21 = vld [vmem:[%s4709_s1 + $0x70] sm:$0xff] (!%p138_p2)   ;;  %v3689_v26 = vld [vmem:[%s4709_s1 + $0x78] sm:$0xff] (!%p138_p2)   ;;  %v3693_v34 = vld [vmem:[%s4709_s1 + $0x80] sm:$0xff] (!%p138_p2)  }
   0xa   : > { %v3688_v25 = vld [vmem:[%s4709_s1 + $0x30] sm:$0xff] (!%p138_p2)   ;;  %v3690_v27 = vld [vmem:[%s4709_s1 + $0x38] sm:$0xff] (!%p138_p2)   ;;  %v3694_v38 = vld [vmem:[%s4709_s1 + $0xc0] sm:$0xff] (!%p138_p2)  }
   0xb   : > { %3218 = vmatpush3.bf16.msra.mxu0 (!%p138_p2), %v3677_v3  ;;  %v3695_v39 = vld [vmem:[%s4709_s1 + $0x88] sm:$0xff] (!%p138_p2)   ;;  %v3697_v43 = vld [vmem:[%s4709_s1 + $0x90] sm:$0xff] (!%p138_p2)   ;;  %v3699_v47 = vld [vmem:[%s4709_s1 + $0x98] sm:$0xff] (!%p138_p2)  }
   0xc   : > { %3246 = vmatpush3.bf16.msra.mxu1 (!%p138_p2), %v3678_v4  ;;  %3219 = vmatprep.subr.bf16.mxu0 (!%p138_p2), %v3841_v1  ;;  %v3696_v42 = vld [vmem:[%s4709_s1 + $0xc8] sm:$0xff] (!%p138_p2)   ;;  %v3698_v45 = vld [vmem:[%s4709_s1 + $0xd0] sm:$0xff] (!%p138_p2)   ;;  %v3700_v48 = vld [vmem:[%s4709_s1 + $0xd8] sm:$0xff] (!%p138_p2)  }
   0xd   : > { %s4713_s13 = smov (!%p161_p3, %s2631_s13), 1  ;;  %3247 = vmatprep.subr.bf16.mxu1 %v3841_v1  ;;  %v3702_v51 = vld [vmem:[%s4709_s1 + $0xa0] sm:$0xff]   ;;  %v3704_v55 = vld [vmem:[%s4709_s1 + $0xa8] sm:$0xff]   ;;  %v3707_v0 = vld [vmem:[%s4709_s1 + $0xb0] sm:$0xff]  }
   0xe   : > { %s3663_s26 = smul.u32 36, %s4713_s13  ;;  %v3703_v52 = vld [vmem:[%s4709_s1 + $0xe0] sm:$0xff]   ;;  %v3705_v56 = vld [vmem:[%s4709_s1 + $0xe8] sm:$0xff]  }
   0xf   : > { %3220 = vmatpush3.bf16.msra.mxu0 %v3679_v5  ;;  %v3708_v5 = vld [vmem:[%s4709_s1 + $0xf0] sm:$0xff]   ;;  %s3664_s5 = smul.u32 40, %s4713_s13 }
  0x10   : > { %3248 = vmatpush3.bf16.msra.mxu1 %v3680_v6  ;;  %3221 = vmatprep.subr.bf16.mxu0 %v3841_v1  ;;  %s3913_s6 = scalar_lea.vmem %s4708_s0, %s3663_s26 }
  0x11   : > { %3249 = vmatprep.subr.bf16.mxu1 %v3841_v1  ;;  %v172_v11 = vld [vmem:[%s3913_s6] sm:$0xf]  ;;  %v3925_v12 = vld [vmem:[%s3913_s6 + $0x4] sm:$0xf]  ;;  %v3928_v13 = vld [vmem:[%s3913_s6 + $0x8] sm:$0xf]  ;;  %s4698_s11 = scalar_lea.vmem %s4711_s3, %s3664_s5 }
  0x12   : > { %v3931_v14 = vld [vmem:[%s3913_s6 + $0xc] sm:$0xf]  ;;  %v2654_v15 = vcombine.low %v172_v11, %v3925_v12  ;;  %v2740_v16 = vcombine.low %v3925_v12, %v3928_v13  ;;  %v3966_v30 = vld [vmem:[%s3913_s6 + $0x10] sm:$0xf]  ;;  %v193_v31 = vld [vmem:[%s3913_s6 + $0x14] sm:$0x1] }
  0x13   : > { %3222 = vmatpush3.bf16.msra.mxu0 %v3681_v7  ;;  %v3941_v18 = vcombine.low %v3928_v13, %v3931_v14  ;;  %v3971_v32 = vcombine.low %v3966_v30, %v193_v31  ;;  %v2741_v33 = vcombine.low %v3931_v14, %v3966_v30  ;;  %v465_v49 = vld [vmem:[%s3913_s6] sm:$0xe]  ;;  %v2665_v53 = vcombine.low %v3966_v30, %v3966_v30  ;;  %v604_v57 = vld [vmem:[%s3913_s6 + $0x14] sm:$0x3]  ;;  %v4053_v62 = vld [vmem:[%s3913_s6 + $0x8] sm:$0xf] }
  0x14   : > { %3250 = vmatpush3.bf16.msra.mxu1 %v3682_v8  ;;  %3223 = vmatprep.subr.bf16.mxu0 %v3841_v1  ;;  %v230_v20 = vshll.u32 %v2654_v15, 16  ;;  %v228_v23 = vshrl.u32 %v2654_v15, 16  ;;  %v2690_v54 = vcombine.low %v465_v49, %v3925_v12  ;;  %v2715_v61 = vcombine.low %v3966_v30, %v604_v57  ;;  %v4056_v63 = vld [vmem:[%s3913_s6 + $0xc] sm:$0xf]  ;;  %v3709_v8 = vld [vmem:[%s4709_s1 + $0xb8] sm:$0xff]   ;;  %v3726_v49 = vld [vmem:[%s4709_s1 + $0x170] sm:$0xff]  }
  0x15   : > { %3251 = vmatprep.subr.bf16.mxu1 %v3841_v1  ;;  %v235_v22 = vshll.u32 %v3941_v18, 16  ;;  %v239_v36 = vshrl.u32 %v3941_v18, 16  ;;  %v243_v37 = vshll.u32 %v3971_v32, 16  ;;  %v247_v46 = vshrl.u32 %v3971_v32, 16  ;;  %v3715_v31 = vld [vmem:[%s4709_s1 + $0x148] sm:$0xff]   ;;  %v3737_v12 = vld [vmem:[%s4709_s1 + $0x190] sm:$0xff]  }
  0x16   : > { %v232_v24 = vrot.slane %v230_v20, 1  ;;  %v627_v58 = vshrl.u32 %v2690_v54, 16  ;;  %v630_v59 = vshll.u32 %v2690_v54, 16  ;;  %v488_v2 = vrot.slane %v3941_v18, 1  ;;  %v4082_v20 = vld [vmem:[%s3913_s6 + $0x14] sm:$0xf] }
  0x17   : > { %3224 = vmatpush3.bf16.msra.mxu0 %v3683_v9  ;;  %v237_v28 = vrot.slane %v235_v22, 1  ;;  %v245_v41 = vrot.slane %v243_v37, 1  ;;  %v635_v60 = vrot.slane %v235_v22, 2  ;;  %v2844_v3 = vcombine.low %v4053_v62, %v4056_v63  ;;  %v4219_v13 = vld [vmem:[%s3913_s6 + $0x14] sm:$0xf]  ;;  %v3743_v30 = vld [vmem:[%s4709_s1 + $0x1a0] sm:$0xff]  }
  0x18   : > { %3252 = vmatpush3.bf16.msra.mxu1 %v3684_v10  ;;  %3225 = vmatprep.subr.bf16.mxu0 %v3841_v1  ;;  %v233_v29 = vor.u32 %v232_v24, %v228_v23  ;;  %v634_v4 = vrot.slane %v239_v36, 1  ;;  %v629_v6 = vrot.slane %v627_v58, 1  ;;  %v632_v7 = vrot.slane %v630_v59, 2  ;;  %v3710_v10 = vld [vmem:[%s4709_s1 + $0xf8] sm:$0xff]   ;;  %v3712_v23 = vld [vmem:[%s4709_s1 + $0x100] sm:$0xff]  }
  0x19   : > { %3253 = vmatprep.subr.bf16.mxu1 %v3841_v1  ;;  %v241_v40 = vor.u32 %v239_v36, %v237_v28  ;;  %v249_v50 = vor.u32 %v247_v46, %v245_v41  ;;  %v487_v9 = vrot.slane %v2690_v54, 1  ;;  %v639_v11 = vshrl.u32 %v2715_v61, 16  ;;  %v3713_v24 = vld [vmem:[%s4709_s1 + $0x140] sm:$0xff]   ;;  %v3717_v36 = vld [vmem:[%s4709_s1 + $0x150] sm:$0xff]   ;;  %v3727_v54 = vld [vmem:[%s4709_s1 + $0x138] sm:$0xff]  }
  0x1a   : > { %v238_v35 = vsel %vm226_vm1, %v233_v29, %v237_v28  ;;  %v3714_v28 = vld [vmem:[%s4709_s1 + $0x108] sm:$0xff]   ;;  %v490_v29 = vrot.slane %v3971_v32, 1  ;;  %v3732_v59 = vld [vmem:[%s4709_s1 + $0x180] sm:$0xff]   ;;  %v3742_v14 = vld [vmem:[%s3913_s6 + $0x14] ss:$0 sps:$4 sm:$0xff]  }
  0x1b   : > { %3226 = vmatpush3.bf16.msra.mxu0 %v3685_v17  ;;  %v246_v44 = vsel %vm226_vm1, %v241_v40, %v245_v41  ;;  %v4078_v17 = vld [vmem:[%s3913_s6 + $0x10] sm:$0xf]  ;;  %v489_v22 = vsel %vm486_vm2, %v487_v9, %v488_v2  ;;  %v894_v40 = vld [vmem:[%s3913_s6 + $0x4] sm:$0xf] }
  0x1c   : > { %3254 = vmatpush3.bf16.msra.mxu1 %v3686_v19  ;;  %3227 = vmatprep.subr.bf16.mxu0 %v3841_v1  ;;  %v636_v19 = vor.u32 %v635_v60, %v634_v4  ;;  %v491_v32 = vsel %vm486_vm2, %v488_v2, %v490_v29  ;;  %v3721_v41 = vld [vmem:[%s4709_s1 + $0x120] sm:$0xff]  }
  0x1d   : > { %3255 = vmatprep.subr.bf16.mxu1 %v3841_v1  ;;  %v3733_v60 = vld [vmem:[%s4709_s1 + $0x1c0] sm:$0xff]  }
  0x1f   : > { %3228 = vmatpush3.bf16.msra.mxu0 %v3687_v21  ;;  %v2845_v21 = vcombine.low %v4078_v17, %v4082_v20 }
  0x20   : > { %3256 = vmatpush3.bf16.msra.mxu1 %v3688_v25  ;;  %3229 = vmatprep.subr.bf16.mxu0 %v3841_v1 }
  0x21   : > { %3257 = vmatprep.subr.bf16.mxu1 %v3841_v1 }
  0x23   : > { %3230 = vmatpush3.bf16.msra.mxu0 %v3689_v26  ;;  %v641_v26 = vrot.slane %v639_v11, 1  ;;  %v3738_v11 = vld [vmem:[%s4709_s1 + $0x1d0] sm:$0xff]  }
  0x24   : > { %3258 = vmatpush3.bf16.msra.mxu1 %v3690_v27  ;;  %3271 = vmatprep.subr.bf16.mxu0 %v3841_v1 }
  0x25   : > { %3299 = vmatprep.subr.bf16.mxu1 %v3841_v1 }
  0x26   : > { %3232 = vmatmul.mubr.bf16.vlgmr.msra.gmra.mrb[0].mxu0 %v238_v35  ;;  %v3716_v35 = vld [vmem:[%s4709_s1 + $0x110] sm:$0xff]  }
  0x27   : > { %3260 = vmatmul.mubr.bf16.vlgmr.msra.gmra.mrb[0].mxu1 %v2654_v15  ;;  %3272 = vmatpush3.bf16.msra.mxu0 %v3693_v34  ;;  %v642_v15 = vshll.u32 %v2715_v61, 16  ;;  %v4188_v61 = vld [vmem:[%s3913_s6 + $0xc] sm:$0xf] }
  0x28   : > { %3300 = vmatpush3.bf16.msra.mxu1 %v3694_v38  ;;  %3273 = vmatprep.subr.bf16.mxu0 %v3841_v1  ;;  %v3719_v38 = vld [vmem:[%s4709_s1 + $0x118] sm:$0xff]  }
  0x29   : > { %3301 = vmatprep.subr.bf16.mxu1 %v3841_v1  ;;  %3235 = vmatprep.mubr.msk.bf16.mxu0 %vm3842_vm0, %v3841_v1  ;;  %v644_v27 = vrot.slane %v642_v15, 2 }
  0x2a   : > { %3263 = vmatprep.mubr.msk.bf16.mxu1 %vm3842_vm0, %v3841_v1 }
  0x2b   : > { %3274 = vmatpush3.bf16.msra.mxu0 %v3695_v39  ;;  %v645_v34 = vor.u32 %v644_v27, %v641_v26  ;;  %v3720_v39 = vld [vmem:[%s4709_s1 + $0x158] sm:$0xff]   ;;  %v3744_v26 = vld [vmem:[%s4709_s1 + $0x1e0] sm:$0xff]   ;;  %v3745_v27 = vld [vmem:[%s4709_s1 + $0x1a8] sm:$0xff]  }
  0x2c   : > { %3302 = vmatpush3.bf16.msra.mxu1 %v3696_v42  ;;  %3275 = vmatprep.subr.bf16.mxu0 %v3841_v1  ;;  %v2767_v42 = vcombine.low %v894_v40, %v4053_v62 }
  0x2d   : > { %3303 = vmatprep.subr.bf16.mxu1 %v3841_v1  ;;  %v646_v37 = vsel %vm625_vm3, %v636_v19, %v645_v34 }
  0x2e   : > { %3236 = vmatmul.mubr.bf16.gmra.mrb[4].mxu0 %v246_v44  ;;  %v3723_v44 = vld [vmem:[%s4709_s1 + $0x128] sm:$0xff]   ;;  %v935_v46 = vshll.u32 %v2767_v42, 16 }
  0x2f   : > { %3276 = vmatpush3.bf16.msra.mxu0 %v3697_v43  ;;  %3264 = vmatmul.mubr.bf16.gmra.mrb[4].mxu1 %v3941_v18  ;;  %v633_v18 = vor.u32 %v632_v7, %v629_v6  ;;  %v3722_v43 = vld [vmem:[%s4709_s1 + $0x160] sm:$0xff]   ;;  %v3734_v7 = vld [vmem:[%s4709_s1 + $0x188] sm:$0xff]  }
  0x30   : > { %3304 = vmatpush3.bf16.msra.mxu1 %v3698_v45  ;;  %3277 = vmatprep.subr.bf16.mxu0 %v3841_v1  ;;  %v3724_v45 = vld [vmem:[%s4709_s1 + $0x168] sm:$0xff]  }
  0x31   : > { %3305 = vmatprep.subr.bf16.mxu1 %v3841_v1  ;;  %3239 = vmatprep.mubr.msk.bf16.mxu0 %vm3842_vm0, %v3841_v1  ;;  %v637_v25 = vsel %vm625_vm3, %v633_v18, %v636_v19  ;;  %v3740_v19 = vld [vmem:[%s4709_s1 + $0x198] sm:$0xff]  }
  0x32   : > { %3267 = vmatprep.mubr.msk.bf16.mxu1 %vm3842_vm0, %v3841_v1 }
  0x33   : > { %3278 = vmatpush3.bf16.msra.mxu0 %v3699_v47  ;;  %v4151_v47 = vcombine.low %v4056_v63, %v4078_v17  ;;  %v3778_v63 = vld [vmem:[%s4709_s1 + $0x2d0] sm:$0xff]   ;;  %v1667_v17 = vld [vmem:[%s3913_s6 + $0x8] sm:$0xe] }
  0x34   : > { %3306 = vmatpush3.bf16.msra.mxu1 %v3700_v48  ;;  %3279 = vmatprep.subr.bf16.mxu0 %v3841_v1  ;;  %v3725_v48 = vld [vmem:[%s4709_s1 + $0x130] sm:$0xff]  }
  0x35   : > { %3307 = vmatprep.subr.bf16.mxu1 %v3841_v1  ;;  %v944_v4 = vshrl.u32 %v4151_v47, 16 }
  0x36   : > { %3240 = vmatmul.mubr.bf16.gmra.mrb[8].mxu0 %v249_v50  ;;  %v933_v50 = vshrl.u32 %v2767_v42, 16  ;;  %v1089_v42 = vrot.slane %v4151_v47, 1 }
  0x37   : > { %3280 = vmatpush3.bf16.msra.mxu0 %v3702_v51  ;;  %3268 = vmatmul.mubr.bf16.gmra.mrb[8].mxu1 %v2665_v53  ;;  %v937_v51 = vrot.slane %v935_v46, 1  ;;  %v899_v53 = vld [vmem:[%s3913_s6 + $0x18] sm:$0x1] }
  0x38   : > { %3308 = vmatpush3.bf16.msra.mxu1 %v3703_v52  ;;  %3281 = vmatprep.subr.bf16.mxu0 %v3841_v1  ;;  %v940_v52 = vshll.u32 %v4151_v47, 16  ;;  %v4178_v58 = vcombine.low %v4082_v20, %v899_v53  ;;  %v3752_v47 = vld [vmem:[%s4709_s1 + $0x200] sm:$0xff]  }
  0x39   : > { %3309 = vmatprep.subr.bf16.mxu1 %v3841_v1  ;;  %3287 = vmatprep.mubr.msk.bf16.mxu0 %vm3842_vm0, %v3841_v1 }
  0x3a   : > { %3315 = vmatprep.mubr.msk.bf16.mxu1 %vm3842_vm0, %v3841_v1  ;;  %v942_v57 = vrot.slane %v940_v52, 1 }
  0x3b   : > { %3282 = vmatpush3.bf16.msra.mxu0 %v3704_v55  ;;  %v3728_v55 = vld [vmem:[%s4709_s1 + $0x178] sm:$0xff]  }
  0x3c   : > { %3310 = vmatpush3.bf16.msra.mxu1 %v3705_v56  ;;  %3283 = vmatprep.subr.bf16.mxu0 %v3841_v1  ;;  %v938_v56 = vor.u32 %v937_v51, %v933_v50  ;;  %v946_v9 = vor.u32 %v944_v4, %v942_v57 }
  0x3d   : > { %3311 = vmatprep.subr.bf16.mxu1 %v3841_v1 }
  0x3e   : > { %v943_v2 = vsel %vm226_vm1, %v938_v56, %v942_v57  ;;  %v1091_v56 = vrot.slane %v4178_v58, 1  ;;  %v3755_v57 = vld [vmem:[%s4709_s1 + $0x248] sm:$0xff]  }
  0x3f   : > { %3284 = vmatpush3.bf16.msra.mxu0 %v3707_v0  ;;  %v4191_v0 = vld [vmem:[%s3913_s6 + $0x10] sm:$0xf] }
  0x40   : > { %3312 = vmatpush3.bf16.msra.mxu1 %v3708_v5  ;;  %3285 = vmatprep.subr.bf16.mxu0 %v3841_v1  ;;  %v948_v5 = vshll.u32 %v4178_v58, 16  ;;  %v2948_v6 = vcombine.low %v4188_v61, %v4191_v0 }
  0x41   : > { %3313 = vmatprep.subr.bf16.mxu1 %v3841_v1 }
  0x43   : > { %3286 = vmatpush3.bf16.msra.mxu0 %v3709_v8  ;;  %v3735_v8 = vld [vmem:[%s4709_s1 + $0x1c8] sm:$0xff]  }
  0x44   : > { %3314 = vmatpush3.bf16.msra.mxu1 %v3710_v10  ;;  %3327 = vmatprep.subr.bf16.mxu0 %v3841_v1  ;;  %v950_v10 = vrot.slane %v948_v5, 1  ;;  %v3759_v5 = vld [vmem:[%s4709_s1 + $0x218] sm:$0xff]  }
  0x45   : > { %3355 = vmatprep.subr.bf16.mxu1 %v3841_v1 }
  0x46   : > { %3288 = vmatmul.mubr.bf16.vlgmr.msra.gmra.mrb[12].mxu0 %v489_v22  ;;  %v951_v15 = vsel %vm226_vm1, %v946_v9, %v950_v10  ;;  %v3741_v22 = vld [vmem:[%s4709_s1 + $0x1d8] sm:$0xff]   ;;  %v3761_v9 = vld [vmem:[%s4709_s1 + $0x220] sm:$0xff]  }
  0x47   : > { %3316 = vmatmul.mubr.bf16.vlgmr.msra.gmra.mrb[12].mxu1 %v637_v25  ;;  %3328 = vmatpush3.bf16.msra.mxu0 %v3712_v23  ;;  %v952_v23 = vshrl.u32 %v4178_v58, 16  ;;  %v1092_v58 = vsel %vm486_vm2, %v1089_v42, %v1091_v56 }
  0x48   : > { %3356 = vmatpush3.bf16.msra.mxu1 %v3713_v24  ;;  %3329 = vmatprep.subr.bf16.mxu0 %v3841_v1  ;;  %v1067_v24 = vld [vmem:[%s3913_s6 + $0x4] sm:$0xe] }
  0x49   : > { %3357 = vmatprep.subr.bf16.mxu1 %v3841_v1  ;;  %3291 = vmatprep.mubr.msk.bf16.mxu0 %vm3842_vm0, %v3841_v1  ;;  %v2794_v25 = vcombine.low %v1067_v24, %v4053_v62  ;;  %v3766_v24 = vld [vmem:[%s4709_s1 + $0x270] sm:$0xff]  }
  0x4a   : > { %3319 = vmatprep.mubr.msk.bf16.mxu1 %vm3842_vm0, %v3841_v1  ;;  %v3777_v62 = vld [vmem:[%s4709_s1 + $0x290] sm:$0xff]  }
  0x4b   : > { %3330 = vmatpush3.bf16.msra.mxu0 %v3714_v28  ;;  %v1227_v28 = vshrl.u32 %v2794_v25, 16 }
  0x4c   : > { %3358 = vmatpush3.bf16.msra.mxu1 %v3715_v31  ;;  %3331 = vmatprep.subr.bf16.mxu0 %v3841_v1  ;;  %v3746_v31 = vld [vmem:[%s4709_s1 + $0x1e8] sm:$0xff]  }
  0x4d   : > { %3359 = vmatprep.subr.bf16.mxu1 %v3841_v1 }
  0x4e   : > { %3292 = vmatmul.mubr.bf16.gmra.mrb[16].mxu0 %v491_v32  ;;  %v1234_v32 = vrot.slane %v944_v4, 1 }
  0x4f   : > { %3332 = vmatpush3.bf16.msra.mxu0 %v3716_v35  ;;  %3320 = vmatmul.mubr.bf16.gmra.mrb[16].mxu1 %v646_v37  ;;  %v3747_v35 = vld [vmem:[%s4709_s1 + $0x1b0] sm:$0xff]   ;;  %v1229_v37 = vrot.slane %v1227_v28, 1 }
  0x50   : > { %3360 = vmatpush3.bf16.msra.mxu1 %v3717_v36  ;;  %3333 = vmatprep.subr.bf16.mxu0 %v3841_v1  ;;  %v3748_v36 = vld [vmem:[%s4709_s1 + $0x1f0] sm:$0xff]  }
  0x51   : > { %3361 = vmatprep.subr.bf16.mxu1 %v3841_v1  ;;  %3295 = vmatprep.mubr.msk.bf16.mxu0 %vm3842_vm0, %v3841_v1 }
  0x52   : > { %3323 = vmatprep.mubr.msk.bf16.mxu1 %vm3842_vm0, %v3841_v1 }
  0x53   : > { %3334 = vmatpush3.bf16.msra.mxu0 %v3719_v38 }
  0x54   : > { %3362 = vmatpush3.bf16.msra.mxu1 %v3720_v39  ;;  %3335 = vmatprep.subr.bf16.mxu0 %v3841_v1  ;;  %v1235_v39 = vrot.slane %v940_v52, 2  ;;  %v3753_v52 = vld [vmem:[%s4709_s1 + $0x240] sm:$0xff]  }
  0x55   : > { %3363 = vmatprep.subr.bf16.mxu1 %v3841_v1 }
  0x56   : > { %3296 = vmatmul.mubr.bf16.gmra.mrb[20].mxu0 %v490_v29  ;;  %v1230_v29 = vshll.u32 %v2794_v25, 16  ;;  %v1236_v46 = vor.u32 %v1235_v39, %v1234_v32  ;;  %v3775_v39 = vld [vmem:[%s4709_s1 + $0x2c8] sm:$0xff]  }
  0x57   : > { %3336 = vmatpush3.bf16.msra.mxu0 %v3721_v41  ;;  %3324 = vmatmul.mubr.bf16.gmra.mrb[20].mxu1 %v645_v34  ;;  %v1205_v34 = vld [vmem:[%s3913_s6 + $0x18] sm:$0x3] }
  0x58   : > { %3364 = vmatpush3.bf16.msra.mxu1 %v3722_v43  ;;  %3337 = vmatprep.subr.bf16.mxu0 %v3841_v1  ;;  %v1232_v38 = vrot.slane %v1230_v29, 2  ;;  %v2819_v40 = vcombine.low %v4082_v20, %v1205_v34  ;;  %v3749_v41 = vld [vmem:[%s4709_s1 + $0x1b8] sm:$0xff]   ;;  %v3772_v34 = vld [vmem:[%s4709_s1 + $0x280] sm:$0xff]  }
  0x59   : > { %3365 = vmatprep.subr.bf16.mxu1 %v3841_v1  ;;  %3343 = vmatprep.mubr.msk.bf16.mxu0 %vm3842_vm0, %v3841_v1  ;;  %v3750_v43 = vld [vmem:[%s4709_s1 + $0x1f8] sm:$0xff]  }
  0x5a   : > { %3371 = vmatprep.mubr.msk.bf16.mxu1 %vm3842_vm0, %v3841_v1  ;;  %v3782_v20 = vld [vmem:[%s3913_s6 + $0x18] ss:$0 sps:$4 sm:$0xff]  }
  0x5b   : > { %3338 = vmatpush3.bf16.msra.mxu0 %v3723_v44  ;;  %v1088_v44 = vrot.slane %v2794_v25, 1  ;;  %v1499_v25 = vld [vmem:[%s3913_s6 + $0x1c] sm:$0x1] }
  0x5c   : > { %3366 = vmatpush3.bf16.msra.mxu1 %v3724_v45  ;;  %3339 = vmatprep.subr.bf16.mxu0 %v3841_v1  ;;  %v1233_v45 = vor.u32 %v1232_v38, %v1229_v37  ;;  %v3774_v38 = vld [vmem:[%s4709_s1 + $0x288] sm:$0xff]  }
  0x5d   : > { %3367 = vmatprep.subr.bf16.mxu1 %v3841_v1  ;;  %v1090_v50 = vsel %vm486_vm2, %v1088_v44, %v1089_v42  ;;  %v3780_v42 = vld [vmem:[%s4709_s1 + $0x298] sm:$0xff]  }
  0x5e   : > { %v1237_v51 = vsel %vm625_vm3, %v1233_v45, %v1236_v46  ;;  %v3781_v44 = vld [vmem:[%s4709_s1 + $0x2d8] sm:$0xff]  }
  0x5f   : > { %3340 = vmatpush3.bf16.msra.mxu0 %v3725_v48  ;;  %v1239_v48 = vshrl.u32 %v2819_v40, 16 }
  0x60   : > { %3368 = vmatpush3.bf16.msra.mxu1 %v3726_v49  ;;  %3341 = vmatprep.subr.bf16.mxu0 %v3841_v1  ;;  %v1242_v49 = vshll.u32 %v2819_v40, 16 }
  0x61   : > { %3369 = vmatprep.subr.bf16.mxu1 %v3841_v1  ;;  %v1241_v53 = vrot.slane %v1239_v48, 1  ;;  %v2898_v48 = vcombine.low %v1667_v17, %v4188_v61  ;;  %v2099_v17 = vld [vmem:[%s3913_s6 + $0x20] sm:$0x1] }
  0x63   : > { %3342 = vmatpush3.bf16.msra.mxu0 %v3727_v54  ;;  %v1244_v54 = vrot.slane %v1242_v49, 2  ;;  %v3785_v49 = vld [vmem:[%s4709_s1 + $0x2a8] sm:$0xff]  }
  0x64   : > { %3370 = vmatpush3.bf16.msra.mxu1 %v3728_v55  ;;  %3383 = vmatprep.subr.bf16.mxu0 %v3841_v1  ;;  %v3754_v55 = vld [vmem:[%s4709_s1 + $0x208] sm:$0xff]  }
  0x65   : > { %3411 = vmatprep.subr.bf16.mxu1 %v3841_v1 }
  0x66   : > { %3344 = vmatmul.mubr.bf16.vlgmr.msra.gmra.mrb[24].mxu0 %v2740_v16  ;;  %v4222_v16 = vld [vmem:[%s3913_s6 + $0x18] sm:$0xf] }
  0x67   : > { %3372 = vmatmul.mubr.bf16.vlgmr.msra.gmra.mrb[24].mxu1 %v943_v2  ;;  %3384 = vmatpush3.bf16.msra.mxu0 %v3732_v59  ;;  %v2949_v18 = vcombine.low %v4219_v13, %v4222_v16  ;;  %v1245_v59 = vor.u32 %v1244_v54, %v1241_v53  ;;  %v3757_v2 = vld [vmem:[%s4709_s1 + $0x250] sm:$0xff]  }
  0x68   : > { %3412 = vmatpush3.bf16.msra.mxu1 %v3733_v60  ;;  %3385 = vmatprep.subr.bf16.mxu0 %v3841_v1  ;;  %v3756_v60 = vld [vmem:[%s4709_s1 + $0x210] sm:$0xff]  }
  0x69   : > { %3413 = vmatprep.subr.bf16.mxu1 %v3841_v1  ;;  %3347 = vmatprep.mubr.msk.bf16.mxu0 %vm3842_vm0, %v3841_v1  ;;  %v1246_v4 = vsel %vm625_vm3, %v1236_v46, %v1245_v59  ;;  %v3784_v46 = vld [vmem:[%s4709_s1 + $0x2e0] sm:$0xff]   ;;  %v3787_v54 = vld [vmem:[%s4709_s1 + $0x2b0] sm:$0xff]  }
  0x6a   : > { %3375 = vmatprep.mubr.msk.bf16.mxu1 %vm3842_vm0, %v3841_v1 }
  0x6b   : > { %3386 = vmatpush3.bf16.msra.mxu0 %v3734_v7  ;;  %v3760_v7 = vld [vmem:[%s4709_s1 + $0x258] sm:$0xff]  }
  0x6c   : > { %3414 = vmatpush3.bf16.msra.mxu1 %v3735_v8  ;;  %3387 = vmatprep.subr.bf16.mxu0 %v3841_v1  ;;  %v1494_v8 = vld [vmem:[%s3913_s6 + $0x8] sm:$0xf] }
  0x6d   : > { %3415 = vmatprep.subr.bf16.mxu1 %v3841_v1 }
  0x6e   : > { %3348 = vmatmul.mubr.bf16.gmra.mrb[28].mxu0 %v2741_v33  ;;  %v954_v33 = vor.u32 %v952_v23, %v950_v10  ;;  %v3762_v10 = vld [vmem:[%s4709_s1 + $0x260] sm:$0xff]   ;;  %v3765_v23 = vld [vmem:[%s4709_s1 + $0x230] sm:$0xff]  }
  0x6f   : > { %3388 = vmatpush3.bf16.msra.mxu0 %v3737_v12  ;;  %3376 = vmatmul.mubr.bf16.gmra.mrb[28].mxu1 %v951_v15  ;;  %v2871_v12 = vcombine.low %v1494_v8, %v4188_v61  ;;  %v3764_v15 = vld [vmem:[%s4709_s1 + $0x268] sm:$0xff]   ;;  %v3817_v61 = vld [vmem:[%s4709_s1 + $0x390] sm:$0xff]  }
  0x70   : > { %3416 = vmatpush3.bf16.msra.mxu1 %v3738_v11  ;;  %3389 = vmatprep.subr.bf16.mxu0 %v3841_v1  ;;  %v3763_v11 = vld [vmem:[%s4709_s1 + $0x228] sm:$0xff]  }
  0x71   : > { %3417 = vmatprep.subr.bf16.mxu1 %v3841_v1  ;;  %3351 = vmatprep.mubr.msk.bf16.mxu0 %vm3842_vm0, %v3841_v1 }
  0x72   : > { %3379 = vmatprep.mubr.msk.bf16.mxu1 %vm3842_vm0, %v3841_v1 }
  0x73   : > { %3390 = vmatpush3.bf16.msra.mxu0 %v3740_v19  ;;  %v4356_v19 = vcombine.low %v4191_v0, %v4219_v13  ;;  %v3818_v0 = vld [vmem:[%s4709_s1 + $0x3d0] sm:$0xff]   ;;  %v2267_v13 = vld [vmem:[%s3913_s6 + $0xc] sm:$0xe] }
  0x74   : > { %3418 = vmatpush3.bf16.msra.mxu1 %v3741_v22  ;;  %3391 = vmatprep.subr.bf16.mxu0 %v3841_v1  ;;  %v1535_v22 = vshll.u32 %v2871_v12, 16 }
  0x75   : > { %3419 = vmatprep.subr.bf16.mxu1 %v3841_v1 }
  0x76   : > { %3352 = vmatmul.mubr.bf16.gmra.mrb[32].mxu0 %v3742_v14  ;;  %v1533_v14 = vshrl.u32 %v2871_v12, 16 }
  0x77   : > { %3392 = vmatpush3.bf16.msra.mxu0 %v3743_v30  ;;  %3380 = vmatmul.mubr.bf16.gmra.mrb[32].mxu1 %v954_v33  ;;  %v1537_v30 = vrot.slane %v1535_v22, 1  ;;  %v1540_v33 = vshll.u32 %v4356_v19, 16 }
  0x78   : > { %3420 = vmatpush3.bf16.msra.mxu1 %v3744_v26  ;;  %3393 = vmatprep.subr.bf16.mxu0 %v3841_v1  ;;  %v3767_v26 = vld [vmem:[%s4709_s1 + $0x238] sm:$0xff]  }
  0x79   : > { %3421 = vmatprep.subr.bf16.mxu1 %v3841_v1  ;;  %3399 = vmatprep.mubr.msk.bf16.mxu0 %vm3842_vm0, %v3841_v1  ;;  %v1538_v28 = vor.u32 %v1537_v30, %v1533_v14  ;;  %v1542_v29 = vrot.slane %v1540_v33, 1  ;;  %v3795_v30 = vld [vmem:[%s4709_s1 + $0x348] sm:$0xff]  }
  0x7a   : > { %3427 = vmatprep.mubr.msk.bf16.mxu1 %vm3842_vm0, %v3841_v1 }
  0x7b   : > { %3394 = vmatpush3.bf16.msra.mxu0 %v3745_v27  ;;  %v3768_v27 = vld [vmem:[%s4709_s1 + $0x278] sm:$0xff]   ;;  %v1543_v32 = vsel %vm226_vm1, %v1538_v28, %v1542_v29 }
  0x7c   : > { %3422 = vmatpush3.bf16.msra.mxu1 %v3746_v31  ;;  %3395 = vmatprep.subr.bf16.mxu0 %v3841_v1  ;;  %v4383_v31 = vcombine.low %v4222_v16, %v1499_v25 }
  0x7d   : > { %3423 = vmatprep.subr.bf16.mxu1 %v3841_v1 }
  0x7e   : > { %v1548_v37 = vshll.u32 %v4383_v31, 16  ;;  %v1691_v14 = vrot.slane %v4383_v31, 1 }
  0x7f   : > { %3396 = vmatpush3.bf16.msra.mxu0 %v3747_v35  ;;  %v3773_v35 = vld [vmem:[%s4709_s1 + $0x2c0] sm:$0xff]  }
  0x80   : > { %3424 = vmatpush3.bf16.msra.mxu1 %v3748_v36  ;;  %3397 = vmatprep.subr.bf16.mxu0 %v3841_v1  ;;  %v1544_v36 = vshrl.u32 %v4356_v19, 16 }
  0x81   : > { %3425 = vmatprep.subr.bf16.mxu1 %v3841_v1 }
  0x82   : > { %v1546_v40 = vor.u32 %v1544_v36, %v1542_v29  ;;  %v1834_v53 = vrot.slane %v1544_v36, 1  ;;  %v3799_v29 = vld [vmem:[%s4709_s1 + $0x318] sm:$0xff]   ;;  %v3802_v36 = vld [vmem:[%s4709_s1 + $0x360] sm:$0xff]  }
  0x83   : > { %3398 = vmatpush3.bf16.msra.mxu0 %v3749_v41  ;;  %v1550_v41 = vrot.slane %v1548_v37, 1 }
  0x84   : > { %3426 = vmatpush3.bf16.msra.mxu1 %v3750_v43  ;;  %3439 = vmatprep.subr.bf16.mxu0 %v3841_v1  ;;  %v1552_v43 = vshrl.u32 %v4383_v31, 16  ;;  %v3800_v31 = vld [vmem:[%s4709_s1 + $0x358] sm:$0xff]  }
  0x85   : > { %3467 = vmatprep.subr.bf16.mxu1 %v3841_v1 }
  0x86   : > { %3400 = vmatmul.mubr.bf16.vlgmr.msra.gmra.mrb[36].mxu0 %v1090_v50  ;;  %v1554_v45 = vor.u32 %v1552_v43, %v1550_v41  ;;  %v3786_v50 = vld [vmem:[%s4709_s1 + $0x2e8] sm:$0xff]  }
  0x87   : > { %3428 = vmatmul.mubr.bf16.vlgmr.msra.gmra.mrb[36].mxu1 %v1237_v51  ;;  %3440 = vmatpush3.bf16.msra.mxu0 %v3752_v47  ;;  %v1827_v47 = vshrl.u32 %v2898_v48, 16  ;;  %v1830_v51 = vshll.u32 %v2898_v48, 16 }
  0x88   : > { %3468 = vmatpush3.bf16.msra.mxu1 %v3753_v52  ;;  %3441 = vmatprep.subr.bf16.mxu0 %v3841_v1  ;;  %v1805_v52 = vld [vmem:[%s3913_s6 + $0x1c] sm:$0x3] }
  0x89   : > { %3469 = vmatprep.subr.bf16.mxu1 %v3841_v1  ;;  %3403 = vmatprep.mubr.msk.bf16.mxu0 %vm3842_vm0, %v3841_v1 }
  0x8a   : > { %3431 = vmatprep.mubr.msk.bf16.mxu1 %vm3842_vm0, %v3841_v1 }
  0x8b   : > { %3442 = vmatpush3.bf16.msra.mxu0 %v3754_v55  ;;  %v3788_v55 = vld [vmem:[%s4709_s1 + $0x2f0] sm:$0xff]  }
  0x8c   : > { %3470 = vmatpush3.bf16.msra.mxu1 %v3755_v57  ;;  %3443 = vmatprep.subr.bf16.mxu0 %v3841_v1  ;;  %v1832_v57 = vrot.slane %v1830_v51, 2 }
  0x8d   : > { %3471 = vmatprep.subr.bf16.mxu1 %v3841_v1 }
  0x8e   : > { %3404 = vmatmul.mubr.bf16.gmra.mrb[40].mxu0 %v1092_v58  ;;  %v2923_v58 = vcombine.low %v4222_v16, %v1805_v52  ;;  %v3822_v16 = vld [vmem:[%s3913_s6 + $0x1c] ss:$0 sps:$4 sm:$0xff]  }
  0x8f   : > { %3444 = vmatpush3.bf16.msra.mxu0 %v3756_v60  ;;  %3432 = vmatmul.mubr.bf16.gmra.mrb[40].mxu1 %v1246_v4  ;;  %v3789_v60 = vld [vmem:[%s4709_s1 + $0x2b8] sm:$0xff]   ;;  %v1689_v4 = vrot.slane %v4356_v19, 1  ;;  %v3793_v19 = vld [vmem:[%s4709_s1 + $0x340] sm:$0xff]  }
  0x90   : > { %3472 = vmatpush3.bf16.msra.mxu1 %v3757_v2  ;;  %3445 = vmatprep.subr.bf16.mxu0 %v3841_v1  ;;  %v1688_v2 = vrot.slane %v2898_v48, 1 }
  0x91   : > { %3473 = vmatprep.subr.bf16.mxu1 %v3841_v1  ;;  %3407 = vmatprep.mubr.msk.bf16.mxu0 %vm3842_vm0, %v3841_v1  ;;  %v1692_v25 = vsel %vm486_vm2, %v1689_v4, %v1691_v14 }
  0x92   : > { %3435 = vmatprep.mubr.msk.bf16.mxu1 %vm3842_vm0, %v3841_v1  ;;  %v1690_v12 = vsel %vm486_vm2, %v1688_v2, %v1689_v4  ;;  %v3824_v2 = vld [vmem:[%s4709_s1 + $0x3e0] sm:$0xff]  }
  0x93   : > { %3446 = vmatpush3.bf16.msra.mxu0 %v3759_v5  ;;  %v3790_v5 = vld [vmem:[%s4709_s1 + $0x2f8] sm:$0xff]  }
  0x94   : > { %3474 = vmatpush3.bf16.msra.mxu1 %v3760_v7  ;;  %3447 = vmatprep.subr.bf16.mxu0 %v3841_v1 }
  0x95   : > { %3475 = vmatprep.subr.bf16.mxu1 %v3841_v1 }
  0x96   : > { %3408 = vmatmul.mubr.bf16.gmra.mrb[44].mxu0 %v1091_v56  ;;  %v1829_v56 = vrot.slane %v1827_v47, 1  ;;  %v3813_v47 = vld [vmem:[%s4709_s1 + $0x3c0] sm:$0xff]  }
  0x97   : > { %3448 = vmatpush3.bf16.msra.mxu0 %v3761_v9  ;;  %3436 = vmatmul.mubr.bf16.gmra.mrb[44].mxu1 %v1245_v59  ;;  %v1835_v59 = vrot.slane %v1540_v33, 2  ;;  %v1839_v9 = vshrl.u32 %v2923_v58, 16 }
  0x98   : > { %3476 = vmatpush3.bf16.msra.mxu1 %v3762_v10  ;;  %3449 = vmatprep.subr.bf16.mxu0 %v3841_v1  ;;  %v1833_v7 = vor.u32 %v1832_v57, %v1829_v56  ;;  %v1842_v10 = vshll.u32 %v2923_v58, 16  ;;  %v3820_v57 = vld [vmem:[%s4709_s1 + $0x398] sm:$0xff]  }
  0x99   : > { %3477 = vmatprep.subr.bf16.mxu1 %v3841_v1  ;;  %3455 = vmatprep.mubr.msk.bf16.mxu0 %vm3842_vm0, %v3841_v1  ;;  %v1836_v8 = vor.u32 %v1835_v59, %v1834_v53  ;;  %v1841_v22 = vrot.slane %v1839_v9, 1  ;;  %v3814_v53 = vld [vmem:[%s4709_s1 + $0x388] sm:$0xff]   ;;  %v3821_v58 = vld [vmem:[%s4709_s1 + $0x3d8] sm:$0xff]  }
  0x9a   : > { %3483 = vmatprep.mubr.msk.bf16.mxu1 %vm3842_vm0, %v3841_v1 }
  0x9b   : > { %3450 = vmatpush3.bf16.msra.mxu0 %v3763_v11  ;;  %v3792_v11 = vld [vmem:[%s4709_s1 + $0x300] sm:$0xff]  }
  0x9c   : > { %3478 = vmatpush3.bf16.msra.mxu1 %v3764_v15  ;;  %3451 = vmatprep.subr.bf16.mxu0 %v3841_v1  ;;  %v1837_v15 = vsel %vm625_vm3, %v1833_v7, %v1836_v8  ;;  %v3826_v7 = vld [vmem:[%s4709_s1 + $0x3e8] sm:$0xff]  }
  0x9d   : > { %3479 = vmatprep.subr.bf16.mxu1 %v3841_v1 }
  0x9f   : > { %3452 = vmatpush3.bf16.msra.mxu0 %v3765_v23  ;;  %v1844_v23 = vrot.slane %v1842_v10, 2 }
  0xa0   : > { %3480 = vmatpush3.bf16.msra.mxu1 %v3766_v24  ;;  %3453 = vmatprep.subr.bf16.mxu0 %v3841_v1  ;;  %v3794_v24 = vld [vmem:[%s4709_s1 + $0x308] sm:$0xff]  }
  0xa1   : > { %3481 = vmatprep.subr.bf16.mxu1 %v3841_v1  ;;  %v1845_v33 = vor.u32 %v1844_v23, %v1841_v22 }
  0xa3   : > { %3454 = vmatpush3.bf16.msra.mxu0 %v3767_v26  ;;  %v3796_v26 = vld [vmem:[%s4709_s1 + $0x310] sm:$0xff]   ;;  %v1846_v28 = vsel %vm625_vm3, %v1836_v8, %v1845_v33 }
  0xa4   : > { %3482 = vmatpush3.bf16.msra.mxu1 %v3768_v27  ;;  %3495 = vmatprep.subr.bf16.mxu0 %v3841_v1  ;;  %v3797_v27 = vld [vmem:[%s4709_s1 + $0x350] sm:$0xff]  }
  0xa5   : > { %3523 = vmatprep.subr.bf16.mxu1 %v3841_v1 }
  0xa6   : > { %3456 = vmatmul.mubr.bf16.vlgmr.msra.gmra.mrb[48].mxu0 %v2844_v3  ;;  %v1551_v3 = vsel %vm226_vm1, %v1546_v40, %v1550_v41  ;;  %v4547_v40 = vld [vmem:[%s3913_s6 + $0x14] sm:$0xff]  }
  0xa7   : > { %3484 = vmatmul.mubr.bf16.vlgmr.msra.gmra.mrb[48].mxu1 %v1543_v32  ;;  %3496 = vmatpush3.bf16.msra.mxu0 %v3772_v34  ;;  %v2094_v34 = vld [vmem:[%s3913_s6 + $0xc] sm:$0xf]  ;;  %v4526_v32 = vld [vmem:[%s3913_s6 + $0x10] sm:$0xf]  ;;  %v2140_v43 = vshll.u32 %v4547_v40, 16  ;;  %v2144_v51 = vshrl.u32 %v4547_v40, 16 }
  0xa8   : > { %3524 = vmatpush3.bf16.msra.mxu1 %v3773_v35  ;;  %3497 = vmatprep.subr.bf16.mxu0 %v3841_v1  ;;  %v3801_v35 = vld [vmem:[%s4709_s1 + $0x320] sm:$0xff]   ;;  %v2975_v37 = vcombine.low %v2094_v34, %v4526_v32  ;;  %v3002_v4 = vcombine.low %v2267_v13, %v4526_v32  ;;  %v3829_v32 = vld [vmem:[%s4709_s1 + $0x3b8] sm:$0xff]  }
  0xa9   : > { %3525 = vmatprep.subr.bf16.mxu1 %v3841_v1  ;;  %3459 = vmatprep.mubr.msk.bf16.mxu0 %vm3842_vm0, %v3841_v1 }
  0xaa   : > { %3487 = vmatprep.mubr.msk.bf16.mxu1 %vm3842_vm0, %v3841_v1  ;;  %v2135_v41 = vshll.u32 %v2975_v37, 16  ;;  %v2427_v8 = vshrl.u32 %v3002_v4, 16  ;;  %v2430_v9 = vshll.u32 %v3002_v4, 16 }
  0xab   : > { %3498 = vmatpush3.bf16.msra.mxu0 %v3774_v38  ;;  %v3803_v38 = vld [vmem:[%s4709_s1 + $0x328] sm:$0xff]  }
  0xac   : > { %3526 = vmatpush3.bf16.msra.mxu1 %v3775_v39  ;;  %3499 = vmatprep.subr.bf16.mxu0 %v3841_v1  ;;  %v3804_v39 = vld [vmem:[%s4709_s1 + $0x368] sm:$0xff]  }
  0xad   : > { %3527 = vmatprep.subr.bf16.mxu1 %v3841_v1 }
  0xae   : > { %3460 = vmatmul.mubr.bf16.gmra.mrb[52].mxu0 %v2845_v21  ;;  %v3783_v21 = vld [vmem:[%s4709_s1 + $0x2a0] sm:$0xff]  }
  0xaf   : > { %3500 = vmatpush3.bf16.msra.mxu0 %v3777_v62  ;;  %3488 = vmatmul.mubr.bf16.gmra.mrb[52].mxu1 %v1551_v3  ;;  %v3805_v62 = vld [vmem:[%s4709_s1 + $0x330] sm:$0xff]   ;;  %v2133_v3 = vshrl.u32 %v2975_v37, 16  ;;  %v3830_v37 = vld [vmem:[%s4709_s1 + $0x3f8] sm:$0xff]  }
  0xb0   : > { %3528 = vmatpush3.bf16.msra.mxu1 %v3778_v63  ;;  %3501 = vmatprep.subr.bf16.mxu0 %v3841_v1  ;;  %v3806_v63 = vld [vmem:[%s4709_s1 + $0x370] sm:$0xff]  }
  0xb1   : > { %3529 = vmatprep.subr.bf16.mxu1 %v3841_v1  ;;  %3463 = vmatprep.mubr.msk.bf16.mxu0 %vm3842_vm0, %v3841_v1 }
  0xb2   : > { %3491 = vmatprep.mubr.msk.bf16.mxu1 %vm3842_vm0, %v3841_v1 }
  0xb3   : > { %3502 = vmatpush3.bf16.msra.mxu0 %v3780_v42  ;;  %v2137_v42 = vrot.slane %v2135_v41, 1 }
  0xb4   : > { %3530 = vmatpush3.bf16.msra.mxu1 %v3781_v44  ;;  %3503 = vmatprep.subr.bf16.mxu0 %v3841_v1  ;;  %v4564_v44 = vld [vmem:[%s3913_s6 + $0x1c] sm:$0xf] }
  0xb5   : > { %3531 = vmatprep.subr.bf16.mxu1 %v3841_v1  ;;  %v4577_v48 = vcombine.low %v4564_v44, %v2099_v17 }
  0xb6   : > { %3464 = vmatmul.mubr.bf16.gmra.mrb[56].mxu0 %v3782_v20  ;;  %v3807_v20 = vld [vmem:[%s4709_s1 + $0x338] sm:$0xff]  }
  0xb7   : > { %3504 = vmatpush3.bf16.msra.mxu0 %v3783_v21  ;;  %3492 = vmatmul.mubr.bf16.gmra.mrb[56].mxu1 %v1554_v45  ;;  %v3808_v21 = vld [vmem:[%s4709_s1 + $0x378] sm:$0xff]   ;;  %v2138_v45 = vor.u32 %v2137_v42, %v2133_v3  ;;  %v2148_v52 = vshll.u32 %v4577_v48, 16  ;;  %v2152_v59 = vshrl.u32 %v4577_v48, 16 }
  0xb8   : > { %3532 = vmatpush3.bf16.msra.mxu1 %v3784_v46  ;;  %3505 = vmatprep.subr.bf16.mxu0 %v3841_v1  ;;  %v2142_v46 = vrot.slane %v2140_v43, 1 }
  0xb9   : > { %3533 = vmatprep.subr.bf16.mxu1 %v3841_v1  ;;  %3511 = vmatprep.mubr.msk.bf16.mxu0 %vm3842_vm0, %v3841_v1  ;;  %v2150_v56 = vrot.slane %v2148_v52, 1 }
  0xba   : > { %3539 = vmatprep.mubr.msk.bf16.mxu1 %vm3842_vm0, %v3841_v1 }
  0xbb   : > { %3506 = vmatpush3.bf16.msra.mxu0 %v3785_v49  ;;  %v3812_v49 = vld [vmem:[%s4709_s1 + $0x380] sm:$0xff]  }
  0xbc   : > { %3534 = vmatpush3.bf16.msra.mxu1 %v3786_v50  ;;  %3507 = vmatprep.subr.bf16.mxu0 %v3841_v1  ;;  %v2143_v50 = vsel %vm226_vm1, %v2138_v45, %v2142_v46 }
  0xbd   : > { %3535 = vmatprep.subr.bf16.mxu1 %v3841_v1 }
  0xbf   : > { %3508 = vmatpush3.bf16.msra.mxu0 %v3787_v54  ;;  %v3815_v54 = vld [vmem:[%s4709_s1 + $0x3c8] sm:$0xff]  }
  0xc0   : > { %3536 = vmatpush3.bf16.msra.mxu1 %v3788_v55  ;;  %3509 = vmatprep.subr.bf16.mxu0 %v3841_v1  ;;  %v2146_v55 = vor.u32 %v2144_v51, %v2142_v46 }
  0xc1   : > { %3537 = vmatprep.subr.bf16.mxu1 %v3841_v1 }
  0xc3   : > { %3510 = vmatpush3.bf16.msra.mxu0 %v3789_v60  ;;  %v2154_v60 = vor.u32 %v2152_v59, %v2150_v56 }
  0xc4   : > { %3538 = vmatpush3.bf16.msra.mxu1 %v3790_v5  ;;  %3551 = vmatprep.subr.bf16.mxu0 %v3841_v1  ;;  %v3825_v5 = vld [vmem:[%s4709_s1 + $0x3a8] sm:$0xff]  }
  0xc5   : > { %3579 = vmatprep.subr.bf16.mxu1 %v3841_v1 }
  0xc6   : > { %3512 = vmatmul.mubr.bf16.vlgmr.msra.gmra.mrb[60].mxu0 %v1690_v12  ;;  %v2405_v12 = vld [vmem:[%s3913_s6 + $0x20] sm:$0x3] }
  0xc7   : > { %3540 = vmatmul.mubr.bf16.vlgmr.msra.gmra.mrb[60].mxu1 %v1837_v15  ;;  %3552 = vmatpush3.bf16.msra.mxu0 %v3792_v11 }
  0xc8   : > { %3580 = vmatpush3.bf16.msra.mxu1 %v3793_v19  ;;  %3553 = vmatprep.subr.bf16.mxu0 %v3841_v1  ;;  %v2434_v19 = vrot.slane %v2144_v51, 1  ;;  %v2291_v51 = vrot.slane %v4577_v48, 1 }
  0xc9   : > { %3581 = vmatprep.subr.bf16.mxu1 %v3841_v1  ;;  %3515 = vmatprep.mubr.msk.bf16.mxu0 %vm3842_vm0, %v3841_v1 }
  0xca   : > { %3543 = vmatprep.mubr.msk.bf16.mxu1 %vm3842_vm0, %v3841_v1 }
  0xcb   : > { %3554 = vmatpush3.bf16.msra.mxu0 %v3794_v24 }
  0xcc   : > { %3582 = vmatpush3.bf16.msra.mxu1 %v3795_v30  ;;  %3555 = vmatprep.subr.bf16.mxu0 %v3841_v1 }
  0xcd   : > { %3583 = vmatprep.subr.bf16.mxu1 %v3841_v1 }
  0xce   : > { %3516 = vmatmul.mubr.bf16.gmra.mrb[64].mxu0 %v1692_v25  ;;  %v3828_v25 = vld [vmem:[%s4709_s1 + $0x3f0] sm:$0xff]  }
  0xcf   : > { %3556 = vmatpush3.bf16.msra.mxu0 %v3796_v26  ;;  %3544 = vmatmul.mubr.bf16.gmra.mrb[64].mxu1 %v1846_v28  ;;  %v2429_v26 = vrot.slane %v2427_v8, 1  ;;  %v2435_v28 = vrot.slane %v2140_v43, 2 }
  0xd0   : > { %3584 = vmatpush3.bf16.msra.mxu1 %v3797_v27  ;;  %3557 = vmatprep.subr.bf16.mxu0 %v3841_v1  ;;  %v2432_v27 = vrot.slane %v2430_v9, 2 }
  0xd1   : > { %3585 = vmatprep.subr.bf16.mxu1 %v3841_v1  ;;  %3519 = vmatprep.mubr.msk.bf16.mxu0 %vm3842_vm0, %v3841_v1 }
  0xd2   : > { %3547 = vmatprep.mubr.msk.bf16.mxu1 %vm3842_vm0, %v3841_v1 }
  0xd3   : > { %3558 = vmatpush3.bf16.msra.mxu0 %v3799_v29  ;;  %v3027_v29 = vcombine.low %v4564_v44, %v2405_v12 }
  0xd4   : > { %3586 = vmatpush3.bf16.msra.mxu1 %v3800_v31  ;;  %3559 = vmatprep.subr.bf16.mxu0 %v3841_v1 }
  0xd5   : > { %3587 = vmatprep.subr.bf16.mxu1 %v3841_v1  ;;  %v2439_v41 = vshrl.u32 %v3027_v29, 16 }
  0xd6   : > { %3520 = vmatmul.mubr.bf16.gmra.mrb[68].mxu0 %v1691_v14  ;;  %v3827_v14 = vld [vmem:[%s4709_s1 + $0x3b0] sm:$0xff]  }
  0xd7   : > { %3560 = vmatpush3.bf16.msra.mxu0 %v3801_v35  ;;  %3548 = vmatmul.mubr.bf16.gmra.mrb[68].mxu1 %v1845_v33  ;;  %v2288_v35 = vrot.slane %v3002_v4, 1  ;;  %v2441_v46 = vrot.slane %v2439_v41, 1 }
  0xd8   : > { %3588 = vmatpush3.bf16.msra.mxu1 %v3802_v36  ;;  %3561 = vmatprep.subr.bf16.mxu0 %v3841_v1  ;;  %v2289_v36 = vrot.slane %v4547_v40, 1 }
  0xd9   : > { %3589 = vmatprep.subr.bf16.mxu1 %v3841_v1  ;;  %3567 = vmatprep.mubr.msk.bf16.mxu0 %vm3842_vm0, %v3841_v1 }
  0xda   : > { %3595 = vmatprep.mubr.msk.bf16.mxu1 %vm3842_vm0, %v3841_v1  ;;  %v2290_v43 = vsel %vm486_vm2, %v2288_v35, %v2289_v36 }
  0xdb   : > { %3562 = vmatpush3.bf16.msra.mxu0 %v3803_v38  ;;  %v2433_v38 = vor.u32 %v2432_v27, %v2429_v26 }
  0xdc   : > { %3590 = vmatpush3.bf16.msra.mxu1 %v3804_v39  ;;  %3563 = vmatprep.subr.bf16.mxu0 %v3841_v1  ;;  %v2436_v39 = vor.u32 %v2435_v28, %v2434_v19 }
  0xdd   : > { %3591 = vmatprep.subr.bf16.mxu1 %v3841_v1 }
  0xdf   : > { %3564 = vmatpush3.bf16.msra.mxu0 %v3805_v62  ;;  %v2442_v62 = vshll.u32 %v3027_v29, 16 }
  0xe0   : > { %3592 = vmatpush3.bf16.msra.mxu1 %v3806_v63  ;;  %3565 = vmatprep.subr.bf16.mxu0 %v3841_v1 }
  0xe1   : > { %3593 = vmatprep.subr.bf16.mxu1 %v3841_v1 }
  0xe3   : > { %3566 = vmatpush3.bf16.msra.mxu0 %v3807_v20  ;;  %v2437_v20 = vsel %vm625_vm3, %v2433_v38, %v2436_v39 }
  0xe4   : > { %3594 = vmatpush3.bf16.msra.mxu1 %v3808_v21  ;;  %3607 = vmatprep.subr.bf16.mxu0 %v3841_v1 }
  0xe5   : > { %3635 = vmatprep.subr.bf16.mxu1 %v3841_v1 }
  0xe6   : > { %3568 = vmatmul.mubr.bf16.vlgmr.msra.gmra.mrb[72].mxu0 %v2948_v6  ;;  %v2151_v6 = vsel %vm226_vm1, %v2146_v55, %v2150_v56  ;;  %v2292_v56 = vsel %vm486_vm2, %v2289_v36, %v2291_v51 }
  0xe7   : > { %3596 = vmatmul.mubr.bf16.vlgmr.msra.gmra.mrb[72].mxu1 %v2143_v50  ;;  %3608 = vmatpush3.bf16.msra.mxu0 %v3812_v49  ;;  %v2444_v49 = vrot.slane %v2442_v62, 2 }
  0xe8   : > { %3636 = vmatpush3.bf16.msra.mxu1 %v3813_v47  ;;  %3609 = vmatprep.subr.bf16.mxu0 %v3841_v1 }
  0xe9   : > { %3637 = vmatprep.subr.bf16.mxu1 %v3841_v1  ;;  %3571 = vmatprep.mubr.msk.bf16.mxu0 %vm3842_vm0, %v3841_v1  ;;  %v2445_v52 = vor.u32 %v2444_v49, %v2441_v46 }
  0xea   : > { %3599 = vmatprep.mubr.msk.bf16.mxu1 %vm3842_vm0, %v3841_v1 }
  0xeb   : > { %3610 = vmatpush3.bf16.msra.mxu0 %v3814_v53 }
  0xec   : > { %3638 = vmatpush3.bf16.msra.mxu1 %v3815_v54  ;;  %3611 = vmatprep.subr.bf16.mxu0 %v3841_v1 }
  0xed   : > { %3639 = vmatprep.subr.bf16.mxu1 %v3841_v1 }
  0xee   : > { %3572 = vmatmul.mubr.bf16.gmra.mrb[76].mxu0 %v2949_v18  ;;  %v3823_v18 = vld [vmem:[%s4709_s1 + $0x3a0] sm:$0xff]  }
  0xef   : > { %3612 = vmatpush3.bf16.msra.mxu0 %v3817_v61  ;;  %3600 = vmatmul.mubr.bf16.gmra.mrb[76].mxu1 %v2151_v6 }
  0xf0   : > { %3640 = vmatpush3.bf16.msra.mxu1 %v3818_v0  ;;  %3613 = vmatprep.subr.bf16.mxu0 %v3841_v1 }
  0xf1   : > { %3641 = vmatprep.subr.bf16.mxu1 %v3841_v1  ;;  %3575 = vmatprep.mubr.msk.bf16.mxu0 %vm3842_vm0, %v3841_v1 }
  0xf2   : > { %3603 = vmatprep.mubr.msk.bf16.mxu1 %vm3842_vm0, %v3841_v1 }
  0xf3   : > { %3614 = vmatpush3.bf16.msra.mxu0 %v3820_v57  ;;  %v2446_v57 = vsel %vm625_vm3, %v2436_v39, %v2445_v52 }
  0xf4   : > { %3642 = vmatpush3.bf16.msra.mxu1 %v3821_v58  ;;  %3615 = vmatprep.subr.bf16.mxu0 %v3841_v1 }
  0xf5   : > { %3643 = vmatprep.subr.bf16.mxu1 %v3841_v1 }
  0xf6   : > { %3576 = vmatmul.mubr.bf16.gmra.mrb[80].mxu0 %v3822_v16 }
  0xf7   : > { %3616 = vmatpush3.bf16.msra.mxu0 %v3823_v18  ;;  %3604 = vmatmul.mubr.bf16.gmra.mrb[80].mxu1 %v2154_v60 }
  0xf8   : > { %3644 = vmatpush3.bf16.msra.mxu1 %v3824_v2  ;;  %3617 = vmatprep.subr.bf16.mxu0 %v3841_v1 }
  0xf9   : > { %v335_v10 = vpop.f32.mrb[0].mxu0  ;;  %3645 = vmatprep.subr.bf16.mxu1 %v3841_v1  ;;  %3623 = vmatprep.mubr.msk.bf16.mxu0 %vm3842_vm0, %v3841_v1 }
  0xfa   : > { %v443_v11 = vpop.f32.mrb[0].mxu1  ;;  %v3233_v15 = vpop.f32.mrb[1].mxu0  ;;  %3651 = vmatprep.mubr.msk.bf16.mxu1 %vm3842_vm0, %v3841_v1 }
  0xfb   : > { %v4655_v22 = vadd.f32 %v443_v11, %v335_v10  ;;  %v3261_v23 = vpop.f32.mrb[1].mxu1  ;;  %v338_v24 = vpop.f32.mrb[2].mxu0  ;;  %3618 = vmatpush3.bf16.msra.mxu0 %v3825_v5 }
  0xfc   : > { %v446_v30 = vpop.f32.mrb[2].mxu1  ;;  %3646 = vmatpush3.bf16.msra.mxu1 %v3826_v7  ;;  %v3234_v33 = vpop.f32.mrb[3].mxu0  ;;  %3619 = vmatprep.subr.bf16.mxu0 %v3841_v1 }
  0xfd   : > { %v447_v31 = vadd.f32 %v446_v30, %v338_v24  ;;  %v3262_v34 = vpop.f32.mrb[3].mxu1  ;;  %3647 = vmatprep.subr.bf16.mxu1 %v3841_v1 }
  0xff   : > { %3620 = vmatpush3.bf16.msra.mxu0 %v3827_v14 }
 0x100   : > { %3648 = vmatpush3.bf16.msra.mxu1 %v3828_v25  ;;  %3621 = vmatprep.subr.bf16.mxu0 %v3841_v1 }
 0x101   : > { %3649 = vmatprep.subr.bf16.mxu1 %v3841_v1  ;;  %v343_v63 = vpop.f32.mrb[4].mxu0 }
 0x102   : > { %v3237_v3 = vpop.f32.mrb[5].mxu0  ;;  %v451_v42 = vpop.f32.mrb[4].mxu1 }
 0x103   : > { %3622 = vmatpush3.bf16.msra.mxu0 %v3829_v32  ;;  %v452_v40 = vadd.f32 %v451_v42, %v343_v63  ;;  %v346_v44 = vpop.f32.mrb[6].mxu0  ;;  %v3265_v17 = vpop.f32.mrb[5].mxu1 }
 0x104   : > { %3650 = vmatpush3.bf16.msra.mxu1 %v3830_v37  ;;  %v3238_v21 = vpop.f32.mrb[7].mxu0  ;;  %v454_v45 = vpop.f32.mrb[6].mxu1 }
 0x105   : > { %v455_v50 = vadd.f32 %v454_v45, %v346_v44  ;;  %v3266_v47 = vpop.f32.mrb[7].mxu1 }
 0x106   : > { %3624 = vmatmul.mubr.bf16.vlgmr.msra.gmra.mrb[84].mxu0 %v2290_v43 }
 0x107   : > { %3652 = vmatmul.mubr.bf16.vlgmr.msra.gmra.mrb[84].mxu1 %v2437_v20  ;;  %3627 = vmatprep.mubr.msk.bf16.mxu0 %vm3842_vm0, %v3841_v1 }
 0x108   : > { %3655 = vmatprep.mubr.msk.bf16.mxu1 %vm3842_vm0, %v3841_v1 }
 0x109   : > { %v351_v53 = vpop.f32.mrb[8].mxu0 }
 0x10a   : > { %v3241_v54 = vpop.f32.mrb[9].mxu0  ;;  %v459_v55 = vpop.f32.mrb[8].mxu1 }
 0x10b   : > { %v354_v61 = vpop.f32.mrb[10].mxu0  ;;  %v460_v0 = vadd.f32 %v459_v55, %v351_v53  ;;  %v3269_v6 = vpop.f32.mrb[9].mxu1 }
 0x10c   : > { %v3242_v59 = vpop.f32.mrb[11].mxu0  ;;  %v462_v58 = vpop.f32.mrb[10].mxu1 }
 0x10d   : > { %v3270_v13 = vpop.f32.mrb[11].mxu1 }
 0x10e   : > { %3628 = vmatmul.mubr.bf16.gmra.mrb[88].mxu0 %v2292_v56 }
 0x10f   : > { %3656 = vmatmul.mubr.bf16.gmra.mrb[88].mxu1 %v2446_v57  ;;  %3631 = vmatprep.mubr.msk.bf16.mxu0 %vm3842_vm0, %v3841_v1 }
 0x110   : > { %3659 = vmatprep.mubr.msk.bf16.mxu1 %vm3842_vm0, %v3841_v1 }
 0x116   : > { %3632 = vmatmul.mubr.bf16.gmra.mrb[92].mxu0 %v2291_v51 }
 0x117   : > { %3660 = vmatmul.mubr.bf16.gmra.mrb[92].mxu1 %v2445_v52 }
 0x119   : > { %v577_v48 = vpop.f32.mrb[12].mxu0 }
 0x11a   : > { %v599_v16 = vadd.f32 %v577_v48, %v4655_v22  ;;  %v732_v18 = vpop.f32.mrb[12].mxu1  ;;  %v3289_v60 = vpop.f32.mrb[13].mxu0 }
 0x11b   : > { %v3317_v2 = vpop.f32.mrb[13].mxu1  ;;  %v580_v4 = vpop.f32.mrb[14].mxu0 }
 0x11c   : > { %v754_v5 = vadd.f32 %v732_v18, %v599_v16  ;;  %v600_v7 = vadd.f32 %v580_v4, %v447_v31  ;;  %v735_v8 = vpop.f32.mrb[14].mxu1  ;;  %v3290_v9 = vpop.f32.mrb[15].mxu0 }
 0x11d   : > { %v3318_v10 = vpop.f32.mrb[15].mxu1 }
 0x11e   : > { %v755_v12 = vadd.f32 %v735_v8, %v600_v7 }
 0x121   : > { %v585_v11 = vpop.f32.mrb[16].mxu0 }
 0x122   : > { %v601_v15 = vadd.f32 %v585_v11, %v452_v40  ;;  %v3293_v19 = vpop.f32.mrb[17].mxu0  ;;  %v740_v23 = vpop.f32.mrb[16].mxu1 }
 0x123   : > { %v588_v1 = vpop.f32.mrb[18].mxu0  ;;  %v3321_v24 = vpop.f32.mrb[17].mxu1 }
 0x124   : > { %v602_v14 = vadd.f32 %v588_v1, %v455_v50  ;;  %v756_v30 = vadd.f32 %v740_v23, %v601_v15  ;;  %v743_v33 = vpop.f32.mrb[18].mxu1  ;;  %v3294_v22 = vpop.f32.mrb[19].mxu0 }
 0x125   : > { %v3322_v25 = vpop.f32.mrb[19].mxu1 }
 0x126   : > { %v757_v26 = vadd.f32 %v743_v33, %v602_v14 }
 0x129   : > { %v593_v27 = vpop.f32.mrb[20].mxu0 }
 0x12a   : > { %v603_v28 = vadd.f32 %v593_v27, %v460_v0  ;;  %v748_v29 = vpop.f32.mrb[20].mxu1  ;;  %v3297_v31 = vpop.f32.mrb[21].mxu0 }
 0x12b   : > { %v596_v34 = vpop.f32.mrb[22].mxu0  ;;  %v3325_v32 = vpop.f32.mrb[21].mxu1 }
 0x12c   : > { %v758_v35 = vadd.f32 %v748_v29, %v603_v28  ;;  %v3298_v36 = vpop.f32.mrb[23].mxu0  ;;  %v751_v37 = vpop.f32.mrb[22].mxu1 }
 0x12d   : > { %v3326_v38 = vpop.f32.mrb[23].mxu1 }
 0x139   : > { %v867_v39 = vpop.f32.mrb[24].mxu0 }
 0x13a   : > { %v889_v41 = vadd.f32 %v867_v39, %v754_v5  ;;  %v1040_v62 = vpop.f32.mrb[24].mxu1  ;;  %v3345_v63 = vpop.f32.mrb[25].mxu0 }
 0x13b   : > { %v3373_v3 = vpop.f32.mrb[25].mxu1  ;;  %v870_v42 = vpop.f32.mrb[26].mxu0 }
 0x13c   : > { %v1062_v43 = vadd.f32 %v1040_v62, %v889_v41  ;;  %v890_v40 = vadd.f32 %v870_v42, %v755_v12  ;;  %v1043_v44 = vpop.f32.mrb[26].mxu1  ;;  %v3346_v17 = vpop.f32.mrb[27].mxu0 }
 0x13d   : > { %v3374_v20 = vpop.f32.mrb[27].mxu1 }
 0x13e   : > { %v1063_v21 = vadd.f32 %v1043_v44, %v890_v40 }
 0x141   : > { %v875_v45 = vpop.f32.mrb[28].mxu0 }
 0x142   : > { %v891_v46 = vadd.f32 %v875_v45, %v756_v30  ;;  %v3349_v49 = vpop.f32.mrb[29].mxu0  ;;  %v1048_v50 = vpop.f32.mrb[28].mxu1 }
 0x143   : > { %v878_v47 = vpop.f32.mrb[30].mxu0  ;;  %v3377_v51 = vpop.f32.mrb[29].mxu1 }
 0x144   : > { %v892_v52 = vadd.f32 %v878_v47, %v757_v26  ;;  %v1064_v53 = vadd.f32 %v1048_v50, %v891_v46  ;;  %v1051_v54 = vpop.f32.mrb[30].mxu1  ;;  %v3350_v55 = vpop.f32.mrb[31].mxu0 }
 0x145   : > { %v3378_v56 = vpop.f32.mrb[31].mxu1 }
 0x146   : > { %v1065_v61 = vadd.f32 %v1051_v54, %v892_v52 }
 0x149   : > { %v883_v0 = vpop.f32.mrb[32].mxu0 }
 0x14a   : > { %v893_v6 = vadd.f32 %v883_v0, %v758_v35  ;;  %v1056_v57 = vpop.f32.mrb[32].mxu1  ;;  %v3353_v59 = vpop.f32.mrb[33].mxu0 }
 0x14b   : > { %v886_v58 = vpop.f32.mrb[34].mxu0  ;;  %v3381_v13 = vpop.f32.mrb[33].mxu1 }
 0x14c   : > { %v1066_v48 = vadd.f32 %v1056_v57, %v893_v6  ;;  %v3354_v16 = vpop.f32.mrb[35].mxu0  ;;  %v1059_v18 = vpop.f32.mrb[34].mxu1 }
 0x14d   : > { %v3382_v60 = vpop.f32.mrb[35].mxu1 }
 0x159   : > { %v1178_v2 = vpop.f32.mrb[36].mxu0 }
 0x15a   : > { %v1200_v4 = vadd.f32 %v1178_v2, %v1062_v43  ;;  %v1332_v5 = vpop.f32.mrb[36].mxu1  ;;  %v3401_v7 = vpop.f32.mrb[37].mxu0 }
 0x15b   : > { %v3429_v8 = vpop.f32.mrb[37].mxu1  ;;  %v1181_v9 = vpop.f32.mrb[38].mxu0 }
 0x15c   : > { %v1354_v10 = vadd.f32 %v1332_v5, %v1200_v4  ;;  %v1201_v12 = vadd.f32 %v1181_v9, %v1063_v21  ;;  %v1335_v11 = vpop.f32.mrb[38].mxu1  ;;  %v3402_v15 = vpop.f32.mrb[39].mxu0 }
 0x15d   : > { %v3430_v19 = vpop.f32.mrb[39].mxu1 }
 0x15e   : > { %v1355_v23 = vadd.f32 %v1335_v11, %v1201_v12 }
 0x161   : > { %v1186_v1 = vpop.f32.mrb[40].mxu0 }
 0x162   : > { %v1202_v24 = vadd.f32 %v1186_v1, %v1064_v53  ;;  %v3405_v14 = vpop.f32.mrb[41].mxu0  ;;  %v1340_v30 = vpop.f32.mrb[40].mxu1 }
 0x163   : > { %v1189_v33 = vpop.f32.mrb[42].mxu0  ;;  %v3433_v22 = vpop.f32.mrb[41].mxu1 }
 0x164   : > { %v1203_v25 = vadd.f32 %v1189_v33, %v1065_v61  ;;  %v1356_v26 = vadd.f32 %v1340_v30, %v1202_v24  ;;  %v1343_v27 = vpop.f32.mrb[42].mxu1  ;;  %v3406_v28 = vpop.f32.mrb[43].mxu0 }
 0x165   : > { %v3434_v29 = vpop.f32.mrb[43].mxu1 }
 0x166   : > { %v1357_v31 = vadd.f32 %v1343_v27, %v1203_v25 }
 0x169   : > { %v1194_v34 = vpop.f32.mrb[44].mxu0 }
 0x16a   : > { %v1204_v32 = vadd.f32 %v1194_v34, %v1066_v48  ;;  %v1348_v35 = vpop.f32.mrb[44].mxu1  ;;  %v3409_v36 = vpop.f32.mrb[45].mxu0 }
 0x16b   : > { %v1197_v37 = vpop.f32.mrb[46].mxu0  ;;  %v3437_v38 = vpop.f32.mrb[45].mxu1 }
 0x16c   : > { %v1358_v39 = vadd.f32 %v1348_v35, %v1204_v32  ;;  %v3410_v41 = vpop.f32.mrb[47].mxu0  ;;  %v1351_v62 = vpop.f32.mrb[46].mxu1 }
 0x16d   : > { %v3438_v63 = vpop.f32.mrb[47].mxu1 }
 0x179   : > { %v1467_v3 = vpop.f32.mrb[48].mxu0 }
 0x17a   : > { %v1489_v42 = vadd.f32 %v1467_v3, %v1354_v10  ;;  %v1640_v43 = vpop.f32.mrb[48].mxu1  ;;  %v3457_v40 = vpop.f32.mrb[49].mxu0 }
 0x17b   : > { %v3485_v44 = vpop.f32.mrb[49].mxu1  ;;  %v1470_v17 = vpop.f32.mrb[50].mxu0 }
 0x17c   : > { %v1662_v20 = vadd.f32 %v1640_v43, %v1489_v42  ;;  %v1490_v21 = vadd.f32 %v1470_v17, %v1355_v23  ;;  %v1643_v45 = vpop.f32.mrb[50].mxu1  ;;  %v3458_v46 = vpop.f32.mrb[51].mxu0 }
 0x17d   : > { %v3486_v49 = vpop.f32.mrb[51].mxu1 }
 0x17e   : > { %v1663_v50 = vadd.f32 %v1643_v45, %v1490_v21 }
 0x181   : > { %v1475_v47 = vpop.f32.mrb[52].mxu0 }
 0x182   : > { %v1491_v51 = vadd.f32 %v1475_v47, %v1356_v26  ;;  %v3461_v52 = vpop.f32.mrb[53].mxu0  ;;  %v1648_v53 = vpop.f32.mrb[52].mxu1 }
 0x183   : > { %v1478_v54 = vpop.f32.mrb[54].mxu0  ;;  %v3489_v55 = vpop.f32.mrb[53].mxu1 }
 0x184   : > { %v1492_v56 = vadd.f32 %v1478_v54, %v1357_v31  ;;  %v1664_v61 = vadd.f32 %v1648_v53, %v1491_v51  ;;  %v1651_v0 = vpop.f32.mrb[54].mxu1  ;;  %v3462_v6 = vpop.f32.mrb[55].mxu0 }
 0x185   : > { %v3490_v57 = vpop.f32.mrb[55].mxu1 }
 0x186   : > { %v1665_v59 = vadd.f32 %v1651_v0, %v1492_v56 }
 0x189   : > { %v1483_v58 = vpop.f32.mrb[56].mxu0 }
 0x18a   : > { %v1493_v13 = vadd.f32 %v1483_v58, %v1358_v39  ;;  %v1656_v48 = vpop.f32.mrb[56].mxu1  ;;  %v3465_v16 = vpop.f32.mrb[57].mxu0 }
 0x18b   : > { %v1486_v18 = vpop.f32.mrb[58].mxu0  ;;  %v3493_v60 = vpop.f32.mrb[57].mxu1 }
 0x18c   : > { %v1666_v2 = vadd.f32 %v1656_v48, %v1493_v13  ;;  %v3466_v4 = vpop.f32.mrb[59].mxu0  ;;  %v1659_v5 = vpop.f32.mrb[58].mxu1 }
 0x18d   : > { %v3494_v7 = vpop.f32.mrb[59].mxu1 }
 0x199   : > { %v1778_v8 = vpop.f32.mrb[60].mxu0 }
 0x19a   : > { %v1800_v9 = vadd.f32 %v1778_v8, %v1662_v20  ;;  %v1932_v10 = vpop.f32.mrb[60].mxu1  ;;  %v3513_v12 = vpop.f32.mrb[61].mxu0 }
 0x19b   : > { %v3541_v11 = vpop.f32.mrb[61].mxu1  ;;  %v1781_v15 = vpop.f32.mrb[62].mxu0 }
 0x19c   : > { %v1954_v19 = vadd.f32 %v1932_v10, %v1800_v9  ;;  %v1801_v23 = vadd.f32 %v1781_v15, %v1663_v50  ;;  %v1935_v1 = vpop.f32.mrb[62].mxu1  ;;  %v3514_v24 = vpop.f32.mrb[63].mxu0 }
 0x19d   : > { %v3542_v14 = vpop.f32.mrb[63].mxu1 }
 0x19e   : > { %v1955_v30 = vadd.f32 %v1935_v1, %v1801_v23  ;;  %v3036_v1 = vld [vmem:[%s4710_s2] ss:$0 sm:$0xff] }
 0x1a1   : > { %v1786_v33 = vpop.f32.mrb[64].mxu0 }
 0x1a2   : > { %v1802_v22 = vadd.f32 %v1786_v33, %v1664_v61  ;;  %v3517_v25 = vpop.f32.mrb[65].mxu0  ;;  %v1940_v26 = vpop.f32.mrb[64].mxu1 }
 0x1a3   : > { %v1789_v27 = vpop.f32.mrb[66].mxu0  ;;  %v3545_v28 = vpop.f32.mrb[65].mxu1 }
 0x1a4   : > { %v1803_v29 = vadd.f32 %v1789_v27, %v1665_v59  ;;  %v1956_v31 = vadd.f32 %v1940_v26, %v1802_v22  ;;  %v1943_v34 = vpop.f32.mrb[66].mxu1  ;;  %v3518_v32 = vpop.f32.mrb[67].mxu0 }
 0x1a5   : > { %v3546_v35 = vpop.f32.mrb[67].mxu1 }
 0x1a6   : > { %v1957_v36 = vadd.f32 %v1943_v34, %v1803_v29 }
 0x1a9   : > { %v1794_v37 = vpop.f32.mrb[68].mxu0 }
 0x1aa   : > { %v1804_v38 = vadd.f32 %v1794_v37, %v1666_v2  ;;  %v1948_v39 = vpop.f32.mrb[68].mxu1  ;;  %v3521_v41 = vpop.f32.mrb[69].mxu0 }
 0x1ab   : > { %v1797_v62 = vpop.f32.mrb[70].mxu0  ;;  %v3549_v63 = vpop.f32.mrb[69].mxu1 }
 0x1ac   : > { %v1958_v3 = vadd.f32 %v1948_v39, %v1804_v38  ;;  %v3522_v42 = vpop.f32.mrb[71].mxu0  ;;  %v1951_v43 = vpop.f32.mrb[70].mxu1 }
 0x1ad   : > { %v3550_v40 = vpop.f32.mrb[71].mxu1 }
 0x1b9   : > { %v2067_v44 = vpop.f32.mrb[72].mxu0 }
 0x1ba   : > { %v2089_v17 = vadd.f32 %v2067_v44, %v1954_v19  ;;  %v2240_v20 = vpop.f32.mrb[72].mxu1  ;;  %v3569_v21 = vpop.f32.mrb[73].mxu0 }
 0x1bb   : > { %v3597_v45 = vpop.f32.mrb[73].mxu1  ;;  %v2070_v46 = vpop.f32.mrb[74].mxu0 }
 0x1bc   : > { %v2262_v49 = vadd.f32 %v2240_v20, %v2089_v17  ;;  %v2090_v50 = vadd.f32 %v2070_v46, %v1955_v30  ;;  %v2243_v47 = vpop.f32.mrb[74].mxu1  ;;  %v3570_v51 = vpop.f32.mrb[75].mxu0 }
 0x1bd   : > { %v3598_v52 = vpop.f32.mrb[75].mxu1 }
 0x1be   : > { %v2263_v53 = vadd.f32 %v2243_v47, %v2090_v50 }
 0x1c1   : > { %v2075_v54 = vpop.f32.mrb[76].mxu0 }
 0x1c2   : > { %v2091_v55 = vadd.f32 %v2075_v54, %v1956_v31  ;;  %v3573_v56 = vpop.f32.mrb[77].mxu0  ;;  %v2248_v61 = vpop.f32.mrb[76].mxu1 }
 0x1c3   : > { %v2078_v0 = vpop.f32.mrb[78].mxu0  ;;  %v3601_v6 = vpop.f32.mrb[77].mxu1 }
 0x1c4   : > { %v2092_v57 = vadd.f32 %v2078_v0, %v1957_v36  ;;  %v2264_v59 = vadd.f32 %v2248_v61, %v2091_v55  ;;  %v2251_v58 = vpop.f32.mrb[78].mxu1  ;;  %v3574_v13 = vpop.f32.mrb[79].mxu0 }
 0x1c5   : > { %v3602_v48 = vpop.f32.mrb[79].mxu1 }
 0x1c6   : > { %v2265_v16 = vadd.f32 %v2251_v58, %v2092_v57 }
 0x1c9   : > { %v2083_v18 = vpop.f32.mrb[80].mxu0 }
 0x1ca   : > { %v2093_v60 = vadd.f32 %v2083_v18, %v1958_v3  ;;  %v2256_v2 = vpop.f32.mrb[80].mxu1  ;;  %v3577_v4 = vpop.f32.mrb[81].mxu0 }
 0x1cb   : > { %v2086_v5 = vpop.f32.mrb[82].mxu0  ;;  %v3605_v7 = vpop.f32.mrb[81].mxu1 }
 0x1cc   : > { %v2266_v8 = vadd.f32 %v2256_v2, %v2093_v60  ;;  %v3578_v9 = vpop.f32.mrb[83].mxu0  ;;  %v2259_v10 = vpop.f32.mrb[82].mxu1 }
 0x1cd   : > { %v3606_v12 = vpop.f32.mrb[83].mxu1 }
 0x1d9   : > { %v2378_v11 = vpop.f32.mrb[84].mxu0 }
 0x1da   : > { %v2400_v15 = vadd.f32 %v2378_v11, %v2262_v49  ;;  %v2532_v19 = vpop.f32.mrb[84].mxu1  ;;  %v3625_v23 = vpop.f32.mrb[85].mxu0 }
 0x1db   : > { %v3653_v24 = vpop.f32.mrb[85].mxu1  ;;  %v2381_v14 = vpop.f32.mrb[86].mxu0 }
 0x1dc   : > { %v2554_v30 = vadd.f32 %v2532_v19, %v2400_v15  ;;  %v2401_v33 = vadd.f32 %v2381_v14, %v2263_v53  ;;  %v2535_v22 = vpop.f32.mrb[86].mxu1  ;;  %v3626_v25 = vpop.f32.mrb[87].mxu0 }
 0x1dd   : > { %v3654_v26 = vpop.f32.mrb[87].mxu1 }
 0x1de   : > { %v2566_v27 = vadd.f32 %v3036_v1, %v2554_v30  ;;  %v2555_v28 = vadd.f32 %v2535_v22, %v2401_v33 }
 0x1e0   : > { %2571 = vst [vmem:[%s4698_s11] sm:$0xff] %v2566_v27  ;;  %v2567_v29 = vadd.f32 %v3036_v1, %v2555_v28 }
 0x1e1   : > { %v2386_v31 = vpop.f32.mrb[88].mxu0 }
 0x1e2   : > { %2572 = vst [vmem:[%s4698_s11 + $0x8] sm:$0xff] %v2567_v29  ;;  %v2402_v34 = vadd.f32 %v2386_v31, %v2264_v59  ;;  %v2540_v32 = vpop.f32.mrb[88].mxu1  ;;  %v3629_v35 = vpop.f32.mrb[89].mxu0 }
 0x1e3   : > { %v3657_v36 = vpop.f32.mrb[89].mxu1  ;;  %v2389_v37 = vpop.f32.mrb[90].mxu0 }
 0x1e4   : > { %v2556_v38 = vadd.f32 %v2540_v32, %v2402_v34  ;;  %v2403_v39 = vadd.f32 %v2389_v37, %v2265_v16  ;;  %v2543_v41 = vpop.f32.mrb[90].mxu1  ;;  %v3630_v62 = vpop.f32.mrb[91].mxu0 }
 0x1e5   : > { %v3658_v63 = vpop.f32.mrb[91].mxu1 }
 0x1e6   : > { %v2568_v3 = vadd.f32 %v3036_v1, %v2556_v38  ;;  %v2557_v42 = vadd.f32 %v2543_v41, %v2403_v39 }
 0x1e8   : > { %2573 = vst [vmem:[%s4698_s11 + $0x10] sm:$0xff] %v2568_v3  ;;  %v2569_v43 = vadd.f32 %v3036_v1, %v2557_v42 }
 0x1e9   : > { %v2394_v40 = vpop.f32.mrb[92].mxu0 }
 0x1ea   : > { %2574 = vst [vmem:[%s4698_s11 + $0x18] sm:$0xff] %v2569_v43  ;;  %v2404_v44 = vadd.f32 %v2394_v40, %v2266_v8  ;;  %v2548_v17 = vpop.f32.mrb[92].mxu1  ;;  %v3633_v20 = vpop.f32.mrb[93].mxu0 }
 0x1eb   : > { %v3661_v21 = vpop.f32.mrb[93].mxu1  ;;  %v2397_v45 = vpop.f32.mrb[94].mxu0 }
 0x1ec   : > { %v2558_v46 = vadd.f32 %v2548_v17, %v2404_v44  ;;  %v2551_v49 = vpop.f32.mrb[94].mxu1  ;;  %v3634_v50 = vpop.f32.mrb[95].mxu0 }
 0x1ed   : > { %v3662_v47 = vpop.f32.mrb[95].mxu1 }
 0x1ee   : > { %v2570_v51 = vadd.f32 %v3036_v1, %v2558_v46 }
 0x1f0   : > { %2575 = vst [vmem:[%s4698_s11 + $0x20] sm:$0xff] %v2570_v51 }
 0x1f1 PF: > { %s13_s12 = sadd.s32 1, %s3839_s12  }
 0x1f2   : > { %p10_p4 = scmp.ge.s32.totalorder %s13_s12, 4  }
 0x1f4   :  { %12 = sbr.rel (!%p10_p4) target bundleno = 1 (0x1), region = 77 }

</bundles_post_ra>
